<compile_context>
chip_gen: v7x
topology: tpu7x:2x2x1
jax: 0.10.0
libtpu: 0.0.40
codegen_flags: <defaults>
</compile_context>

<pallas_src>
import jax
import jax.numpy as jnp
from jax.experimental import pallas as pl
from jax.experimental.pallas import tpu as pltpu


def conv_block_kernel(x_ref, w_ref, b_ref, o_ref, s_ref, acc_ref, mid_ref):
    """Fused ConvBlock forward.

    x_ref:   [B, H+2, W+2, Cp]      spatially + channel padded input (NHWC)
    w_ref:   [2, 9, Cp, Cp]         per-layer, per-tap (t = ky*3+kx) weights,
                                    WSConv2d scale folded in
    b_ref:   [2, 1, Cp]             per-layer bias (channel padded)
    o_ref:   [B, H, W, Cp]          output (channel padded)
    s_ref:   [B*(H+2)*W + 2W, Cp]   kx-shifted flat source + zero row margins
    acc_ref: [B*(H+2)*W, Cp]        f32 accumulator (padded-height frame)
    mid_ref: [B, H+2, W+2, Cp]      re-padded intermediate activation

    Assumes W is a multiple of 8 (sublane-aligned ky shifts / free reshapes).
    """
    B, Hp2, Wp2, Cp = x_ref.shape
    H, W = Hp2 - 2, Wp2 - 2
    R = B * Hp2 * W                       # rows of the padded-height frame

    # Zero the top/bottom row margins of the shift scratch once: they act as the
    # "virtual row above/below" read by the ky=0 / ky=2 taps of the edge rows
    # (those outputs are border rows and are dropped anyway).
    zeros_margin = jnp.zeros((W, Cp), dtype=s_ref.dtype)
    s_ref[pl.ds(0, W), :] = zeros_margin
    s_ref[pl.ds(W + R, W), :] = zeros_margin
    # Zero the intermediate scratch once so its border provides conv padding=1
    # for the second layer.
    mid_ref[...] = jnp.zeros_like(mid_ref)

    def ws_conv3x3_leaky(src_ref, layer):
        for kx in range(3):
            # One sublane-shuffle copy per kx: (padded-height, valid-width) image,
            # flattened. 16 % 8 == 0 keeps the reshape layout preserving.
            s_ref[pl.ds(W, R), :] = src_ref[:, :, kx:kx + W, :].reshape(R, Cp)
            for ky in range(3):
                # ky shift == tile-aligned row offset into s_ref (pure addressing).
                contrib = jnp.dot(
                    s_ref[pl.ds(ky * W, R), :],
                    w_ref[layer, ky * 3 + kx],
                    preferred_element_type=jnp.float32)
                if kx == 0 and ky == 0:
                    acc_ref[...] = contrib
                else:
                    acc_ref[...] += contrib
        y = acc_ref[...] + b_ref[layer]          # [R, Cp] + [1, Cp] broadcast
        y = jnp.maximum(y, 0.2 * y)              # LeakyReLU(0.2)
        return y.reshape(B, Hp2, W, Cp)

    # Layer 1: WSConv2d + LeakyReLU. Write only the valid rows into the zeroed,
    # re-padded scratch (borders stay zero => implicit padding=1 for layer 2).
    y1 = ws_conv3x3_leaky(x_ref, 0)
    mid_ref[:, 1:H + 1, 1:W + 1, :] = y1[:, 1:H + 1]

    # Layer 2: WSConv2d + LeakyReLU. Keep only the valid rows.
    y2 = ws_conv3x3_leaky(mid_ref, 1)
    o_ref[...] = y2[:, 1:H + 1].astype(o_ref.dtype)


def _round_up(n, m):
    return ((n + m - 1) // m) * m


def conv_block(x, w1, b1, w2, b2):
    """ConvBlock forward with PyTorch semantics.

    x:  [B, C_in, H, W] (NCHW); w1: [C_out, C_in, 3, 3]; b1: [C_out];
    w2: [C_out, C_out, 3, 3]; b2: [C_out].  Returns [B, C_out, H, W].
    """
    B, C_in, H, W = x.shape
    C_out = w1.shape[0]
    Cp = _round_up(max(C_in, C_out), 128)      # lane-dense channel padding

    # NHWC, zero-pad spatially by 1 (conv padding=1) and channels to Cp.
    x_nhwc = jnp.transpose(x, (0, 2, 3, 1)).astype(jnp.float32)
    x_pad = jnp.pad(x_nhwc, ((0, 0), (1, 1), (1, 1), (0, Cp - C_in)))

    def prep(w, b):
        c_out, c_in, k = w.shape[0], w.shape[1], w.shape[2]
        # Same expression (and operator precedence) as the PyTorch WSConv2d code.
        scale = (2.0 / c_in * k ** 2) ** 0.5
        # [C_out, C_in, kH, kW] -> [kH, kW, C_in, C_out] -> [k*k, C_in, C_out]
        wt = jnp.transpose(w * scale, (2, 3, 1, 0)).reshape(k * k, c_in, c_out)
        wt = jnp.pad(wt, ((0, 0), (0, Cp - c_in), (0, Cp - c_out)))
        bp = jnp.pad(b, (0, Cp - c_out)).reshape(1, Cp)
        return wt.astype(jnp.float32), bp.astype(jnp.float32)

    w1p, b1p = prep(w1, b1)
    w2p, b2p = prep(w2, b2)
    w_all = jnp.stack([w1p, w2p])              # [2, 9, Cp, Cp]
    b_all = jnp.stack([b1p, b2p])              # [2, 1, Cp]

    R = B * (H + 2) * W
    vmem = pl.BlockSpec(memory_space=pltpu.MemorySpace.VMEM)
    out = pl.pallas_call(
        conv_block_kernel,
        out_shape=jax.ShapeDtypeStruct((B, H, W, Cp), jnp.float32),
        in_specs=[vmem, vmem, vmem],
        out_specs=vmem,
        scratch_shapes=[
            pltpu.VMEM((R + 2 * W, Cp), jnp.float32),        # s_ref
            pltpu.VMEM((R, Cp), jnp.float32),                # acc_ref
            pltpu.VMEM((B, H + 2, W + 2, Cp), jnp.float32),  # mid_ref
        ],
    )(x_pad, w_all, b_all)

    # Strip channel padding, back to NCHW.
    return jnp.transpose(out[:, :, :, :C_out], (0, 3, 1, 2))


def reference_conv_block(x, w1, b1, w2, b2):
    """Pure-JAX reference of the PyTorch ConvBlock forward."""
    def ws_conv(v, w, b):
        c_in, k = w.shape[1], w.shape[2]
        scale = (2.0 / c_in * k ** 2) ** 0.5
        y = jax.lax.conv_general_dilated(
            v * scale, w, window_strides=(1, 1), padding=((1, 1), (1, 1)),
            dimension_numbers=("NCHW", "OIHW", "NCHW"),
            precision=jax.lax.Precision.HIGHEST)
        return y + b[None, :, None, None]

    def leaky(v):
        return jnp.where(v >= 0, v, 0.2 * v)

    y = leaky(ws_conv(x, w1, b1))
    y = leaky(ws_conv(y, w2, b2))
    return y


if __name__ == "__main__":
    B, C_in, C_out, H, W = 2, 4, 8, 16, 16

    key = jax.random.PRNGKey(0)
    kx, kw1, kw2, kb1, kb2 = jax.random.split(key, 5)
    x = jax.random.normal(kx, (B, C_in, H, W), dtype=jnp.float32)
    # WSConv2d init: weight ~ N(0, 1); bias like default nn.Conv2d bias init.
    w1 = jax.random.normal(kw1, (C_out, C_in, 3, 3), dtype=jnp.float32)
    w2 = jax.random.normal(kw2, (C_out, C_out, 3, 3), dtype=jnp.float32)
    bnd1 = 1.0 / (C_in * 9) ** 0.5
    bnd2 = 1.0 / (C_out * 9) ** 0.5
    b1 = jax.random.uniform(kb1, (C_out,), minval=-bnd1, maxval=bnd1, dtype=jnp.float32)
    b2 = jax.random.uniform(kb2, (C_out,), minval=-bnd2, maxval=bnd2, dtype=jnp.float32)

    out = jax.block_until_ready(jax.jit(conv_block)(x, w1, b1, w2, b2))
    ref = reference_conv_block(x, w1, b1, w2, b2)

    assert out.shape == (B, C_out, H, W)
    rel_err = float(jnp.max(jnp.abs(out - ref)) / (jnp.max(jnp.abs(ref)) + 1e-6))
    assert rel_err < 2e-2, f"mismatch vs reference (rel_err={rel_err:.3e})"

    print("KERNEL_OK")
</pallas_src>

<mosaic_0001>
module attributes {stable_mosaic.version = 11 : i64} {
  func.func @conv_block_kernel(%arg0: memref<2x18x18x128xf32, #tpu.memory_space<vmem>>, %arg1: memref<2x9x128x128xf32, #tpu.memory_space<vmem>>, %arg2: memref<2x1x128xf32, #tpu.memory_space<vmem>>, %arg3: memref<2x16x16x128xf32, #tpu.memory_space<vmem>>, %arg4: memref<608x128xf32, #tpu.memory_space<vmem>>, %arg5: memref<576x128xf32, #tpu.memory_space<vmem>>, %arg6: memref<2x18x18x128xf32, #tpu.memory_space<vmem>>) attributes {dimension_semantics = [], scalar_prefetch = 0 : i64, scratch_operands = 3 : i64, tpu.core_type = #tpu.core_type<tc>} {
    %cst = arith.constant 0.000000e+00 : f32
    %0 = vector.broadcast %cst : f32 to vector<16x128xf32>
    %c0 = arith.constant 0 : index
    %c0_0 = arith.constant 0 : index
    %1 = vector.load %arg4[%c0, %c0_0] : memref<608x128xf32, #tpu.memory_space<vmem>>, vector<16x128xf32>
    tpu.vector_store %arg4[%c0, %c0_0], %0 {strides = array<i32>} : memref<608x128xf32, #tpu.memory_space<vmem>>, vector<16x128xf32>,
    %c592 = arith.constant 592 : index
    %c0_1 = arith.constant 0 : index
    %2 = vector.load %arg4[%c592, %c0_1] : memref<608x128xf32, #tpu.memory_space<vmem>>, vector<16x128xf32>
    tpu.vector_store %arg4[%c592, %c0_1], %0 {strides = array<i32>} : memref<608x128xf32, #tpu.memory_space<vmem>>, vector<16x128xf32>,
    %cst_2 = arith.constant 0.000000e+00 : f32
    %3 = vector.broadcast %cst_2 : f32 to vector<2x18x18x128xf32>
    %c0_3 = arith.constant 0 : index
    %c0_4 = arith.constant 0 : index
    %c0_5 = arith.constant 0 : index
    %c0_6 = arith.constant 0 : index
    %4 = vector.load %arg6[%c0_3, %c0_4, %c0_5, %c0_6] : memref<2x18x18x128xf32, #tpu.memory_space<vmem>>, vector<2x18x18x128xf32>
    tpu.vector_store %arg6[%c0_3, %c0_4, %c0_5, %c0_6], %3 {strides = array<i32>} : memref<2x18x18x128xf32, #tpu.memory_space<vmem>>, vector<2x18x18x128xf32>,
    %c0_7 = arith.constant 0 : index
    %c0_8 = arith.constant 0 : index
    %c0_9 = arith.constant 0 : index
    %c0_10 = arith.constant 0 : index
    %5 = vector.load %arg0[%c0_7, %c0_8, %c0_9, %c0_10] : memref<2x18x18x128xf32, #tpu.memory_space<vmem>>, vector<2x18x16x128xf32>
    %6 = vector.shape_cast %5 : vector<2x18x16x128xf32> to vector<576x128xf32>
    %c16 = arith.constant 16 : index
    %c0_11 = arith.constant 0 : index
    %7 = vector.load %arg4[%c16, %c0_11] : memref<608x128xf32, #tpu.memory_space<vmem>>, vector<576x128xf32>
    tpu.vector_store %arg4[%c16, %c0_11], %6 {strides = array<i32>} : memref<608x128xf32, #tpu.memory_space<vmem>>, vector<576x128xf32>,
    %c0_12 = arith.constant 0 : index
    %c0_13 = arith.constant 0 : index
    %8 = vector.load %arg4[%c0_12, %c0_13] : memref<608x128xf32, #tpu.memory_space<vmem>>, vector<576x128xf32>
    %c0_14 = arith.constant 0 : index
    %c0_15 = arith.constant 0 : index
    %c0_16 = arith.constant 0 : index
    %c0_17 = arith.constant 0 : index
    %9 = vector.load %arg1[%c0_14, %c0_15, %c0_16, %c0_17] : memref<2x9x128x128xf32, #tpu.memory_space<vmem>>, vector<1x1x128x128xf32>
    %10 = vector.shape_cast %9 : vector<1x1x128x128xf32> to vector<128x128xf32>
    %cst_18 = arith.constant dense<0.000000e+00> : vector<576x128xf32>
    %11 = tpu.matmul %8, %10, %cst_18 {dimension_numbers = #tpu.dot_dimension_numbers<[1], [0], [0], [1], [0, 0, 1, 1], [], []>} : vector<576x128xf32>, vector<128x128xf32>, vector<576x128xf32> -> vector<576x128xf32>
    %c0_19 = arith.constant 0 : index
    %c0_20 = arith.constant 0 : index
    %12 = vector.load %arg5[%c0_19, %c0_20] : memref<576x128xf32, #tpu.memory_space<vmem>>, vector<576x128xf32>
    tpu.vector_store %arg5[%c0_19, %c0_20], %11 {strides = array<i32>} : memref<576x128xf32, #tpu.memory_space<vmem>>, vector<576x128xf32>,
    %c16_21 = arith.constant 16 : index
    %c0_22 = arith.constant 0 : index
    %13 = vector.load %arg4[%c16_21, %c0_22] : memref<608x128xf32, #tpu.memory_space<vmem>>, vector<576x128xf32>
    %c0_23 = arith.constant 0 : index
    %c3 = arith.constant 3 : index
    %c0_24 = arith.constant 0 : index
    %c0_25 = arith.constant 0 : index
    %14 = vector.load %arg1[%c0_23, %c3, %c0_24, %c0_25] : memref<2x9x128x128xf32, #tpu.memory_space<vmem>>, vector<1x1x128x128xf32>
    %15 = vector.shape_cast %14 : vector<1x1x128x128xf32> to vector<128x128xf32>
    %cst_26 = arith.constant dense<0.000000e+00> : vector<576x128xf32>
    %16 = tpu.matmul %13, %15, %cst_26 {dimension_numbers = #tpu.dot_dimension_numbers<[1], [0], [0], [1], [0, 0, 1, 1], [], []>} : vector<576x128xf32>, vector<128x128xf32>, vector<576x128xf32> -> vector<576x128xf32>
    %c0_27 = arith.constant 0 : index
    %c0_28 = arith.constant 0 : index
    %17 = vector.load %arg5[%c0_27, %c0_28] : memref<576x128xf32, #tpu.memory_space<vmem>>, vector<576x128xf32>
    %18 = arith.addf %17, %16 : vector<576x128xf32>
    %c0_29 = arith.constant 0 : index
    %c0_30 = arith.constant 0 : index
    %19 = vector.load %arg5[%c0_29, %c0_30] : memref<576x128xf32, #tpu.memory_space<vmem>>, vector<576x128xf32>
    tpu.vector_store %arg5[%c0_29, %c0_30], %18 {strides = array<i32>} : memref<576x128xf32, #tpu.memory_space<vmem>>, vector<576x128xf32>,
    %c32 = arith.constant 32 : index
    %c0_31 = arith.constant 0 : index
    %20 = vector.load %arg4[%c32, %c0_31] : memref<608x128xf32, #tpu.memory_space<vmem>>, vector<576x128xf32>
    %c0_32 = arith.constant 0 : index
    %c6 = arith.constant 6 : index
    %c0_33 = arith.constant 0 : index
    %c0_34 = arith.constant 0 : index
    %21 = vector.load %arg1[%c0_32, %c6, %c0_33, %c0_34] : memref<2x9x128x128xf32, #tpu.memory_space<vmem>>, vector<1x1x128x128xf32>
    %22 = vector.shape_cast %21 : vector<1x1x128x128xf32> to vector<128x128xf32>
    %cst_35 = arith.constant dense<0.000000e+00> : vector<576x128xf32>
    %23 = tpu.matmul %20, %22, %cst_35 {dimension_numbers = #tpu.dot_dimension_numbers<[1], [0], [0], [1], [0, 0, 1, 1], [], []>} : vector<576x128xf32>, vector<128x128xf32>, vector<576x128xf32> -> vector<576x128xf32>
    %c0_36 = arith.constant 0 : index
    %c0_37 = arith.constant 0 : index
    %24 = vector.load %arg5[%c0_36, %c0_37] : memref<576x128xf32, #tpu.memory_space<vmem>>, vector<576x128xf32>
    %25 = arith.addf %24, %23 : vector<576x128xf32>
    %c0_38 = arith.constant 0 : index
    %c0_39 = arith.constant 0 : index
    %26 = vector.load %arg5[%c0_38, %c0_39] : memref<576x128xf32, #tpu.memory_space<vmem>>, vector<576x128xf32>
    tpu.vector_store %arg5[%c0_38, %c0_39], %25 {strides = array<i32>} : memref<576x128xf32, #tpu.memory_space<vmem>>, vector<576x128xf32>,
    %c0_40 = arith.constant 0 : index
    %c0_41 = arith.constant 0 : index
    %c1 = arith.constant 1 : index
    %c0_42 = arith.constant 0 : index
    %27 = vector.load %arg0[%c0_40, %c0_41, %c1, %c0_42] : memref<2x18x18x128xf32, #tpu.memory_space<vmem>>, vector<2x18x16x128xf32>
    %28 = vector.shape_cast %27 : vector<2x18x16x128xf32> to vector<576x128xf32>
    %c16_43 = arith.constant 16 : index
    %c0_44 = arith.constant 0 : index
    %29 = vector.load %arg4[%c16_43, %c0_44] : memref<608x128xf32, #tpu.memory_space<vmem>>, vector<576x128xf32>
    tpu.vector_store %arg4[%c16_43, %c0_44], %28 {strides = array<i32>} : memref<608x128xf32, #tpu.memory_space<vmem>>, vector<576x128xf32>,
    %c0_45 = arith.constant 0 : index
    %c0_46 = arith.constant 0 : index
    %30 = vector.load %arg4[%c0_45, %c0_46] : memref<608x128xf32, #tpu.memory_space<vmem>>, vector<576x128xf32>
    %c0_47 = arith.constant 0 : index
    %c1_48 = arith.constant 1 : index
    %c0_49 = arith.constant 0 : index
    %c0_50 = arith.constant 0 : index
    %31 = vector.load %arg1[%c0_47, %c1_48, %c0_49, %c0_50] : memref<2x9x128x128xf32, #tpu.memory_space<vmem>>, vector<1x1x128x128xf32>
    %32 = vector.shape_cast %31 : vector<1x1x128x128xf32> to vector<128x128xf32>
    %cst_51 = arith.constant dense<0.000000e+00> : vector<576x128xf32>
    %33 = tpu.matmul %30, %32, %cst_51 {dimension_numbers = #tpu.dot_dimension_numbers<[1], [0], [0], [1], [0, 0, 1, 1], [], []>} : vector<576x128xf32>, vector<128x128xf32>, vector<576x128xf32> -> vector<576x128xf32>
    %c0_52 = arith.constant 0 : index
    %c0_53 = arith.constant 0 : index
    %34 = vector.load %arg5[%c0_52, %c0_53] : memref<576x128xf32, #tpu.memory_space<vmem>>, vector<576x128xf32>
    %35 = arith.addf %34, %33 : vector<576x128xf32>
    %c0_54 = arith.constant 0 : index
    %c0_55 = arith.constant 0 : index
    %36 = vector.load %arg5[%c0_54, %c0_55] : memref<576x128xf32, #tpu.memory_space<vmem>>, vector<576x128xf32>
    tpu.vector_store %arg5[%c0_54, %c0_55], %35 {strides = array<i32>} : memref<576x128xf32, #tpu.memory_space<vmem>>, vector<576x128xf32>,
    %c16_56 = arith.constant 16 : index
    %c0_57 = arith.constant 0 : index
    %37 = vector.load %arg4[%c16_56, %c0_57] : memref<608x128xf32, #tpu.memory_space<vmem>>, vector<576x128xf32>
    %c0_58 = arith.constant 0 : index
    %c4 = arith.constant 4 : index
    %c0_59 = arith.constant 0 : index
    %c0_60 = arith.constant 0 : index
    %38 = vector.load %arg1[%c0_58, %c4, %c0_59, %c0_60] : memref<2x9x128x128xf32, #tpu.memory_space<vmem>>, vector<1x1x128x128xf32>
    %39 = vector.shape_cast %38 : vector<1x1x128x128xf32> to vector<128x128xf32>
    %cst_61 = arith.constant dense<0.000000e+00> : vector<576x128xf32>
    %40 = tpu.matmul %37, %39, %cst_61 {dimension_numbers = #tpu.dot_dimension_numbers<[1], [0], [0], [1], [0, 0, 1, 1], [], []>} : vector<576x128xf32>, vector<128x128xf32>, vector<576x128xf32> -> vector<576x128xf32>
    %c0_62 = arith.constant 0 : index
    %c0_63 = arith.constant 0 : index
    %41 = vector.load %arg5[%c0_62, %c0_63] : memref<576x128xf32, #tpu.memory_space<vmem>>, vector<576x128xf32>
    %42 = arith.addf %41, %40 : vector<576x128xf32>
    %c0_64 = arith.constant 0 : index
    %c0_65 = arith.constant 0 : index
    %43 = vector.load %arg5[%c0_64, %c0_65] : memref<576x128xf32, #tpu.memory_space<vmem>>, vector<576x128xf32>
    tpu.vector_store %arg5[%c0_64, %c0_65], %42 {strides = array<i32>} : memref<576x128xf32, #tpu.memory_space<vmem>>, vector<576x128xf32>,
    %c32_66 = arith.constant 32 : index
    %c0_67 = arith.constant 0 : index
    %44 = vector.load %arg4[%c32_66, %c0_67] : memref<608x128xf32, #tpu.memory_space<vmem>>, vector<576x128xf32>
    %c0_68 = arith.constant 0 : index
    %c7 = arith.constant 7 : index
    %c0_69 = arith.constant 0 : index
    %c0_70 = arith.constant 0 : index
    %45 = vector.load %arg1[%c0_68, %c7, %c0_69, %c0_70] : memref<2x9x128x128xf32, #tpu.memory_space<vmem>>, vector<1x1x128x128xf32>
    %46 = vector.shape_cast %45 : vector<1x1x128x128xf32> to vector<128x128xf32>
    %cst_71 = arith.constant dense<0.000000e+00> : vector<576x128xf32>
    %47 = tpu.matmul %44, %46, %cst_71 {dimension_numbers = #tpu.dot_dimension_numbers<[1], [0], [0], [1], [0, 0, 1, 1], [], []>} : vector<576x128xf32>, vector<128x128xf32>, vector<576x128xf32> -> vector<576x128xf32>
    %c0_72 = arith.constant 0 : index
    %c0_73 = arith.constant 0 : index
    %48 = vector.load %arg5[%c0_72, %c0_73] : memref<576x128xf32, #tpu.memory_space<vmem>>, vector<576x128xf32>
    %49 = arith.addf %48, %47 : vector<576x128xf32>
    %c0_74 = arith.constant 0 : index
    %c0_75 = arith.constant 0 : index
    %50 = vector.load %arg5[%c0_74, %c0_75] : memref<576x128xf32, #tpu.memory_space<vmem>>, vector<576x128xf32>
    tpu.vector_store %arg5[%c0_74, %c0_75], %49 {strides = array<i32>} : memref<576x128xf32, #tpu.memory_space<vmem>>, vector<576x128xf32>,
    %c0_76 = arith.constant 0 : index
    %c0_77 = arith.constant 0 : index
    %c2 = arith.constant 2 : index
    %c0_78 = arith.constant 0 : index
    %51 = vector.load %arg0[%c0_76, %c0_77, %c2, %c0_78] : memref<2x18x18x128xf32, #tpu.memory_space<vmem>>, vector<2x18x16x128xf32>
    %52 = vector.shape_cast %51 : vector<2x18x16x128xf32> to vector<576x128xf32>
    %c16_79 = arith.constant 16 : index
    %c0_80 = arith.constant 0 : index
    %53 = vector.load %arg4[%c16_79, %c0_80] : memref<608x128xf32, #tpu.memory_space<vmem>>, vector<576x128xf32>
    tpu.vector_store %arg4[%c16_79, %c0_80], %52 {strides = array<i32>} : memref<608x128xf32, #tpu.memory_space<vmem>>, vector<576x128xf32>,
    %c0_81 = arith.constant 0 : index
    %c0_82 = arith.constant 0 : index
    %54 = vector.load %arg4[%c0_81, %c0_82] : memref<608x128xf32, #tpu.memory_space<vmem>>, vector<576x128xf32>
    %c0_83 = arith.constant 0 : index
    %c2_84 = arith.constant 2 : index
    %c0_85 = arith.constant 0 : index
    %c0_86 = arith.constant 0 : index
    %55 = vector.load %arg1[%c0_83, %c2_84, %c0_85, %c0_86] : memref<2x9x128x128xf32, #tpu.memory_space<vmem>>, vector<1x1x128x128xf32>
    %56 = vector.shape_cast %55 : vector<1x1x128x128xf32> to vector<128x128xf32>
    %cst_87 = arith.constant dense<0.000000e+00> : vector<576x128xf32>
    %57 = tpu.matmul %54, %56, %cst_87 {dimension_numbers = #tpu.dot_dimension_numbers<[1], [0], [0], [1], [0, 0, 1, 1], [], []>} : vector<576x128xf32>, vector<128x128xf32>, vector<576x128xf32> -> vector<576x128xf32>
    %c0_88 = arith.constant 0 : index
    %c0_89 = arith.constant 0 : index
    %58 = vector.load %arg5[%c0_88, %c0_89] : memref<576x128xf32, #tpu.memory_space<vmem>>, vector<576x128xf32>
    %59 = arith.addf %58, %57 : vector<576x128xf32>
    %c0_90 = arith.constant 0 : index
    %c0_91 = arith.constant 0 : index
    %60 = vector.load %arg5[%c0_90, %c0_91] : memref<576x128xf32, #tpu.memory_space<vmem>>, vector<576x128xf32>
    tpu.vector_store %arg5[%c0_90, %c0_91], %59 {strides = array<i32>} : memref<576x128xf32, #tpu.memory_space<vmem>>, vector<576x128xf32>,
    %c16_92 = arith.constant 16 : index
    %c0_93 = arith.constant 0 : index
    %61 = vector.load %arg4[%c16_92, %c0_93] : memref<608x128xf32, #tpu.memory_space<vmem>>, vector<576x128xf32>
    %c0_94 = arith.constant 0 : index
    %c5 = arith.constant 5 : index
    %c0_95 = arith.constant 0 : index
    %c0_96 = arith.constant 0 : index
    %62 = vector.load %arg1[%c0_94, %c5, %c0_95, %c0_96] : memref<2x9x128x128xf32, #tpu.memory_space<vmem>>, vector<1x1x128x128xf32>
    %63 = vector.shape_cast %62 : vector<1x1x128x128xf32> to vector<128x128xf32>
    %cst_97 = arith.constant dense<0.000000e+00> : vector<576x128xf32>
    %64 = tpu.matmul %61, %63, %cst_97 {dimension_numbers = #tpu.dot_dimension_numbers<[1], [0], [0], [1], [0, 0, 1, 1], [], []>} : vector<576x128xf32>, vector<128x128xf32>, vector<576x128xf32> -> vector<576x128xf32>
    %c0_98 = arith.constant 0 : index
    %c0_99 = arith.constant 0 : index
    %65 = vector.load %arg5[%c0_98, %c0_99] : memref<576x128xf32, #tpu.memory_space<vmem>>, vector<576x128xf32>
    %66 = arith.addf %65, %64 : vector<576x128xf32>
    %c0_100 = arith.constant 0 : index
    %c0_101 = arith.constant 0 : index
    %67 = vector.load %arg5[%c0_100, %c0_101] : memref<576x128xf32, #tpu.memory_space<vmem>>, vector<576x128xf32>
    tpu.vector_store %arg5[%c0_100, %c0_101], %66 {strides = array<i32>} : memref<576x128xf32, #tpu.memory_space<vmem>>, vector<576x128xf32>,
    %c32_102 = arith.constant 32 : index
    %c0_103 = arith.constant 0 : index
    %68 = vector.load %arg4[%c32_102, %c0_103] : memref<608x128xf32, #tpu.memory_space<vmem>>, vector<576x128xf32>
    %c0_104 = arith.constant 0 : index
    %c8 = arith.constant 8 : index
    %c0_105 = arith.constant 0 : index
    %c0_106 = arith.constant 0 : index
    %69 = vector.load %arg1[%c0_104, %c8, %c0_105, %c0_106] : memref<2x9x128x128xf32, #tpu.memory_space<vmem>>, vector<1x1x128x128xf32>
    %70 = vector.shape_cast %69 : vector<1x1x128x128xf32> to vector<128x128xf32>
    %cst_107 = arith.constant dense<0.000000e+00> : vector<576x128xf32>
    %71 = tpu.matmul %68, %70, %cst_107 {dimension_numbers = #tpu.dot_dimension_numbers<[1], [0], [0], [1], [0, 0, 1, 1], [], []>} : vector<576x128xf32>, vector<128x128xf32>, vector<576x128xf32> -> vector<576x128xf32>
    %c0_108 = arith.constant 0 : index
    %c0_109 = arith.constant 0 : index
    %72 = vector.load %arg5[%c0_108, %c0_109] : memref<576x128xf32, #tpu.memory_space<vmem>>, vector<576x128xf32>
    %73 = arith.addf %72, %71 : vector<576x128xf32>
    %c0_110 = arith.constant 0 : index
    %c0_111 = arith.constant 0 : index
    %74 = vector.load %arg5[%c0_110, %c0_111] : memref<576x128xf32, #tpu.memory_space<vmem>>, vector<576x128xf32>
    tpu.vector_store %arg5[%c0_110, %c0_111], %73 {strides = array<i32>} : memref<576x128xf32, #tpu.memory_space<vmem>>, vector<576x128xf32>,
    %c0_112 = arith.constant 0 : index
    %c0_113 = arith.constant 0 : index
    %75 = vector.load %arg5[%c0_112, %c0_113] : memref<576x128xf32, #tpu.memory_space<vmem>>, vector<576x128xf32>
    %c0_114 = arith.constant 0 : index
    %c0_115 = arith.constant 0 : index
    %c0_116 = arith.constant 0 : index
    %76 = vector.load %arg2[%c0_114, %c0_115, %c0_116] : memref<2x1x128xf32, #tpu.memory_space<vmem>>, vector<1x1x128xf32>
    %77 = vector.shape_cast %76 : vector<1x1x128xf32> to vector<1x128xf32>
    %78 = vector.broadcast %77 : vector<1x128xf32> to vector<576x128xf32>
    %79 = arith.addf %75, %78 : vector<576x128xf32>
    %cst_117 = arith.constant 2.000000e-01 : f32
    %80 = vector.broadcast %cst_117 : f32 to vector<576x128xf32>
    %81 = arith.mulf %80, %79 : vector<576x128xf32>
    %82 = arith.maximumf %79, %81 : vector<576x128xf32>
    %83 = vector.shape_cast %82 : vector<576x128xf32> to vector<2x18x16x128xf32>
    %84 = vector.extract_strided_slice %83 {offsets = [0, 1, 0, 0], sizes = [2, 16, 16, 128], strides = [1, 1, 1, 1]} : vector<2x18x16x128xf32> to vector<2x16x16x128xf32>
    %c0_118 = arith.constant 0 : index
    %c1_119 = arith.constant 1 : index
    %c1_120 = arith.constant 1 : index
    %c0_121 = arith.constant 0 : index
    %85 = vector.load %arg6[%c0_118, %c1_119, %c1_120, %c0_121] : memref<2x18x18x128xf32, #tpu.memory_space<vmem>>, vector<2x16x16x128xf32>
    tpu.vector_store %arg6[%c0_118, %c1_119, %c1_120, %c0_121], %84 {strides = array<i32>} : memref<2x18x18x128xf32, #tpu.memory_space<vmem>>, vector<2x16x16x128xf32>,
    %c0_122 = arith.constant 0 : index
    %c0_123 = arith.constant 0 : index
    %c0_124 = arith.constant 0 : index
    %c0_125 = arith.constant 0 : index
    %86 = vector.load %arg6[%c0_122, %c0_123, %c0_124, %c0_125] : memref<2x18x18x128xf32, #tpu.memory_space<vmem>>, vector<2x18x16x128xf32>
    %87 = vector.shape_cast %86 : vector<2x18x16x128xf32> to vector<576x128xf32>
    %c16_126 = arith.constant 16 : index
    %c0_127 = arith.constant 0 : index
    %88 = vector.load %arg4[%c16_126, %c0_127] : memref<608x128xf32, #tpu.memory_space<vmem>>, vector<576x128xf32>
    tpu.vector_store %arg4[%c16_126, %c0_127], %87 {strides = array<i32>} : memref<608x128xf32, #tpu.memory_space<vmem>>, vector<576x128xf32>,
    %c0_128 = arith.constant 0 : index
    %c0_129 = arith.constant 0 : index
    %89 = vector.load %arg4[%c0_128, %c0_129] : memref<608x128xf32, #tpu.memory_space<vmem>>, vector<576x128xf32>
    %c1_130 = arith.constant 1 : index
    %c0_131 = arith.constant 0 : index
    %c0_132 = arith.constant 0 : index
    %c0_133 = arith.constant 0 : index
    %90 = vector.load %arg1[%c1_130, %c0_131, %c0_132, %c0_133] : memref<2x9x128x128xf32, #tpu.memory_space<vmem>>, vector<1x1x128x128xf32>
    %91 = vector.shape_cast %90 : vector<1x1x128x128xf32> to vector<128x128xf32>
    %cst_134 = arith.constant dense<0.000000e+00> : vector<576x128xf32>
    %92 = tpu.matmul %89, %91, %cst_134 {dimension_numbers = #tpu.dot_dimension_numbers<[1], [0], [0], [1], [0, 0, 1, 1], [], []>} : vector<576x128xf32>, vector<128x128xf32>, vector<576x128xf32> -> vector<576x128xf32>
    %c0_135 = arith.constant 0 : index
    %c0_136 = arith.constant 0 : index
    %93 = vector.load %arg5[%c0_135, %c0_136] : memref<576x128xf32, #tpu.memory_space<vmem>>, vector<576x128xf32>
    tpu.vector_store %arg5[%c0_135, %c0_136], %92 {strides = array<i32>} : memref<576x128xf32, #tpu.memory_space<vmem>>, vector<576x128xf32>,
    %c16_137 = arith.constant 16 : index
    %c0_138 = arith.constant 0 : index
    %94 = vector.load %arg4[%c16_137, %c0_138] : memref<608x128xf32, #tpu.memory_space<vmem>>, vector<576x128xf32>
    %c1_139 = arith.constant 1 : index
    %c3_140 = arith.constant 3 : index
    %c0_141 = arith.constant 0 : index
    %c0_142 = arith.constant 0 : index
    %95 = vector.load %arg1[%c1_139, %c3_140, %c0_141, %c0_142] : memref<2x9x128x128xf32, #tpu.memory_space<vmem>>, vector<1x1x128x128xf32>
    %96 = vector.shape_cast %95 : vector<1x1x128x128xf32> to vector<128x128xf32>
    %cst_143 = arith.constant dense<0.000000e+00> : vector<576x128xf32>
    %97 = tpu.matmul %94, %96, %cst_143 {dimension_numbers = #tpu.dot_dimension_numbers<[1], [0], [0], [1], [0, 0, 1, 1], [], []>} : vector<576x128xf32>, vector<128x128xf32>, vector<576x128xf32> -> vector<576x128xf32>
    %c0_144 = arith.constant 0 : index
    %c0_145 = arith.constant 0 : index
    %98 = vector.load %arg5[%c0_144, %c0_145] : memref<576x128xf32, #tpu.memory_space<vmem>>, vector<576x128xf32>
    %99 = arith.addf %98, %97 : vector<576x128xf32>
    %c0_146 = arith.constant 0 : index
    %c0_147 = arith.constant 0 : index
    %100 = vector.load %arg5[%c0_146, %c0_147] : memref<576x128xf32, #tpu.memory_space<vmem>>, vector<576x128xf32>
    tpu.vector_store %arg5[%c0_146, %c0_147], %99 {strides = array<i32>} : memref<576x128xf32, #tpu.memory_space<vmem>>, vector<576x128xf32>,
    %c32_148 = arith.constant 32 : index
    %c0_149 = arith.constant 0 : index
    %101 = vector.load %arg4[%c32_148, %c0_149] : memref<608x128xf32, #tpu.memory_space<vmem>>, vector<576x128xf32>
    %c1_150 = arith.constant 1 : index
    %c6_151 = arith.constant 6 : index
    %c0_152 = arith.constant 0 : index
    %c0_153 = arith.constant 0 : index
    %102 = vector.load %arg1[%c1_150, %c6_151, %c0_152, %c0_153] : memref<2x9x128x128xf32, #tpu.memory_space<vmem>>, vector<1x1x128x128xf32>
    %103 = vector.shape_cast %102 : vector<1x1x128x128xf32> to vector<128x128xf32>
    %cst_154 = arith.constant dense<0.000000e+00> : vector<576x128xf32>
    %104 = tpu.matmul %101, %103, %cst_154 {dimension_numbers = #tpu.dot_dimension_numbers<[1], [0], [0], [1], [0, 0, 1, 1], [], []>} : vector<576x128xf32>, vector<128x128xf32>, vector<576x128xf32> -> vector<576x128xf32>
    %c0_155 = arith.constant 0 : index
    %c0_156 = arith.constant 0 : index
    %105 = vector.load %arg5[%c0_155, %c0_156] : memref<576x128xf32, #tpu.memory_space<vmem>>, vector<576x128xf32>
    %106 = arith.addf %105, %104 : vector<576x128xf32>
    %c0_157 = arith.constant 0 : index
    %c0_158 = arith.constant 0 : index
    %107 = vector.load %arg5[%c0_157, %c0_158] : memref<576x128xf32, #tpu.memory_space<vmem>>, vector<576x128xf32>
    tpu.vector_store %arg5[%c0_157, %c0_158], %106 {strides = array<i32>} : memref<576x128xf32, #tpu.memory_space<vmem>>, vector<576x128xf32>,
    %c0_159 = arith.constant 0 : index
    %c0_160 = arith.constant 0 : index
    %c1_161 = arith.constant 1 : index
    %c0_162 = arith.constant 0 : index
    %108 = vector.load %arg6[%c0_159, %c0_160, %c1_161, %c0_162] : memref<2x18x18x128xf32, #tpu.memory_space<vmem>>, vector<2x18x16x128xf32>
    %109 = vector.shape_cast %108 : vector<2x18x16x128xf32> to vector<576x128xf32>
    %c16_163 = arith.constant 16 : index
    %c0_164 = arith.constant 0 : index
    %110 = vector.load %arg4[%c16_163, %c0_164] : memref<608x128xf32, #tpu.memory_space<vmem>>, vector<576x128xf32>
    tpu.vector_store %arg4[%c16_163, %c0_164], %109 {strides = array<i32>} : memref<608x128xf32, #tpu.memory_space<vmem>>, vector<576x128xf32>,
    %c0_165 = arith.constant 0 : index
    %c0_166 = arith.constant 0 : index
    %111 = vector.load %arg4[%c0_165, %c0_166] : memref<608x128xf32, #tpu.memory_space<vmem>>, vector<576x128xf32>
    %c1_167 = arith.constant 1 : index
    %c1_168 = arith.constant 1 : index
    %c0_169 = arith.constant 0 : index
    %c0_170 = arith.constant 0 : index
    %112 = vector.load %arg1[%c1_167, %c1_168, %c0_169, %c0_170] : memref<2x9x128x128xf32, #tpu.memory_space<vmem>>, vector<1x1x128x128xf32>
    %113 = vector.shape_cast %112 : vector<1x1x128x128xf32> to vector<128x128xf32>
    %cst_171 = arith.constant dense<0.000000e+00> : vector<576x128xf32>
    %114 = tpu.matmul %111, %113, %cst_171 {dimension_numbers = #tpu.dot_dimension_numbers<[1], [0], [0], [1], [0, 0, 1, 1], [], []>} : vector<576x128xf32>, vector<128x128xf32>, vector<576x128xf32> -> vector<576x128xf32>
    %c0_172 = arith.constant 0 : index
    %c0_173 = arith.constant 0 : index
    %115 = vector.load %arg5[%c0_172, %c0_173] : memref<576x128xf32, #tpu.memory_space<vmem>>, vector<576x128xf32>
    %116 = arith.addf %115, %114 : vector<576x128xf32>
    %c0_174 = arith.constant 0 : index
    %c0_175 = arith.constant 0 : index
    %117 = vector.load %arg5[%c0_174, %c0_175] : memref<576x128xf32, #tpu.memory_space<vmem>>, vector<576x128xf32>
    tpu.vector_store %arg5[%c0_174, %c0_175], %116 {strides = array<i32>} : memref<576x128xf32, #tpu.memory_space<vmem>>, vector<576x128xf32>,
    %c16_176 = arith.constant 16 : index
    %c0_177 = arith.constant 0 : index
    %118 = vector.load %arg4[%c16_176, %c0_177] : memref<608x128xf32, #tpu.memory_space<vmem>>, vector<576x128xf32>
    %c1_178 = arith.constant 1 : index
    %c4_179 = arith.constant 4 : index
    %c0_180 = arith.constant 0 : index
    %c0_181 = arith.constant 0 : index
    %119 = vector.load %arg1[%c1_178, %c4_179, %c0_180, %c0_181] : memref<2x9x128x128xf32, #tpu.memory_space<vmem>>, vector<1x1x128x128xf32>
    %120 = vector.shape_cast %119 : vector<1x1x128x128xf32> to vector<128x128xf32>
    %cst_182 = arith.constant dense<0.000000e+00> : vector<576x128xf32>
    %121 = tpu.matmul %118, %120, %cst_182 {dimension_numbers = #tpu.dot_dimension_numbers<[1], [0], [0], [1], [0, 0, 1, 1], [], []>} : vector<576x128xf32>, vector<128x128xf32>, vector<576x128xf32> -> vector<576x128xf32>
    %c0_183 = arith.constant 0 : index
    %c0_184 = arith.constant 0 : index
    %122 = vector.load %arg5[%c0_183, %c0_184] : memref<576x128xf32, #tpu.memory_space<vmem>>, vector<576x128xf32>
    %123 = arith.addf %122, %121 : vector<576x128xf32>
    %c0_185 = arith.constant 0 : index
    %c0_186 = arith.constant 0 : index
    %124 = vector.load %arg5[%c0_185, %c0_186] : memref<576x128xf32, #tpu.memory_space<vmem>>, vector<576x128xf32>
    tpu.vector_store %arg5[%c0_185, %c0_186], %123 {strides = array<i32>} : memref<576x128xf32, #tpu.memory_space<vmem>>, vector<576x128xf32>,
    %c32_187 = arith.constant 32 : index
    %c0_188 = arith.constant 0 : index
    %125 = vector.load %arg4[%c32_187, %c0_188] : memref<608x128xf32, #tpu.memory_space<vmem>>, vector<576x128xf32>
    %c1_189 = arith.constant 1 : index
    %c7_190 = arith.constant 7 : index
    %c0_191 = arith.constant 0 : index
    %c0_192 = arith.constant 0 : index
    %126 = vector.load %arg1[%c1_189, %c7_190, %c0_191, %c0_192] : memref<2x9x128x128xf32, #tpu.memory_space<vmem>>, vector<1x1x128x128xf32>
    %127 = vector.shape_cast %126 : vector<1x1x128x128xf32> to vector<128x128xf32>
    %cst_193 = arith.constant dense<0.000000e+00> : vector<576x128xf32>
    %128 = tpu.matmul %125, %127, %cst_193 {dimension_numbers = #tpu.dot_dimension_numbers<[1], [0], [0], [1], [0, 0, 1, 1], [], []>} : vector<576x128xf32>, vector<128x128xf32>, vector<576x128xf32> -> vector<576x128xf32>
    %c0_194 = arith.constant 0 : index
    %c0_195 = arith.constant 0 : index
    %129 = vector.load %arg5[%c0_194, %c0_195] : memref<576x128xf32, #tpu.memory_space<vmem>>, vector<576x128xf32>
    %130 = arith.addf %129, %128 : vector<576x128xf32>
    %c0_196 = arith.constant 0 : index
    %c0_197 = arith.constant 0 : index
    %131 = vector.load %arg5[%c0_196, %c0_197] : memref<576x128xf32, #tpu.memory_space<vmem>>, vector<576x128xf32>
    tpu.vector_store %arg5[%c0_196, %c0_197], %130 {strides = array<i32>} : memref<576x128xf32, #tpu.memory_space<vmem>>, vector<576x128xf32>,
    %c0_198 = arith.constant 0 : index
    %c0_199 = arith.constant 0 : index
    %c2_200 = arith.constant 2 : index
    %c0_201 = arith.constant 0 : index
    %132 = vector.load %arg6[%c0_198, %c0_199, %c2_200, %c0_201] : memref<2x18x18x128xf32, #tpu.memory_space<vmem>>, vector<2x18x16x128xf32>
    %133 = vector.shape_cast %132 : vector<2x18x16x128xf32> to vector<576x128xf32>
    %c16_202 = arith.constant 16 : index
    %c0_203 = arith.constant 0 : index
    %134 = vector.load %arg4[%c16_202, %c0_203] : memref<608x128xf32, #tpu.memory_space<vmem>>, vector<576x128xf32>
    tpu.vector_store %arg4[%c16_202, %c0_203], %133 {strides = array<i32>} : memref<608x128xf32, #tpu.memory_space<vmem>>, vector<576x128xf32>,
    %c0_204 = arith.constant 0 : index
    %c0_205 = arith.constant 0 : index
    %135 = vector.load %arg4[%c0_204, %c0_205] : memref<608x128xf32, #tpu.memory_space<vmem>>, vector<576x128xf32>
    %c1_206 = arith.constant 1 : index
    %c2_207 = arith.constant 2 : index
    %c0_208 = arith.constant 0 : index
    %c0_209 = arith.constant 0 : index
    %136 = vector.load %arg1[%c1_206, %c2_207, %c0_208, %c0_209] : memref<2x9x128x128xf32, #tpu.memory_space<vmem>>, vector<1x1x128x128xf32>
    %137 = vector.shape_cast %136 : vector<1x1x128x128xf32> to vector<128x128xf32>
    %cst_210 = arith.constant dense<0.000000e+00> : vector<576x128xf32>
    %138 = tpu.matmul %135, %137, %cst_210 {dimension_numbers = #tpu.dot_dimension_numbers<[1], [0], [0], [1], [0, 0, 1, 1], [], []>} : vector<576x128xf32>, vector<128x128xf32>, vector<576x128xf32> -> vector<576x128xf32>
    %c0_211 = arith.constant 0 : index
    %c0_212 = arith.constant 0 : index
    %139 = vector.load %arg5[%c0_211, %c0_212] : memref<576x128xf32, #tpu.memory_space<vmem>>, vector<576x128xf32>
    %140 = arith.addf %139, %138 : vector<576x128xf32>
    %c0_213 = arith.constant 0 : index
    %c0_214 = arith.constant 0 : index
    %141 = vector.load %arg5[%c0_213, %c0_214] : memref<576x128xf32, #tpu.memory_space<vmem>>, vector<576x128xf32>
    tpu.vector_store %arg5[%c0_213, %c0_214], %140 {strides = array<i32>} : memref<576x128xf32, #tpu.memory_space<vmem>>, vector<576x128xf32>,
    %c16_215 = arith.constant 16 : index
    %c0_216 = arith.constant 0 : index
    %142 = vector.load %arg4[%c16_215, %c0_216] : memref<608x128xf32, #tpu.memory_space<vmem>>, vector<576x128xf32>
    %c1_217 = arith.constant 1 : index
    %c5_218 = arith.constant 5 : index
    %c0_219 = arith.constant 0 : index
    %c0_220 = arith.constant 0 : index
    %143 = vector.load %arg1[%c1_217, %c5_218, %c0_219, %c0_220] : memref<2x9x128x128xf32, #tpu.memory_space<vmem>>, vector<1x1x128x128xf32>
    %144 = vector.shape_cast %143 : vector<1x1x128x128xf32> to vector<128x128xf32>
    %cst_221 = arith.constant dense<0.000000e+00> : vector<576x128xf32>
    %145 = tpu.matmul %142, %144, %cst_221 {dimension_numbers = #tpu.dot_dimension_numbers<[1], [0], [0], [1], [0, 0, 1, 1], [], []>} : vector<576x128xf32>, vector<128x128xf32>, vector<576x128xf32> -> vector<576x128xf32>
    %c0_222 = arith.constant 0 : index
    %c0_223 = arith.constant 0 : index
    %146 = vector.load %arg5[%c0_222, %c0_223] : memref<576x128xf32, #tpu.memory_space<vmem>>, vector<576x128xf32>
    %147 = arith.addf %146, %145 : vector<576x128xf32>
    %c0_224 = arith.constant 0 : index
    %c0_225 = arith.constant 0 : index
    %148 = vector.load %arg5[%c0_224, %c0_225] : memref<576x128xf32, #tpu.memory_space<vmem>>, vector<576x128xf32>
    tpu.vector_store %arg5[%c0_224, %c0_225], %147 {strides = array<i32>} : memref<576x128xf32, #tpu.memory_space<vmem>>, vector<576x128xf32>,
    %c32_226 = arith.constant 32 : index
    %c0_227 = arith.constant 0 : index
    %149 = vector.load %arg4[%c32_226, %c0_227] : memref<608x128xf32, #tpu.memory_space<vmem>>, vector<576x128xf32>
    %c1_228 = arith.constant 1 : index
    %c8_229 = arith.constant 8 : index
    %c0_230 = arith.constant 0 : index
    %c0_231 = arith.constant 0 : index
    %150 = vector.load %arg1[%c1_228, %c8_229, %c0_230, %c0_231] : memref<2x9x128x128xf32, #tpu.memory_space<vmem>>, vector<1x1x128x128xf32>
    %151 = vector.shape_cast %150 : vector<1x1x128x128xf32> to vector<128x128xf32>
    %cst_232 = arith.constant dense<0.000000e+00> : vector<576x128xf32>
    %152 = tpu.matmul %149, %151, %cst_232 {dimension_numbers = #tpu.dot_dimension_numbers<[1], [0], [0], [1], [0, 0, 1, 1], [], []>} : vector<576x128xf32>, vector<128x128xf32>, vector<576x128xf32> -> vector<576x128xf32>
    %c0_233 = arith.constant 0 : index
    %c0_234 = arith.constant 0 : index
    %153 = vector.load %arg5[%c0_233, %c0_234] : memref<576x128xf32, #tpu.memory_space<vmem>>, vector<576x128xf32>
    %154 = arith.addf %153, %152 : vector<576x128xf32>
    %c0_235 = arith.constant 0 : index
    %c0_236 = arith.constant 0 : index
    %155 = vector.load %arg5[%c0_235, %c0_236] : memref<576x128xf32, #tpu.memory_space<vmem>>, vector<576x128xf32>
    tpu.vector_store %arg5[%c0_235, %c0_236], %154 {strides = array<i32>} : memref<576x128xf32, #tpu.memory_space<vmem>>, vector<576x128xf32>,
    %c0_237 = arith.constant 0 : index
    %c0_238 = arith.constant 0 : index
    %156 = vector.load %arg5[%c0_237, %c0_238] : memref<576x128xf32, #tpu.memory_space<vmem>>, vector<576x128xf32>
    %c1_239 = arith.constant 1 : index
    %c0_240 = arith.constant 0 : index
    %c0_241 = arith.constant 0 : index
    %157 = vector.load %arg2[%c1_239, %c0_240, %c0_241] : memref<2x1x128xf32, #tpu.memory_space<vmem>>, vector<1x1x128xf32>
    %158 = vector.shape_cast %157 : vector<1x1x128xf32> to vector<1x128xf32>
    %159 = vector.broadcast %158 : vector<1x128xf32> to vector<576x128xf32>
    %160 = arith.addf %156, %159 : vector<576x128xf32>
    %cst_242 = arith.constant 2.000000e-01 : f32
    %161 = vector.broadcast %cst_242 : f32 to vector<576x128xf32>
    %162 = arith.mulf %161, %160 : vector<576x128xf32>
    %163 = arith.maximumf %160, %162 : vector<576x128xf32>
    %164 = vector.shape_cast %163 : vector<576x128xf32> to vector<2x18x16x128xf32>
    %165 = vector.extract_strided_slice %164 {offsets = [0, 1, 0, 0], sizes = [2, 16, 16, 128], strides = [1, 1, 1, 1]} : vector<2x18x16x128xf32> to vector<2x16x16x128xf32>
    %c0_243 = arith.constant 0 : index
    %c0_244 = arith.constant 0 : index
    %c0_245 = arith.constant 0 : index
    %c0_246 = arith.constant 0 : index
    %166 = vector.load %arg3[%c0_243, %c0_244, %c0_245, %c0_246] : memref<2x16x16x128xf32, #tpu.memory_space<vmem>>, vector<2x16x16x128xf32>
    tpu.vector_store %arg3[%c0_243, %c0_244, %c0_245, %c0_246], %165 {strides = array<i32>} : memref<2x16x16x128xf32, #tpu.memory_space<vmem>>, vector<2x16x16x128xf32>,
    return
  }
}

</mosaic_0001>

<bundles_post_ra>
// kernel: conv_block.1
= control target key start
LH: loop header
LB: loop body
LE: loop exit
PB: predicated region body
PF: predicated region fallthrough
CT: control target
= control target key end

     0   :  { %v20509_v3 = vmov 0.0   ;;  %s24725_s1 = inlined_call_operand.vmem [shape: f32[2,9,128,128], index: 1, kind: input, shape index: {}]   ;;  %s24726_s0 = inlined_call_operand.vmem [shape: f32[2,18,18,128], index: 0, kind: input, shape index: {}]   ;;  %s24727_s2 = inlined_call_operand.vmem [shape: f32[2,1,128], index: 2, kind: input, shape index: {}]   ;;  %s24728_s3 = inlined_call_operand.vmem [shape: f32[2,16,16,128], index: 3, kind: output, shape index: {}]  }
   0x1   :  { %v20533_v0 = vld [vmem:[%s24725_s1] sm:$0xff]  ;;  %v20538_v1 = vld [vmem:[%s24725_s1 + $0x8] sm:$0xff]  ;;  %v20543_v2 = vld [vmem:[%s24725_s1 + $0x10] sm:$0xff]  ;;  %16392 = vmatprep.mubr.f32.mxu0 %v20509_v3  ;;  %18 = vst [vmem:[#allocation4] sm:$0xff] %v20509_v3  ;;  %17652 = vmatprep.mubr.f32.mxu1 %v20509_v3 }
   0x2   :  { %19 = vst [vmem:[#allocation4 + $0x8] sm:$0xff] %v20509_v3  ;;  %20 = vst [vmem:[#allocation4 + $0x10] sm:$0x3] %v20509_v3  ;;  %v18880_v4 = vpack.c.bf16 %v20538_v1, %v20533_v0  ;;  %v345_v5 = vld [vmem:[%s24725_s1 + $0x18] sm:$0xff]  ;;  %v346_v7 = vld [vmem:[%s24725_s1 + $0x20] sm:$0xff] }
   0x3   :  { %21 = vst [vmem:[#allocation4 + $0x18] sm:$0xff] %v20509_v3  ;;  %22 = vst [vmem:[#allocation4 + $0x20] sm:$0xff] %v20509_v3  ;;  %v18884_v6 = vpack.c.bf16 %v345_v5, %v20543_v2  ;;  %v347_v8 = vld [vmem:[%s24725_s1 + $0x28] sm:$0xff]  ;;  %v348_v10 = vld [vmem:[%s24725_s1 + $0x30] sm:$0xff] }
   0x4   :  { %23 = vst [vmem:[#allocation4 + $0x28] sm:$0x3] %v20509_v3  ;;  %24 = vst [vmem:[#allocation4 + $0x30] sm:$0xff] %v20509_v3  ;;  %18881 = vmatprep.subr.bf16.mxu0 %v18880_v4  ;;  %v18888_v9 = vpack.c.bf16 %v347_v8, %v346_v7  ;;  %v349_v11 = vld [vmem:[%s24725_s1 + $0x38] sm:$0xff]  ;;  %v350_v13 = vld [vmem:[%s24725_s1 + $0x40] sm:$0xff] }
   0x5   :  { %25 = vst [vmem:[#allocation4 + $0x38] sm:$0xff] %v20509_v3  ;;  %26 = vst [vmem:[#allocation4 + $0x40] sm:$0x3] %v20509_v3  ;;  %18883 = vmatpush3.bf16.msra.mxu0 %v18880_v4  ;;  %v18892_v12 = vpack.c.bf16 %v349_v11, %v348_v10  ;;  %v351_v14 = vld [vmem:[%s24725_s1 + $0x48] sm:$0xff]  ;;  %v352_v16 = vld [vmem:[%s24725_s1 + $0x50] sm:$0xff] }
   0x6   :  { %27 = vst [vmem:[#allocation4 + $0x48] sm:$0xff] %v20509_v3  ;;  %28 = vst [vmem:[#allocation4 + $0x50] sm:$0xff] %v20509_v3  ;;  %18885 = vmatprep.subr.bf16.mxu0 %v18884_v6  ;;  %v18896_v15 = vpack.c.bf16 %v351_v14, %v350_v13  ;;  %v353_v17 = vld [vmem:[%s24725_s1 + $0x58] sm:$0xff]  ;;  %v354_v19 = vld [vmem:[%s24725_s1 + $0x60] sm:$0xff] }
   0x7   :  { %29 = vst [vmem:[#allocation4 + $0x58] sm:$0x3] %v20509_v3  ;;  %30 = vst [vmem:[#allocation4 + $0x60] sm:$0xff] %v20509_v3  ;;  %v18900_v18 = vpack.c.bf16 %v353_v17, %v352_v16  ;;  %v355_v20 = vld [vmem:[%s24725_s1 + $0x68] sm:$0xff]  ;;  %v356_v22 = vld [vmem:[%s24725_s1 + $0x70] sm:$0xff] }
   0x8   :  { %31 = vst [vmem:[#allocation4 + $0x68] sm:$0xff] %v20509_v3  ;;  %32 = vst [vmem:[#allocation4 + $0x70] sm:$0x3] %v20509_v3  ;;  %v18904_v21 = vpack.c.bf16 %v355_v20, %v354_v19  ;;  %v357_v23 = vld [vmem:[%s24725_s1 + $0x78] sm:$0xff]  ;;  %v14501_v25 = vld [vmem:[%s24725_s1 + $0x180] sm:$0xff] }
   0x9   :  { %33 = vst [vmem:[#allocation4 + $0x78] sm:$0xff] %v20509_v3  ;;  %34 = vst [vmem:[#allocation4 + $0x80] sm:$0xff] %v20509_v3  ;;  %18887 = vmatpush3.bf16.msra.mxu0 %v18884_v6  ;;  %v18908_v24 = vpack.c.bf16 %v357_v23, %v356_v22  ;;  %v14502_v26 = vld [vmem:[%s24725_s1 + $0x188] sm:$0xff]  ;;  %v14503_v28 = vld [vmem:[%s24725_s1 + $0x190] sm:$0xff] }
   0xa   :  { %35 = vst [vmem:[#allocation4 + $0x88] sm:$0x3] %v20509_v3  ;;  %36 = vst [vmem:[#allocation4 + $0x90] sm:$0xff] %v20509_v3  ;;  %18889 = vmatprep.subr.bf16.mxu0 %v18888_v9  ;;  %v18912_v27 = vpack.c.bf16 %v14502_v26, %v14501_v25  ;;  %v14504_v29 = vld [vmem:[%s24725_s1 + $0x198] sm:$0xff]  ;;  %v20712_v30 = vld [vmem:[%s24726_s0] sm:$0xff] }
   0xb   :  { %37 = vst [vmem:[#allocation4 + $0x98] sm:$0xff] %v20509_v3  ;;  %38 = vst [vmem:[#allocation4 + $0xa0] sm:$0x3] %v20509_v3  ;;  %v18916_v31 = vpack.c.bf16 %v14504_v29, %v14503_v28  ;;  %v14505_v32 = vld [vmem:[%s24725_s1 + $0x1a0] sm:$0xff]  ;;  %v14506_v33 = vld [vmem:[%s24725_s1 + $0x1a8] sm:$0xff] }
   0xc   :  { %39 = vst [vmem:[#allocation4 + $0xa8] sm:$0xff] %v20509_v3  ;;  %40 = vst [vmem:[#allocation4 + $0xb0] sm:$0xff] %v20509_v3  ;;  %v20725_v34 = vld [vmem:[%s24726_s0 + $0x8] sm:$0xff]  ;;  %v20730_v35 = vld [vmem:[%s24726_s0 + $0x18] sm:$0xff]  ;;  %v18920_v36 = vpack.c.bf16 %v14506_v33, %v14505_v32 }
   0xd   :  { %41 = vst [vmem:[#allocation4 + $0xb8] sm:$0x3] %v20509_v3  ;;  %42 = vst [vmem:[#allocation4 + $0xc0] sm:$0xff] %v20509_v3  ;;  %18891 = vmatpush3.bf16.msra.mxu0 %v18888_v9  ;;  %v14507_v37 = vld [vmem:[%s24725_s1 + $0x1b0] sm:$0xff]  ;;  %v14508_v38 = vld [vmem:[%s24725_s1 + $0x1b8] sm:$0xff] }
   0xe   :  { %43 = vst [vmem:[#allocation4 + $0xc8] sm:$0xff] %v20509_v3  ;;  %44 = vst [vmem:[#allocation4 + $0xd0] sm:$0x3] %v20509_v3  ;;  %18893 = vmatprep.subr.bf16.mxu0 %v18892_v12  ;;  %v20743_v39 = vld [vmem:[%s24726_s0 + $0x20] sm:$0xff]  ;;  %v20748_v40 = vld [vmem:[%s24726_s0 + $0x30] sm:$0xff]  ;;  %v18924_v41 = vpack.c.bf16 %v14508_v38, %v14507_v37 }
   0xf   :  { %45 = vst [vmem:[#allocation4 + $0xd8] sm:$0xff] %v20509_v3  ;;  %46 = vst [vmem:[#allocation4 + $0xe0] sm:$0xff] %v20509_v3  ;;  %v14509_v42 = vld [vmem:[%s24725_s1 + $0x1c0] sm:$0xff]  ;;  %v14510_v43 = vld [vmem:[%s24725_s1 + $0x1c8] sm:$0xff] }
  0x10   :  { %47 = vst [vmem:[#allocation4 + $0xe8] sm:$0x3] %v20509_v3  ;;  %48 = vst [vmem:[#allocation4 + $0xf0] sm:$0xff] %v20509_v3  ;;  %v20761_v44 = vld [vmem:[%s24726_s0 + $0x38] sm:$0xff]  ;;  %v20766_v45 = vld [vmem:[%s24726_s0 + $0x48] sm:$0xff]  ;;  %v18928_v46 = vpack.c.bf16 %v14510_v43, %v14509_v42 }
  0x11   :  { %49 = vst [vmem:[#allocation4 + $0xf8] sm:$0xff] %v20509_v3  ;;  %50 = vst [vmem:[#allocation4 + $0x100] sm:$0x3] %v20509_v3  ;;  %18895 = vmatpush3.bf16.msra.mxu0 %v18892_v12  ;;  %v14511_v47 = vld [vmem:[%s24725_s1 + $0x1d0] sm:$0xff]  ;;  %v14512_v48 = vld [vmem:[%s24725_s1 + $0x1d8] sm:$0xff] }
  0x12   :  { %51 = vst [vmem:[#allocation4 + $0x108] sm:$0xff] %v20509_v3  ;;  %52 = vst [vmem:[#allocation4 + $0x110] sm:$0xff] %v20509_v3  ;;  %18897 = vmatprep.subr.bf16.mxu0 %v18896_v15  ;;  %v20779_v49 = vld [vmem:[%s24726_s0 + $0x50] sm:$0xff]  ;;  %v20784_v50 = vld [vmem:[%s24726_s0 + $0x60] sm:$0xff]  ;;  %v18932_v51 = vpack.c.bf16 %v14512_v48, %v14511_v47 }
  0x13   :  { %53 = vst [vmem:[#allocation4 + $0x118] sm:$0x3] %v20509_v3  ;;  %54 = vst [vmem:[#allocation4 + $0x120] sm:$0xff] %v20509_v3  ;;  %v14513_v52 = vld [vmem:[%s24725_s1 + $0x1e0] sm:$0xff]  ;;  %v14514_v53 = vld [vmem:[%s24725_s1 + $0x1e8] sm:$0xff] }
  0x14   :  { %55 = vst [vmem:[#allocation4 + $0x128] sm:$0xff] %v20509_v3  ;;  %56 = vst [vmem:[#allocation4 + $0x130] sm:$0x3] %v20509_v3  ;;  %v20797_v54 = vld [vmem:[%s24726_s0 + $0x68] sm:$0xff]  ;;  %v20802_v55 = vld [vmem:[%s24726_s0 + $0x78] sm:$0xff]  ;;  %v18936_v56 = vpack.c.bf16 %v14514_v53, %v14513_v52 }
  0x15   :  { %57 = vst [vmem:[#allocation4 + $0x138] sm:$0xff] %v20509_v3  ;;  %58 = vst [vmem:[#allocation4 + $0x140] sm:$0xff] %v20509_v3  ;;  %18899 = vmatpush3.bf16.msra.mxu0 %v18896_v15  ;;  %v14515_v57 = vld [vmem:[%s24725_s1 + $0x1f0] sm:$0xff]  ;;  %v14516_v58 = vld [vmem:[%s24725_s1 + $0x1f8] sm:$0xff] }
  0x16   :  { %59 = vst [vmem:[#allocation4 + $0x148] sm:$0x3] %v20509_v3  ;;  %60 = vst [vmem:[#allocation4 + $0x150] sm:$0xff] %v20509_v3  ;;  %18901 = vmatprep.subr.bf16.mxu0 %v18900_v18  ;;  %v20815_v59 = vld [vmem:[%s24726_s0 + $0x80] sm:$0xff]  ;;  %v20820_v60 = vld [vmem:[%s24726_s0 + $0x90] sm:$0xff]  ;;  %v18940_v61 = vpack.c.bf16 %v14516_v58, %v14515_v57 }
  0x17   :  { %61 = vst [vmem:[#allocation4 + $0x158] sm:$0xff] %v20509_v3  ;;  %62 = vst [vmem:[#allocation4 + $0x160] sm:$0x3] %v20509_v3  ;;  %v14517_v62 = vld [vmem:[%s24725_s1 + $0x300] sm:$0xff]  ;;  %v14518_v63 = vld [vmem:[%s24725_s1 + $0x308] sm:$0xff] }
  0x18   :  { %63 = vst [vmem:[#allocation4 + $0x168] sm:$0xff] %v20509_v3  ;;  %64 = vst [vmem:[#allocation4 + $0x170] sm:$0xff] %v20509_v3  ;;  %v20833_v0 = vld [vmem:[%s24726_s0 + $0x98] sm:$0xff]  ;;  %v20838_v1 = vld [vmem:[%s24726_s0 + $0xa8] sm:$0xff]  ;;  %v20840_v2 = vpack.c.bf16 %v14518_v63, %v14517_v62 }
  0x19   :  { %65 = vst [vmem:[#allocation4 + $0x178] sm:$0x3] %v20509_v3  ;;  %66 = vst [vmem:[#allocation4 + $0x180] sm:$0xff] %v20509_v3  ;;  %18903 = vmatpush3.bf16.msra.mxu0 %v18900_v18  ;;  %v20852_v4 = vld [vmem:[%s24726_s0 + $0xc0] sm:$0xff]  ;;  %v20860_v5 = vld [vmem:[%s24726_s0 + $0xc8] sm:$0xff] }
  0x1a   :  { %67 = vst [vmem:[#allocation4 + $0x188] sm:$0xff] %v20509_v3  ;;  %68 = vst [vmem:[#allocation4 + $0x190] sm:$0x3] %v20509_v3  ;;  %18905 = vmatprep.subr.bf16.mxu0 %v18904_v21  ;;  %v20865_v6 = vld [vmem:[%s24726_s0 + $0xd8] sm:$0xff]  ;;  %v20872_v7 = vld [vmem:[%s24726_s0 + $0xe0] sm:$0xff] }
  0x1b   :  { %69 = vst [vmem:[#allocation4 + $0x198] sm:$0xff] %v20509_v3  ;;  %70 = vst [vmem:[#allocation4 + $0x1a0] sm:$0xff] %v20509_v3  ;;  %v20877_v8 = vld [vmem:[%s24726_s0 + $0xf0] sm:$0xff]  ;;  %v20884_v9 = vld [vmem:[%s24726_s0 + $0xf8] sm:$0xff] }
  0x1c   :  { %71 = vst [vmem:[#allocation4 + $0x1a8] sm:$0x3] %v20509_v3  ;;  %72 = vst [vmem:[#allocation4 + $0x1b0] sm:$0xff] %v20509_v3  ;;  %v20889_v10 = vld [vmem:[%s24726_s0 + $0x108] sm:$0xff]  ;;  %v20896_v11 = vld [vmem:[%s24726_s0 + $0x110] sm:$0xff] }
  0x1d   :  { %73 = vst [vmem:[#allocation4 + $0x1b8] sm:$0xff] %v20509_v3  ;;  %74 = vst [vmem:[#allocation4 + $0x1c0] sm:$0x3] %v20509_v3  ;;  %18907 = vmatpush3.bf16.msra.mxu0 %v18904_v21  ;;  %v20901_v12 = vld [vmem:[%s24726_s0 + $0x120] sm:$0xff]  ;;  %v20908_v13 = vld [vmem:[%s24726_s0 + $0x128] sm:$0xff] }
  0x1e   :  { %75 = vst [vmem:[#allocation4 + $0x1c8] sm:$0xff] %v20509_v3  ;;  %76 = vst [vmem:[#allocation4 + $0x1d0] sm:$0xff] %v20509_v3  ;;  %18909 = vmatprep.subr.bf16.mxu0 %v18908_v24  ;;  %v20913_v14 = vld [vmem:[%s24726_s0 + $0x138] sm:$0xff]  ;;  %v20920_v15 = vld [vmem:[%s24726_s0 + $0x140] sm:$0xff] }
  0x1f   :  { %77 = vst [vmem:[#allocation4 + $0x1d8] sm:$0x3] %v20509_v3  ;;  %78 = vst [vmem:[#allocation4 + $0x1e0] sm:$0xff] %v20509_v3  ;;  %v20925_v16 = vld [vmem:[%s24726_s0 + $0x150] sm:$0xff]  ;;  %v20932_v17 = vld [vmem:[%s24726_s0 + $0x158] sm:$0xff] }
  0x20   :  { %79 = vst [vmem:[#allocation4 + $0x1e8] sm:$0xff] %v20509_v3  ;;  %80 = vst [vmem:[#allocation4 + $0x1f0] sm:$0x3] %v20509_v3  ;;  %v20937_v18 = vld [vmem:[%s24726_s0 + $0x168] sm:$0xff]  ;;  %v20944_v19 = vld [vmem:[%s24726_s0 + $0x170] sm:$0xff] }
  0x21   :  { %81 = vst [vmem:[#allocation4 + $0x1f8] sm:$0xff] %v20509_v3  ;;  %82 = vst [vmem:[#allocation4 + $0x200] sm:$0xff] %v20509_v3  ;;  %18911 = vmatpush3.bf16.msra.mxu0 %v18908_v24  ;;  %v20949_v20 = vld [vmem:[%s24726_s0 + $0x180] sm:$0xff]  ;;  %v20956_v21 = vld [vmem:[%s24726_s0 + $0x188] sm:$0xff] }
  0x22   :  { %83 = vst [vmem:[#allocation4 + $0x208] sm:$0x3] %v20509_v3  ;;  %84 = vst [vmem:[#allocation4 + $0x210] sm:$0xff] %v20509_v3  ;;  %18913 = vmatprep.subr.bf16.mxu0 %v18912_v27  ;;  %v20961_v22 = vld [vmem:[%s24726_s0 + $0x198] sm:$0xff]  ;;  %v20968_v23 = vld [vmem:[%s24726_s0 + $0x1a0] sm:$0xff] }
  0x23   :  { %85 = vst [vmem:[#allocation4 + $0x218] sm:$0xff] %v20509_v3  ;;  %86 = vst [vmem:[#allocation4 + $0x220] sm:$0x3] %v20509_v3  ;;  %v20973_v24 = vld [vmem:[%s24726_s0 + $0x1b0] sm:$0xff]  ;;  %v20980_v25 = vld [vmem:[%s24726_s0 + $0x1b8] sm:$0xff] }
  0x24   :  { %87 = vst [vmem:[#allocation4 + $0x228] sm:$0xff] %v20509_v3  ;;  %88 = vst [vmem:[#allocation4 + $0x230] sm:$0xff] %v20509_v3  ;;  %16393 = vmatmul.mubr.f32.vlgmr.msra.gmra.mrb[0].mxu0 %v20509_v3  ;;  %v20985_v26 = vld [vmem:[%s24726_s0 + $0x1c8] sm:$0xff]  ;;  %v20997_v28 = vld [vmem:[%s24726_s0 + $0x1e0] sm:$0xff] }
  0x25   :  { %89 = vst [vmem:[#allocation4 + $0x238] sm:$0x3] %v20509_v3  ;;  %90 = vst [vmem:[#allocation4 + $0x240] sm:$0xff] %v20509_v3  ;;  %18915 = vmatpush3.bf16.msra.mxu0 %v18912_v27  ;;  %16395 = vmatprep.mubr.f32.mxu0 %v20712_v30  ;;  %v20992_v27 = vld [vmem:[%s24726_s0 + $0x1d0] sm:$0xff]  ;;  %v21004_v29 = vld [vmem:[%s24726_s0 + $0x1e8] sm:$0xff] }
  0x26   :  { %91 = vst [vmem:[#allocation4 + $0x248] sm:$0xff] %v20509_v3  ;;  %92 = vst [vmem:[#allocation4 + $0x250] sm:$0x3] %v20509_v3  ;;  %18917 = vmatprep.subr.bf16.mxu0 %v18916_v31  ;;  %v21016_v32 = vld [vmem:[%s24726_s0 + $0x200] sm:$0xff]  ;;  %v21021_v33 = vld [vmem:[%s24726_s0 + $0x210] sm:$0xff] }
  0x27   :  { %93 = vst [vmem:[#allocation4 + $0x258] sm:$0xff] %v20509_v3  ;;  %94 = vst [vmem:[#allocation4 + $0x260] sm:$0xff] %v20509_v3  ;;  %v21033_v37 = vld [vmem:[%s24726_s0 + $0x228] sm:$0xff]  ;;  %v21040_v38 = vld [vmem:[%s24726_s0 + $0x230] sm:$0xff] }
  0x28   :  { %95 = vst [vmem:[#allocation4 + $0x268] sm:$0x3] %v20509_v3  ;;  %96 = vst [vmem:[#allocation4 + $0x270] sm:$0xff] %v20509_v3  ;;  %16396 = vmatmul.mubr.f32.gmra.mrb[2].mxu0 %v20725_v34  ;;  %v21052_v42 = vld [vmem:[%s24726_s0 + $0x248] sm:$0xff]  ;;  %v21057_v43 = vld [vmem:[%s24726_s0 + $0x258] sm:$0xff] }
  0x29   :  { %97 = vst [vmem:[#allocation4 + $0x278] sm:$0xff] %v20509_v3  ;;  %98 = vst [vmem:[#allocation4 + $0x280] sm:$0x3] %v20509_v3  ;;  %16398 = vmatprep.mubr.f32.mxu0 %v20730_v35  ;;  %18919 = vmatpush3.bf16.msra.mxu0 %v18916_v31  ;;  %v21009_v31 = vld [vmem:[%s24726_s0 + $0x1f8] sm:$0xff]  ;;  %v21069_v47 = vld [vmem:[%s24726_s0 + $0x270] sm:$0xff] }
  0x2a   :  { %99 = vst [vmem:[#allocation4 + $0x288] sm:$0xff] %v20509_v3  ;;  %100 = vst [vmem:[#allocation4 + $0x290] sm:$0xff] %v20509_v3  ;;  %18921 = vmatprep.subr.bf16.mxu0 %v18920_v36  ;;  %v21076_v48 = vld [vmem:[%s24726_s0 + $0x278] sm:$0xff]  ;;  %v21088_v52 = vld [vmem:[%s24726_s0 + $0x290] sm:$0xff] }
  0x2b   :  { %101 = vst [vmem:[#allocation4 + $0x298] sm:$0x3] %v20509_v3  ;;  %102 = vst [vmem:[#allocation4 + $0x2a0] sm:$0xff] %v20509_v3  ;;  %v21093_v53 = vld [vmem:[%s24726_s0 + $0x2a0] sm:$0xff]  ;;  %v21105_v57 = vld [vmem:[%s24726_s0 + $0x2b8] sm:$0xff] }
  0x2c   :  { %103 = vst [vmem:[#allocation4 + $0x2a8] sm:$0xff] %v20509_v3  ;;  %104 = vst [vmem:[#allocation4 + $0x2b0] sm:$0x3] %v20509_v3  ;;  %16399 = vmatmul.mubr.f32.gmra.mrb[4].mxu0 %v20743_v39  ;;  %v21112_v58 = vld [vmem:[%s24726_s0 + $0x2c0] sm:$0xff]  ;;  %v21124_v62 = vld [vmem:[%s24726_s0 + $0x2d8] sm:$0xff] }
  0x2d   :  { %105 = vst [vmem:[#allocation4 + $0x2b8] sm:$0xff] %v20509_v3  ;;  %106 = vst [vmem:[#allocation4 + $0x2c0] sm:$0xff] %v20509_v3  ;;  %16401 = vmatprep.mubr.f32.mxu0 %v20748_v40  ;;  %18923 = vmatpush3.bf16.msra.mxu0 %v18920_v36  ;;  %v21028_v36 = vld [vmem:[%s24726_s0 + $0x218] sm:$0xff]  ;;  %v21129_v63 = vld [vmem:[%s24726_s0 + $0x2e8] sm:$0xff] }
  0x2e   :  { %107 = vst [vmem:[#allocation4 + $0x2c8] sm:$0x3] %v20509_v3  ;;  %108 = vst [vmem:[#allocation4 + $0x2d0] sm:$0xff] %v20509_v3  ;;  %18925 = vmatprep.subr.bf16.mxu0 %v18924_v41 }
  0x2f   :  { %109 = vst [vmem:[#allocation4 + $0x2d8] sm:$0xff] %v20509_v3  ;;  %110 = vst [vmem:[#allocation4 + $0x2e0] sm:$0x3] %v20509_v3 }
  0x30   :  { %111 = vst [vmem:[#allocation4 + $0x2e8] sm:$0xff] %v20509_v3  ;;  %112 = vst [vmem:[#allocation4 + $0x2f0] sm:$0xff] %v20509_v3  ;;  %16402 = vmatmul.mubr.f32.gmra.mrb[6].mxu0 %v20761_v44 }
  0x31   :  { %113 = vst [vmem:[#allocation4 + $0x2f8] sm:$0x3] %v20509_v3  ;;  %114 = vst [vmem:[#allocation4 + $0x300] sm:$0xff] %v20509_v3  ;;  %16404 = vmatprep.mubr.f32.mxu0 %v20766_v45  ;;  %18927 = vmatpush3.bf16.msra.mxu0 %v18924_v41  ;;  %v21045_v41 = vld [vmem:[%s24726_s0 + $0x240] sm:$0xff] }
  0x32   :  { %115 = vst [vmem:[#allocation4 + $0x308] sm:$0xff] %v20509_v3  ;;  %116 = vst [vmem:[#allocation4 + $0x310] sm:$0x3] %v20509_v3  ;;  %18929 = vmatprep.subr.bf16.mxu0 %v18928_v46 }
  0x33   :  { %117 = vst [vmem:[#allocation4 + $0x318] sm:$0xff] %v20509_v3  ;;  %118 = vst [vmem:[#allocation4 + $0x320] sm:$0xff] %v20509_v3 }
  0x34   :  { %119 = vst [vmem:[#allocation4 + $0x328] sm:$0x3] %v20509_v3  ;;  %120 = vst [vmem:[#allocation4 + $0x330] sm:$0xff] %v20509_v3  ;;  %16405 = vmatmul.mubr.f32.gmra.mrb[8].mxu0 %v20779_v49 }
  0x35   :  { %121 = vst [vmem:[#allocation4 + $0x338] sm:$0xff] %v20509_v3  ;;  %122 = vst [vmem:[#allocation4 + $0x340] sm:$0x3] %v20509_v3  ;;  %16407 = vmatprep.mubr.f32.mxu0 %v20784_v50  ;;  %18931 = vmatpush3.bf16.msra.mxu0 %v18928_v46  ;;  %v21064_v46 = vld [vmem:[%s24726_s0 + $0x260] sm:$0xff] }
  0x36   :  { %123 = vst [vmem:[#allocation4 + $0x348] sm:$0xff] %v20509_v3  ;;  %124 = vst [vmem:[#allocation4 + $0x350] sm:$0xff] %v20509_v3  ;;  %18933 = vmatprep.subr.bf16.mxu0 %v18932_v51 }
  0x37   :  { %125 = vst [vmem:[#allocation4 + $0x358] sm:$0x3] %v20509_v3  ;;  %v20847_v3 = vld [vmem:[%s24726_s0 + $0xb0] sm:$0xff]  ;;  %24906 = vst [vmem:[#allocation5_spill] sm:$0xff] %v21076_v48 }
  0x38   :  { %16408 = vmatmul.mubr.f32.gmra.mrb[10].mxu0 %v20797_v54  ;;  %24908 = vst [vmem:[#allocation7_spill] sm:$0xff] %v21088_v52  ;;  %24909 = vst [vmem:[#allocation8_spill] sm:$0xff] %v21093_v53 }
  0x39   :  { %16410 = vmatprep.mubr.f32.mxu0 %v20802_v55  ;;  %18935 = vmatpush3.bf16.msra.mxu0 %v18932_v51  ;;  %v21081_v51 = vld [vmem:[%s24726_s0 + $0x288] sm:$0xff]  ;;  %24911 = vst [vmem:[#allocation10_spill] sm:$0xff] %v21105_v57  ;;  %24912 = vst [vmem:[#allocation11_spill] sm:$0xff] %v21112_v58 }
  0x3a   :  { %18937 = vmatprep.subr.bf16.mxu0 %v18936_v56  ;;  %24907 = vst [vmem:[#allocation6_spill] sm:$0xff] %v21081_v51  ;;  %24914 = vst [vmem:[#allocation13_spill] sm:$0xff] %v21124_v62 }
  0x3b   :  { %24915 = vst [vmem:[#allocation14_spill] sm:$0xff] %v21129_v63 }
  0x3c   :  { %16411 = vmatmul.mubr.f32.gmra.mrb[12].mxu0 %v20815_v59 }
  0x3d   :  { %16413 = vmatprep.mubr.f32.mxu0 %v20820_v60  ;;  %18939 = vmatpush3.bf16.msra.mxu0 %v18936_v56  ;;  %v21100_v56 = vld [vmem:[%s24726_s0 + $0x2a8] sm:$0xff] }
  0x3e   :  { %18941 = vmatprep.subr.bf16.mxu0 %v18940_v61  ;;  %24910 = vst [vmem:[#allocation9_spill] sm:$0xff] %v21100_v56 }
  0x40   :  { %16414 = vmatmul.mubr.f32.gmra.mrb[14].mxu0 %v20833_v0 }
  0x41   :  { %16416 = vmatprep.mubr.f32.mxu0 %v20838_v1  ;;  %18943 = vmatpush3.bf16.msra.mxu0 %v18940_v61  ;;  %v21117_v61 = vld [vmem:[%s24726_s0 + $0x2d0] sm:$0xff] }
  0x42   :  { %18945 = vmatprep.subr.bf16.mxu0 %v20840_v2  ;;  %24913 = vst [vmem:[#allocation12_spill] sm:$0xff] %v21117_v61 }
  0x44   :  { %16417 = vmatmul.mubr.f32.gmra.mrb[16].mxu0 %v20847_v3 }
  0x45   :  { %16419 = vmatprep.mubr.f32.mxu0 %v20852_v4 }
  0x48   :  { %16420 = vmatmul.mubr.f32.gmra.mrb[18].mxu0 %v20860_v5 }
  0x49   :  { %16422 = vmatprep.mubr.f32.mxu0 %v20865_v6 }
  0x4c   :  { %16423 = vmatmul.mubr.f32.gmra.mrb[20].mxu0 %v20872_v7 }
  0x4d   :  { %16425 = vmatprep.mubr.f32.mxu0 %v20877_v8 }
  0x50   :  { %16426 = vmatmul.mubr.f32.gmra.mrb[22].mxu0 %v20884_v9 }
  0x51   :  { %16428 = vmatprep.mubr.f32.mxu0 %v20889_v10 }
  0x54   :  { %16429 = vmatmul.mubr.f32.gmra.mrb[24].mxu0 %v20896_v11 }
  0x55   :  { %16431 = vmatprep.mubr.f32.mxu0 %v20901_v12 }
  0x58   :  { %16432 = vmatmul.mubr.f32.gmra.mrb[26].mxu0 %v20908_v13 }
  0x59   :  { %16434 = vmatprep.mubr.f32.mxu0 %v20913_v14 }
  0x5c   :  { %16435 = vmatmul.mubr.f32.gmra.mrb[28].mxu0 %v20920_v15 }
  0x5d   :  { %16437 = vmatprep.mubr.f32.mxu0 %v20925_v16 }
  0x60   :  { %16438 = vmatmul.mubr.f32.gmra.mrb[30].mxu0 %v20932_v17 }
  0x61   :  { %16440 = vmatprep.mubr.f32.mxu0 %v20937_v18 }
  0x64   :  { %16441 = vmatmul.mubr.f32.gmra.mrb[32].mxu0 %v20944_v19 }
  0x65   :  { %16443 = vmatprep.mubr.f32.mxu0 %v20949_v20 }
  0x68   :  { %16444 = vmatmul.mubr.f32.gmra.mrb[34].mxu0 %v20956_v21 }
  0x69   :  { %16446 = vmatprep.mubr.f32.mxu0 %v20961_v22 }
  0x6c   :  { %16447 = vmatmul.mubr.f32.gmra.mrb[36].mxu0 %v20968_v23 }
  0x6d   :  { %16449 = vmatprep.mubr.f32.mxu0 %v20973_v24 }
  0x70   :  { %16450 = vmatmul.mubr.f32.gmra.mrb[38].mxu0 %v20980_v25 }
  0x71   :  { %16452 = vmatprep.mubr.f32.mxu0 %v20985_v26 }
  0x74   :  { %16453 = vmatmul.mubr.f32.gmra.mrb[40].mxu0 %v20992_v27 }
  0x75   :  { %16455 = vmatprep.mubr.f32.mxu0 %v20997_v28 }
  0x78   :  { %16456 = vmatmul.mubr.f32.gmra.mrb[42].mxu0 %v21004_v29 }
  0x79   :  { %16458 = vmatprep.mubr.f32.mxu0 %v21009_v31 }
  0x7c   :  { %16459 = vmatmul.mubr.f32.gmra.mrb[44].mxu0 %v21016_v32 }
  0x7d   :  { %16461 = vmatprep.mubr.f32.mxu0 %v21021_v33 }
  0x80   :  { %16462 = vmatmul.mubr.f32.gmra.mrb[46].mxu0 %v21028_v36 }
  0x81   :  { %16464 = vmatprep.mubr.f32.mxu0 %v21033_v37 }
  0x84   :  { %16465 = vmatmul.mubr.f32.gmra.mrb[48].mxu0 %v21040_v38 }
  0x85   :  { %16467 = vmatprep.mubr.f32.mxu0 %v21045_v41 }
  0x88   :  { %16468 = vmatmul.mubr.f32.gmra.mrb[50].mxu0 %v21052_v42 }
  0x89   :  { %16470 = vmatprep.mubr.f32.mxu0 %v21057_v43 }
  0x8c   :  { %16471 = vmatmul.mubr.f32.gmra.mrb[52].mxu0 %v21064_v46 }
  0x8d   :  { %16473 = vmatprep.mubr.f32.mxu0 %v21069_v47 }
  0x90   :  { %16474 = vmatmul.mubr.f32.gmra.mrb[54].mxu0 %v21076_v48 }
  0x91   :  { %16476 = vmatprep.mubr.f32.mxu0 %v21081_v51 }
  0x94   :  { %16477 = vmatmul.mubr.f32.gmra.mrb[56].mxu0 %v21088_v52 }
  0x95   :  { %16479 = vmatprep.mubr.f32.mxu0 %v21093_v53 }
  0x98   :  { %16480 = vmatmul.mubr.f32.gmra.mrb[58].mxu0 %v21100_v56  ;;  %v14522_v56 = vld [vmem:[%s24725_s1 + $0x328] sm:$0xff] }
  0x99   :  { %16482 = vmatprep.mubr.f32.mxu0 %v21105_v57  ;;  %v14520_v57 = vld [vmem:[%s24725_s1 + $0x318] sm:$0xff] }
  0x9c   :  { %16483 = vmatmul.mubr.f32.gmra.mrb[60].mxu0 %v21112_v58  ;;  %v21136_v58 = vld [vmem:[%s24726_s0 + $0x2f0] sm:$0xff] }
  0x9d   :  { %16485 = vmatprep.mubr.f32.mxu0 %v21117_v61  ;;  %24916 = vst [vmem:[#allocation15_spill] sm:$0xff] %v21136_v58  ;;  %v21141_v61 = vld [vmem:[%s24726_s0 + $0x300] sm:$0xff] }
  0x9e   :  { %24917 = vst [vmem:[#allocation16_spill] sm:$0xff] %v21141_v61 }
  0xa0   :  { %16486 = vmatmul.mubr.f32.gmra.mrb[62].mxu0 %v21124_v62  ;;  %v21148_v62 = vld [vmem:[%s24726_s0 + $0x308] sm:$0xff] }
  0xa1   :  { %16488 = vmatprep.mubr.f32.mxu0 %v21129_v63  ;;  %24918 = vst [vmem:[#allocation17_spill] sm:$0xff] %v21148_v62  ;;  %v21153_v63 = vld [vmem:[%s24726_s0 + $0x318] sm:$0xff] }
  0xa2   :  { %24919 = vst [vmem:[#allocation18_spill] sm:$0xff] %v21153_v63 }
  0xa4   :  { %16489 = vmatmul.mubr.f32.gmra.mrb[64].mxu0 %v21136_v58  ;;  %v21160_v58 = vld [vmem:[%s24726_s0 + $0x320] sm:$0xff] }
  0xa5   :  { %16491 = vmatprep.mubr.f32.mxu0 %v21141_v61  ;;  %24920 = vst [vmem:[#allocation19_spill] sm:$0xff] %v21160_v58  ;;  %v21165_v61 = vld [vmem:[%s24726_s0 + $0x330] sm:$0xff] }
  0xa6   :  { %24921 = vst [vmem:[#allocation20_spill] sm:$0xff] %v21165_v61 }
  0xa8   :  { %16492 = vmatmul.mubr.f32.gmra.mrb[66].mxu0 %v21148_v62  ;;  %v21172_v62 = vld [vmem:[%s24726_s0 + $0x338] sm:$0xff] }
  0xa9   :  { %16494 = vmatprep.mubr.f32.mxu0 %v21153_v63  ;;  %v14519_v63 = vld [vmem:[%s24725_s1 + $0x310] sm:$0xff] }
  0xac   :  { %16495 = vmatmul.mubr.f32.gmra.mrb[68].mxu0 %v21160_v58  ;;  %v18948_v58 = vpack.c.bf16 %v14520_v57, %v14519_v63  ;;  %v14524_v57 = vld [vmem:[%s24725_s1 + $0x338] sm:$0xff] }
  0xad   :  { %16497 = vmatprep.mubr.f32.mxu0 %v21165_v61  ;;  %v14521_v61 = vld [vmem:[%s24725_s1 + $0x320] sm:$0xff]  ;;  %v14528_v63 = vld [vmem:[%s24725_s1 + $0x358] sm:$0xff] }
  0xae   :  { %v18952_v53 = vpack.c.bf16 %v14522_v56, %v14521_v61  ;;  %v14526_v56 = vld [vmem:[%s24725_s1 + $0x348] sm:$0xff] }
  0xb0   :  { %16498 = vmatmul.mubr.f32.gmra.mrb[70].mxu0 %v21172_v62 }
  0xb1   :  { %16532 = vmatprep.mubr.f32.mxu0 %v20712_v30  ;;  %v14523_v30 = vld [vmem:[%s24725_s1 + $0x330] sm:$0xff] }
  0xb4   :  { %16533 = vmatmul.mubr.f32.vlgmr.msra.gmra.mrb[72].mxu0 %v20725_v34  ;;  %v18956_v34 = vpack.c.bf16 %v14524_v57, %v14523_v30  ;;  %v14530_v57 = vld [vmem:[%s24725_s1 + $0x368] sm:$0xff] }
  0xb5   :  { %18947 = vmatpush3.bf16.msra.mxu0 %v20840_v2  ;;  %16535 = vmatprep.mubr.f32.mxu0 %v20730_v35  ;;  %v14525_v2 = vld [vmem:[%s24725_s1 + $0x340] sm:$0xff] }
  0xb6   :  { %18949 = vmatprep.subr.bf16.mxu0 %v18948_v58  ;;  %v18960_v61 = vpack.c.bf16 %v14526_v56, %v14525_v2  ;;  %v14532_v56 = vld [vmem:[%s24725_s1 + $0x378] sm:$0xff] }
  0xb8   :  { %16536 = vmatmul.mubr.f32.gmra.mrb[2].mxu0 %v20743_v39 }
  0xb9   :  { %16538 = vmatprep.mubr.f32.mxu0 %v20748_v40  ;;  %18951 = vmatpush3.bf16.msra.mxu0 %v18948_v58  ;;  %v14527_v58 = vld [vmem:[%s24725_s1 + $0x350] sm:$0xff] }
  0xba   :  { %18953 = vmatprep.subr.bf16.mxu0 %v18952_v53  ;;  %v18964_v30 = vpack.c.bf16 %v14528_v63, %v14527_v58  ;;  %v14534_v63 = vld [vmem:[%s24725_s1 + $0x88] sm:$0xff] }
  0xbc   :  { %16539 = vmatmul.mubr.f32.gmra.mrb[4].mxu0 %v20761_v44 }
  0xbd   :  { %16541 = vmatprep.mubr.f32.mxu0 %v20766_v45  ;;  %18955 = vmatpush3.bf16.msra.mxu0 %v18952_v53  ;;  %v14529_v53 = vld [vmem:[%s24725_s1 + $0x360] sm:$0xff] }
  0xbe   :  { %18957 = vmatprep.subr.bf16.mxu0 %v18956_v34  ;;  %v18968_v2 = vpack.c.bf16 %v14530_v57, %v14529_v53 }
  0xc0   :  { %16542 = vmatmul.mubr.f32.gmra.mrb[6].mxu0 %v20779_v49 }
  0xc1   :  { %16544 = vmatprep.mubr.f32.mxu0 %v20784_v50  ;;  %18959 = vmatpush3.bf16.msra.mxu0 %v18956_v34  ;;  %v14531_v34 = vld [vmem:[%s24725_s1 + $0x370] sm:$0xff] }
  0xc2   :  { %18961 = vmatprep.subr.bf16.mxu0 %v18960_v61  ;;  %v18972_v58 = vpack.c.bf16 %v14532_v56, %v14531_v34  ;;  %v24923_v34 = vld [vmem:[#allocation9_spill] sm:$0xff]  ;;  %v24924_v56 = vld [vmem:[#allocation10_spill] sm:$0xff] }
  0xc4   :  { %16545 = vmatmul.mubr.f32.gmra.mrb[8].mxu0 %v20797_v54 }
  0xc5   :  { %16547 = vmatprep.mubr.f32.mxu0 %v20802_v55  ;;  %18963 = vmatpush3.bf16.msra.mxu0 %v18960_v61  ;;  %v14533_v61 = vld [vmem:[%s24725_s1 + $0x80] sm:$0xff] }
  0xc6   :  { %18965 = vmatprep.subr.bf16.mxu0 %v18964_v30  ;;  %v21239_v53 = vpack.c.bf16 %v14534_v63, %v14533_v61  ;;  %v24926_v61 = vld [vmem:[#allocation12_spill] sm:$0xff]  ;;  %v24927_v63 = vld [vmem:[#allocation13_spill] sm:$0xff] }
  0xc8   :  { %16548 = vmatmul.mubr.f32.gmra.mrb[10].mxu0 %v20815_v59 }
  0xc9   :  { %16550 = vmatprep.mubr.f32.mxu0 %v20820_v60  ;;  %18967 = vmatpush3.bf16.msra.mxu0 %v18964_v30 }
  0xca   :  { %18969 = vmatprep.subr.bf16.mxu0 %v18968_v2 }
  0xcc   :  { %16551 = vmatmul.mubr.f32.gmra.mrb[12].mxu0 %v20833_v0 }
  0xcd   :  { %16553 = vmatprep.mubr.f32.mxu0 %v20838_v1  ;;  %18971 = vmatpush3.bf16.msra.mxu0 %v18968_v2  ;;  %v24922_v2 = vld [vmem:[#allocation8_spill] sm:$0xff] }
  0xce   :  { %18973 = vmatprep.subr.bf16.mxu0 %v18972_v58 }
  0xd0   :  { %16554 = vmatmul.mubr.f32.gmra.mrb[14].mxu0 %v20847_v3 }
  0xd1   :  { %16556 = vmatprep.mubr.f32.mxu0 %v20852_v4  ;;  %18975 = vmatpush3.bf16.msra.mxu0 %v18972_v58  ;;  %v24925_v58 = vld [vmem:[#allocation11_spill] sm:$0xff] }
  0xd2   :  { %18977 = vmatprep.subr.bf16.mxu0 %v21239_v53 }
  0xd4   :  { %16557 = vmatmul.mubr.f32.gmra.mrb[16].mxu0 %v20860_v5 }
  0xd5   :  { %16559 = vmatprep.mubr.f32.mxu0 %v20865_v6 }
  0xd8   :  { %16560 = vmatmul.mubr.f32.gmra.mrb[18].mxu0 %v20872_v7 }
  0xd9   :  { %16562 = vmatprep.mubr.f32.mxu0 %v20877_v8 }
  0xdc   :  { %16563 = vmatmul.mubr.f32.gmra.mrb[20].mxu0 %v20884_v9 }
  0xdd   :  { %16565 = vmatprep.mubr.f32.mxu0 %v20889_v10 }
  0xe0   :  { %16566 = vmatmul.mubr.f32.gmra.mrb[22].mxu0 %v20896_v11 }
  0xe1   :  { %16568 = vmatprep.mubr.f32.mxu0 %v20901_v12 }
  0xe4   :  { %16569 = vmatmul.mubr.f32.gmra.mrb[24].mxu0 %v20908_v13 }
  0xe5   :  { %16571 = vmatprep.mubr.f32.mxu0 %v20913_v14 }
  0xe8   :  { %16572 = vmatmul.mubr.f32.gmra.mrb[26].mxu0 %v20920_v15 }
  0xe9   :  { %16574 = vmatprep.mubr.f32.mxu0 %v20925_v16 }
  0xec   :  { %16575 = vmatmul.mubr.f32.gmra.mrb[28].mxu0 %v20932_v17 }
  0xed   :  { %16577 = vmatprep.mubr.f32.mxu0 %v20937_v18 }
  0xf0   :  { %16578 = vmatmul.mubr.f32.gmra.mrb[30].mxu0 %v20944_v19 }
  0xf1   :  { %16580 = vmatprep.mubr.f32.mxu0 %v20949_v20 }
  0xf4   :  { %16581 = vmatmul.mubr.f32.gmra.mrb[32].mxu0 %v20956_v21 }
  0xf5   :  { %16583 = vmatprep.mubr.f32.mxu0 %v20961_v22 }
  0xf7   :  { %v16394_v30 = vpop.f32.mrb[0].mxu0 }
  0xf8   :  { %v424_v57 = vpop.f32.mrb[1].mxu0  ;;  %16584 = vmatmul.mubr.f32.gmra.mrb[74].mxu0 %v20968_v23  ;;  %v24928_v30 = vld [vmem:[#allocation14_spill] sm:$0xff] }
  0xf9   :  { %16586 = vmatprep.mubr.f32.mxu0 %v20973_v24  ;;  %v24929_v57 = vld [vmem:[#allocation15_spill] sm:$0xff] }
  0xfc   :  { %16587 = vmatmul.mubr.f32.gmra.mrb[76].mxu0 %v20980_v25 }
  0xfd   :  { %16589 = vmatprep.mubr.f32.mxu0 %v20985_v26 }
 0x100   :  { %16590 = vmatmul.mubr.f32.gmra.mrb[38].mxu0 %v20992_v27 }
 0x101   :  { %16592 = vmatprep.mubr.f32.mxu0 %v20997_v28 }
 0x104   :  { %16593 = vmatmul.mubr.f32.gmra.mrb[40].mxu0 %v21004_v29 }
 0x105   :  { %16595 = vmatprep.mubr.f32.mxu0 %v21009_v31 }
 0x108   :  { %16596 = vmatmul.mubr.f32.gmra.mrb[42].mxu0 %v21016_v32 }
 0x109   :  { %16598 = vmatprep.mubr.f32.mxu0 %v21021_v33 }
 0x10c   :  { %16599 = vmatmul.mubr.f32.gmra.mrb[44].mxu0 %v21028_v36 }
 0x10d   :  { %16601 = vmatprep.mubr.f32.mxu0 %v21033_v37 }
 0x110   :  { %16602 = vmatmul.mubr.f32.gmra.mrb[46].mxu0 %v21040_v38 }
 0x111   :  { %16604 = vmatprep.mubr.f32.mxu0 %v21045_v41 }
 0x114   :  { %16605 = vmatmul.mubr.f32.gmra.mrb[48].mxu0 %v21052_v42 }
 0x115   :  { %16607 = vmatprep.mubr.f32.mxu0 %v21057_v43 }
 0x118   :  { %16608 = vmatmul.mubr.f32.gmra.mrb[50].mxu0 %v21064_v46 }
 0x119   :  { %16610 = vmatprep.mubr.f32.mxu0 %v21069_v47 }
 0x11c   :  { %16611 = vmatmul.mubr.f32.gmra.mrb[52].mxu0 %v21076_v48  ;;  %v24930_v48 = vld [vmem:[#allocation16_spill] sm:$0xff] }
 0x11d   :  { %16613 = vmatprep.mubr.f32.mxu0 %v21081_v51  ;;  %v24931_v51 = vld [vmem:[#allocation17_spill] sm:$0xff] }
 0x120   :  { %16614 = vmatmul.mubr.f32.gmra.mrb[54].mxu0 %v21088_v52  ;;  %v24932_v52 = vld [vmem:[#allocation18_spill] sm:$0xff] }
 0x121   :  { %16616 = vmatprep.mubr.f32.mxu0 %v24922_v2  ;;  %v24933_v2 = vld [vmem:[#allocation19_spill] sm:$0xff] }
 0x124   :  { %16617 = vmatmul.mubr.f32.gmra.mrb[56].mxu0 %v24923_v34  ;;  %v24934_v34 = vld [vmem:[#allocation20_spill] sm:$0xff] }
 0x125   :  { %16619 = vmatprep.mubr.f32.mxu0 %v24924_v56 }
 0x128   :  { %16620 = vmatmul.mubr.f32.gmra.mrb[58].mxu0 %v24925_v58 }
 0x129   :  { %16622 = vmatprep.mubr.f32.mxu0 %v24926_v61  ;;  %v21299_v61 = vld [vmem:[%s24726_s0 + $0x348] sm:$0xff] }
 0x12a   :  { %24935 = vst [vmem:[#allocation10_spill] sm:$0xff] %v21299_v61 }
 0x12c   :  { %16623 = vmatmul.mubr.f32.gmra.mrb[60].mxu0 %v24927_v63 }
 0x12d   :  { %16625 = vmatprep.mubr.f32.mxu0 %v24928_v30 }
 0x130   :  { %16626 = vmatmul.mubr.f32.gmra.mrb[62].mxu0 %v24929_v57 }
 0x131   :  { %16628 = vmatprep.mubr.f32.mxu0 %v24930_v48 }
 0x134   :  { %16629 = vmatmul.mubr.f32.gmra.mrb[64].mxu0 %v24931_v51  ;;  %v21306_v51 = vld [vmem:[%s24726_s0 + $0x350] sm:$0xff] }
 0x135   :  { %16631 = vmatprep.mubr.f32.mxu0 %v24932_v52 }
 0x138   :  { %16632 = vmatmul.mubr.f32.gmra.mrb[66].mxu0 %v24933_v2  ;;  %v14536_v2 = vld [vmem:[%s24725_s1 + $0x98] sm:$0xff] }
 0x139   :  { %16634 = vmatprep.mubr.f32.mxu0 %v24934_v34  ;;  %v14535_v34 = vld [vmem:[%s24725_s1 + $0x90] sm:$0xff] }
 0x13b   :  { %v16445_v63 = vpop.f32.mrb[34].mxu0 }
 0x13c   :  { %v594_v58 = vpop.f32.mrb[35].mxu0  ;;  %16635 = vmatmul.mubr.f32.gmra.mrb[68].mxu0 %v21172_v62 }
 0x13d   :  { %16637 = vmatprep.mubr.f32.mxu0 %v21299_v61  ;;  %v18980_v58 = vpack.c.bf16 %v14536_v2, %v14535_v34  ;;  %v14537_v61 = vld [vmem:[%s24725_s1 + $0xa0] sm:$0xff]  ;;  %v14540_v2 = vld [vmem:[%s24725_s1 + $0xb8] sm:$0xff] }
 0x13e   :  { %v14544_v34 = vld [vmem:[%s24725_s1 + $0xd8] sm:$0xff] }
 0x13f   :  { %v16448_v52 = vpop.f32.mrb[36].mxu0 }
 0x140   :  { %v604_v63 = vpop.f32.mrb[37].mxu0  ;;  %16638 = vmatmul.mubr.f32.gmra.mrb[78].mxu0 %v21306_v51  ;;  %v14538_v52 = vld [vmem:[%s24725_s1 + $0xa8] sm:$0xff] }
 0x141   :  { %16672 = vmatprep.mubr.f32.mxu0 %v20730_v35  ;;  %v18984_v63 = vpack.c.bf16 %v14538_v52, %v14537_v61  ;;  %v14539_v35 = vld [vmem:[%s24725_s1 + $0xb0] sm:$0xff]  ;;  %v14546_v61 = vld [vmem:[%s24725_s1 + $0xe8] sm:$0xff] }
 0x142   :  { %v14550_v52 = vld [vmem:[%s24725_s1 + $0x208] sm:$0xff] }
 0x144   :  { %16673 = vmatmul.mubr.f32.vlgmr.msra.gmra.mrb[80].mxu0 %v20743_v39  ;;  %v18988_v39 = vpack.c.bf16 %v14540_v2, %v14539_v35  ;;  %v14561_v35 = vld [vmem:[%s24725_s1 + $0x260] sm:$0xff]  ;;  %v14562_v2 = vld [vmem:[%s24725_s1 + $0x268] sm:$0xff] }
 0x145   :  { %18979 = vmatpush3.bf16.msra.mxu0 %v21239_v53  ;;  %16675 = vmatprep.mubr.f32.mxu0 %v20748_v40  ;;  %v14541_v40 = vld [vmem:[%s24725_s1 + $0xc0] sm:$0xff]  ;;  %v14542_v53 = vld [vmem:[%s24725_s1 + $0xc8] sm:$0xff] }
 0x146   :  { %18981 = vmatprep.subr.bf16.mxu0 %v18980_v58 }
 0x148   :  { %16676 = vmatmul.mubr.f32.gmra.mrb[2].mxu0 %v20761_v44  ;;  %v18992_v44 = vpack.c.bf16 %v14542_v53, %v14541_v40  ;;  %v21536_v40 = vld [vmem:[%s24726_s0 + $0x79] sm:$0xff]  ;;  %v19032_v53 = vpack.c.bf16 %v14562_v2, %v14561_v35  ;;  %v21798_v2 = vld [vmem:[%s24726_s0 + $0x261] sm:$0xff] }
 0x149   :  { %16678 = vmatprep.mubr.f32.mxu0 %v20766_v45  ;;  %18983 = vmatpush3.bf16.msra.mxu0 %v18980_v58  ;;  %v14543_v45 = vld [vmem:[%s24725_s1 + $0xd0] sm:$0xff]  ;;  %v14548_v58 = vld [vmem:[%s24725_s1 + $0xf8] sm:$0xff] }
 0x14a   :  { %18985 = vmatprep.subr.bf16.mxu0 %v18984_v63  ;;  %v21791_v35 = vld [vmem:[%s24726_s0 + $0x259] sm:$0xff] }
 0x14c   :  { %16679 = vmatmul.mubr.f32.gmra.mrb[4].mxu0 %v20779_v49  ;;  %v18996_v49 = vpack.c.bf16 %v14544_v34, %v14543_v45  ;;  %v14564_v45 = vld [vmem:[%s24725_s1 + $0x278] sm:$0xff]  ;;  %v21549_v34 = vld [vmem:[%s24726_s0 + $0x81] sm:$0xff] }
 0x14d   :  { %16681 = vmatprep.mubr.f32.mxu0 %v20784_v50  ;;  %18987 = vmatpush3.bf16.msra.mxu0 %v18984_v63  ;;  %v14545_v50 = vld [vmem:[%s24725_s1 + $0xe0] sm:$0xff] }
 0x14e   :  { %18989 = vmatprep.subr.bf16.mxu0 %v18988_v39 }
 0x150   :  { %16682 = vmatmul.mubr.f32.gmra.mrb[6].mxu0 %v20797_v54  ;;  %v19000_v54 = vpack.c.bf16 %v14546_v61, %v14545_v50  ;;  %v14565_v61 = vld [vmem:[%s24725_s1 + $0x380] sm:$0xff] }
 0x151   :  { %16684 = vmatprep.mubr.f32.mxu0 %v20802_v55  ;;  %18991 = vmatpush3.bf16.msra.mxu0 %v18988_v39  ;;  %v14547_v55 = vld [vmem:[%s24725_s1 + $0xf0] sm:$0xff] }
 0x152   :  { %18993 = vmatprep.subr.bf16.mxu0 %v18992_v44  ;;  %v21531_v39 = vld [vmem:[%s24726_s0 + $0x69] sm:$0xff] }
 0x154   :  { %16685 = vmatmul.mubr.f32.gmra.mrb[8].mxu0 %v20815_v59  ;;  %v19004_v59 = vpack.c.bf16 %v14548_v58, %v14547_v55  ;;  %v21567_v55 = vld [vmem:[%s24726_s0 + $0x99] sm:$0xff]  ;;  %v21572_v58 = vld [vmem:[%s24726_s0 + $0xa9] sm:$0xff] }
 0x155   :  { %16687 = vmatprep.mubr.f32.mxu0 %v20820_v60  ;;  %18995 = vmatpush3.bf16.msra.mxu0 %v18992_v44  ;;  %v14549_v60 = vld [vmem:[%s24725_s1 + $0x200] sm:$0xff]  ;;  %v14563_v44 = vld [vmem:[%s24725_s1 + $0x270] sm:$0xff] }
 0x156   :  { %18997 = vmatprep.subr.bf16.mxu0 %v18996_v49  ;;  %v19036_v50 = vpack.c.bf16 %v14564_v45, %v14563_v44  ;;  %v21810_v44 = vld [vmem:[%s24726_s0 + $0x279] sm:$0xff]  ;;  %v21815_v45 = vld [vmem:[%s24726_s0 + $0x289] sm:$0xff] }
 0x157   :  { %24951 = vst [vmem:[#allocation16_spill] sm:$0xff] %v21810_v44 }
 0x158   :  { %16688 = vmatmul.mubr.f32.gmra.mrb[10].mxu0 %v20833_v0  ;;  %v21373_v0 = vpack.c.bf16 %v14550_v52, %v14549_v60  ;;  %v21581_v60 = vld [vmem:[%s24726_s0 + $0xb1] sm:$0xff]  ;;  %v21586_v52 = vld [vmem:[%s24726_s0 + $0xc1] sm:$0xff] }
 0x159   :  { %16690 = vmatprep.mubr.f32.mxu0 %v20838_v1  ;;  %18999 = vmatpush3.bf16.msra.mxu0 %v18996_v49  ;;  %v21554_v49 = vld [vmem:[%s24726_s0 + $0x91] sm:$0xff] }
 0x15a   :  { %19001 = vmatprep.subr.bf16.mxu0 %v19000_v54 }
 0x15c   :  { %16691 = vmatmul.mubr.f32.gmra.mrb[12].mxu0 %v20847_v3 }
 0x15d   :  { %16693 = vmatprep.mubr.f32.mxu0 %v20852_v4  ;;  %19003 = vmatpush3.bf16.msra.mxu0 %v19000_v54  ;;  %v14566_v54 = vld [vmem:[%s24725_s1 + $0x388] sm:$0xff] }
 0x15e   :  { %19005 = vmatprep.subr.bf16.mxu0 %v19004_v59 }
 0x160   :  { %16694 = vmatmul.mubr.f32.gmra.mrb[14].mxu0 %v20860_v5 }
 0x161   :  { %16696 = vmatprep.mubr.f32.mxu0 %v20865_v6  ;;  %19007 = vmatpush3.bf16.msra.mxu0 %v19004_v59  ;;  %v24936_v6 = vld [vmem:[#allocation5_spill] sm:$0xff]  ;;  %v21574_v59 = vpack.c.bf16 %v14566_v54, %v14565_v61  ;;  %v21834_v54 = vld [vmem:[%s24726_s0 + $0x2a9] sm:$0xff] }
 0x162   :  { %19009 = vmatprep.subr.bf16.mxu0 %v21373_v0  ;;  %24952 = vst [vmem:[#allocation5_spill] sm:$0xff] %v21815_v45  ;;  %v21827_v61 = vld [vmem:[%s24726_s0 + $0x2a1] sm:$0xff] }
 0x164   :  { %16697 = vmatmul.mubr.f32.gmra.mrb[16].mxu0 %v20872_v7  ;;  %v24937_v7 = vld [vmem:[#allocation6_spill] sm:$0xff] }
 0x165   :  { %16699 = vmatprep.mubr.f32.mxu0 %v20877_v8  ;;  %v24938_v8 = vld [vmem:[#allocation7_spill] sm:$0xff] }
 0x166   :  { %24954 = vst [vmem:[#allocation7_spill] sm:$0xff] %v21827_v61 }
 0x168   :  { %16700 = vmatmul.mubr.f32.gmra.mrb[18].mxu0 %v20884_v9  ;;  %v24939_v9 = vld [vmem:[#allocation8_spill] sm:$0xff] }
 0x169   :  { %16702 = vmatprep.mubr.f32.mxu0 %v20889_v10  ;;  %v24940_v10 = vld [vmem:[#allocation9_spill] sm:$0xff]  ;;  %24955 = vst [vmem:[#allocation8_spill] sm:$0xff] %v21834_v54 }
 0x16c   :  { %16703 = vmatmul.mubr.f32.gmra.mrb[20].mxu0 %v20896_v11  ;;  %v24941_v11 = vld [vmem:[#allocation11_spill] sm:$0xff] }
 0x16d   :  { %16705 = vmatprep.mubr.f32.mxu0 %v20901_v12  ;;  %v24942_v12 = vld [vmem:[#allocation12_spill] sm:$0xff] }
 0x170   :  { %16706 = vmatmul.mubr.f32.gmra.mrb[22].mxu0 %v20908_v13  ;;  %v24943_v13 = vld [vmem:[#allocation13_spill] sm:$0xff] }
 0x171   :  { %16708 = vmatprep.mubr.f32.mxu0 %v20913_v14  ;;  %v24944_v14 = vld [vmem:[#allocation17_spill] sm:$0xff] }
 0x174   :  { %16709 = vmatmul.mubr.f32.gmra.mrb[24].mxu0 %v20920_v15  ;;  %v24945_v15 = vld [vmem:[#allocation18_spill] sm:$0xff] }
 0x175   :  { %16711 = vmatprep.mubr.f32.mxu0 %v20925_v16  ;;  %v24946_v16 = vld [vmem:[#allocation19_spill] sm:$0xff] }
 0x178   :  { %16712 = vmatmul.mubr.f32.gmra.mrb[26].mxu0 %v20932_v17  ;;  %v24947_v17 = vld [vmem:[#allocation20_spill] sm:$0xff] }
 0x179   :  { %16714 = vmatprep.mubr.f32.mxu0 %v20937_v18  ;;  %v24948_v18 = vld [vmem:[#allocation10_spill] sm:$0xff] }
 0x17c   :  { %16715 = vmatmul.mubr.f32.gmra.mrb[28].mxu0 %v20944_v19 }
 0x17d   :  { %16717 = vmatprep.mubr.f32.mxu0 %v20949_v20 }
 0x180   :  { %16718 = vmatmul.mubr.f32.gmra.mrb[30].mxu0 %v20956_v21  ;;  %v21431_v21 = vld [vmem:[#allocation4] sm:$0xff] }
 0x181   :  { %16720 = vmatprep.mubr.f32.mxu0 %v20961_v22  ;;  %24949 = vst [vmem:[#allocation14_spill] sm:$0xff] %v21431_v21 }
 0x183   :  { %v16499_v1 = vpop.f32.mrb[70].mxu0 }
 0x184   :  { %v774_v3 = vpop.f32.mrb[71].mxu0  ;;  %16721 = vmatmul.mubr.f32.gmra.mrb[32].mxu0 %v20968_v23  ;;  %v14551_v23 = vld [vmem:[%s24725_s1 + $0x210] sm:$0xff]  ;;  %v21599_v1 = vld [vmem:[%s24726_s0 + $0xd9] sm:$0xff] }
 0x185   :  { %16723 = vmatprep.mubr.f32.mxu0 %v20973_v24  ;;  %v14552_v24 = vld [vmem:[%s24725_s1 + $0x218] sm:$0xff]  ;;  %v21606_v3 = vld [vmem:[%s24726_s0 + $0xe1] sm:$0xff] }
 0x187   :  { %v16534_v4 = vpop.f32.mrb[72].mxu0 }
 0x188   :  { %v1010_v5 = vpop.f32.mrb[73].mxu0  ;;  %16724 = vmatmul.mubr.f32.gmra.mrb[82].mxu0 %v20980_v25  ;;  %v21611_v4 = vld [vmem:[%s24726_s0 + $0xf1] sm:$0xff] }
 0x189   :  { %16726 = vmatprep.mubr.f32.mxu0 %v20985_v26  ;;  %v21445_v26 = vld [vmem:[%s24726_s0 + $0x1] sm:$0xff]  ;;  %v21618_v5 = vld [vmem:[%s24726_s0 + $0xf9] sm:$0xff] }
 0x18c   :  { %16727 = vmatmul.mubr.f32.gmra.mrb[84].mxu0 %v20992_v27  ;;  %v19012_v27 = vpack.c.bf16 %v14552_v24, %v14551_v23  ;;  %v21702_v24 = vld [vmem:[%s24726_s0 + $0x1a1] sm:$0xff] }
 0x18d   :  { %16729 = vmatprep.mubr.f32.mxu0 %v20997_v28  ;;  %v14553_v28 = vld [vmem:[%s24725_s1 + $0x220] sm:$0xff] }
 0x190   :  { %16730 = vmatmul.mubr.f32.gmra.mrb[38].mxu0 %v21004_v29  ;;  %v14554_v29 = vld [vmem:[%s24725_s1 + $0x228] sm:$0xff] }
 0x191   :  { %16732 = vmatprep.mubr.f32.mxu0 %v21009_v31  ;;  %v21459_v31 = vld [vmem:[%s24726_s0 + $0x9] sm:$0xff] }
 0x194   :  { %16733 = vmatmul.mubr.f32.gmra.mrb[40].mxu0 %v21016_v32  ;;  %v21464_v32 = vld [vmem:[%s24726_s0 + $0x19] sm:$0xff] }
 0x195   :  { %16735 = vmatprep.mubr.f32.mxu0 %v21021_v33  ;;  %v19016_v33 = vpack.c.bf16 %v14554_v29, %v14553_v28  ;;  %v21719_v28 = vld [vmem:[%s24726_s0 + $0x1c9] sm:$0xff]  ;;  %v21726_v29 = vld [vmem:[%s24726_s0 + $0x1d1] sm:$0xff] }
 0x198   :  { %16736 = vmatmul.mubr.f32.gmra.mrb[42].mxu0 %v21028_v36  ;;  %v14555_v36 = vld [vmem:[%s24725_s1 + $0x230] sm:$0xff] }
 0x199   :  { %16738 = vmatprep.mubr.f32.mxu0 %v21033_v37  ;;  %v14556_v37 = vld [vmem:[%s24725_s1 + $0x238] sm:$0xff] }
 0x19c   :  { %16739 = vmatmul.mubr.f32.gmra.mrb[44].mxu0 %v21040_v38  ;;  %v21477_v38 = vld [vmem:[%s24726_s0 + $0x21] sm:$0xff] }
 0x19d   :  { %16741 = vmatprep.mubr.f32.mxu0 %v21045_v41  ;;  %v21482_v41 = vld [vmem:[%s24726_s0 + $0x31] sm:$0xff] }
 0x1a0   :  { %16742 = vmatmul.mubr.f32.gmra.mrb[46].mxu0 %v21052_v42  ;;  %v19020_v42 = vpack.c.bf16 %v14556_v37, %v14555_v36  ;;  %v21738_v36 = vld [vmem:[%s24726_s0 + $0x1e9] sm:$0xff]  ;;  %v21743_v37 = vld [vmem:[%s24726_s0 + $0x1f9] sm:$0xff] }
 0x1a1   :  { %16744 = vmatprep.mubr.f32.mxu0 %v21057_v43  ;;  %v14557_v43 = vld [vmem:[%s24725_s1 + $0x240] sm:$0xff] }
 0x1a4   :  { %16745 = vmatmul.mubr.f32.gmra.mrb[48].mxu0 %v21064_v46  ;;  %v14558_v46 = vld [vmem:[%s24725_s1 + $0x248] sm:$0xff] }
 0x1a5   :  { %16747 = vmatprep.mubr.f32.mxu0 %v21069_v47  ;;  %v21495_v47 = vld [vmem:[%s24726_s0 + $0x39] sm:$0xff] }
 0x1a8   :  { %16748 = vmatmul.mubr.f32.gmra.mrb[50].mxu0 %v24936_v6  ;;  %v21623_v6 = vld [vmem:[%s24726_s0 + $0x109] sm:$0xff] }
 0x1a9   :  { %16750 = vmatprep.mubr.f32.mxu0 %v24937_v7  ;;  %v21630_v7 = vld [vmem:[%s24726_s0 + $0x111] sm:$0xff] }
 0x1ac   :  { %16751 = vmatmul.mubr.f32.gmra.mrb[52].mxu0 %v24938_v8  ;;  %v21635_v8 = vld [vmem:[%s24726_s0 + $0x121] sm:$0xff] }
 0x1ad   :  { %16753 = vmatprep.mubr.f32.mxu0 %v24939_v9  ;;  %v21642_v9 = vld [vmem:[%s24726_s0 + $0x129] sm:$0xff] }
 0x1b0   :  { %16754 = vmatmul.mubr.f32.gmra.mrb[54].mxu0 %v24940_v10  ;;  %v21647_v10 = vld [vmem:[%s24726_s0 + $0x139] sm:$0xff] }
 0x1b1   :  { %16756 = vmatprep.mubr.f32.mxu0 %v24924_v56  ;;  %v14560_v56 = vld [vmem:[%s24725_s1 + $0x258] sm:$0xff] }
 0x1b4   :  { %16757 = vmatmul.mubr.f32.gmra.mrb[56].mxu0 %v24941_v11  ;;  %v21654_v11 = vld [vmem:[%s24726_s0 + $0x141] sm:$0xff] }
 0x1b5   :  { %16759 = vmatprep.mubr.f32.mxu0 %v24942_v12  ;;  %v21659_v12 = vld [vmem:[%s24726_s0 + $0x151] sm:$0xff] }
 0x1b8   :  { %16760 = vmatmul.mubr.f32.gmra.mrb[58].mxu0 %v24943_v13  ;;  %v21666_v13 = vld [vmem:[%s24726_s0 + $0x159] sm:$0xff] }
 0x1b9   :  { %16762 = vmatprep.mubr.f32.mxu0 %v24928_v30  ;;  %v21513_v30 = vld [vmem:[%s24726_s0 + $0x51] sm:$0xff] }
 0x1bc   :  { %16763 = vmatmul.mubr.f32.gmra.mrb[60].mxu0 %v24929_v57  ;;  %v21518_v57 = vld [vmem:[%s24726_s0 + $0x61] sm:$0xff] }
 0x1bd   :  { %16765 = vmatprep.mubr.f32.mxu0 %v24930_v48  ;;  %v21500_v48 = vld [vmem:[%s24726_s0 + $0x49] sm:$0xff] }
 0x1c0   :  { %16766 = vmatmul.mubr.f32.gmra.mrb[62].mxu0 %v24944_v14  ;;  %v21671_v14 = vld [vmem:[%s24726_s0 + $0x169] sm:$0xff] }
 0x1c1   :  { %16768 = vmatprep.mubr.f32.mxu0 %v24945_v15  ;;  %v21678_v15 = vld [vmem:[%s24726_s0 + $0x171] sm:$0xff] }
 0x1c4   :  { %16769 = vmatmul.mubr.f32.gmra.mrb[64].mxu0 %v24946_v16  ;;  %v21683_v16 = vld [vmem:[%s24726_s0 + $0x181] sm:$0xff] }
 0x1c5   :  { %16771 = vmatprep.mubr.f32.mxu0 %v24947_v17 }
 0x1c8   :  { %16772 = vmatmul.mubr.f32.gmra.mrb[66].mxu0 %v21172_v62  ;;  %v14559_v62 = vld [vmem:[%s24725_s1 + $0x250] sm:$0xff] }
 0x1c9   :  { %16774 = vmatprep.mubr.f32.mxu0 %v24948_v18  ;;  %v19028_v63 = vpack.c.bf16 %v14560_v56, %v14559_v62  ;;  %v21774_v62 = vld [vmem:[%s24726_s0 + $0x231] sm:$0xff]  ;;  %v21779_v56 = vld [vmem:[%s24726_s0 + $0x241] sm:$0xff] }
 0x1cb   :  { %v16585_v19 = vpop.f32.mrb[74].mxu0 }
 0x1cc   :  { %v1180_v20 = vpop.f32.mrb[75].mxu0  ;;  %16775 = vmatmul.mubr.f32.gmra.mrb[68].mxu0 %v21306_v51  ;;  %v19024_v51 = vpack.c.bf16 %v14558_v46, %v14557_v43  ;;  %v21690_v19 = vld [vmem:[%s24726_s0 + $0x189] sm:$0xff]  ;;  %v21755_v43 = vld [vmem:[%s24726_s0 + $0x211] sm:$0xff]  ;;  %v21762_v46 = vld [vmem:[%s24726_s0 + $0x219] sm:$0xff] }
 0x1cd   :  { %16777 = vmatprep.mubr.f32.mxu0 %v21431_v21  ;;  %v21695_v20 = vld [vmem:[%s24726_s0 + $0x199] sm:$0xff] }
 0x1cf   :  { %v16588_v22 = vpop.f32.mrb[76].mxu0 }
 0x1d0   :  { %v1190_v25 = vpop.f32.mrb[77].mxu0  ;;  %16778 = vmatmul.mubr.f32.gmra.mrb[86].mxu0 %v21431_v21 }
 0x1d1   :  { %16812 = vmatprep.mubr.f32.mxu0 %v21431_v21  ;;  %v21707_v25 = vld [vmem:[%s24726_s0 + $0x1b1] sm:$0xff] }
 0x1d4   :  { %16813 = vmatmul.mubr.f32.vlgmr.msra.gmra.mrb[88].mxu0 %v21431_v21  ;;  %v21863_v21 = vld [vmem:[%s24726_s0 + $0x2e9] sm:$0xff] }
 0x1d5   :  { %19011 = vmatpush3.bf16.msra.mxu0 %v21373_v0  ;;  %16815 = vmatprep.mubr.f32.mxu0 %v21445_v26  ;;  %v21594_v0 = vld [vmem:[%s24726_s0 + $0xc9] sm:$0xff]  ;;  %24960 = vst [vmem:[#allocation17_spill] sm:$0xff] %v21863_v21 }
 0x1d6   :  { %19013 = vmatprep.subr.bf16.mxu0 %v19012_v27 }
 0x1d8   :  { %16816 = vmatmul.mubr.f32.gmra.mrb[2].mxu0 %v21459_v31 }
 0x1d9   :  { %16818 = vmatprep.mubr.f32.mxu0 %v21464_v32  ;;  %19015 = vmatpush3.bf16.msra.mxu0 %v19012_v27  ;;  %v21714_v27 = vld [vmem:[%s24726_s0 + $0x1b9] sm:$0xff] }
 0x1da   :  { %19017 = vmatprep.subr.bf16.mxu0 %v19016_v33 }
 0x1dc   :  { %16819 = vmatmul.mubr.f32.gmra.mrb[4].mxu0 %v21477_v38 }
 0x1dd   :  { %16821 = vmatprep.mubr.f32.mxu0 %v21482_v41  ;;  %19019 = vmatpush3.bf16.msra.mxu0 %v19016_v33  ;;  %v21731_v33 = vld [vmem:[%s24726_s0 + $0x1e1] sm:$0xff] }
 0x1de   :  { %19021 = vmatprep.subr.bf16.mxu0 %v19020_v42 }
 0x1e0   :  { %16822 = vmatmul.mubr.f32.gmra.mrb[6].mxu0 %v21495_v47 }
 0x1e1   :  { %16824 = vmatprep.mubr.f32.mxu0 %v21500_v48  ;;  %19023 = vmatpush3.bf16.msra.mxu0 %v19020_v42  ;;  %v21750_v42 = vld [vmem:[%s24726_s0 + $0x201] sm:$0xff] }
 0x1e2   :  { %19025 = vmatprep.subr.bf16.mxu0 %v19024_v51 }
 0x1e4   :  { %16825 = vmatmul.mubr.f32.gmra.mrb[8].mxu0 %v21513_v30 }
 0x1e5   :  { %16827 = vmatprep.mubr.f32.mxu0 %v21518_v57  ;;  %19027 = vmatpush3.bf16.msra.mxu0 %v19024_v51  ;;  %v21767_v51 = vld [vmem:[%s24726_s0 + $0x229] sm:$0xff] }
 0x1e6   :  { %19029 = vmatprep.subr.bf16.mxu0 %v19028_v63 }
 0x1e8   :  { %16828 = vmatmul.mubr.f32.gmra.mrb[10].mxu0 %v21531_v39 }
 0x1e9   :  { %16830 = vmatprep.mubr.f32.mxu0 %v21536_v40  ;;  %19031 = vmatpush3.bf16.msra.mxu0 %v19028_v63  ;;  %v21786_v63 = vld [vmem:[%s24726_s0 + $0x249] sm:$0xff] }
 0x1ea   :  { %19033 = vmatprep.subr.bf16.mxu0 %v19032_v53 }
 0x1ec   :  { %16831 = vmatmul.mubr.f32.gmra.mrb[12].mxu0 %v21549_v34 }
 0x1ed   :  { %16833 = vmatprep.mubr.f32.mxu0 %v21554_v49  ;;  %19035 = vmatpush3.bf16.msra.mxu0 %v19032_v53  ;;  %v21803_v53 = vld [vmem:[%s24726_s0 + $0x271] sm:$0xff] }
 0x1ee   :  { %19037 = vmatprep.subr.bf16.mxu0 %v19036_v50  ;;  %24950 = vst [vmem:[#allocation15_spill] sm:$0xff] %v21803_v53 }
 0x1f0   :  { %16834 = vmatmul.mubr.f32.gmra.mrb[14].mxu0 %v21567_v55 }
 0x1f1   :  { %16836 = vmatprep.mubr.f32.mxu0 %v21572_v58  ;;  %19039 = vmatpush3.bf16.msra.mxu0 %v19036_v50  ;;  %v21822_v50 = vld [vmem:[%s24726_s0 + $0x291] sm:$0xff] }
 0x1f2   :  { %19041 = vmatprep.subr.bf16.mxu0 %v21574_v59  ;;  %24953 = vst [vmem:[#allocation6_spill] sm:$0xff] %v21822_v50 }
 0x1f4   :  { %16837 = vmatmul.mubr.f32.gmra.mrb[16].mxu0 %v21581_v60 }
 0x1f5   :  { %16839 = vmatprep.mubr.f32.mxu0 %v21586_v52 }
 0x1f8   :  { %16840 = vmatmul.mubr.f32.gmra.mrb[18].mxu0 %v21594_v0 }
 0x1f9   :  { %16842 = vmatprep.mubr.f32.mxu0 %v21599_v1 }
 0x1fc   :  { %16843 = vmatmul.mubr.f32.gmra.mrb[20].mxu0 %v21606_v3 }
 0x1fd   :  { %16845 = vmatprep.mubr.f32.mxu0 %v21611_v4 }
 0x200   :  { %16846 = vmatmul.mubr.f32.gmra.mrb[22].mxu0 %v21618_v5 }
 0x201   :  { %16848 = vmatprep.mubr.f32.mxu0 %v21623_v6 }
 0x204   :  { %16849 = vmatmul.mubr.f32.gmra.mrb[24].mxu0 %v21630_v7 }
 0x205   :  { %16851 = vmatprep.mubr.f32.mxu0 %v21635_v8 }
 0x208   :  { %16852 = vmatmul.mubr.f32.gmra.mrb[26].mxu0 %v21642_v9 }
 0x209   :  { %16854 = vmatprep.mubr.f32.mxu0 %v21647_v10 }
 0x20c   :  { %16855 = vmatmul.mubr.f32.gmra.mrb[28].mxu0 %v21654_v11 }
 0x20d   :  { %16857 = vmatprep.mubr.f32.mxu0 %v21659_v12 }
 0x210   :  { %16858 = vmatmul.mubr.f32.gmra.mrb[30].mxu0 %v21666_v13 }
 0x211   :  { %16860 = vmatprep.mubr.f32.mxu0 %v21671_v14 }
 0x213   :  { %v16639_v17 = vpop.f32.mrb[78].mxu0 }
 0x214   :  { %v1360_v18 = vpop.f32.mrb[79].mxu0  ;;  %16861 = vmatmul.mubr.f32.gmra.mrb[32].mxu0 %v21678_v15  ;;  %v21839_v17 = vld [vmem:[%s24726_s0 + $0x2b9] sm:$0xff] }
 0x215   :  { %16863 = vmatprep.mubr.f32.mxu0 %v21683_v16  ;;  %24956 = vst [vmem:[#allocation9_spill] sm:$0xff] %v21839_v17  ;;  %v21846_v18 = vld [vmem:[%s24726_s0 + $0x2c1] sm:$0xff] }
 0x216   :  { %24957 = vst [vmem:[#allocation11_spill] sm:$0xff] %v21846_v18 }
 0x217   :  { %v16674_v22 = vpop.f32.mrb[80].mxu0 }
 0x218   :  { %v1740_v23 = vpop.f32.mrb[81].mxu0  ;;  %16864 = vmatmul.mubr.f32.gmra.mrb[90].mxu0 %v21690_v19  ;;  %v21851_v22 = vld [vmem:[%s24726_s0 + $0x2d1] sm:$0xff] }
 0x219   :  { %16866 = vmatprep.mubr.f32.mxu0 %v21695_v20  ;;  %24958 = vst [vmem:[#allocation12_spill] sm:$0xff] %v21851_v22  ;;  %v21858_v23 = vld [vmem:[%s24726_s0 + $0x2d9] sm:$0xff] }
 0x21a   :  { %24959 = vst [vmem:[#allocation13_spill] sm:$0xff] %v21858_v23 }
 0x21c   :  { %16867 = vmatmul.mubr.f32.gmra.mrb[92].mxu0 %v21702_v24 }
 0x21d   :  { %16869 = vmatprep.mubr.f32.mxu0 %v21707_v25 }
 0x220   :  { %16870 = vmatmul.mubr.f32.gmra.mrb[38].mxu0 %v21714_v27 }
 0x221   :  { %16872 = vmatprep.mubr.f32.mxu0 %v21719_v28 }
 0x224   :  { %16873 = vmatmul.mubr.f32.gmra.mrb[40].mxu0 %v21726_v29 }
 0x225   :  { %16875 = vmatprep.mubr.f32.mxu0 %v21731_v33 }
 0x228   :  { %16876 = vmatmul.mubr.f32.gmra.mrb[42].mxu0 %v21738_v36 }
 0x229   :  { %16878 = vmatprep.mubr.f32.mxu0 %v21743_v37 }
 0x22c   :  { %16879 = vmatmul.mubr.f32.gmra.mrb[44].mxu0 %v21750_v42 }
 0x22d   :  { %16881 = vmatprep.mubr.f32.mxu0 %v21755_v43 }
 0x230   :  { %16882 = vmatmul.mubr.f32.gmra.mrb[46].mxu0 %v21762_v46 }
 0x231   :  { %16884 = vmatprep.mubr.f32.mxu0 %v21767_v51 }
 0x234   :  { %16885 = vmatmul.mubr.f32.gmra.mrb[48].mxu0 %v21774_v62 }
 0x235   :  { %16887 = vmatprep.mubr.f32.mxu0 %v21779_v56 }
 0x238   :  { %16888 = vmatmul.mubr.f32.gmra.mrb[50].mxu0 %v21786_v63 }
 0x239   :  { %16890 = vmatprep.mubr.f32.mxu0 %v21791_v35 }
 0x23c   :  { %16891 = vmatmul.mubr.f32.gmra.mrb[52].mxu0 %v21798_v2 }
 0x23d   :  { %16893 = vmatprep.mubr.f32.mxu0 %v21803_v53 }
 0x240   :  { %16894 = vmatmul.mubr.f32.gmra.mrb[54].mxu0 %v21810_v44 }
 0x241   :  { %16896 = vmatprep.mubr.f32.mxu0 %v21815_v45 }
 0x244   :  { %16897 = vmatmul.mubr.f32.gmra.mrb[56].mxu0 %v21822_v50  ;;  %v14568_v50 = vld [vmem:[%s24725_s1 + $0x398] sm:$0xff] }
 0x245   :  { %16899 = vmatprep.mubr.f32.mxu0 %v21827_v61  ;;  %v14567_v61 = vld [vmem:[%s24725_s1 + $0x390] sm:$0xff] }
 0x248   :  { %16900 = vmatmul.mubr.f32.gmra.mrb[58].mxu0 %v21834_v54 }
 0x249   :  { %16902 = vmatprep.mubr.f32.mxu0 %v21839_v17 }
 0x24c   :  { %16903 = vmatmul.mubr.f32.gmra.mrb[60].mxu0 %v21846_v18  ;;  %v21870_v18 = vld [vmem:[%s24726_s0 + $0x2f1] sm:$0xff] }
 0x24d   :  { %16905 = vmatprep.mubr.f32.mxu0 %v21851_v22  ;;  %24961 = vst [vmem:[#allocation18_spill] sm:$0xff] %v21870_v18  ;;  %v21875_v22 = vld [vmem:[%s24726_s0 + $0x301] sm:$0xff] }
 0x24e   :  { %24962 = vst [vmem:[#allocation19_spill] sm:$0xff] %v21875_v22 }
 0x250   :  { %16906 = vmatmul.mubr.f32.gmra.mrb[62].mxu0 %v21858_v23  ;;  %v21882_v23 = vld [vmem:[%s24726_s0 + $0x309] sm:$0xff] }
 0x251   :  { %16908 = vmatprep.mubr.f32.mxu0 %v21863_v21  ;;  %24963 = vst [vmem:[#allocation20_spill] sm:$0xff] %v21882_v23  ;;  %v21887_v21 = vld [vmem:[%s24726_s0 + $0x319] sm:$0xff] }
 0x252   :  { %24964 = vst [vmem:[#allocation10_spill] sm:$0xff] %v21887_v21 }
 0x254   :  { %16909 = vmatmul.mubr.f32.gmra.mrb[64].mxu0 %v21870_v18  ;;  %v21894_v18 = vld [vmem:[%s24726_s0 + $0x321] sm:$0xff] }
 0x255   :  { %16911 = vmatprep.mubr.f32.mxu0 %v21875_v22  ;;  %24965 = vst [vmem:[#allocation21_spill] sm:$0xff] %v21894_v18  ;;  %v21899_v22 = vld [vmem:[%s24726_s0 + $0x331] sm:$0xff] }
 0x256   :  { %24966 = vst [vmem:[#allocation22_spill] sm:$0xff] %v21899_v22 }
 0x258   :  { %16912 = vmatmul.mubr.f32.gmra.mrb[66].mxu0 %v21882_v23 }
 0x259   :  { %16914 = vmatprep.mubr.f32.mxu0 %v21887_v21  ;;  %v21906_v21 = vld [vmem:[%s24726_s0 + $0x339] sm:$0xff] }
 0x25b   :  { %v16725_v17 = vpop.f32.mrb[82].mxu0 }
 0x25c   :  { %v1910_v54 = vpop.f32.mrb[83].mxu0  ;;  %16915 = vmatmul.mubr.f32.gmra.mrb[68].mxu0 %v21894_v18 }
 0x25d   :  { %16917 = vmatprep.mubr.f32.mxu0 %v21899_v22  ;;  %v19044_v54 = vpack.c.bf16 %v14568_v50, %v14567_v61  ;;  %v14569_v22 = vld [vmem:[%s24725_s1 + $0x3a0] sm:$0xff]  ;;  %v14572_v50 = vld [vmem:[%s24725_s1 + $0x3b8] sm:$0xff]  ;;  %v14574_v61 = vld [vmem:[%s24725_s1 + $0x3c8] sm:$0xff] }
 0x25f   :  { %v16728_v23 = vpop.f32.mrb[84].mxu0 }
 0x260   :  { %v1920_v17 = vpop.f32.mrb[85].mxu0  ;;  %16918 = vmatmul.mubr.f32.gmra.mrb[94].mxu0 %v21906_v21  ;;  %v14570_v23 = vld [vmem:[%s24725_s1 + $0x3a8] sm:$0xff] }
 0x261   :  { %16952 = vmatprep.mubr.f32.mxu0 %v21445_v26  ;;  %v19048_v17 = vpack.c.bf16 %v14570_v23, %v14569_v22  ;;  %v14571_v26 = vld [vmem:[%s24725_s1 + $0x3b0] sm:$0xff]  ;;  %v14576_v23 = vld [vmem:[%s24725_s1 + $0x3d8] sm:$0xff] }
 0x264   :  { %16953 = vmatmul.mubr.f32.vlgmr.msra.gmra.mrb[96].mxu0 %v21459_v31  ;;  %v19052_v31 = vpack.c.bf16 %v14572_v50, %v14571_v26  ;;  %v14578_v50 = vld [vmem:[%s24725_s1 + $0x3e8] sm:$0xff] }
 0x265   :  { %19043 = vmatpush3.bf16.msra.mxu0 %v21574_v59  ;;  %16955 = vmatprep.mubr.f32.mxu0 %v21464_v32  ;;  %v14573_v59 = vld [vmem:[%s24725_s1 + $0x3c0] sm:$0xff] }
 0x266   :  { %19045 = vmatprep.subr.bf16.mxu0 %v19044_v54  ;;  %v19056_v22 = vpack.c.bf16 %v14574_v61, %v14573_v59  ;;  %v14580_v61 = vld [vmem:[%s24725_s1 + $0x3f8] sm:$0xff] }
 0x268   :  { %16956 = vmatmul.mubr.f32.gmra.mrb[2].mxu0 %v21477_v38 }
 0x269   :  { %16958 = vmatprep.mubr.f32.mxu0 %v21482_v41  ;;  %19047 = vmatpush3.bf16.msra.mxu0 %v19044_v54  ;;  %v14575_v54 = vld [vmem:[%s24725_s1 + $0x3d0] sm:$0xff] }
 0x26a   :  { %19049 = vmatprep.subr.bf16.mxu0 %v19048_v17  ;;  %v19060_v26 = vpack.c.bf16 %v14576_v23, %v14575_v54  ;;  %v14582_v23 = vld [vmem:[%s24725_s1 + $0x108] sm:$0xff] }
 0x26c   :  { %16959 = vmatmul.mubr.f32.gmra.mrb[4].mxu0 %v21495_v47 }
 0x26d   :  { %16961 = vmatprep.mubr.f32.mxu0 %v21500_v48  ;;  %19051 = vmatpush3.bf16.msra.mxu0 %v19048_v17  ;;  %v14577_v17 = vld [vmem:[%s24725_s1 + $0x3e0] sm:$0xff] }
 0x26e   :  { %19053 = vmatprep.subr.bf16.mxu0 %v19052_v31  ;;  %v19064_v59 = vpack.c.bf16 %v14578_v50, %v14577_v17 }
 0x270   :  { %16962 = vmatmul.mubr.f32.gmra.mrb[6].mxu0 %v21513_v30 }
 0x271   :  { %16964 = vmatprep.mubr.f32.mxu0 %v21518_v57  ;;  %19055 = vmatpush3.bf16.msra.mxu0 %v19052_v31  ;;  %v14579_v31 = vld [vmem:[%s24725_s1 + $0x3f0] sm:$0xff] }
 0x272   :  { %19057 = vmatprep.subr.bf16.mxu0 %v19056_v22  ;;  %v19068_v54 = vpack.c.bf16 %v14580_v61, %v14579_v31  ;;  %v24967_v61 = vld [vmem:[#allocation6_spill] sm:$0xff] }
 0x274   :  { %16965 = vmatmul.mubr.f32.gmra.mrb[8].mxu0 %v21531_v39 }
 0x275   :  { %16967 = vmatprep.mubr.f32.mxu0 %v21536_v40  ;;  %19059 = vmatpush3.bf16.msra.mxu0 %v19056_v22  ;;  %v14581_v22 = vld [vmem:[%s24725_s1 + $0x100] sm:$0xff] }
 0x276   :  { %19061 = vmatprep.subr.bf16.mxu0 %v19060_v26  ;;  %v21973_v17 = vpack.c.bf16 %v14582_v23, %v14581_v22  ;;  %v24969_v22 = vld [vmem:[#allocation8_spill] sm:$0xff]  ;;  %v24970_v23 = vld [vmem:[#allocation9_spill] sm:$0xff] }
 0x278   :  { %16968 = vmatmul.mubr.f32.gmra.mrb[10].mxu0 %v21549_v34 }
 0x279   :  { %16970 = vmatprep.mubr.f32.mxu0 %v21554_v49  ;;  %19063 = vmatpush3.bf16.msra.mxu0 %v19060_v26 }
 0x27a   :  { %19065 = vmatprep.subr.bf16.mxu0 %v19064_v59 }
 0x27c   :  { %16971 = vmatmul.mubr.f32.gmra.mrb[12].mxu0 %v21567_v55 }
 0x27d   :  { %16973 = vmatprep.mubr.f32.mxu0 %v21572_v58  ;;  %19067 = vmatpush3.bf16.msra.mxu0 %v19064_v59 }
 0x27e   :  { %19069 = vmatprep.subr.bf16.mxu0 %v19068_v54 }
 0x280   :  { %16974 = vmatmul.mubr.f32.gmra.mrb[14].mxu0 %v21581_v60 }
 0x281   :  { %16976 = vmatprep.mubr.f32.mxu0 %v21586_v52  ;;  %19071 = vmatpush3.bf16.msra.mxu0 %v19068_v54  ;;  %v24968_v54 = vld [vmem:[#allocation7_spill] sm:$0xff] }
 0x282   :  { %19073 = vmatprep.subr.bf16.mxu0 %v21973_v17 }
 0x284   :  { %16977 = vmatmul.mubr.f32.gmra.mrb[16].mxu0 %v21594_v0 }
 0x285   :  { %16979 = vmatprep.mubr.f32.mxu0 %v21599_v1 }
 0x288   :  { %16980 = vmatmul.mubr.f32.gmra.mrb[18].mxu0 %v21606_v3 }
 0x289   :  { %16982 = vmatprep.mubr.f32.mxu0 %v21611_v4 }
 0x28c   :  { %16983 = vmatmul.mubr.f32.gmra.mrb[20].mxu0 %v21618_v5 }
 0x28d   :  { %16985 = vmatprep.mubr.f32.mxu0 %v21623_v6 }
 0x290   :  { %16986 = vmatmul.mubr.f32.gmra.mrb[22].mxu0 %v21630_v7 }
 0x291   :  { %16988 = vmatprep.mubr.f32.mxu0 %v21635_v8 }
 0x294   :  { %16989 = vmatmul.mubr.f32.gmra.mrb[24].mxu0 %v21642_v9 }
 0x295   :  { %16991 = vmatprep.mubr.f32.mxu0 %v21647_v10 }
 0x298   :  { %16992 = vmatmul.mubr.f32.gmra.mrb[26].mxu0 %v21654_v11 }
 0x299   :  { %16994 = vmatprep.mubr.f32.mxu0 %v21659_v12 }
 0x29c   :  { %16995 = vmatmul.mubr.f32.gmra.mrb[28].mxu0 %v21666_v13 }
 0x29d   :  { %16997 = vmatprep.mubr.f32.mxu0 %v21671_v14 }
 0x2a0   :  { %16998 = vmatmul.mubr.f32.gmra.mrb[30].mxu0 %v21678_v15 }
 0x2a1   :  { %17000 = vmatprep.mubr.f32.mxu0 %v21683_v16 }
 0x2a3   :  { %v16779_v26 = vpop.f32.mrb[86].mxu0 }
 0x2a4   :  { %v2090_v50 = vpop.f32.mrb[87].mxu0  ;;  %17001 = vmatmul.mubr.f32.gmra.mrb[32].mxu0 %v21690_v19  ;;  %v24971_v26 = vld [vmem:[#allocation11_spill] sm:$0xff] }
 0x2a5   :  { %17003 = vmatprep.mubr.f32.mxu0 %v21695_v20  ;;  %v24972_v50 = vld [vmem:[#allocation12_spill] sm:$0xff] }
 0x2a7   :  { %v16814_v59 = vpop.f32.mrb[88].mxu0 }
 0x2a8   :  { %v2614_v31 = vpop.f32.mrb[89].mxu0  ;;  %17004 = vmatmul.mubr.f32.gmra.mrb[98].mxu0 %v21702_v24  ;;  %v24973_v59 = vld [vmem:[#allocation13_spill] sm:$0xff] }
 0x2a9   :  { %17006 = vmatprep.mubr.f32.mxu0 %v21707_v25  ;;  %v24974_v31 = vld [vmem:[#allocation17_spill] sm:$0xff] }
 0x2ac   :  { %17007 = vmatmul.mubr.f32.gmra.mrb[100].mxu0 %v21714_v27 }
 0x2ad   :  { %17009 = vmatprep.mubr.f32.mxu0 %v21719_v28 }
 0x2b0   :  { %17010 = vmatmul.mubr.f32.gmra.mrb[38].mxu0 %v21726_v29 }
 0x2b1   :  { %17012 = vmatprep.mubr.f32.mxu0 %v21731_v33 }
 0x2b4   :  { %17013 = vmatmul.mubr.f32.gmra.mrb[40].mxu0 %v21738_v36 }
 0x2b5   :  { %17015 = vmatprep.mubr.f32.mxu0 %v21743_v37 }
 0x2b8   :  { %17016 = vmatmul.mubr.f32.gmra.mrb[42].mxu0 %v21750_v42 }
 0x2b9   :  { %17018 = vmatprep.mubr.f32.mxu0 %v21755_v43 }
 0x2bc   :  { %17019 = vmatmul.mubr.f32.gmra.mrb[44].mxu0 %v21762_v46 }
 0x2bd   :  { %17021 = vmatprep.mubr.f32.mxu0 %v21767_v51 }
 0x2c0   :  { %17022 = vmatmul.mubr.f32.gmra.mrb[46].mxu0 %v21774_v62 }
 0x2c1   :  { %17024 = vmatprep.mubr.f32.mxu0 %v21779_v56 }
 0x2c4   :  { %17025 = vmatmul.mubr.f32.gmra.mrb[48].mxu0 %v21786_v63 }
 0x2c5   :  { %17027 = vmatprep.mubr.f32.mxu0 %v21791_v35 }
 0x2c8   :  { %17028 = vmatmul.mubr.f32.gmra.mrb[50].mxu0 %v21798_v2 }
 0x2c9   :  { %17030 = vmatprep.mubr.f32.mxu0 %v21803_v53  ;;  %v24975_v53 = vld [vmem:[#allocation18_spill] sm:$0xff] }
 0x2cc   :  { %17031 = vmatmul.mubr.f32.gmra.mrb[52].mxu0 %v21810_v44  ;;  %v24976_v44 = vld [vmem:[#allocation19_spill] sm:$0xff] }
 0x2cd   :  { %17033 = vmatprep.mubr.f32.mxu0 %v21815_v45  ;;  %v24977_v45 = vld [vmem:[#allocation20_spill] sm:$0xff] }
 0x2d0   :  { %17034 = vmatmul.mubr.f32.gmra.mrb[54].mxu0 %v24967_v61  ;;  %v24978_v61 = vld [vmem:[#allocation10_spill] sm:$0xff] }
 0x2d1   :  { %17036 = vmatprep.mubr.f32.mxu0 %v24968_v54 }
 0x2d4   :  { %17037 = vmatmul.mubr.f32.gmra.mrb[56].mxu0 %v24969_v22  ;;  %v24979_v22 = vld [vmem:[#allocation22_spill] sm:$0xff] }
 0x2d5   :  { %17039 = vmatprep.mubr.f32.mxu0 %v24970_v23 }
 0x2d8   :  { %17040 = vmatmul.mubr.f32.gmra.mrb[58].mxu0 %v24971_v26 }
 0x2d9   :  { %17042 = vmatprep.mubr.f32.mxu0 %v24972_v50  ;;  %v22033_v50 = vld [vmem:[%s24726_s0 + $0x349] sm:$0xff] }
 0x2da   :  { %24980 = vst [vmem:[#allocation7_spill] sm:$0xff] %v22033_v50 }
 0x2dc   :  { %17043 = vmatmul.mubr.f32.gmra.mrb[60].mxu0 %v24973_v59 }
 0x2dd   :  { %17045 = vmatprep.mubr.f32.mxu0 %v24974_v31 }
 0x2e0   :  { %17046 = vmatmul.mubr.f32.gmra.mrb[62].mxu0 %v24975_v53 }
 0x2e1   :  { %17048 = vmatprep.mubr.f32.mxu0 %v24976_v44 }
 0x2e4   :  { %17049 = vmatmul.mubr.f32.gmra.mrb[64].mxu0 %v24977_v45  ;;  %v22040_v45 = vld [vmem:[%s24726_s0 + $0x351] sm:$0xff] }
 0x2e5   :  { %17051 = vmatprep.mubr.f32.mxu0 %v24978_v61 }
 0x2e8   :  { %17052 = vmatmul.mubr.f32.gmra.mrb[66].mxu0 %v21894_v18  ;;  %v14584_v18 = vld [vmem:[%s24725_s1 + $0x118] sm:$0xff] }
 0x2e9   :  { %17054 = vmatprep.mubr.f32.mxu0 %v24979_v22  ;;  %v14583_v22 = vld [vmem:[%s24725_s1 + $0x110] sm:$0xff] }
 0x2eb   :  { %v16865_v59 = vpop.f32.mrb[90].mxu0 }
 0x2ec   :  { %v2784_v26 = vpop.f32.mrb[91].mxu0  ;;  %17055 = vmatmul.mubr.f32.gmra.mrb[68].mxu0 %v21906_v21 }
 0x2ed   :  { %17057 = vmatprep.mubr.f32.mxu0 %v22033_v50  ;;  %v19076_v26 = vpack.c.bf16 %v14584_v18, %v14583_v22  ;;  %v14585_v50 = vld [vmem:[%s24725_s1 + $0x120] sm:$0xff]  ;;  %v14588_v18 = vld [vmem:[%s24725_s1 + $0x138] sm:$0xff] }
 0x2ee   :  { %v14592_v22 = vld [vmem:[%s24725_s1 + $0x158] sm:$0xff] }
 0x2ef   :  { %v16868_v61 = vpop.f32.mrb[92].mxu0 }
 0x2f0   :  { %v2794_v59 = vpop.f32.mrb[93].mxu0  ;;  %17058 = vmatmul.mubr.f32.gmra.mrb[102].mxu0 %v22040_v45  ;;  %v14586_v61 = vld [vmem:[%s24725_s1 + $0x128] sm:$0xff] }
 0x2f1   :  { %17092 = vmatprep.mubr.f32.mxu0 %v21464_v32  ;;  %v19080_v59 = vpack.c.bf16 %v14586_v61, %v14585_v50  ;;  %v14587_v32 = vld [vmem:[%s24725_s1 + $0x130] sm:$0xff]  ;;  %v14594_v50 = vld [vmem:[%s24725_s1 + $0x168] sm:$0xff] }
 0x2f2   :  { %v14598_v61 = vld [vmem:[%s24725_s1 + $0x288] sm:$0xff] }
 0x2f4   :  { %17093 = vmatmul.mubr.f32.vlgmr.msra.gmra.mrb[104].mxu0 %v21477_v38  ;;  %v19084_v38 = vpack.c.bf16 %v14588_v18, %v14587_v32  ;;  %v14609_v32 = vld [vmem:[%s24725_s1 + $0x2e0] sm:$0xff]  ;;  %v14610_v18 = vld [vmem:[%s24725_s1 + $0x2e8] sm:$0xff] }
 0x2f5   :  { %19075 = vmatpush3.bf16.msra.mxu0 %v21973_v17  ;;  %17095 = vmatprep.mubr.f32.mxu0 %v21482_v41  ;;  %v14589_v41 = vld [vmem:[%s24725_s1 + $0x140] sm:$0xff]  ;;  %v14590_v17 = vld [vmem:[%s24725_s1 + $0x148] sm:$0xff] }
 0x2f6   :  { %19077 = vmatprep.subr.bf16.mxu0 %v19076_v26 }
 0x2f8   :  { %17096 = vmatmul.mubr.f32.gmra.mrb[2].mxu0 %v21495_v47  ;;  %v19088_v47 = vpack.c.bf16 %v14590_v17, %v14589_v41  ;;  %v22268_v41 = vld [vmem:[%s24726_s0 + $0x7a] sm:$0xff]  ;;  %v19128_v17 = vpack.c.bf16 %v14610_v18, %v14609_v32  ;;  %v22530_v32 = vld [vmem:[%s24726_s0 + $0x262] sm:$0xff]  ;;  %v22535_v18 = vld [vmem:[%s24726_s0 + $0x272] sm:$0xff] }
 0x2f9   :  { %17098 = vmatprep.mubr.f32.mxu0 %v21500_v48  ;;  %19079 = vmatpush3.bf16.msra.mxu0 %v19076_v26  ;;  %v14591_v48 = vld [vmem:[%s24725_s1 + $0x150] sm:$0xff]  ;;  %v14596_v26 = vld [vmem:[%s24725_s1 + $0x178] sm:$0xff] }
 0x2fa   :  { %19081 = vmatprep.subr.bf16.mxu0 %v19080_v59 }
 0x2fc   :  { %17099 = vmatmul.mubr.f32.gmra.mrb[4].mxu0 %v21513_v30  ;;  %v19092_v30 = vpack.c.bf16 %v14592_v22, %v14591_v48  ;;  %v14612_v48 = vld [vmem:[%s24725_s1 + $0x2f8] sm:$0xff]  ;;  %v22281_v22 = vld [vmem:[%s24726_s0 + $0x82] sm:$0xff] }
 0x2fd   :  { %17101 = vmatprep.mubr.f32.mxu0 %v21518_v57  ;;  %19083 = vmatpush3.bf16.msra.mxu0 %v19080_v59  ;;  %v14593_v57 = vld [vmem:[%s24725_s1 + $0x160] sm:$0xff] }
 0x2fe   :  { %19085 = vmatprep.subr.bf16.mxu0 %v19084_v38 }
 0x300   :  { %17102 = vmatmul.mubr.f32.gmra.mrb[6].mxu0 %v21531_v39  ;;  %v19096_v39 = vpack.c.bf16 %v14594_v50, %v14593_v57  ;;  %v14613_v50 = vld [vmem:[%s24725_s1 + $0x400] sm:$0xff] }
 0x301   :  { %17104 = vmatprep.mubr.f32.mxu0 %v21536_v40  ;;  %19087 = vmatpush3.bf16.msra.mxu0 %v19084_v38  ;;  %v14595_v40 = vld [vmem:[%s24725_s1 + $0x170] sm:$0xff] }
 0x302   :  { %19089 = vmatprep.subr.bf16.mxu0 %v19088_v47  ;;  %v22263_v38 = vld [vmem:[%s24726_s0 + $0x6a] sm:$0xff] }
 0x304   :  { %17105 = vmatmul.mubr.f32.gmra.mrb[8].mxu0 %v21549_v34  ;;  %v19100_v34 = vpack.c.bf16 %v14596_v26, %v14595_v40  ;;  %v22299_v40 = vld [vmem:[%s24726_s0 + $0x9a] sm:$0xff]  ;;  %v22304_v26 = vld [vmem:[%s24726_s0 + $0xaa] sm:$0xff] }
 0x305   :  { %17107 = vmatprep.mubr.f32.mxu0 %v21554_v49  ;;  %19091 = vmatpush3.bf16.msra.mxu0 %v19088_v47  ;;  %v14597_v49 = vld [vmem:[%s24725_s1 + $0x280] sm:$0xff]  ;;  %v14611_v47 = vld [vmem:[%s24725_s1 + $0x2f0] sm:$0xff] }
 0x306   :  { %19093 = vmatprep.subr.bf16.mxu0 %v19092_v30  ;;  %v19132_v57 = vpack.c.bf16 %v14612_v48, %v14611_v47  ;;  %v22547_v47 = vld [vmem:[%s24726_s0 + $0x28a] sm:$0xff]  ;;  %v22554_v48 = vld [vmem:[%s24726_s0 + $0x292] sm:$0xff] }
 0x307   :  { %24996 = vst [vmem:[#allocation17_spill] sm:$0xff] %v22547_v47  ;;  %24997 = vst [vmem:[#allocation18_spill] sm:$0xff] %v22554_v48 }
 0x308   :  { %17108 = vmatmul.mubr.f32.gmra.mrb[10].mxu0 %v21567_v55  ;;  %v22107_v55 = vpack.c.bf16 %v14598_v61, %v14597_v49  ;;  %v22313_v49 = vld [vmem:[%s24726_s0 + $0xb2] sm:$0xff]  ;;  %v22318_v61 = vld [vmem:[%s24726_s0 + $0xc2] sm:$0xff] }
 0x309   :  { %17110 = vmatprep.mubr.f32.mxu0 %v21572_v58  ;;  %19095 = vmatpush3.bf16.msra.mxu0 %v19092_v30  ;;  %v22286_v30 = vld [vmem:[%s24726_s0 + $0x92] sm:$0xff] }
 0x30a   :  { %19097 = vmatprep.subr.bf16.mxu0 %v19096_v39 }
 0x30c   :  { %17111 = vmatmul.mubr.f32.gmra.mrb[12].mxu0 %v21581_v60 }
 0x30d   :  { %17113 = vmatprep.mubr.f32.mxu0 %v21586_v52  ;;  %19099 = vmatpush3.bf16.msra.mxu0 %v19096_v39  ;;  %v14614_v39 = vld [vmem:[%s24725_s1 + $0x408] sm:$0xff] }
 0x30e   :  { %19101 = vmatprep.subr.bf16.mxu0 %v19100_v34 }
 0x310   :  { %17114 = vmatmul.mubr.f32.gmra.mrb[14].mxu0 %v21594_v0 }
 0x311   :  { %17116 = vmatprep.mubr.f32.mxu0 %v21599_v1  ;;  %19103 = vmatpush3.bf16.msra.mxu0 %v19100_v34  ;;  %v24981_v1 = vld [vmem:[#allocation15_spill] sm:$0xff]  ;;  %v22306_v34 = vpack.c.bf16 %v14614_v39, %v14613_v50  ;;  %v22571_v39 = vld [vmem:[%s24726_s0 + $0x2ba] sm:$0xff] }
 0x312   :  { %19105 = vmatprep.subr.bf16.mxu0 %v22107_v55  ;;  %v22566_v50 = vld [vmem:[%s24726_s0 + $0x2aa] sm:$0xff] }
 0x313   :  { %24999 = vst [vmem:[#allocation15_spill] sm:$0xff] %v22566_v50 }
 0x314   :  { %17117 = vmatmul.mubr.f32.gmra.mrb[16].mxu0 %v21606_v3  ;;  %v24982_v3 = vld [vmem:[#allocation16_spill] sm:$0xff] }
 0x315   :  { %17119 = vmatprep.mubr.f32.mxu0 %v21611_v4  ;;  %v24983_v4 = vld [vmem:[#allocation5_spill] sm:$0xff]  ;;  %25000 = vst [vmem:[#allocation16_spill] sm:$0xff] %v22571_v39 }
 0x318   :  { %17120 = vmatmul.mubr.f32.gmra.mrb[18].mxu0 %v21618_v5  ;;  %v24984_v5 = vld [vmem:[#allocation6_spill] sm:$0xff] }
 0x319   :  { %17122 = vmatprep.mubr.f32.mxu0 %v21623_v6  ;;  %v24985_v6 = vld [vmem:[#allocation8_spill] sm:$0xff] }
 0x31c   :  { %17123 = vmatmul.mubr.f32.gmra.mrb[20].mxu0 %v21630_v7  ;;  %v24986_v7 = vld [vmem:[#allocation11_spill] sm:$0xff] }
 0x31d   :  { %17125 = vmatprep.mubr.f32.mxu0 %v21635_v8  ;;  %v24987_v8 = vld [vmem:[#allocation12_spill] sm:$0xff] }
 0x320   :  { %17126 = vmatmul.mubr.f32.gmra.mrb[22].mxu0 %v21642_v9  ;;  %v24988_v9 = vld [vmem:[#allocation13_spill] sm:$0xff] }
 0x321   :  { %17128 = vmatprep.mubr.f32.mxu0 %v21647_v10  ;;  %v24989_v10 = vld [vmem:[#allocation20_spill] sm:$0xff] }
 0x324   :  { %17129 = vmatmul.mubr.f32.gmra.mrb[24].mxu0 %v21654_v11  ;;  %v24990_v11 = vld [vmem:[#allocation10_spill] sm:$0xff] }
 0x325   :  { %17131 = vmatprep.mubr.f32.mxu0 %v21659_v12  ;;  %v24991_v12 = vld [vmem:[#allocation21_spill] sm:$0xff] }
 0x328   :  { %17132 = vmatmul.mubr.f32.gmra.mrb[26].mxu0 %v21666_v13  ;;  %v24992_v13 = vld [vmem:[#allocation22_spill] sm:$0xff] }
 0x329   :  { %17134 = vmatprep.mubr.f32.mxu0 %v21671_v14  ;;  %v24993_v14 = vld [vmem:[#allocation7_spill] sm:$0xff] }
 0x32c   :  { %17135 = vmatmul.mubr.f32.gmra.mrb[28].mxu0 %v21678_v15 }
 0x32d   :  { %17137 = vmatprep.mubr.f32.mxu0 %v21683_v16 }
 0x330   :  { %17138 = vmatmul.mubr.f32.gmra.mrb[30].mxu0 %v21690_v19  ;;  %v24994_v19 = vld [vmem:[#allocation14_spill] sm:$0xff] }
 0x331   :  { %17140 = vmatprep.mubr.f32.mxu0 %v21695_v20 }
 0x333   :  { %v16919_v58 = vpop.f32.mrb[94].mxu0 }
 0x334   :  { %v2964_v60 = vpop.f32.mrb[95].mxu0  ;;  %17141 = vmatmul.mubr.f32.gmra.mrb[32].mxu0 %v21702_v24  ;;  %v14599_v24 = vld [vmem:[%s24725_s1 + $0x290] sm:$0xff]  ;;  %v22331_v58 = vld [vmem:[%s24726_s0 + $0xda] sm:$0xff] }
 0x335   :  { %17143 = vmatprep.mubr.f32.mxu0 %v21707_v25  ;;  %v14600_v25 = vld [vmem:[%s24725_s1 + $0x298] sm:$0xff]  ;;  %v22338_v60 = vld [vmem:[%s24726_s0 + $0xe2] sm:$0xff] }
 0x337   :  { %v16954_v52 = vpop.f32.mrb[96].mxu0 }
 0x338   :  { %v3344_v0 = vpop.f32.mrb[97].mxu0  ;;  %17144 = vmatmul.mubr.f32.gmra.mrb[106].mxu0 %v21714_v27  ;;  %v22343_v52 = vld [vmem:[%s24726_s0 + $0xf2] sm:$0xff] }
 0x339   :  { %17146 = vmatprep.mubr.f32.mxu0 %v21719_v28  ;;  %v19108_v28 = vpack.c.bf16 %v14600_v25, %v14599_v24  ;;  %v22350_v0 = vld [vmem:[%s24726_s0 + $0xfa] sm:$0xff]  ;;  %v22434_v24 = vld [vmem:[%s24726_s0 + $0x1a2] sm:$0xff]  ;;  %v22439_v25 = vld [vmem:[%s24726_s0 + $0x1b2] sm:$0xff] }
 0x33c   :  { %17147 = vmatmul.mubr.f32.gmra.mrb[108].mxu0 %v21726_v29  ;;  %v14601_v29 = vld [vmem:[%s24725_s1 + $0x2a0] sm:$0xff] }
 0x33d   :  { %17149 = vmatprep.mubr.f32.mxu0 %v21731_v33  ;;  %v14602_v33 = vld [vmem:[%s24725_s1 + $0x2a8] sm:$0xff] }
 0x340   :  { %17150 = vmatmul.mubr.f32.gmra.mrb[38].mxu0 %v21738_v36  ;;  %v22191_v36 = vld [vmem:[%s24726_s0 + $0xa] sm:$0xff] }
 0x341   :  { %17152 = vmatprep.mubr.f32.mxu0 %v21743_v37  ;;  %v22196_v37 = vld [vmem:[%s24726_s0 + $0x1a] sm:$0xff] }
 0x344   :  { %17153 = vmatmul.mubr.f32.gmra.mrb[40].mxu0 %v21750_v42  ;;  %v19112_v42 = vpack.c.bf16 %v14602_v33, %v14601_v29  ;;  %v22458_v29 = vld [vmem:[%s24726_s0 + $0x1d2] sm:$0xff]  ;;  %v22463_v33 = vld [vmem:[%s24726_s0 + $0x1e2] sm:$0xff] }
 0x345   :  { %17155 = vmatprep.mubr.f32.mxu0 %v21755_v43  ;;  %v14603_v43 = vld [vmem:[%s24725_s1 + $0x2b0] sm:$0xff] }
 0x348   :  { %17156 = vmatmul.mubr.f32.gmra.mrb[42].mxu0 %v21762_v46  ;;  %v14604_v46 = vld [vmem:[%s24725_s1 + $0x2b8] sm:$0xff] }
 0x349   :  { %17158 = vmatprep.mubr.f32.mxu0 %v21767_v51  ;;  %v22209_v51 = vld [vmem:[%s24726_s0 + $0x22] sm:$0xff] }
 0x34c   :  { %17159 = vmatmul.mubr.f32.gmra.mrb[44].mxu0 %v21774_v62  ;;  %v22214_v62 = vld [vmem:[%s24726_s0 + $0x32] sm:$0xff] }
 0x34d   :  { %17161 = vmatprep.mubr.f32.mxu0 %v21779_v56  ;;  %v19116_v56 = vpack.c.bf16 %v14604_v46, %v14603_v43  ;;  %v22475_v43 = vld [vmem:[%s24726_s0 + $0x1fa] sm:$0xff]  ;;  %v22482_v46 = vld [vmem:[%s24726_s0 + $0x202] sm:$0xff] }
 0x350   :  { %17162 = vmatmul.mubr.f32.gmra.mrb[46].mxu0 %v21786_v63  ;;  %v14605_v63 = vld [vmem:[%s24725_s1 + $0x2c0] sm:$0xff] }
 0x351   :  { %17164 = vmatprep.mubr.f32.mxu0 %v21791_v35  ;;  %v14606_v35 = vld [vmem:[%s24725_s1 + $0x2c8] sm:$0xff] }
 0x354   :  { %17165 = vmatmul.mubr.f32.gmra.mrb[48].mxu0 %v21798_v2  ;;  %v22227_v2 = vld [vmem:[%s24726_s0 + $0x3a] sm:$0xff] }
 0x355   :  { %17167 = vmatprep.mubr.f32.mxu0 %v24981_v1  ;;  %v22355_v1 = vld [vmem:[%s24726_s0 + $0x10a] sm:$0xff] }
 0x358   :  { %17168 = vmatmul.mubr.f32.gmra.mrb[50].mxu0 %v24982_v3  ;;  %v22362_v3 = vld [vmem:[%s24726_s0 + $0x112] sm:$0xff] }
 0x359   :  { %17170 = vmatprep.mubr.f32.mxu0 %v24983_v4  ;;  %v22367_v4 = vld [vmem:[%s24726_s0 + $0x122] sm:$0xff] }
 0x35c   :  { %17171 = vmatmul.mubr.f32.gmra.mrb[52].mxu0 %v24984_v5  ;;  %v22374_v5 = vld [vmem:[%s24726_s0 + $0x12a] sm:$0xff] }
 0x35d   :  { %17173 = vmatprep.mubr.f32.mxu0 %v24968_v54  ;;  %v14608_v54 = vld [vmem:[%s24725_s1 + $0x2d8] sm:$0xff] }
 0x360   :  { %17174 = vmatmul.mubr.f32.gmra.mrb[54].mxu0 %v24985_v6  ;;  %v22379_v6 = vld [vmem:[%s24726_s0 + $0x13a] sm:$0xff] }
 0x361   :  { %17176 = vmatprep.mubr.f32.mxu0 %v24970_v23  ;;  %v22245_v23 = vld [vmem:[%s24726_s0 + $0x52] sm:$0xff] }
 0x364   :  { %17177 = vmatmul.mubr.f32.gmra.mrb[56].mxu0 %v24986_v7  ;;  %v22386_v7 = vld [vmem:[%s24726_s0 + $0x142] sm:$0xff] }
 0x365   :  { %17179 = vmatprep.mubr.f32.mxu0 %v24987_v8  ;;  %v22391_v8 = vld [vmem:[%s24726_s0 + $0x152] sm:$0xff] }
 0x368   :  { %17180 = vmatmul.mubr.f32.gmra.mrb[58].mxu0 %v24988_v9  ;;  %v22398_v9 = vld [vmem:[%s24726_s0 + $0x15a] sm:$0xff] }
 0x369   :  { %17182 = vmatprep.mubr.f32.mxu0 %v24974_v31  ;;  %v22250_v31 = vld [vmem:[%s24726_s0 + $0x62] sm:$0xff] }
 0x36c   :  { %17183 = vmatmul.mubr.f32.gmra.mrb[60].mxu0 %v24975_v53  ;;  %v22232_v53 = vld [vmem:[%s24726_s0 + $0x4a] sm:$0xff] }
 0x36d   :  { %17185 = vmatprep.mubr.f32.mxu0 %v24976_v44  ;;  %v19120_v44 = vpack.c.bf16 %v14606_v35, %v14605_v63  ;;  %v22494_v63 = vld [vmem:[%s24726_s0 + $0x21a] sm:$0xff]  ;;  %v22499_v35 = vld [vmem:[%s24726_s0 + $0x22a] sm:$0xff] }
 0x370   :  { %17186 = vmatmul.mubr.f32.gmra.mrb[62].mxu0 %v24989_v10  ;;  %v22403_v10 = vld [vmem:[%s24726_s0 + $0x16a] sm:$0xff] }
 0x371   :  { %17188 = vmatprep.mubr.f32.mxu0 %v24990_v11  ;;  %v22410_v11 = vld [vmem:[%s24726_s0 + $0x172] sm:$0xff] }
 0x374   :  { %17189 = vmatmul.mubr.f32.gmra.mrb[64].mxu0 %v24991_v12  ;;  %v22415_v12 = vld [vmem:[%s24726_s0 + $0x182] sm:$0xff] }
 0x375   :  { %17191 = vmatprep.mubr.f32.mxu0 %v24992_v13 }
 0x378   :  { %17192 = vmatmul.mubr.f32.gmra.mrb[66].mxu0 %v21906_v21  ;;  %v22177_v21 = vld [vmem:[%s24726_s0 + $0x2] sm:$0xff] }
 0x379   :  { %17194 = vmatprep.mubr.f32.mxu0 %v24993_v14 }
 0x37b   :  { %v17005_v15 = vpop.f32.mrb[98].mxu0 }
 0x37c   :  { %v3514_v16 = vpop.f32.mrb[99].mxu0  ;;  %17195 = vmatmul.mubr.f32.gmra.mrb[68].mxu0 %v22040_v45  ;;  %v14607_v45 = vld [vmem:[%s24725_s1 + $0x2d0] sm:$0xff] }
 0x37d   :  { %17197 = vmatprep.mubr.f32.mxu0 %v24994_v19  ;;  %v19124_v59 = vpack.c.bf16 %v14608_v54, %v14607_v45  ;;  %v22422_v15 = vld [vmem:[%s24726_s0 + $0x18a] sm:$0xff]  ;;  %v22427_v16 = vld [vmem:[%s24726_s0 + $0x19a] sm:$0xff]  ;;  %v22511_v45 = vld [vmem:[%s24726_s0 + $0x242] sm:$0xff] }
 0x37e   :  { %v22518_v54 = vld [vmem:[%s24726_s0 + $0x24a] sm:$0xff] }
 0x37f   :  { %v17008_v20 = vpop.f32.mrb[100].mxu0 }
 0x380   :  { %v3524_v27 = vpop.f32.mrb[101].mxu0  ;;  %17198 = vmatmul.mubr.f32.gmra.mrb[110].mxu0 %v24994_v19 }
 0x381   :  { %17232 = vmatprep.mubr.f32.mxu0 %v24994_v19  ;;  %v22446_v27 = vld [vmem:[%s24726_s0 + $0x1ba] sm:$0xff] }
 0x384   :  { %17233 = vmatmul.mubr.f32.vlgmr.msra.gmra.mrb[112].mxu0 %v24994_v19 }
 0x385   :  { %19107 = vmatpush3.bf16.msra.mxu0 %v22107_v55  ;;  %17235 = vmatprep.mubr.f32.mxu0 %v22177_v21  ;;  %v22326_v55 = vld [vmem:[%s24726_s0 + $0xca] sm:$0xff] }
 0x386   :  { %19109 = vmatprep.subr.bf16.mxu0 %v19108_v28 }
 0x388   :  { %17236 = vmatmul.mubr.f32.gmra.mrb[2].mxu0 %v22191_v36 }
 0x389   :  { %17238 = vmatprep.mubr.f32.mxu0 %v22196_v37  ;;  %19111 = vmatpush3.bf16.msra.mxu0 %v19108_v28  ;;  %v22451_v28 = vld [vmem:[%s24726_s0 + $0x1ca] sm:$0xff] }
 0x38a   :  { %19113 = vmatprep.subr.bf16.mxu0 %v19112_v42 }
 0x38c   :  { %17239 = vmatmul.mubr.f32.gmra.mrb[4].mxu0 %v22209_v51 }
 0x38d   :  { %17241 = vmatprep.mubr.f32.mxu0 %v22214_v62  ;;  %19115 = vmatpush3.bf16.msra.mxu0 %v19112_v42  ;;  %v22470_v42 = vld [vmem:[%s24726_s0 + $0x1ea] sm:$0xff] }
 0x38e   :  { %19117 = vmatprep.subr.bf16.mxu0 %v19116_v56 }
 0x390   :  { %17242 = vmatmul.mubr.f32.gmra.mrb[6].mxu0 %v22227_v2 }
 0x391   :  { %17244 = vmatprep.mubr.f32.mxu0 %v22232_v53  ;;  %19119 = vmatpush3.bf16.msra.mxu0 %v19116_v56  ;;  %v22487_v56 = vld [vmem:[%s24726_s0 + $0x212] sm:$0xff] }
 0x392   :  { %19121 = vmatprep.subr.bf16.mxu0 %v19120_v44 }
 0x394   :  { %17245 = vmatmul.mubr.f32.gmra.mrb[8].mxu0 %v22245_v23 }
 0x395   :  { %17247 = vmatprep.mubr.f32.mxu0 %v22250_v31  ;;  %19123 = vmatpush3.bf16.msra.mxu0 %v19120_v44  ;;  %v22506_v44 = vld [vmem:[%s24726_s0 + $0x232] sm:$0xff] }
 0x396   :  { %19125 = vmatprep.subr.bf16.mxu0 %v19124_v59 }
 0x398   :  { %17248 = vmatmul.mubr.f32.gmra.mrb[10].mxu0 %v22263_v38 }
 0x399   :  { %17250 = vmatprep.mubr.f32.mxu0 %v22268_v41  ;;  %19127 = vmatpush3.bf16.msra.mxu0 %v19124_v59  ;;  %v22523_v59 = vld [vmem:[%s24726_s0 + $0x25a] sm:$0xff] }
 0x39a   :  { %19129 = vmatprep.subr.bf16.mxu0 %v19128_v17 }
 0x39c   :  { %17251 = vmatmul.mubr.f32.gmra.mrb[12].mxu0 %v22281_v22 }
 0x39d   :  { %17253 = vmatprep.mubr.f32.mxu0 %v22286_v30  ;;  %19131 = vmatpush3.bf16.msra.mxu0 %v19128_v17  ;;  %v22542_v17 = vld [vmem:[%s24726_s0 + $0x27a] sm:$0xff] }
 0x39e   :  { %19133 = vmatprep.subr.bf16.mxu0 %v19132_v57  ;;  %24995 = vst [vmem:[#allocation9_spill] sm:$0xff] %v22542_v17 }
 0x3a0   :  { %17254 = vmatmul.mubr.f32.gmra.mrb[14].mxu0 %v22299_v40 }
 0x3a1   :  { %17256 = vmatprep.mubr.f32.mxu0 %v22304_v26  ;;  %19135 = vmatpush3.bf16.msra.mxu0 %v19132_v57  ;;  %v22559_v57 = vld [vmem:[%s24726_s0 + $0x2a2] sm:$0xff] }
 0x3a2   :  { %19137 = vmatprep.subr.bf16.mxu0 %v22306_v34  ;;  %24998 = vst [vmem:[#allocation19_spill] sm:$0xff] %v22559_v57 }
 0x3a4   :  { %17257 = vmatmul.mubr.f32.gmra.mrb[16].mxu0 %v22313_v49 }
 0x3a5   :  { %17259 = vmatprep.mubr.f32.mxu0 %v22318_v61 }
 0x3a8   :  { %17260 = vmatmul.mubr.f32.gmra.mrb[18].mxu0 %v22326_v55 }
 0x3a9   :  { %17262 = vmatprep.mubr.f32.mxu0 %v22331_v58 }
 0x3ac   :  { %17263 = vmatmul.mubr.f32.gmra.mrb[20].mxu0 %v22338_v60 }
 0x3ad   :  { %17265 = vmatprep.mubr.f32.mxu0 %v22343_v52 }
 0x3b0   :  { %17266 = vmatmul.mubr.f32.gmra.mrb[22].mxu0 %v22350_v0 }
 0x3b1   :  { %17268 = vmatprep.mubr.f32.mxu0 %v22355_v1 }
 0x3b4   :  { %17269 = vmatmul.mubr.f32.gmra.mrb[24].mxu0 %v22362_v3 }
 0x3b5   :  { %17271 = vmatprep.mubr.f32.mxu0 %v22367_v4 }
 0x3b8   :  { %17272 = vmatmul.mubr.f32.gmra.mrb[26].mxu0 %v22374_v5 }
 0x3b9   :  { %17274 = vmatprep.mubr.f32.mxu0 %v22379_v6 }
 0x3bc   :  { %17275 = vmatmul.mubr.f32.gmra.mrb[28].mxu0 %v22386_v7 }
 0x3bd   :  { %17277 = vmatprep.mubr.f32.mxu0 %v22391_v8 }
 0x3c0   :  { %17278 = vmatmul.mubr.f32.gmra.mrb[30].mxu0 %v22398_v9 }
 0x3c1   :  { %17280 = vmatprep.mubr.f32.mxu0 %v22403_v10 }
 0x3c3   :  { %v17059_v13 = vpop.f32.mrb[102].mxu0 }
 0x3c4   :  { %v3694_v14 = vpop.f32.mrb[103].mxu0  ;;  %17281 = vmatmul.mubr.f32.gmra.mrb[32].mxu0 %v22410_v11  ;;  %v22578_v13 = vld [vmem:[%s24726_s0 + $0x2c2] sm:$0xff] }
 0x3c5   :  { %17283 = vmatprep.mubr.f32.mxu0 %v22415_v12  ;;  %25001 = vst [vmem:[#allocation5_spill] sm:$0xff] %v22578_v13  ;;  %v22583_v14 = vld [vmem:[%s24726_s0 + $0x2d2] sm:$0xff] }
 0x3c6   :  { %25002 = vst [vmem:[#allocation6_spill] sm:$0xff] %v22583_v14 }
 0x3c7   :  { %v17094_v19 = vpop.f32.mrb[104].mxu0 }
 0x3c8   :  { %v4074_v20 = vpop.f32.mrb[105].mxu0  ;;  %17284 = vmatmul.mubr.f32.gmra.mrb[114].mxu0 %v22422_v15  ;;  %v22590_v19 = vld [vmem:[%s24726_s0 + $0x2da] sm:$0xff] }
 0x3c9   :  { %17286 = vmatprep.mubr.f32.mxu0 %v22427_v16  ;;  %25003 = vst [vmem:[#allocation8_spill] sm:$0xff] %v22590_v19  ;;  %v22595_v20 = vld [vmem:[%s24726_s0 + $0x2ea] sm:$0xff] }
 0x3ca   :  { %25004 = vst [vmem:[#allocation11_spill] sm:$0xff] %v22595_v20 }
 0x3cc   :  { %17287 = vmatmul.mubr.f32.gmra.mrb[116].mxu0 %v22434_v24 }
 0x3cd   :  { %17289 = vmatprep.mubr.f32.mxu0 %v22439_v25 }
 0x3d0   :  { %17290 = vmatmul.mubr.f32.gmra.mrb[38].mxu0 %v22446_v27 }
 0x3d1   :  { %17292 = vmatprep.mubr.f32.mxu0 %v22451_v28 }
 0x3d4   :  { %17293 = vmatmul.mubr.f32.gmra.mrb[40].mxu0 %v22458_v29 }
 0x3d5   :  { %17295 = vmatprep.mubr.f32.mxu0 %v22463_v33 }
 0x3d8   :  { %17296 = vmatmul.mubr.f32.gmra.mrb[42].mxu0 %v22470_v42 }
 0x3d9   :  { %17298 = vmatprep.mubr.f32.mxu0 %v22475_v43 }
 0x3dc   :  { %17299 = vmatmul.mubr.f32.gmra.mrb[44].mxu0 %v22482_v46 }
 0x3dd   :  { %17301 = vmatprep.mubr.f32.mxu0 %v22487_v56 }
 0x3e0   :  { %17302 = vmatmul.mubr.f32.gmra.mrb[46].mxu0 %v22494_v63 }
 0x3e1   :  { %17304 = vmatprep.mubr.f32.mxu0 %v22499_v35 }
 0x3e4   :  { %17305 = vmatmul.mubr.f32.gmra.mrb[48].mxu0 %v22506_v44 }
 0x3e5   :  { %17307 = vmatprep.mubr.f32.mxu0 %v22511_v45 }
 0x3e8   :  { %17308 = vmatmul.mubr.f32.gmra.mrb[50].mxu0 %v22518_v54 }
 0x3e9   :  { %17310 = vmatprep.mubr.f32.mxu0 %v22523_v59 }
 0x3ec   :  { %17311 = vmatmul.mubr.f32.gmra.mrb[52].mxu0 %v22530_v32 }
 0x3ed   :  { %17313 = vmatprep.mubr.f32.mxu0 %v22535_v18 }
 0x3f0   :  { %17314 = vmatmul.mubr.f32.gmra.mrb[54].mxu0 %v22542_v17 }
 0x3f1   :  { %17316 = vmatprep.mubr.f32.mxu0 %v22547_v47 }
 0x3f4   :  { %17317 = vmatmul.mubr.f32.gmra.mrb[56].mxu0 %v22554_v48  ;;  %v14616_v48 = vld [vmem:[%s24725_s1 + $0x418] sm:$0xff] }
 0x3f5   :  { %17319 = vmatprep.mubr.f32.mxu0 %v22559_v57  ;;  %v14615_v57 = vld [vmem:[%s24725_s1 + $0x410] sm:$0xff] }
 0x3f8   :  { %17320 = vmatmul.mubr.f32.gmra.mrb[58].mxu0 %v22566_v50 }
 0x3f9   :  { %17322 = vmatprep.mubr.f32.mxu0 %v22571_v39 }
 0x3fc   :  { %17323 = vmatmul.mubr.f32.gmra.mrb[60].mxu0 %v22578_v13  ;;  %v22602_v13 = vld [vmem:[%s24726_s0 + $0x2f2] sm:$0xff] }
 0x3fd   :  { %17325 = vmatprep.mubr.f32.mxu0 %v22583_v14  ;;  %25005 = vst [vmem:[#allocation12_spill] sm:$0xff] %v22602_v13  ;;  %v22607_v14 = vld [vmem:[%s24726_s0 + $0x302] sm:$0xff] }
 0x3fe   :  { %25006 = vst [vmem:[#allocation13_spill] sm:$0xff] %v22607_v14 }
 0x400   :  { %17326 = vmatmul.mubr.f32.gmra.mrb[62].mxu0 %v22590_v19  ;;  %v22614_v19 = vld [vmem:[%s24726_s0 + $0x30a] sm:$0xff] }
 0x401   :  { %17328 = vmatprep.mubr.f32.mxu0 %v22595_v20  ;;  %25007 = vst [vmem:[#allocation20_spill] sm:$0xff] %v22614_v19  ;;  %v22619_v20 = vld [vmem:[%s24726_s0 + $0x31a] sm:$0xff] }
 0x402   :  { %25008 = vst [vmem:[#allocation10_spill] sm:$0xff] %v22619_v20 }
 0x404   :  { %17329 = vmatmul.mubr.f32.gmra.mrb[64].mxu0 %v22602_v13  ;;  %v22626_v13 = vld [vmem:[%s24726_s0 + $0x322] sm:$0xff] }
 0x405   :  { %17331 = vmatprep.mubr.f32.mxu0 %v22607_v14  ;;  %25009 = vst [vmem:[#allocation21_spill] sm:$0xff] %v22626_v13  ;;  %v22631_v14 = vld [vmem:[%s24726_s0 + $0x332] sm:$0xff] }
 0x406   :  { %25010 = vst [vmem:[#allocation22_spill] sm:$0xff] %v22631_v14 }
 0x408   :  { %17332 = vmatmul.mubr.f32.gmra.mrb[66].mxu0 %v22614_v19 }
 0x409   :  { %17334 = vmatprep.mubr.f32.mxu0 %v22619_v20  ;;  %v22638_v20 = vld [vmem:[%s24726_s0 + $0x33a] sm:$0xff] }
 0x40b   :  { %v17145_v39 = vpop.f32.mrb[106].mxu0 }
 0x40c   :  { %v4244_v50 = vpop.f32.mrb[107].mxu0  ;;  %17335 = vmatmul.mubr.f32.gmra.mrb[68].mxu0 %v22626_v13 }
 0x40d   :  { %17337 = vmatprep.mubr.f32.mxu0 %v22631_v14  ;;  %v19140_v50 = vpack.c.bf16 %v14616_v48, %v14615_v57  ;;  %v14617_v14 = vld [vmem:[%s24725_s1 + $0x420] sm:$0xff]  ;;  %v14620_v48 = vld [vmem:[%s24725_s1 + $0x438] sm:$0xff]  ;;  %v14622_v57 = vld [vmem:[%s24725_s1 + $0x448] sm:$0xff] }
 0x40f   :  { %v17148_v19 = vpop.f32.mrb[108].mxu0 }
 0x410   :  { %v4254_v39 = vpop.f32.mrb[109].mxu0  ;;  %17338 = vmatmul.mubr.f32.gmra.mrb[118].mxu0 %v22638_v20  ;;  %v14618_v19 = vld [vmem:[%s24725_s1 + $0x428] sm:$0xff] }
 0x411   :  { %17372 = vmatprep.mubr.f32.mxu0 %v22177_v21  ;;  %v19144_v39 = vpack.c.bf16 %v14618_v19, %v14617_v14  ;;  %v14619_v21 = vld [vmem:[%s24725_s1 + $0x430] sm:$0xff]  ;;  %v14624_v19 = vld [vmem:[%s24725_s1 + $0x458] sm:$0xff] }
 0x414   :  { %17373 = vmatmul.mubr.f32.vlgmr.msra.gmra.mrb[120].mxu0 %v22191_v36  ;;  %v19148_v36 = vpack.c.bf16 %v14620_v48, %v14619_v21  ;;  %v14626_v48 = vld [vmem:[%s24725_s1 + $0x468] sm:$0xff] }
 0x415   :  { %19139 = vmatpush3.bf16.msra.mxu0 %v22306_v34  ;;  %17375 = vmatprep.mubr.f32.mxu0 %v22196_v37  ;;  %v14621_v34 = vld [vmem:[%s24725_s1 + $0x440] sm:$0xff] }
 0x416   :  { %19141 = vmatprep.subr.bf16.mxu0 %v19140_v50  ;;  %v19152_v14 = vpack.c.bf16 %v14622_v57, %v14621_v34  ;;  %v14628_v57 = vld [vmem:[%s24725_s1 + $0x478] sm:$0xff] }
 0x418   :  { %17376 = vmatmul.mubr.f32.gmra.mrb[2].mxu0 %v22209_v51 }
 0x419   :  { %17378 = vmatprep.mubr.f32.mxu0 %v22214_v62  ;;  %19143 = vmatpush3.bf16.msra.mxu0 %v19140_v50  ;;  %v14623_v50 = vld [vmem:[%s24725_s1 + $0x450] sm:$0xff] }
 0x41a   :  { %19145 = vmatprep.subr.bf16.mxu0 %v19144_v39  ;;  %v19156_v21 = vpack.c.bf16 %v14624_v19, %v14623_v50 }
 0x41c   :  { %17379 = vmatmul.mubr.f32.gmra.mrb[4].mxu0 %v22227_v2 }
 0x41d   :  { %17381 = vmatprep.mubr.f32.mxu0 %v22232_v53  ;;  %19147 = vmatpush3.bf16.msra.mxu0 %v19144_v39  ;;  %v14625_v39 = vld [vmem:[%s24725_s1 + $0x460] sm:$0xff] }
 0x41e   :  { %19149 = vmatprep.subr.bf16.mxu0 %v19148_v36  ;;  %v19160_v34 = vpack.c.bf16 %v14626_v48, %v14625_v39  ;;  %v25011_v48 = vld [vmem:[#allocation18_spill] sm:$0xff] }
 0x420   :  { %17382 = vmatmul.mubr.f32.gmra.mrb[6].mxu0 %v22245_v23 }
 0x421   :  { %17384 = vmatprep.mubr.f32.mxu0 %v22250_v31  ;;  %19151 = vmatpush3.bf16.msra.mxu0 %v19148_v36  ;;  %v14627_v36 = vld [vmem:[%s24725_s1 + $0x470] sm:$0xff] }
 0x422   :  { %19153 = vmatprep.subr.bf16.mxu0 %v19152_v14  ;;  %v19164_v50 = vpack.c.bf16 %v14628_v57, %v14627_v36  ;;  %v25013_v36 = vld [vmem:[#allocation15_spill] sm:$0xff]  ;;  %v25014_v57 = vld [vmem:[#allocation16_spill] sm:$0xff] }
 0x424   :  { %17385 = vmatmul.mubr.f32.gmra.mrb[8].mxu0 %v22263_v38 }
 0x425   :  { %17387 = vmatprep.mubr.f32.mxu0 %v22268_v41  ;;  %19155 = vmatpush3.bf16.msra.mxu0 %v19152_v14 }
 0x426   :  { %19157 = vmatprep.subr.bf16.mxu0 %v19156_v21 }
 0x428   :  { %17388 = vmatmul.mubr.f32.gmra.mrb[10].mxu0 %v22281_v22 }
 0x429   :  { %17390 = vmatprep.mubr.f32.mxu0 %v22286_v30  ;;  %19159 = vmatpush3.bf16.msra.mxu0 %v19156_v21 }
 0x42a   :  { %19161 = vmatprep.subr.bf16.mxu0 %v19160_v34 }
 0x42c   :  { %17391 = vmatmul.mubr.f32.gmra.mrb[12].mxu0 %v22299_v40 }
 0x42d   :  { %17393 = vmatprep.mubr.f32.mxu0 %v22304_v26  ;;  %19163 = vmatpush3.bf16.msra.mxu0 %v19160_v34  ;;  %v25012_v34 = vld [vmem:[#allocation19_spill] sm:$0xff] }
 0x42e   :  { %19165 = vmatprep.subr.bf16.mxu0 %v19164_v50 }
 0x430   :  { %17394 = vmatmul.mubr.f32.gmra.mrb[14].mxu0 %v22313_v49 }
 0x431   :  { %17396 = vmatprep.mubr.f32.mxu0 %v22318_v61  ;;  %19167 = vmatpush3.bf16.msra.mxu0 %v19164_v50  ;;  %v25015_v50 = vld [vmem:[#allocation5_spill] sm:$0xff] }
 0x434   :  { %17397 = vmatmul.mubr.f32.gmra.mrb[16].mxu0 %v22326_v55 }
 0x435   :  { %17399 = vmatprep.mubr.f32.mxu0 %v22331_v58 }
 0x438   :  { %17400 = vmatmul.mubr.f32.gmra.mrb[18].mxu0 %v22338_v60 }
 0x439   :  { %17402 = vmatprep.mubr.f32.mxu0 %v22343_v52 }
 0x43c   :  { %17403 = vmatmul.mubr.f32.gmra.mrb[20].mxu0 %v22350_v0 }
 0x43d   :  { %17405 = vmatprep.mubr.f32.mxu0 %v22355_v1 }
 0x440   :  { %17406 = vmatmul.mubr.f32.gmra.mrb[22].mxu0 %v22362_v3 }
 0x441   :  { %17408 = vmatprep.mubr.f32.mxu0 %v22367_v4 }
 0x444   :  { %17409 = vmatmul.mubr.f32.gmra.mrb[24].mxu0 %v22374_v5 }
 0x445   :  { %17411 = vmatprep.mubr.f32.mxu0 %v22379_v6 }
 0x448   :  { %17412 = vmatmul.mubr.f32.gmra.mrb[26].mxu0 %v22386_v7 }
 0x449   :  { %17414 = vmatprep.mubr.f32.mxu0 %v22391_v8 }
 0x44c   :  { %17415 = vmatmul.mubr.f32.gmra.mrb[28].mxu0 %v22398_v9 }
 0x44d   :  { %17417 = vmatprep.mubr.f32.mxu0 %v22403_v10 }
 0x450   :  { %17418 = vmatmul.mubr.f32.gmra.mrb[30].mxu0 %v22410_v11 }
 0x451   :  { %17420 = vmatprep.mubr.f32.mxu0 %v22415_v12 }
 0x453   :  { %v17199_v14 = vpop.f32.mrb[110].mxu0 }
 0x454   :  { %v4424_v19 = vpop.f32.mrb[111].mxu0  ;;  %17421 = vmatmul.mubr.f32.gmra.mrb[32].mxu0 %v22422_v15  ;;  %v25016_v14 = vld [vmem:[#allocation6_spill] sm:$0xff] }
 0x455   :  { %17423 = vmatprep.mubr.f32.mxu0 %v22427_v16  ;;  %v25017_v19 = vld [vmem:[#allocation8_spill] sm:$0xff] }
 0x457   :  { %v17234_v21 = vpop.f32.mrb[112].mxu0 }
 0x458   :  { %v4948_v39 = vpop.f32.mrb[113].mxu0  ;;  %17424 = vmatmul.mubr.f32.gmra.mrb[122].mxu0 %v22434_v24  ;;  %v25018_v21 = vld [vmem:[#allocation11_spill] sm:$0xff] }
 0x459   :  { %17426 = vmatprep.mubr.f32.mxu0 %v22439_v25  ;;  %v25019_v39 = vld [vmem:[#allocation12_spill] sm:$0xff] }
 0x45c   :  { %17427 = vmatmul.mubr.f32.gmra.mrb[124].mxu0 %v22446_v27 }
 0x45d   :  { %17429 = vmatprep.mubr.f32.mxu0 %v22451_v28 }
 0x460   :  { %17430 = vmatmul.mubr.f32.gmra.mrb[38].mxu0 %v22458_v29 }
 0x461   :  { %17432 = vmatprep.mubr.f32.mxu0 %v22463_v33 }
 0x464   :  { %17433 = vmatmul.mubr.f32.gmra.mrb[40].mxu0 %v22470_v42 }
 0x465   :  { %17435 = vmatprep.mubr.f32.mxu0 %v22475_v43 }
 0x468   :  { %17436 = vmatmul.mubr.f32.gmra.mrb[42].mxu0 %v22482_v46 }
 0x469   :  { %17438 = vmatprep.mubr.f32.mxu0 %v22487_v56 }
 0x46c   :  { %17439 = vmatmul.mubr.f32.gmra.mrb[44].mxu0 %v22494_v63 }
 0x46d   :  { %17441 = vmatprep.mubr.f32.mxu0 %v22499_v35 }
 0x470   :  { %17442 = vmatmul.mubr.f32.gmra.mrb[46].mxu0 %v22506_v44 }
 0x471   :  { %17444 = vmatprep.mubr.f32.mxu0 %v22511_v45 }
 0x474   :  { %17445 = vmatmul.mubr.f32.gmra.mrb[48].mxu0 %v22518_v54 }
 0x475   :  { %17447 = vmatprep.mubr.f32.mxu0 %v22523_v59 }
 0x478   :  { %17448 = vmatmul.mubr.f32.gmra.mrb[50].mxu0 %v22530_v32 }
 0x479   :  { %17450 = vmatprep.mubr.f32.mxu0 %v22535_v18 }
 0x47c   :  { %17451 = vmatmul.mubr.f32.gmra.mrb[52].mxu0 %v22542_v17  ;;  %v25020_v17 = vld [vmem:[#allocation13_spill] sm:$0xff] }
 0x47d   :  { %17453 = vmatprep.mubr.f32.mxu0 %v22547_v47  ;;  %v25021_v47 = vld [vmem:[#allocation20_spill] sm:$0xff] }
 0x480   :  { %17454 = vmatmul.mubr.f32.gmra.mrb[54].mxu0 %v25011_v48  ;;  %v25022_v48 = vld [vmem:[#allocation10_spill] sm:$0xff] }
 0x481   :  { %17456 = vmatprep.mubr.f32.mxu0 %v25012_v34 }
 0x484   :  { %17457 = vmatmul.mubr.f32.gmra.mrb[56].mxu0 %v25013_v36  ;;  %v25023_v36 = vld [vmem:[#allocation22_spill] sm:$0xff] }
 0x485   :  { %17459 = vmatprep.mubr.f32.mxu0 %v25014_v57 }
 0x488   :  { %17460 = vmatmul.mubr.f32.gmra.mrb[58].mxu0 %v25015_v50 }
 0x489   :  { %17462 = vmatprep.mubr.f32.mxu0 %v25016_v14  ;;  %v22756_v14 = vld [vmem:[%s24726_s0 + $0x34a] sm:$0xff] }
 0x48c   :  { %17463 = vmatmul.mubr.f32.gmra.mrb[60].mxu0 %v25017_v19 }
 0x48d   :  { %17465 = vmatprep.mubr.f32.mxu0 %v25018_v21 }
 0x490   :  { %17466 = vmatmul.mubr.f32.gmra.mrb[62].mxu0 %v25019_v39 }
 0x491   :  { %17468 = vmatprep.mubr.f32.mxu0 %v25020_v17 }
 0x494   :  { %17469 = vmatmul.mubr.f32.gmra.mrb[64].mxu0 %v25021_v47  ;;  %v22763_v47 = vld [vmem:[%s24726_s0 + $0x352] sm:$0xff] }
 0x495   :  { %17471 = vmatprep.mubr.f32.mxu0 %v25022_v48 }
 0x498   :  { %17472 = vmatmul.mubr.f32.gmra.mrb[66].mxu0 %v22626_v13 }
 0x499   :  { %17474 = vmatprep.mubr.f32.mxu0 %v25023_v36 }
 0x49b   :  { %v17285_v19 = vpop.f32.mrb[114].mxu0 }
 0x49c   :  { %v5118_v50 = vpop.f32.mrb[115].mxu0  ;;  %17475 = vmatmul.mubr.f32.gmra.mrb[68].mxu0 %v22638_v20 }
 0x49d   :  { %17477 = vmatprep.mubr.f32.mxu0 %v22756_v14  ;;  %v14657_v50 = vld [vmem:[%s24725_s1 + $0x658] sm:$0xff] }
 0x49f   :  { %v17288_v48 = vpop.f32.mrb[116].mxu0 }
 0x4a0   :  { %v5128_v13 = vpop.f32.mrb[117].mxu0  ;;  %17478 = vmatmul.mubr.f32.gmra.mrb[126].mxu0 %v22763_v47  ;;  %v14637_v48 = vld [vmem:[%s24725_s1 + $0x4b8] sm:$0xff] }
 0x4a1   :  { %17512 = vmatprep.mubr.f32.mxu0 %v22196_v37  ;;  %v14630_v13 = vld [vmem:[%s24725_s1 + $0x480] sm:$0xff]  ;;  %v14631_v37 = vld [vmem:[%s24725_s1 + $0x488] sm:$0xff] }
 0x4a4   :  { %17513 = vmatmul.mubr.f32.vlgmr.msra.gmra.mrb[128].mxu0 %v22209_v51  ;;  %v14632_v51 = vld [vmem:[%s24725_s1 + $0x490] sm:$0xff] }
 0x4a5   :  { %17515 = vmatprep.mubr.f32.mxu0 %v22214_v62  ;;  %v19168_v62 = vpack.c.bf16 %v14631_v37, %v14630_v13  ;;  %v14658_v13 = vld [vmem:[%s24725_s1 + $0x660] sm:$0xff]  ;;  %v14659_v37 = vld [vmem:[%s24725_s1 + $0x668] sm:$0xff] }
 0x4a7   :  { %19169 = vmatprep.subr.bf16.mxu1 %v19168_v62 }
 0x4a8   :  { %17516 = vmatmul.mubr.f32.gmra.mrb[2].mxu0 %v22227_v2  ;;  %v14633_v2 = vld [vmem:[%s24725_s1 + $0x498] sm:$0xff]  ;;  %19171 = vmatpush3.bf16.msra.mxu1 %v19168_v62  ;;  %v19224_v62 = vpack.c.bf16 %v14659_v37, %v14658_v13  ;;  %v14662_v37 = vld [vmem:[%s24725_s1 + $0x780] sm:$0xff] }
 0x4a9   :  { %17518 = vmatprep.mubr.f32.mxu0 %v22232_v53  ;;  %v19172_v53 = vpack.c.bf16 %v14633_v2, %v14632_v51  ;;  %v22936_v2 = vld [vmem:[%s24727_s2] ss:$0 sm:$0xff] }
 0x4ab   :  { %19173 = vmatprep.subr.bf16.mxu1 %v19172_v53 }
 0x4ac   :  { %17519 = vmatmul.mubr.f32.gmra.mrb[4].mxu0 %v22245_v23  ;;  %v14634_v23 = vld [vmem:[%s24725_s1 + $0x4a0] sm:$0xff]  ;;  %19175 = vmatpush3.bf16.msra.mxu1 %v19172_v53 }
 0x4ad   :  { %17521 = vmatprep.mubr.f32.mxu0 %v22250_v31  ;;  %v14635_v31 = vld [vmem:[%s24725_s1 + $0x4a8] sm:$0xff] }
 0x4b0   :  { %17522 = vmatmul.mubr.f32.gmra.mrb[6].mxu0 %v22263_v38  ;;  %v19176_v38 = vpack.c.bf16 %v14635_v31, %v14634_v23 }
 0x4b1   :  { %17524 = vmatprep.mubr.f32.mxu0 %v22268_v41  ;;  %v14636_v41 = vld [vmem:[%s24725_s1 + $0x4b0] sm:$0xff] }
 0x4b2   :  { %19177 = vmatprep.subr.bf16.mxu1 %v19176_v38 }
 0x4b3   :  { %19179 = vmatpush3.bf16.msra.mxu1 %v19176_v38 }
 0x4b4   :  { %17525 = vmatmul.mubr.f32.gmra.mrb[8].mxu0 %v22281_v22  ;;  %v19180_v22 = vpack.c.bf16 %v14637_v48, %v14636_v41 }
 0x4b5   :  { %17527 = vmatprep.mubr.f32.mxu0 %v22286_v30 }
 0x4b6   :  { %19181 = vmatprep.subr.bf16.mxu1 %v19180_v22 }
 0x4b7   :  { %19183 = vmatpush3.bf16.msra.mxu1 %v19180_v22 }
 0x4b8   :  { %17528 = vmatmul.mubr.f32.gmra.mrb[10].mxu0 %v22299_v40 }
 0x4b9   :  { %17530 = vmatprep.mubr.f32.mxu0 %v22304_v26 }
 0x4bc   :  { %17531 = vmatmul.mubr.f32.gmra.mrb[12].mxu0 %v22313_v49 }
 0x4bd   :  { %17533 = vmatprep.mubr.f32.mxu0 %v22318_v61  ;;  %v14638_v61 = vld [vmem:[%s24725_s1 + $0x4c0] sm:$0xff] }
 0x4c0   :  { %17534 = vmatmul.mubr.f32.gmra.mrb[14].mxu0 %v22326_v55  ;;  %v14639_v55 = vld [vmem:[%s24725_s1 + $0x4c8] sm:$0xff] }
 0x4c1   :  { %17536 = vmatprep.mubr.f32.mxu0 %v22331_v58  ;;  %v19184_v58 = vpack.c.bf16 %v14639_v55, %v14638_v61 }
 0x4c3   :  { %19185 = vmatprep.subr.bf16.mxu1 %v19184_v58 }
 0x4c4   :  { %17537 = vmatmul.mubr.f32.gmra.mrb[16].mxu0 %v22338_v60  ;;  %19187 = vmatpush3.bf16.msra.mxu1 %v19184_v58  ;;  %v14640_v60 = vld [vmem:[%s24725_s1 + $0x4d0] sm:$0xff] }
 0x4c5   :  { %17539 = vmatprep.mubr.f32.mxu0 %v22343_v52  ;;  %v14641_v52 = vld [vmem:[%s24725_s1 + $0x4d8] sm:$0xff] }
 0x4c8   :  { %17540 = vmatmul.mubr.f32.gmra.mrb[18].mxu0 %v22350_v0  ;;  %v19188_v0 = vpack.c.bf16 %v14641_v52, %v14640_v60 }
 0x4c9   :  { %17542 = vmatprep.mubr.f32.mxu0 %v22355_v1  ;;  %v14642_v1 = vld [vmem:[%s24725_s1 + $0x4e0] sm:$0xff] }
 0x4ca   :  { %19189 = vmatprep.subr.bf16.mxu1 %v19188_v0 }
 0x4cb   :  { %19191 = vmatpush3.bf16.msra.mxu1 %v19188_v0 }
 0x4cc   :  { %17543 = vmatmul.mubr.f32.gmra.mrb[20].mxu0 %v22362_v3  ;;  %v14643_v3 = vld [vmem:[%s24725_s1 + $0x4e8] sm:$0xff] }
 0x4cd   :  { %17545 = vmatprep.mubr.f32.mxu0 %v22367_v4  ;;  %v19192_v4 = vpack.c.bf16 %v14643_v3, %v14642_v1 }
 0x4cf   :  { %19193 = vmatprep.subr.bf16.mxu1 %v19192_v4 }
 0x4d0   :  { %17546 = vmatmul.mubr.f32.gmra.mrb[22].mxu0 %v22374_v5  ;;  %19195 = vmatpush3.bf16.msra.mxu1 %v19192_v4  ;;  %v14644_v5 = vld [vmem:[%s24725_s1 + $0x4f0] sm:$0xff] }
 0x4d1   :  { %17548 = vmatprep.mubr.f32.mxu0 %v22379_v6  ;;  %v14645_v6 = vld [vmem:[%s24725_s1 + $0x4f8] sm:$0xff] }
 0x4d4   :  { %17549 = vmatmul.mubr.f32.gmra.mrb[24].mxu0 %v22386_v7  ;;  %v19196_v7 = vpack.c.bf16 %v14645_v6, %v14644_v5 }
 0x4d5   :  { %17551 = vmatprep.mubr.f32.mxu0 %v22391_v8  ;;  %v22863_v8 = vld [vmem:[#allocation4] sm:$0xff] }
 0x4d6   :  { %19197 = vmatprep.subr.bf16.mxu1 %v19196_v7 }
 0x4d7   :  { %19199 = vmatpush3.bf16.msra.mxu1 %v19196_v7 }
 0x4d8   :  { %17552 = vmatmul.mubr.f32.gmra.mrb[26].mxu0 %v22398_v9  ;;  %v25024_v9 = vld [vmem:[#allocation9_spill] sm:$0xff] }
 0x4d9   :  { %17554 = vmatprep.mubr.f32.mxu0 %v22403_v10  ;;  %v25025_v10 = vld [vmem:[#allocation17_spill] sm:$0xff] }
 0x4da   :  { %17653 = vmatmul.mubr.f32.vlgmr.msra.gmra.mrb[0].mxu1 %v22863_v8 }
 0x4db   :  { %17655 = vmatprep.mubr.f32.mxu1 %v22863_v8 }
 0x4dc   :  { %17555 = vmatmul.mubr.f32.gmra.mrb[28].mxu0 %v22410_v11  ;;  %v14646_v11 = vld [vmem:[%s24725_s1 + $0x600] sm:$0xff] }
 0x4dd   :  { %17557 = vmatprep.mubr.f32.mxu0 %v22415_v12  ;;  %v14647_v12 = vld [vmem:[%s24725_s1 + $0x608] sm:$0xff] }
 0x4de   :  { %17656 = vmatmul.mubr.f32.gmra.mrb[2].mxu1 %v22863_v8 }
 0x4e0   :  { %17558 = vmatmul.mubr.f32.gmra.mrb[30].mxu0 %v22422_v15  ;;  %v25026_v15 = vld [vmem:[#allocation18_spill] sm:$0xff] }
 0x4e1   :  { %17560 = vmatprep.mubr.f32.mxu0 %v22427_v16  ;;  %v19200_v16 = vpack.c.bf16 %v14647_v12, %v14646_v11 }
 0x4e3   :  { %v17339_v30 = vpop.f32.mrb[118].mxu0  ;;  %19201 = vmatprep.subr.bf16.mxu1 %v19200_v16 }
 0x4e4   :  { %v5298_v40 = vpop.f32.mrb[119].mxu0  ;;  %17561 = vmatmul.mubr.f32.gmra.mrb[32].mxu0 %v22434_v24  ;;  %19203 = vmatpush3.bf16.msra.mxu1 %v19200_v16  ;;  %v25027_v24 = vld [vmem:[#allocation15_spill] sm:$0xff] }
 0x4e5   :  { %17563 = vmatprep.mubr.f32.mxu0 %v22439_v25  ;;  %v25028_v25 = vld [vmem:[#allocation5_spill] sm:$0xff] }
 0x4e7   :  { %v17374_v26 = vpop.f32.mrb[120].mxu0 }
 0x4e8   :  { %v5678_v49 = vpop.f32.mrb[121].mxu0  ;;  %17564 = vmatmul.mubr.f32.gmra.mrb[130].mxu0 %v22446_v27  ;;  %v25029_v27 = vld [vmem:[#allocation6_spill] sm:$0xff] }
 0x4e9   :  { %17566 = vmatprep.mubr.f32.mxu0 %v22451_v28  ;;  %v25030_v28 = vld [vmem:[#allocation8_spill] sm:$0xff] }
 0x4ec   :  { %17567 = vmatmul.mubr.f32.gmra.mrb[132].mxu0 %v22458_v29  ;;  %v14648_v29 = vld [vmem:[%s24725_s1 + $0x610] sm:$0xff] }
 0x4ed   :  { %17569 = vmatprep.mubr.f32.mxu0 %v22463_v33  ;;  %v14649_v33 = vld [vmem:[%s24725_s1 + $0x618] sm:$0xff] }
 0x4f0   :  { %17570 = vmatmul.mubr.f32.gmra.mrb[38].mxu0 %v22470_v42  ;;  %v19204_v42 = vpack.c.bf16 %v14649_v33, %v14648_v29 }
 0x4f1   :  { %17572 = vmatprep.mubr.f32.mxu0 %v22475_v43  ;;  %v25031_v43 = vld [vmem:[#allocation20_spill] sm:$0xff] }
 0x4f2   :  { %19205 = vmatprep.subr.bf16.mxu1 %v19204_v42 }
 0x4f3   :  { %19207 = vmatpush3.bf16.msra.mxu1 %v19204_v42 }
 0x4f4   :  { %17573 = vmatmul.mubr.f32.gmra.mrb[40].mxu0 %v22482_v46  ;;  %v25032_v46 = vld [vmem:[#allocation10_spill] sm:$0xff] }
 0x4f5   :  { %17575 = vmatprep.mubr.f32.mxu0 %v22487_v56  ;;  %v25033_v56 = vld [vmem:[#allocation21_spill] sm:$0xff] }
 0x4f8   :  { %17576 = vmatmul.mubr.f32.gmra.mrb[42].mxu0 %v22494_v63 }
 0x4f9   :  { %17578 = vmatprep.mubr.f32.mxu0 %v22499_v35 }
 0x4fc   :  { %17579 = vmatmul.mubr.f32.gmra.mrb[44].mxu0 %v22506_v44 }
 0x4fd   :  { %17581 = vmatprep.mubr.f32.mxu0 %v22511_v45  ;;  %v14650_v45 = vld [vmem:[%s24725_s1 + $0x620] sm:$0xff] }
 0x500   :  { %17582 = vmatmul.mubr.f32.gmra.mrb[46].mxu0 %v22518_v54  ;;  %v14651_v54 = vld [vmem:[%s24725_s1 + $0x628] sm:$0xff] }
 0x501   :  { %17584 = vmatprep.mubr.f32.mxu0 %v22523_v59 }
 0x504   :  { %17585 = vmatmul.mubr.f32.gmra.mrb[48].mxu0 %v22530_v32  ;;  %v19208_v32 = vpack.c.bf16 %v14651_v54, %v14650_v45 }
 0x505   :  { %17587 = vmatprep.mubr.f32.mxu0 %v22535_v18  ;;  %v14652_v18 = vld [vmem:[%s24725_s1 + $0x630] sm:$0xff] }
 0x506   :  { %19209 = vmatprep.subr.bf16.mxu1 %v19208_v32 }
 0x507   :  { %19211 = vmatpush3.bf16.msra.mxu1 %v19208_v32 }
 0x508   :  { %17588 = vmatmul.mubr.f32.gmra.mrb[50].mxu0 %v25024_v9  ;;  %v14660_v9 = vld [vmem:[%s24725_s1 + $0x670] sm:$0xff] }
 0x509   :  { %17590 = vmatprep.mubr.f32.mxu0 %v25025_v10  ;;  %v14661_v10 = vld [vmem:[%s24725_s1 + $0x678] sm:$0xff] }
 0x50a   :  { %v19228_v16 = vpack.c.bf16 %v14661_v10, %v14660_v9 }
 0x50c   :  { %17591 = vmatmul.mubr.f32.gmra.mrb[52].mxu0 %v25026_v15 }
 0x50d   :  { %17593 = vmatprep.mubr.f32.mxu0 %v25012_v34  ;;  %v14655_v34 = vld [vmem:[%s24725_s1 + $0x648] sm:$0xff] }
 0x510   :  { %17594 = vmatmul.mubr.f32.gmra.mrb[54].mxu0 %v25027_v24 }
 0x511   :  { %17596 = vmatprep.mubr.f32.mxu0 %v25014_v57  ;;  %v14656_v57 = vld [vmem:[%s24725_s1 + $0x650] sm:$0xff] }
 0x514   :  { %17597 = vmatmul.mubr.f32.gmra.mrb[56].mxu0 %v25028_v25 }
 0x515   :  { %17599 = vmatprep.mubr.f32.mxu0 %v25029_v27 }
 0x518   :  { %17600 = vmatmul.mubr.f32.gmra.mrb[58].mxu0 %v25030_v28 }
 0x519   :  { %17602 = vmatprep.mubr.f32.mxu0 %v25018_v21 }
 0x51c   :  { %17603 = vmatmul.mubr.f32.gmra.mrb[60].mxu0 %v25019_v39 }
 0x51d   :  { %17605 = vmatprep.mubr.f32.mxu0 %v25020_v17  ;;  %v14653_v17 = vld [vmem:[%s24725_s1 + $0x638] sm:$0xff] }
 0x520   :  { %17606 = vmatmul.mubr.f32.gmra.mrb[62].mxu0 %v25031_v43 }
 0x521   :  { %17608 = vmatprep.mubr.f32.mxu0 %v25032_v46 }
 0x524   :  { %17609 = vmatmul.mubr.f32.gmra.mrb[64].mxu0 %v25033_v56 }
 0x525   :  { %17611 = vmatprep.mubr.f32.mxu0 %v25023_v36 }
 0x528   :  { %17612 = vmatmul.mubr.f32.gmra.mrb[66].mxu0 %v22638_v20  ;;  %v14654_v20 = vld [vmem:[%s24725_s1 + $0x640] sm:$0xff] }
 0x529   :  { %17614 = vmatprep.mubr.f32.mxu0 %v22756_v14  ;;  %v19216_v36 = vpack.c.bf16 %v14655_v34, %v14654_v20  ;;  %v19220_v14 = vpack.c.bf16 %v14657_v50, %v14656_v57 }
 0x52b   :  { %v17425_v63 = vpop.f32.mrb[122].mxu0 }
 0x52c   :  { %v5848_v35 = vpop.f32.mrb[123].mxu0  ;;  %17615 = vmatmul.mubr.f32.gmra.mrb[68].mxu0 %v22763_v47  ;;  %v19212_v47 = vpack.c.bf16 %v14653_v17, %v14652_v18 }
 0x52d   :  { %17617 = vmatprep.mubr.f32.mxu0 %v22863_v8 }
 0x52e   :  { %19213 = vmatprep.subr.bf16.mxu1 %v19212_v47 }
 0x52f   :  { %v17428_v44 = vpop.f32.mrb[124].mxu0  ;;  %19215 = vmatpush3.bf16.msra.mxu1 %v19212_v47 }
 0x530   :  { %v5858_v59 = vpop.f32.mrb[125].mxu0  ;;  %17618 = vmatmul.mubr.f32.gmra.mrb[134].mxu0 %v22863_v8  ;;  %19217 = vmatprep.subr.bf16.mxu1 %v19216_v36 }
 0x533   :  { %19219 = vmatpush3.bf16.msra.mxu1 %v19216_v36 }
 0x534   :  { %19221 = vmatprep.subr.bf16.mxu1 %v19220_v14 }
 0x537   :  { %19223 = vmatpush3.bf16.msra.mxu1 %v19220_v14 }
 0x538   :  { %19225 = vmatprep.subr.bf16.mxu1 %v19224_v62 }
 0x53b   :  { %19227 = vmatpush3.bf16.msra.mxu1 %v19224_v62 }
 0x53c   :  { %19229 = vmatprep.subr.bf16.mxu1 %v19228_v16 }
 0x53f   :  { %19231 = vmatpush3.bf16.msra.mxu1 %v19228_v16 }
 0x573   :  { %v17479_v19 = vpop.f32.mrb[126].mxu0 }
 0x574   :  { %v6028_v21 = vpop.f32.mrb[127].mxu0 }
 0x577   :  { %v17514_v39 = vpop.f32.mrb[128].mxu0 }
 0x578   :  { %v6408_v51 = vpop.f32.mrb[129].mxu0 }
 0x579   :  { %v14663_v51 = vld [vmem:[%s24725_s1 + $0x788] sm:$0xff] }
 0x57b   :  { %v17517_v53 = vpop.f32.mrb[2].mxu0 }
 0x57c   :  { %v7055_v23 = vadd.f32 %v17517_v53, %v22936_v2  ;;  %v6418_v31 = vpop.f32.mrb[3].mxu0 }
 0x57d   :  { %v7054_v38 = vadd.f32 %v22936_v2, %v6418_v31 }
 0x57e   :  { %v7119_v41 = vmul.f32 0.2, %v7055_v23 }
 0x57f   :  { %v7118_v48 = vmul.f32 0.2, %v7054_v38  ;;  %v17520_v22 = vpop.f32.mrb[4].mxu0 }
 0x580   :  { %v7183_v30 = vmax.f32 %v7055_v23, %v7119_v41  ;;  %v7057_v40 = vadd.f32 %v17520_v22, %v22936_v2  ;;  %v6428_v26 = vpop.f32.mrb[5].mxu0  ;;  %v22982_v23 = vpack.c.bf16 %v14663_v51, %v14662_v37 }
 0x581   :  { %v7182_v49 = vmax.f32 %v7054_v38, %v7118_v48  ;;  %v7056_v61 = vadd.f32 %v22936_v2, %v6428_v26 }
 0x582   :  { %7248 = vst [vmem:[#allocation4 + $0x21] sm:$0xff] %v7183_v30  ;;  %v7121_v55 = vmul.f32 0.2, %v7057_v40  ;;  %19233 = vmatprep.subr.bf16.mxu1 %v22982_v23 }
 0x583   :  { %7247 = vst [vmem:[#allocation4 + $0x19] sm:$0xff] %v7182_v49  ;;  %v7120_v58 = vmul.f32 0.2, %v7056_v61  ;;  %v17523_v60 = vpop.f32.mrb[6].mxu0 }
 0x584   :  { %v7185_v52 = vmax.f32 %v7057_v40, %v7121_v55  ;;  %v7059_v0 = vadd.f32 %v17523_v60, %v22936_v2  ;;  %v6438_v1 = vpop.f32.mrb[7].mxu0 }
 0x585   :  { %v7184_v3 = vmax.f32 %v7056_v61, %v7120_v58  ;;  %v7058_v4 = vadd.f32 %v22936_v2, %v6438_v1 }
 0x586   :  { %7250 = vst [vmem:[#allocation4 + $0x39] sm:$0xff] %v7185_v52  ;;  %v7123_v5 = vmul.f32 0.2, %v7059_v0 }
 0x587   :  { %7249 = vst [vmem:[#allocation4 + $0x31] sm:$0xff] %v7184_v3  ;;  %v7122_v6 = vmul.f32 0.2, %v7058_v4  ;;  %v17526_v7 = vpop.f32.mrb[8].mxu0 }
 0x588   :  { %v7187_v11 = vmax.f32 %v7059_v0, %v7123_v5  ;;  %v7061_v12 = vadd.f32 %v17526_v7, %v22936_v2  ;;  %v6448_v15 = vpop.f32.mrb[9].mxu0 }
 0x589   :  { %v7186_v24 = vmax.f32 %v7058_v4, %v7122_v6  ;;  %v7060_v25 = vadd.f32 %v22936_v2, %v6448_v15 }
 0x58a   :  { %7252 = vst [vmem:[#allocation4 + $0x51] sm:$0xff] %v7187_v11  ;;  %v7125_v27 = vmul.f32 0.2, %v7061_v12  ;;  %v22952_v28 = vld [vmem:[#allocation4 + $0x18] sm:$0xff]  ;;  %v22954_v29 = vld [vmem:[#allocation4 + $0x20] sm:$0xff] }
 0x58b   :  { %7251 = vst [vmem:[#allocation4 + $0x49] sm:$0xff] %v7186_v24  ;;  %v7124_v33 = vmul.f32 0.2, %v7060_v25  ;;  %v17529_v42 = vpop.f32.mrb[10].mxu0  ;;  %17658 = vmatprep.mubr.f32.mxu1 %v22952_v28 }
 0x58c   :  { %v7189_v43 = vmax.f32 %v7061_v12, %v7125_v27  ;;  %v7063_v46 = vadd.f32 %v17529_v42, %v22936_v2  ;;  %v6458_v56 = vpop.f32.mrb[11].mxu0  ;;  %17659 = vmatmul.mubr.f32.gmra.mrb[4].mxu1 %v22954_v29 }
 0x58d   :  { %v7188_v63 = vmax.f32 %v7060_v25, %v7124_v33  ;;  %v7062_v35 = vadd.f32 %v22936_v2, %v6458_v56 }
 0x58e   :  { %7254 = vst [vmem:[#allocation4 + $0x69] sm:$0xff] %v7189_v43  ;;  %v7127_v44 = vmul.f32 0.2, %v7063_v46  ;;  %v22960_v45 = vld [vmem:[#allocation4 + $0x30] sm:$0xff]  ;;  %v22962_v54 = vld [vmem:[#allocation4 + $0x38] sm:$0xff] }
 0x58f   :  { %7253 = vst [vmem:[#allocation4 + $0x61] sm:$0xff] %v7188_v63  ;;  %v7126_v59 = vmul.f32 0.2, %v7062_v35  ;;  %v17532_v32 = vpop.f32.mrb[12].mxu0  ;;  %17661 = vmatprep.mubr.f32.mxu1 %v22960_v45 }
 0x590   :  { %v7191_v18 = vmax.f32 %v7063_v46, %v7127_v44  ;;  %v7065_v17 = vadd.f32 %v17532_v32, %v22936_v2  ;;  %v6468_v47 = vpop.f32.mrb[13].mxu0  ;;  %17662 = vmatmul.mubr.f32.gmra.mrb[6].mxu1 %v22962_v54 }
 0x591   :  { %v7190_v20 = vmax.f32 %v7062_v35, %v7126_v59  ;;  %v7064_v34 = vadd.f32 %v22936_v2, %v6468_v47 }
 0x592   :  { %7256 = vst [vmem:[#allocation4 + $0x81] sm:$0xff] %v7191_v18  ;;  %v7129_v36 = vmul.f32 0.2, %v7065_v17  ;;  %v22968_v57 = vld [vmem:[#allocation4 + $0x48] sm:$0xff]  ;;  %v22970_v50 = vld [vmem:[#allocation4 + $0x50] sm:$0xff] }
 0x593   :  { %7255 = vst [vmem:[#allocation4 + $0x79] sm:$0xff] %v7190_v20  ;;  %v7128_v14 = vmul.f32 0.2, %v7064_v34  ;;  %v17535_v19 = vpop.f32.mrb[14].mxu0  ;;  %17664 = vmatprep.mubr.f32.mxu1 %v22968_v57 }
 0x594   :  { %v7193_v21 = vmax.f32 %v7065_v17, %v7129_v36  ;;  %v7067_v39 = vadd.f32 %v17535_v19, %v22936_v2  ;;  %v6478_v13 = vpop.f32.mrb[15].mxu0  ;;  %17665 = vmatmul.mubr.f32.gmra.mrb[8].mxu1 %v22970_v50 }
 0x595   :  { %v7192_v62 = vmax.f32 %v7064_v34, %v7128_v14  ;;  %v7066_v53 = vadd.f32 %v22936_v2, %v6478_v13 }
 0x596   :  { %7258 = vst [vmem:[#allocation4 + $0x99] sm:$0xff] %v7193_v21  ;;  %v7131_v31 = vmul.f32 0.2, %v7067_v39  ;;  %v22984_v38 = vld [vmem:[#allocation4 + $0x60] sm:$0xff]  ;;  %v22986_v41 = vld [vmem:[#allocation4 + $0x68] sm:$0xff] }
 0x597   :  { %7257 = vst [vmem:[#allocation4 + $0x91] sm:$0xff] %v7192_v62  ;;  %v7130_v48 = vmul.f32 0.2, %v7066_v53  ;;  %v17538_v22 = vpop.f32.mrb[16].mxu0  ;;  %17667 = vmatprep.mubr.f32.mxu1 %v22984_v38 }
 0x598   :  { %v7195_v30 = vmax.f32 %v7067_v39, %v7131_v31  ;;  %v7069_v40 = vadd.f32 %v17538_v22, %v22936_v2  ;;  %v6488_v26 = vpop.f32.mrb[17].mxu0  ;;  %17668 = vmatmul.mubr.f32.gmra.mrb[10].mxu1 %v22986_v41 }
 0x599   :  { %v7194_v49 = vmax.f32 %v7066_v53, %v7130_v48  ;;  %v7068_v61 = vadd.f32 %v22936_v2, %v6488_v26 }
 0x59a   :  { %7260 = vst [vmem:[#allocation4 + $0xb1] sm:$0xff] %v7195_v30  ;;  %v7133_v55 = vmul.f32 0.2, %v7069_v40  ;;  %v22993_v58 = vld [vmem:[#allocation4 + $0x78] sm:$0xff]  ;;  %v22995_v60 = vld [vmem:[#allocation4 + $0x80] sm:$0xff] }
 0x59b   :  { %7259 = vst [vmem:[#allocation4 + $0xa9] sm:$0xff] %v7194_v49  ;;  %v7132_v52 = vmul.f32 0.2, %v7068_v61  ;;  %v17541_v0 = vpop.f32.mrb[18].mxu0  ;;  %17670 = vmatprep.mubr.f32.mxu1 %v22993_v58 }
 0x59c   :  { %v7197_v1 = vmax.f32 %v7069_v40, %v7133_v55  ;;  %v7071_v3 = vadd.f32 %v17541_v0, %v22936_v2  ;;  %v6498_v4 = vpop.f32.mrb[19].mxu0  ;;  %17671 = vmatmul.mubr.f32.gmra.mrb[12].mxu1 %v22995_v60 }
 0x59d   :  { %v7196_v5 = vmax.f32 %v7068_v61, %v7132_v52  ;;  %v7070_v6 = vadd.f32 %v22936_v2, %v6498_v4 }
 0x59e   :  { %7262 = vst [vmem:[#allocation4 + $0xc9] sm:$0xff] %v7197_v1  ;;  %v7135_v7 = vmul.f32 0.2, %v7071_v3  ;;  %v23001_v9 = vld [vmem:[#allocation4 + $0x90] sm:$0xff]  ;;  %v23003_v10 = vld [vmem:[#allocation4 + $0x98] sm:$0xff] }
 0x59f   :  { %7261 = vst [vmem:[#allocation4 + $0xc1] sm:$0xff] %v7196_v5  ;;  %v7134_v11 = vmul.f32 0.2, %v7070_v6  ;;  %v17544_v12 = vpop.f32.mrb[20].mxu0  ;;  %17673 = vmatprep.mubr.f32.mxu1 %v23001_v9 }
 0x5a0   :  { %v7199_v15 = vmax.f32 %v7071_v3, %v7135_v7  ;;  %v7073_v16 = vadd.f32 %v17544_v12, %v22936_v2  ;;  %v6508_v24 = vpop.f32.mrb[21].mxu0  ;;  %17674 = vmatmul.mubr.f32.gmra.mrb[14].mxu1 %v23003_v10 }
 0x5a1   :  { %v7198_v25 = vmax.f32 %v7070_v6, %v7134_v11  ;;  %v7072_v27 = vadd.f32 %v22936_v2, %v6508_v24 }
 0x5a2   :  { %7264 = vst [vmem:[#allocation4 + $0xe1] sm:$0xff] %v7199_v15  ;;  %v7137_v33 = vmul.f32 0.2, %v7073_v16  ;;  %v23009_v42 = vld [vmem:[#allocation4 + $0xa8] sm:$0xff]  ;;  %v23011_v43 = vld [vmem:[#allocation4 + $0xb0] sm:$0xff] }
 0x5a3   :  { %7263 = vst [vmem:[#allocation4 + $0xd9] sm:$0xff] %v7198_v25  ;;  %v7136_v46 = vmul.f32 0.2, %v7072_v27  ;;  %v17547_v56 = vpop.f32.mrb[22].mxu0  ;;  %17676 = vmatprep.mubr.f32.mxu1 %v23009_v42 }
 0x5a4   :  { %v7201_v63 = vmax.f32 %v7073_v16, %v7137_v33  ;;  %v7075_v35 = vadd.f32 %v17547_v56, %v22936_v2  ;;  %v6518_v44 = vpop.f32.mrb[23].mxu0  ;;  %17677 = vmatmul.mubr.f32.gmra.mrb[16].mxu1 %v23011_v43 }
 0x5a5   :  { %v7200_v59 = vmax.f32 %v7072_v27, %v7136_v46  ;;  %v7074_v32 = vadd.f32 %v22936_v2, %v6518_v44 }
 0x5a6   :  { %7266 = vst [vmem:[#allocation4 + $0xf9] sm:$0xff] %v7201_v63  ;;  %v7139_v18 = vmul.f32 0.2, %v7075_v35  ;;  %v23017_v17 = vld [vmem:[#allocation4 + $0xc0] sm:$0xff]  ;;  %v23019_v47 = vld [vmem:[#allocation4 + $0xc8] sm:$0xff] }
 0x5a7   :  { %7265 = vst [vmem:[#allocation4 + $0xf1] sm:$0xff] %v7200_v59  ;;  %v7138_v20 = vmul.f32 0.2, %v7074_v32  ;;  %v17550_v34 = vpop.f32.mrb[24].mxu0  ;;  %17679 = vmatprep.mubr.f32.mxu1 %v23017_v17 }
 0x5a8   :  { %v7203_v36 = vmax.f32 %v7075_v35, %v7139_v18  ;;  %v7077_v14 = vadd.f32 %v17550_v34, %v22936_v2  ;;  %v6528_v19 = vpop.f32.mrb[25].mxu0  ;;  %17680 = vmatmul.mubr.f32.gmra.mrb[18].mxu1 %v23019_v47 }
 0x5a9   :  { %v7202_v21 = vmax.f32 %v7074_v32, %v7138_v20  ;;  %v7076_v39 = vadd.f32 %v22936_v2, %v6528_v19 }
 0x5aa   :  { %7268 = vst [vmem:[#allocation4 + $0x111] sm:$0xff] %v7203_v36  ;;  %v7141_v13 = vmul.f32 0.2, %v7077_v14  ;;  %v23025_v37 = vld [vmem:[#allocation4 + $0xd8] sm:$0xff]  ;;  %v23027_v51 = vld [vmem:[#allocation4 + $0xe0] sm:$0xff] }
 0x5ab   :  { %7267 = vst [vmem:[#allocation4 + $0x109] sm:$0xff] %v7202_v21  ;;  %v7140_v62 = vmul.f32 0.2, %v7076_v39  ;;  %v17553_v53 = vpop.f32.mrb[26].mxu0  ;;  %17682 = vmatprep.mubr.f32.mxu1 %v23025_v37 }
 0x5ac   :  { %v7205_v31 = vmax.f32 %v7077_v14, %v7141_v13  ;;  %v7079_v48 = vadd.f32 %v17553_v53, %v22936_v2  ;;  %v6538_v22 = vpop.f32.mrb[27].mxu0  ;;  %17683 = vmatmul.mubr.f32.gmra.mrb[20].mxu1 %v23027_v51 }
 0x5ad   :  { %v7204_v30 = vmax.f32 %v7076_v39, %v7140_v62  ;;  %v7078_v40 = vadd.f32 %v22936_v2, %v6538_v22 }
 0x5ae   :  { %7270 = vst [vmem:[#allocation4 + $0x129] sm:$0xff] %v7205_v31  ;;  %v7143_v26 = vmul.f32 0.2, %v7079_v48  ;;  %v23033_v49 = vld [vmem:[#allocation4 + $0xf0] sm:$0xff]  ;;  %v23035_v61 = vld [vmem:[#allocation4 + $0xf8] sm:$0xff] }
 0x5af   :  { %7269 = vst [vmem:[#allocation4 + $0x121] sm:$0xff] %v7204_v30  ;;  %v7142_v55 = vmul.f32 0.2, %v7078_v40  ;;  %v17556_v52 = vpop.f32.mrb[28].mxu0  ;;  %17685 = vmatprep.mubr.f32.mxu1 %v23033_v49 }
 0x5b0   :  { %v7207_v0 = vmax.f32 %v7079_v48, %v7143_v26  ;;  %v7081_v1 = vadd.f32 %v17556_v52, %v22936_v2  ;;  %v6548_v3 = vpop.f32.mrb[29].mxu0  ;;  %17686 = vmatmul.mubr.f32.gmra.mrb[22].mxu1 %v23035_v61 }
 0x5b1   :  { %v7206_v4 = vmax.f32 %v7078_v40, %v7142_v55  ;;  %v7080_v5 = vadd.f32 %v22936_v2, %v6548_v3 }
 0x5b2   :  { %7272 = vst [vmem:[#allocation4 + $0x141] sm:$0xff] %v7207_v0  ;;  %v7145_v6 = vmul.f32 0.2, %v7081_v1  ;;  %v23041_v7 = vld [vmem:[#allocation4 + $0x108] sm:$0xff]  ;;  %v23043_v11 = vld [vmem:[#allocation4 + $0x110] sm:$0xff] }
 0x5b3   :  { %7271 = vst [vmem:[#allocation4 + $0x139] sm:$0xff] %v7206_v4  ;;  %v7144_v12 = vmul.f32 0.2, %v7080_v5  ;;  %v17559_v15 = vpop.f32.mrb[30].mxu0  ;;  %17688 = vmatprep.mubr.f32.mxu1 %v23041_v7 }
 0x5b4   :  { %v7209_v16 = vmax.f32 %v7081_v1, %v7145_v6  ;;  %v7083_v24 = vadd.f32 %v17559_v15, %v22936_v2  ;;  %v6558_v25 = vpop.f32.mrb[31].mxu0  ;;  %17689 = vmatmul.mubr.f32.gmra.mrb[24].mxu1 %v23043_v11 }
 0x5b5   :  { %v7208_v27 = vmax.f32 %v7080_v5, %v7144_v12  ;;  %v7082_v33 = vadd.f32 %v22936_v2, %v6558_v25 }
 0x5b6   :  { %7274 = vst [vmem:[#allocation4 + $0x159] sm:$0xff] %v7209_v16  ;;  %v7147_v46 = vmul.f32 0.2, %v7083_v24  ;;  %v23049_v56 = vld [vmem:[#allocation4 + $0x120] sm:$0xff]  ;;  %v23051_v63 = vld [vmem:[#allocation4 + $0x128] sm:$0xff] }
 0x5b7   :  { %7273 = vst [vmem:[#allocation4 + $0x151] sm:$0xff] %v7208_v27  ;;  %v7146_v35 = vmul.f32 0.2, %v7082_v33  ;;  %v17562_v44 = vpop.f32.mrb[32].mxu0  ;;  %17691 = vmatprep.mubr.f32.mxu1 %v23049_v56 }
 0x5b8   :  { %v7211_v59 = vmax.f32 %v7083_v24, %v7147_v46  ;;  %v7085_v32 = vadd.f32 %v17562_v44, %v22936_v2  ;;  %v6568_v18 = vpop.f32.mrb[33].mxu0  ;;  %17692 = vmatmul.mubr.f32.gmra.mrb[26].mxu1 %v23051_v63 }
 0x5b9   :  { %v7210_v20 = vmax.f32 %v7082_v33, %v7146_v35  ;;  %v7084_v34 = vadd.f32 %v22936_v2, %v6568_v18 }
 0x5ba   :  { %7276 = vst [vmem:[#allocation4 + $0x171] sm:$0xff] %v7211_v59  ;;  %v7149_v36 = vmul.f32 0.2, %v7085_v32  ;;  %v23057_v14 = vld [vmem:[#allocation4 + $0x138] sm:$0xff]  ;;  %v23059_v19 = vld [vmem:[#allocation4 + $0x140] sm:$0xff] }
 0x5bb   :  { %7275 = vst [vmem:[#allocation4 + $0x169] sm:$0xff] %v7210_v20  ;;  %v7148_v21 = vmul.f32 0.2, %v7084_v34  ;;  %v17565_v39 = vpop.f32.mrb[130].mxu0  ;;  %17694 = vmatprep.mubr.f32.mxu1 %v23057_v14 }
 0x5bc   :  { %v7213_v13 = vmax.f32 %v7085_v32, %v7149_v36  ;;  %v6578_v62 = vpop.f32.mrb[131].mxu0  ;;  %17695 = vmatmul.mubr.f32.gmra.mrb[28].mxu1 %v23059_v19 }
 0x5bd   :  { %v7212_v53 = vmax.f32 %v7084_v34, %v7148_v21 }
 0x5be   :  { %7278 = vst [vmem:[#allocation4 + $0x189] sm:$0xff] %v7213_v13  ;;  %v23063_v31 = vld [vmem:[#allocation4 + $0x150] sm:$0xff]  ;;  %v23065_v48 = vld [vmem:[#allocation4 + $0x158] sm:$0xff] }
 0x5bf   :  { %7277 = vst [vmem:[#allocation4 + $0x181] sm:$0xff] %v7212_v53  ;;  %v17568_v22 = vpop.f32.mrb[132].mxu0  ;;  %17697 = vmatprep.mubr.f32.mxu1 %v23063_v31 }
 0x5c0   :  { %v6588_v30 = vpop.f32.mrb[133].mxu0  ;;  %17698 = vmatmul.mubr.f32.gmra.mrb[30].mxu1 %v23065_v48 }
 0x5c2   :  { %v23069_v40 = vld [vmem:[#allocation4 + $0x168] sm:$0xff]  ;;  %v23071_v26 = vld [vmem:[#allocation4 + $0x170] sm:$0xff] }
 0x5c3   :  { %v17571_v55 = vpop.f32.mrb[38].mxu0  ;;  %17700 = vmatprep.mubr.f32.mxu1 %v23069_v40 }
 0x5c4   :  { %v7087_v52 = vadd.f32 %v17571_v55, %v22936_v2  ;;  %v6598_v0 = vpop.f32.mrb[39].mxu0  ;;  %17701 = vmatmul.mubr.f32.gmra.mrb[32].mxu1 %v23071_v26 }
 0x5c5   :  { %v7086_v1 = vadd.f32 %v22936_v2, %v6598_v0 }
 0x5c6   :  { %v7151_v3 = vmul.f32 0.2, %v7087_v52  ;;  %v23077_v4 = vld [vmem:[#allocation4 + $0x180] sm:$0xff]  ;;  %v23079_v5 = vld [vmem:[#allocation4 + $0x188] sm:$0xff] }
 0x5c7   :  { %v7150_v6 = vmul.f32 0.2, %v7086_v1  ;;  %v17574_v12 = vpop.f32.mrb[40].mxu0  ;;  %17703 = vmatprep.mubr.f32.mxu1 %v23077_v4 }
 0x5c8   :  { %v7215_v15 = vmax.f32 %v7087_v52, %v7151_v3  ;;  %v7089_v16 = vadd.f32 %v17574_v12, %v22936_v2  ;;  %v6608_v24 = vpop.f32.mrb[41].mxu0  ;;  %17704 = vmatmul.mubr.f32.gmra.mrb[34].mxu1 %v23079_v5 }
 0x5c9   :  { %v7214_v25 = vmax.f32 %v7086_v1, %v7150_v6  ;;  %v7088_v27 = vadd.f32 %v22936_v2, %v6608_v24  ;;  %17706 = vmatprep.mubr.f32.mxu1 %v22863_v8 }
 0x5ca   :  { %7280 = vst [vmem:[#allocation4 + $0x1d1] sm:$0xff] %v7215_v15  ;;  %v7153_v33 = vmul.f32 0.2, %v7089_v16 }
 0x5cb   :  { %7279 = vst [vmem:[#allocation4 + $0x1c9] sm:$0xff] %v7214_v25  ;;  %v7152_v46 = vmul.f32 0.2, %v7088_v27  ;;  %v17577_v35 = vpop.f32.mrb[42].mxu0 }
 0x5cc   :  { %v7217_v44 = vmax.f32 %v7089_v16, %v7153_v33  ;;  %v7091_v59 = vadd.f32 %v17577_v35, %v22936_v2  ;;  %v6618_v32 = vpop.f32.mrb[43].mxu0  ;;  %17707 = vmatmul.mubr.f32.gmra.mrb[36].mxu1 %v22863_v8 }
 0x5cd   :  { %v7216_v18 = vmax.f32 %v7088_v27, %v7152_v46  ;;  %v7090_v20 = vadd.f32 %v22936_v2, %v6618_v32  ;;  %17709 = vmatprep.mubr.f32.mxu1 %v22863_v8  ;;  %v17654_v27 = vpop.f32.mrb[0].mxu1 }
 0x5ce   :  { %7282 = vst [vmem:[#allocation4 + $0x1e9] sm:$0xff] %v7217_v44  ;;  %v7155_v34 = vmul.f32 0.2, %v7091_v59  ;;  %v7610_v35 = vpop.f32.mrb[1].mxu1 }
 0x5cf   :  { %7281 = vst [vmem:[#allocation4 + $0x1e1] sm:$0xff] %v7216_v18  ;;  %v7154_v36 = vmul.f32 0.2, %v7090_v20  ;;  %v17580_v21 = vpop.f32.mrb[44].mxu0 }
 0x5d0   :  { %v7219_v39 = vmax.f32 %v7091_v59, %v7155_v34  ;;  %v7093_v13 = vadd.f32 %v17580_v21, %v22936_v2  ;;  %v6628_v62 = vpop.f32.mrb[45].mxu0  ;;  %17710 = vmatmul.mubr.f32.gmra.mrb[38].mxu1 %v22863_v8 }
 0x5d1   :  { %v7218_v53 = vmax.f32 %v7090_v20, %v7154_v36  ;;  %v7092_v22 = vadd.f32 %v22936_v2, %v6628_v62 }
 0x5d2   :  { %7284 = vst [vmem:[#allocation4 + $0x201] sm:$0xff] %v7219_v39  ;;  %v7157_v30 = vmul.f32 0.2, %v7093_v13  ;;  %v23093_v55 = vld [vmem:[#allocation4 + $0x1c8] sm:$0xff]  ;;  %v23095_v52 = vld [vmem:[#allocation4 + $0x1d0] sm:$0xff] }
 0x5d3   :  { %7283 = vst [vmem:[#allocation4 + $0x1f9] sm:$0xff] %v7218_v53  ;;  %v7156_v0 = vmul.f32 0.2, %v7092_v22  ;;  %v17583_v1 = vpop.f32.mrb[46].mxu0  ;;  %17712 = vmatprep.mubr.f32.mxu1 %v23093_v55 }
 0x5d4   :  { %v7221_v3 = vmax.f32 %v7093_v13, %v7157_v30  ;;  %v7095_v6 = vadd.f32 %v17583_v1, %v22936_v2  ;;  %v6638_v12 = vpop.f32.mrb[47].mxu0  ;;  %17713 = vmatmul.mubr.f32.gmra.mrb[40].mxu1 %v23095_v52 }
 0x5d5   :  { %v7220_v8 = vmax.f32 %v7092_v22, %v7156_v0  ;;  %v7094_v15 = vadd.f32 %v22936_v2, %v6638_v12 }
 0x5d6   :  { %7286 = vst [vmem:[#allocation4 + $0x219] sm:$0xff] %v7221_v3  ;;  %v7159_v16 = vmul.f32 0.2, %v7095_v6  ;;  %v23101_v24 = vld [vmem:[#allocation4 + $0x1e0] sm:$0xff]  ;;  %v23103_v25 = vld [vmem:[#allocation4 + $0x1e8] sm:$0xff] }
 0x5d7   :  { %7285 = vst [vmem:[#allocation4 + $0x211] sm:$0xff] %v7220_v8  ;;  %v7158_v33 = vmul.f32 0.2, %v7094_v15  ;;  %v17586_v46 = vpop.f32.mrb[48].mxu0  ;;  %17715 = vmatprep.mubr.f32.mxu1 %v23101_v24 }
 0x5d8   :  { %v7223_v44 = vmax.f32 %v7095_v6, %v7159_v16  ;;  %v7097_v59 = vadd.f32 %v17586_v46, %v22936_v2  ;;  %v6648_v32 = vpop.f32.mrb[49].mxu0  ;;  %17716 = vmatmul.mubr.f32.gmra.mrb[42].mxu1 %v23103_v25 }
 0x5d9   :  { %v7222_v18 = vmax.f32 %v7094_v15, %v7158_v33  ;;  %v7096_v20 = vadd.f32 %v22936_v2, %v6648_v32 }
 0x5da   :  { %7288 = vst [vmem:[#allocation4 + $0x231] sm:$0xff] %v7223_v44  ;;  %v7161_v34 = vmul.f32 0.2, %v7097_v59  ;;  %v23109_v36 = vld [vmem:[#allocation4 + $0x1f8] sm:$0xff]  ;;  %v23111_v21 = vld [vmem:[#allocation4 + $0x200] sm:$0xff] }
 0x5db   :  { %7287 = vst [vmem:[#allocation4 + $0x229] sm:$0xff] %v7222_v18  ;;  %v7160_v39 = vmul.f32 0.2, %v7096_v20  ;;  %v17589_v13 = vpop.f32.mrb[50].mxu0  ;;  %17718 = vmatprep.mubr.f32.mxu1 %v23109_v36 }
 0x5dc   :  { %v7225_v62 = vmax.f32 %v7097_v59, %v7161_v34  ;;  %v7099_v53 = vadd.f32 %v17589_v13, %v22936_v2  ;;  %v6658_v22 = vpop.f32.mrb[51].mxu0  ;;  %17719 = vmatmul.mubr.f32.gmra.mrb[44].mxu1 %v23111_v21 }
 0x5dd   :  { %v7224_v30 = vmax.f32 %v7096_v20, %v7160_v39  ;;  %v7098_v0 = vadd.f32 %v22936_v2, %v6658_v22 }
 0x5de   :  { %7290 = vst [vmem:[#allocation4 + $0x249] sm:$0xff] %v7225_v62  ;;  %v7163_v1 = vmul.f32 0.2, %v7099_v53  ;;  %v23117_v3 = vld [vmem:[#allocation4 + $0x210] sm:$0xff]  ;;  %v23119_v6 = vld [vmem:[#allocation4 + $0x218] sm:$0xff] }
 0x5df   :  { %7289 = vst [vmem:[#allocation4 + $0x241] sm:$0xff] %v7224_v30  ;;  %v7162_v12 = vmul.f32 0.2, %v7098_v0  ;;  %v17592_v8 = vpop.f32.mrb[52].mxu0  ;;  %17721 = vmatprep.mubr.f32.mxu1 %v23117_v3 }
 0x5e0   :  { %v7227_v15 = vmax.f32 %v7099_v53, %v7163_v1  ;;  %v7101_v16 = vadd.f32 %v17592_v8, %v22936_v2  ;;  %v6668_v27 = vpop.f32.mrb[53].mxu0  ;;  %17722 = vmatmul.mubr.f32.gmra.mrb[46].mxu1 %v23119_v6 }
 0x5e1   :  { %v7226_v33 = vmax.f32 %v7098_v0, %v7162_v12  ;;  %v7100_v46 = vadd.f32 %v22936_v2, %v6668_v27 }
 0x5e2   :  { %7292 = vst [vmem:[#allocation4 + $0x261] sm:$0xff] %v7227_v15  ;;  %v7165_v35 = vmul.f32 0.2, %v7101_v16  ;;  %v23125_v44 = vld [vmem:[#allocation4 + $0x228] sm:$0xff]  ;;  %v23127_v59 = vld [vmem:[#allocation4 + $0x230] sm:$0xff] }
 0x5e3   :  { %7291 = vst [vmem:[#allocation4 + $0x259] sm:$0xff] %v7226_v33  ;;  %v7164_v32 = vmul.f32 0.2, %v7100_v46  ;;  %v17595_v18 = vpop.f32.mrb[54].mxu0  ;;  %17724 = vmatprep.mubr.f32.mxu1 %v23125_v44 }
 0x5e4   :  { %v7229_v20 = vmax.f32 %v7101_v16, %v7165_v35  ;;  %v7103_v34 = vadd.f32 %v17595_v18, %v22936_v2  ;;  %v6678_v39 = vpop.f32.mrb[55].mxu0  ;;  %17725 = vmatmul.mubr.f32.gmra.mrb[48].mxu1 %v23127_v59 }
 0x5e5   :  { %v7228_v13 = vmax.f32 %v7100_v46, %v7164_v32  ;;  %v7102_v62 = vadd.f32 %v22936_v2, %v6678_v39 }
 0x5e6   :  { %7294 = vst [vmem:[#allocation4 + $0x279] sm:$0xff] %v7229_v20  ;;  %v7167_v53 = vmul.f32 0.2, %v7103_v34  ;;  %v23133_v22 = vld [vmem:[#allocation4 + $0x240] sm:$0xff]  ;;  %v23135_v30 = vld [vmem:[#allocation4 + $0x248] sm:$0xff] }
 0x5e7   :  { %7293 = vst [vmem:[#allocation4 + $0x271] sm:$0xff] %v7228_v13  ;;  %v7166_v0 = vmul.f32 0.2, %v7102_v62  ;;  %v17598_v1 = vpop.f32.mrb[56].mxu0  ;;  %17727 = vmatprep.mubr.f32.mxu1 %v23133_v22 }
 0x5e8   :  { %v7231_v12 = vmax.f32 %v7103_v34, %v7167_v53  ;;  %v7105_v8 = vadd.f32 %v17598_v1, %v22936_v2  ;;  %v6688_v15 = vpop.f32.mrb[57].mxu0  ;;  %17728 = vmatmul.mubr.f32.gmra.mrb[50].mxu1 %v23135_v30 }
 0x5e9   :  { %v7230_v16 = vmax.f32 %v7102_v62, %v7166_v0  ;;  %v7104_v27 = vadd.f32 %v22936_v2, %v6688_v15 }
 0x5ea   :  { %7296 = vst [vmem:[#allocation4 + $0x291] sm:$0xff] %v7231_v12  ;;  %v7169_v33 = vmul.f32 0.2, %v7105_v8  ;;  %v23141_v46 = vld [vmem:[#allocation4 + $0x258] sm:$0xff]  ;;  %v23143_v35 = vld [vmem:[#allocation4 + $0x260] sm:$0xff] }
 0x5eb   :  { %7295 = vst [vmem:[#allocation4 + $0x289] sm:$0xff] %v7230_v16  ;;  %v7168_v32 = vmul.f32 0.2, %v7104_v27  ;;  %v17601_v18 = vpop.f32.mrb[58].mxu0  ;;  %17730 = vmatprep.mubr.f32.mxu1 %v23141_v46 }
 0x5ec   :  { %v7233_v20 = vmax.f32 %v7105_v8, %v7169_v33  ;;  %v7107_v34 = vadd.f32 %v17601_v18, %v22936_v2  ;;  %v6698_v39 = vpop.f32.mrb[59].mxu0  ;;  %17731 = vmatmul.mubr.f32.gmra.mrb[52].mxu1 %v23143_v35 }
 0x5ed   :  { %v23148_v13 = vmax.f32 %v7104_v27, %v7168_v32  ;;  %v7106_v62 = vadd.f32 %v22936_v2, %v6698_v39 }
 0x5ee   :  { %7298 = vst [vmem:[#allocation4 + $0x2a9] sm:$0xff] %v7233_v20  ;;  %v7171_v53 = vmul.f32 0.2, %v7107_v34  ;;  %v23151_v0 = vld [vmem:[#allocation4 + $0x270] sm:$0xff]  ;;  %v23153_v1 = vld [vmem:[#allocation4 + $0x278] sm:$0xff] }
 0x5ef   :  { %25034 = vst [vmem:[#allocation7_spill] sm:$0xff] %v23148_v13  ;;  %25035 = vst [vmem:[#allocation14_spill] sm:$0xff] %v23153_v1  ;;  %v7170_v12 = vmul.f32 0.2, %v7106_v62  ;;  %v17604_v15 = vpop.f32.mrb[60].mxu0  ;;  %17733 = vmatprep.mubr.f32.mxu1 %v23151_v0 }
 0x5f0   :  { %7297 = vst [vmem:[#allocation4 + $0x2a1] sm:$0xff] %v23148_v13  ;;  %v23157_v8 = vmax.f32 %v7107_v34, %v7171_v53  ;;  %v7109_v16 = vadd.f32 %v17604_v15, %v22936_v2  ;;  %v6708_v27 = vpop.f32.mrb[61].mxu0  ;;  %17734 = vmatmul.mubr.f32.gmra.mrb[54].mxu1 %v23153_v1 }
 0x5f1   :  { %v23161_v33 = vmax.f32 %v7106_v62, %v7170_v12  ;;  %v7108_v32 = vadd.f32 %v22936_v2, %v6708_v27 }
 0x5f2   :  { %25036 = vst [vmem:[#allocation19_spill] sm:$0xff] %v23157_v8  ;;  %7300 = vst [vmem:[#allocation4 + $0x2c1] sm:$0xff] %v23157_v8  ;;  %v7173_v18 = vmul.f32 0.2, %v7109_v16  ;;  %v23165_v20 = vld [vmem:[#allocation4 + $0x288] sm:$0xff]  ;;  %v23167_v39 = vld [vmem:[#allocation4 + $0x290] sm:$0xff] }
 0x5f3   :  { %25037 = vst [vmem:[#allocation16_spill] sm:$0xff] %v23161_v33  ;;  %25038 = vst [vmem:[#allocation11_spill] sm:$0xff] %v23165_v20  ;;  %v7172_v34 = vmul.f32 0.2, %v7108_v32  ;;  %v17607_v53 = vpop.f32.mrb[62].mxu0  ;;  %17736 = vmatprep.mubr.f32.mxu1 %v23165_v20 }
 0x5f4   :  { %25039 = vst [vmem:[#allocation12_spill] sm:$0xff] %v23167_v39  ;;  %7299 = vst [vmem:[#allocation4 + $0x2b9] sm:$0xff] %v23161_v33  ;;  %v23171_v15 = vmax.f32 %v7109_v16, %v7173_v18  ;;  %v7111_v62 = vadd.f32 %v17607_v53, %v22936_v2  ;;  %v6718_v12 = vpop.f32.mrb[63].mxu0  ;;  %17737 = vmatmul.mubr.f32.gmra.mrb[56].mxu1 %v23167_v39 }
 0x5f5   :  { %v23175_v27 = vmax.f32 %v7108_v32, %v7172_v34  ;;  %v7110_v8 = vadd.f32 %v22936_v2, %v6718_v12 }
 0x5f6   :  { %25040 = vst [vmem:[#allocation13_spill] sm:$0xff] %v23171_v15  ;;  %7302 = vst [vmem:[#allocation4 + $0x2d9] sm:$0xff] %v23171_v15  ;;  %v7175_v13 = vmul.f32 0.2, %v7111_v62 }
 0x5f7   :  { %25041 = vst [vmem:[#allocation22_spill] sm:$0xff] %v23175_v27  ;;  %v23179_v1 = vld [vmem:[#allocation4 + $0x2a0] sm:$0xff]  ;;  %v23181_v33 = vld [vmem:[#allocation4 + $0x2a8] sm:$0xff]  ;;  %7301 = vst [vmem:[#allocation4 + $0x2d1] sm:$0xff] %v23175_v27  ;;  %v7174_v16 = vmul.f32 0.2, %v7110_v8 }
 0x5f8   :  { %25042 = vst [vmem:[#allocation9_spill] sm:$0xff] %v23179_v1  ;;  %25043 = vst [vmem:[#allocation17_spill] sm:$0xff] %v23181_v33  ;;  %v17610_v18 = vpop.f32.mrb[64].mxu0  ;;  %17739 = vmatprep.mubr.f32.mxu1 %v23179_v1  ;;  %v23185_v53 = vmax.f32 %v7111_v62, %v7175_v13 }
 0x5f9   :  { %v7113_v32 = vadd.f32 %v17610_v18, %v22936_v2  ;;  %v6728_v34 = vpop.f32.mrb[65].mxu0  ;;  %17740 = vmatmul.mubr.f32.gmra.mrb[58].mxu1 %v23181_v33  ;;  %v23189_v12 = vmax.f32 %v7110_v8, %v7174_v16 }
 0x5fa   :  { %25044 = vst [vmem:[#allocation18_spill] sm:$0xff] %v23185_v53  ;;  %v7112_v15 = vadd.f32 %v22936_v2, %v6728_v34  ;;  %7304 = vst [vmem:[#allocation4 + $0x2f1] sm:$0xff] %v23185_v53 }
 0x5fb   :  { %25045 = vst [vmem:[#allocation15_spill] sm:$0xff] %v23189_v12  ;;  %v7177_v39 = vmul.f32 0.2, %v7113_v32  ;;  %v23193_v20 = vld [vmem:[#allocation4 + $0x2b8] sm:$0xff]  ;;  %v23195_v27 = vld [vmem:[#allocation4 + $0x2c0] sm:$0xff]  ;;  %7303 = vst [vmem:[#allocation4 + $0x2e9] sm:$0xff] %v23189_v12 }
 0x5fc   :  { %25046 = vst [vmem:[#allocation5_spill] sm:$0xff] %v23193_v20  ;;  %25047 = vst [vmem:[#allocation6_spill] sm:$0xff] %v23195_v27  ;;  %v7176_v13 = vmul.f32 0.2, %v7112_v15  ;;  %v17613_v62 = vpop.f32.mrb[66].mxu0  ;;  %17742 = vmatprep.mubr.f32.mxu1 %v23193_v20 }
 0x5fd   :  { %v23199_v18 = vmax.f32 %v7113_v32, %v7177_v39  ;;  %v7115_v8 = vadd.f32 %v17613_v62, %v22936_v2  ;;  %v6738_v16 = vpop.f32.mrb[67].mxu0  ;;  %17743 = vmatmul.mubr.f32.gmra.mrb[60].mxu1 %v23195_v27 }
 0x5fe   :  { %v23203_v34 = vmax.f32 %v7112_v15, %v7176_v13  ;;  %v7114_v53 = vadd.f32 %v22936_v2, %v6738_v16  ;;  %v23207_v1 = vld [vmem:[#allocation4 + $0x2d0] sm:$0xff]  ;;  %v23209_v12 = vld [vmem:[#allocation4 + $0x2d8] sm:$0xff] }
 0x5ff   :  { %25048 = vst [vmem:[#allocation8_spill] sm:$0xff] %v23199_v18  ;;  %7306 = vst [vmem:[#allocation4 + $0x309] sm:$0xff] %v23199_v18  ;;  %v7179_v33 = vmul.f32 0.2, %v7115_v8  ;;  %v17616_v32 = vpop.f32.mrb[68].mxu0  ;;  %17745 = vmatprep.mubr.f32.mxu1 %v23207_v1 }
 0x600   :  { %25049 = vst [vmem:[#allocation20_spill] sm:$0xff] %v23203_v34  ;;  %7305 = vst [vmem:[#allocation4 + $0x301] sm:$0xff] %v23203_v34  ;;  %v7178_v39 = vmul.f32 0.2, %v7114_v53  ;;  %v7117_v15 = vadd.f32 %v17616_v32, %v22936_v2  ;;  %v6748_v13 = vpop.f32.mrb[69].mxu0 }
 0x601   :  { %v23213_v62 = vmax.f32 %v7115_v8, %v7179_v33  ;;  %17746 = vmatmul.mubr.f32.gmra.mrb[62].mxu1 %v23209_v12  ;;  %v7116_v18 = vadd.f32 %v22936_v2, %v6748_v13 }
 0x602   :  { %v23217_v16 = vmax.f32 %v7114_v53, %v7178_v39  ;;  %v7181_v27 = vmul.f32 0.2, %v7117_v15  ;;  %v23221_v20 = vld [vmem:[#allocation4 + $0x2e8] sm:$0xff]  ;;  %v23223_v34 = vld [vmem:[#allocation4 + $0x2f0] sm:$0xff] }
 0x603   :  { %25050 = vst [vmem:[#allocation10_spill] sm:$0xff] %v23213_v62  ;;  %7308 = vst [vmem:[#allocation4 + $0x321] sm:$0xff] %v23213_v62  ;;  %v7180_v33 = vmul.f32 0.2, %v7116_v18  ;;  %17748 = vmatprep.mubr.f32.mxu1 %v23221_v20  ;;  %v17619_v8 = vpop.f32.mrb[134].mxu0  ;;  %v14666_v62 = vld [vmem:[%s24725_s1 + $0x7a0] sm:$0xff] }
 0x604   :  { %25051 = vst [vmem:[#allocation21_spill] sm:$0xff] %v23217_v16  ;;  %7307 = vst [vmem:[#allocation4 + $0x319] sm:$0xff] %v23217_v16  ;;  %v23227_v32 = vmax.f32 %v7117_v15, %v7181_v27  ;;  %v6758_v53 = vpop.f32.mrb[135].mxu0  ;;  %v14667_v16 = vld [vmem:[%s24725_s1 + $0x7a8] sm:$0xff] }
 0x605   :  { %17749 = vmatmul.mubr.f32.gmra.mrb[64].mxu1 %v23223_v34  ;;  %v23230_v39 = vmax.f32 %v7116_v18, %v7180_v33  ;;  %v14664_v33 = vld [vmem:[%s24725_s1 + $0x790] sm:$0xff]  ;;  %v14665_v53 = vld [vmem:[%s24725_s1 + $0x798] sm:$0xff] }
 0x606   :  { %25052 = vst [vmem:[#allocation23_spill] sm:$0xff] %v23227_v32  ;;  %7310 = vst [vmem:[#allocation4 + $0x339] sm:$0xff] %v23227_v32  ;;  %v23258_v32 = vld [vmem:[#allocation4] sm:$0xff] }
 0x607   :  { %25053 = vst [vmem:[#allocation24_spill] sm:$0xff] %v23230_v39  ;;  %v23233_v2 = vld [vmem:[#allocation4 + $0x300] sm:$0xff]  ;;  %v23235_v13 = vld [vmem:[#allocation4 + $0x308] sm:$0xff]  ;;  %7309 = vst [vmem:[#allocation4 + $0x331] sm:$0xff] %v23230_v39  ;;  %v19236_v39 = vpack.c.bf16 %v14665_v53, %v14664_v33 }
 0x608   :  { %17751 = vmatprep.mubr.f32.mxu1 %v23233_v2  ;;  %v14668_v33 = vld [vmem:[%s24725_s1 + $0x7b0] sm:$0xff]  ;;  %v14669_v53 = vld [vmem:[%s24725_s1 + $0x7b8] sm:$0xff] }
 0x609   :  { %17752 = vmatmul.mubr.f32.gmra.mrb[66].mxu1 %v23235_v13 }
 0x60b   :  { %v23240_v8 = vld [vmem:[#allocation4 + $0x318] sm:$0xff]  ;;  %v23242_v27 = vld [vmem:[#allocation4 + $0x320] sm:$0xff] }
 0x60c   :  { %17754 = vmatprep.mubr.f32.mxu1 %v23240_v8 }
 0x60d   :  { %17755 = vmatmul.mubr.f32.gmra.mrb[68].mxu1 %v23242_v27 }
 0x60e   :  { %v23246_v18 = vld [vmem:[#allocation4 + $0x330] sm:$0xff]  ;;  %v23248_v15 = vld [vmem:[#allocation4 + $0x338] sm:$0xff] }
 0x60f   :  { %25054 = vst [vmem:[#allocation25_spill] sm:$0xff] %v23246_v18  ;;  %25055 = vst [vmem:[#allocation26_spill] sm:$0xff] %v23248_v15  ;;  %17757 = vmatprep.mubr.f32.mxu1 %v23246_v18  ;;  %v19244_v18 = vpack.c.bf16 %v14669_v53, %v14668_v33  ;;  %v25058_v33 = vld [vmem:[#allocation12_spill] sm:$0xff]  ;;  %v25059_v53 = vld [vmem:[#allocation9_spill] sm:$0xff] }
 0x611   :  { %17758 = vmatmul.mubr.f32.gmra.mrb[70].mxu1 %v23248_v15  ;;  %v19240_v15 = vpack.c.bf16 %v14667_v16, %v14666_v62  ;;  %v14673_v62 = vld [vmem:[%s24725_s1 + $0x7d8] sm:$0xff]  ;;  %v14675_v16 = vld [vmem:[%s24725_s1 + $0x7e8] sm:$0xff] }
 0x612   :  { %17792 = vmatprep.mubr.f32.mxu1 %v23258_v32 }
 0x615   :  { %17793 = vmatmul.mubr.f32.vlgmr.msra.gmra.mrb[72].mxu1 %v23258_v32 }
 0x616   :  { %17795 = vmatprep.mubr.f32.mxu1 %v22952_v28  ;;  %19235 = vmatpush3.bf16.msra.mxu1 %v22982_v23  ;;  %v14670_v28 = vld [vmem:[%s24725_s1 + $0x7c0] sm:$0xff]  ;;  %v14671_v23 = vld [vmem:[%s24725_s1 + $0x7c8] sm:$0xff] }
 0x617   :  { %19237 = vmatprep.subr.bf16.mxu1 %v19236_v39 }
 0x619   :  { %17796 = vmatmul.mubr.f32.gmra.mrb[2].mxu1 %v22954_v29  ;;  %v19248_v29 = vpack.c.bf16 %v14671_v23, %v14670_v28  ;;  %v25060_v28 = vld [vmem:[#allocation17_spill] sm:$0xff] }
 0x61a   :  { %17798 = vmatprep.mubr.f32.mxu1 %v22960_v45  ;;  %19239 = vmatpush3.bf16.msra.mxu1 %v19236_v39  ;;  %v14672_v45 = vld [vmem:[%s24725_s1 + $0x7d0] sm:$0xff]  ;;  %v14677_v39 = vld [vmem:[%s24725_s1 + $0x7f8] sm:$0xff]  ;;  %v25061_v23 = vld [vmem:[#allocation5_spill] sm:$0xff] }
 0x61b   :  { %19241 = vmatprep.subr.bf16.mxu1 %v19240_v15 }
 0x61d   :  { %17799 = vmatmul.mubr.f32.gmra.mrb[4].mxu1 %v22962_v54  ;;  %v19252_v54 = vpack.c.bf16 %v14673_v62, %v14672_v45  ;;  %v25063_v45 = vld [vmem:[#allocation25_spill] sm:$0xff] }
 0x61e   :  { %17801 = vmatprep.mubr.f32.mxu1 %v22968_v57  ;;  %19243 = vmatpush3.bf16.msra.mxu1 %v19240_v15  ;;  %v14674_v57 = vld [vmem:[%s24725_s1 + $0x7e0] sm:$0xff]  ;;  %v25057_v15 = vld [vmem:[#allocation11_spill] sm:$0xff] }
 0x61f   :  { %19245 = vmatprep.subr.bf16.mxu1 %v19244_v18 }
 0x621   :  { %17802 = vmatmul.mubr.f32.gmra.mrb[6].mxu1 %v22970_v50  ;;  %v19256_v50 = vpack.c.bf16 %v14675_v16, %v14674_v57  ;;  %v25064_v57 = vld [vmem:[#allocation26_spill] sm:$0xff] }
 0x622   :  { %17804 = vmatprep.mubr.f32.mxu1 %v22984_v38  ;;  %19247 = vmatpush3.bf16.msra.mxu1 %v19244_v18  ;;  %v14676_v38 = vld [vmem:[%s24725_s1 + $0x7f0] sm:$0xff]  ;;  %v14679_v18 = vld [vmem:[%s24725_s1 + $0x508] sm:$0xff] }
 0x623   :  { %19249 = vmatprep.subr.bf16.mxu1 %v19248_v29 }
 0x625   :  { %17805 = vmatmul.mubr.f32.gmra.mrb[8].mxu1 %v22986_v41  ;;  %v19260_v41 = vpack.c.bf16 %v14677_v39, %v14676_v38  ;;  %v14681_v38 = vld [vmem:[%s24725_s1 + $0x518] sm:$0xff] }
 0x626   :  { %17807 = vmatprep.mubr.f32.mxu1 %v22993_v58  ;;  %19251 = vmatpush3.bf16.msra.mxu1 %v19248_v29  ;;  %v14678_v58 = vld [vmem:[%s24725_s1 + $0x500] sm:$0xff]  ;;  %v25062_v29 = vld [vmem:[#allocation6_spill] sm:$0xff] }
 0x627   :  { %19253 = vmatprep.subr.bf16.mxu1 %v19252_v54 }
 0x629   :  { %17808 = vmatmul.mubr.f32.gmra.mrb[10].mxu1 %v22995_v60  ;;  %v23318_v60 = vpack.c.bf16 %v14679_v18, %v14678_v58  ;;  %v14682_v18 = vld [vmem:[%s24725_s1 + $0x520] sm:$0xff] }
 0x62a   :  { %17810 = vmatprep.mubr.f32.mxu1 %v23001_v9  ;;  %19255 = vmatpush3.bf16.msra.mxu1 %v19252_v54 }
 0x62b   :  { %19257 = vmatprep.subr.bf16.mxu1 %v19256_v50 }
 0x62d   :  { %17811 = vmatmul.mubr.f32.gmra.mrb[12].mxu1 %v23003_v10  ;;  %v25056_v10 = vld [vmem:[#allocation14_spill] sm:$0xff] }
 0x62e   :  { %17813 = vmatprep.mubr.f32.mxu1 %v23009_v42  ;;  %19259 = vmatpush3.bf16.msra.mxu1 %v19256_v50  ;;  %v14680_v50 = vld [vmem:[%s24725_s1 + $0x510] sm:$0xff] }
 0x62f   :  { %19261 = vmatprep.subr.bf16.mxu1 %v19260_v41  ;;  %v19268_v58 = vpack.c.bf16 %v14681_v38, %v14680_v50  ;;  %v14684_v50 = vld [vmem:[%s24725_s1 + $0x530] sm:$0xff]  ;;  %v14685_v38 = vld [vmem:[%s24725_s1 + $0x538] sm:$0xff] }
 0x631   :  { %17814 = vmatmul.mubr.f32.gmra.mrb[14].mxu1 %v23011_v43 }
 0x632   :  { %17816 = vmatprep.mubr.f32.mxu1 %v23017_v17  ;;  %19263 = vmatpush3.bf16.msra.mxu1 %v19260_v41  ;;  %v20484_v41 = vld [vmem:[#allocation4 + $0x18] sm:$0xff] }
 0x633   :  { %19265 = vmatprep.subr.bf16.mxu1 %v23318_v60 }
 0x635   :  { %17817 = vmatmul.mubr.f32.gmra.mrb[16].mxu1 %v23019_v47 }
 0x636   :  { %17819 = vmatprep.mubr.f32.mxu1 %v23025_v37 }
 0x639   :  { %17820 = vmatmul.mubr.f32.gmra.mrb[18].mxu1 %v23027_v51 }
 0x63a   :  { %17822 = vmatprep.mubr.f32.mxu1 %v23033_v49 }
 0x63d   :  { %17823 = vmatmul.mubr.f32.gmra.mrb[20].mxu1 %v23035_v61 }
 0x63e   :  { %17825 = vmatprep.mubr.f32.mxu1 %v23041_v7 }
 0x641   :  { %17826 = vmatmul.mubr.f32.gmra.mrb[22].mxu1 %v23043_v11 }
 0x642   :  { %17828 = vmatprep.mubr.f32.mxu1 %v23049_v56 }
 0x645   :  { %17829 = vmatmul.mubr.f32.gmra.mrb[24].mxu1 %v23051_v63 }
 0x646   :  { %17831 = vmatprep.mubr.f32.mxu1 %v23057_v14 }
 0x649   :  { %17832 = vmatmul.mubr.f32.gmra.mrb[26].mxu1 %v23059_v19 }
 0x64a   :  { %17834 = vmatprep.mubr.f32.mxu1 %v23063_v31 }
 0x64d   :  { %17835 = vmatmul.mubr.f32.gmra.mrb[28].mxu1 %v23065_v48 }
 0x64e   :  { %17837 = vmatprep.mubr.f32.mxu1 %v23069_v40 }
 0x651   :  { %17838 = vmatmul.mubr.f32.gmra.mrb[30].mxu1 %v23071_v26 }
 0x652   :  { %17840 = vmatprep.mubr.f32.mxu1 %v23077_v4 }
 0x655   :  { %17841 = vmatmul.mubr.f32.gmra.mrb[32].mxu1 %v23079_v5 }
 0x656   :  { %17843 = vmatprep.mubr.f32.mxu1 %v23258_v32 }
 0x659   :  { %17844 = vmatmul.mubr.f32.gmra.mrb[74].mxu1 %v23258_v32 }
 0x65a   :  { %17846 = vmatprep.mubr.f32.mxu1 %v23258_v32 }
 0x65d   :  { %17847 = vmatmul.mubr.f32.gmra.mrb[76].mxu1 %v23258_v32 }
 0x65e   :  { %17849 = vmatprep.mubr.f32.mxu1 %v23093_v55 }
 0x661   :  { %17850 = vmatmul.mubr.f32.gmra.mrb[38].mxu1 %v23095_v52 }
 0x662   :  { %17852 = vmatprep.mubr.f32.mxu1 %v23101_v24 }
 0x665   :  { %17853 = vmatmul.mubr.f32.gmra.mrb[40].mxu1 %v23103_v25 }
 0x666   :  { %17855 = vmatprep.mubr.f32.mxu1 %v23109_v36 }
 0x669   :  { %17856 = vmatmul.mubr.f32.gmra.mrb[42].mxu1 %v23111_v21 }
 0x66a   :  { %17858 = vmatprep.mubr.f32.mxu1 %v23117_v3 }
 0x66d   :  { %17859 = vmatmul.mubr.f32.gmra.mrb[44].mxu1 %v23119_v6 }
 0x66e   :  { %17861 = vmatprep.mubr.f32.mxu1 %v23125_v44 }
 0x671   :  { %17862 = vmatmul.mubr.f32.gmra.mrb[46].mxu1 %v23127_v59 }
 0x672   :  { %17864 = vmatprep.mubr.f32.mxu1 %v23133_v22 }
 0x675   :  { %17865 = vmatmul.mubr.f32.gmra.mrb[48].mxu1 %v23135_v30 }
 0x676   :  { %17867 = vmatprep.mubr.f32.mxu1 %v23141_v46 }
 0x679   :  { %17868 = vmatmul.mubr.f32.gmra.mrb[50].mxu1 %v23143_v35 }
 0x67a   :  { %17870 = vmatprep.mubr.f32.mxu1 %v23151_v0 }
 0x67d   :  { %17871 = vmatmul.mubr.f32.gmra.mrb[52].mxu1 %v25056_v10 }
 0x67e   :  { %17873 = vmatprep.mubr.f32.mxu1 %v25057_v15 }
 0x681   :  { %17874 = vmatmul.mubr.f32.gmra.mrb[54].mxu1 %v25058_v33 }
 0x682   :  { %17876 = vmatprep.mubr.f32.mxu1 %v25059_v53 }
 0x685   :  { %17877 = vmatmul.mubr.f32.gmra.mrb[56].mxu1 %v25060_v28 }
 0x686   :  { %17879 = vmatprep.mubr.f32.mxu1 %v25061_v23 }
 0x689   :  { %17880 = vmatmul.mubr.f32.gmra.mrb[58].mxu1 %v25062_v29 }
 0x68a   :  { %17882 = vmatprep.mubr.f32.mxu1 %v23207_v1 }
 0x68d   :  { %17883 = vmatmul.mubr.f32.gmra.mrb[60].mxu1 %v23209_v12 }
 0x68e   :  { %17885 = vmatprep.mubr.f32.mxu1 %v23221_v20 }
 0x691   :  { %17886 = vmatmul.mubr.f32.gmra.mrb[62].mxu1 %v23223_v34 }
 0x692   :  { %17888 = vmatprep.mubr.f32.mxu1 %v23233_v2 }
 0x695   :  { %17889 = vmatmul.mubr.f32.gmra.mrb[64].mxu1 %v23235_v13 }
 0x696   :  { %17891 = vmatprep.mubr.f32.mxu1 %v23240_v8 }
 0x699   :  { %17892 = vmatmul.mubr.f32.gmra.mrb[66].mxu1 %v23242_v27 }
 0x69a   :  { %17894 = vmatprep.mubr.f32.mxu1 %v25063_v45 }
 0x69b   :  { %v17705_v62 = vpop.f32.mrb[34].mxu1 }
 0x69c   :  { %v7780_v54 = vpop.f32.mrb[35].mxu1  ;;  %v14683_v62 = vld [vmem:[%s24725_s1 + $0x528] sm:$0xff] }
 0x69d   :  { %17895 = vmatmul.mubr.f32.gmra.mrb[68].mxu1 %v25064_v57  ;;  %v20485_v54 = vld [vmem:[#allocation4 + $0x20] sm:$0xff]  ;;  %v20488_v57 = vld [vmem:[#allocation4 + $0x48] sm:$0xff] }
 0x69e   :  { %17897 = vmatprep.mubr.f32.mxu1 %v23258_v32 }
 0x69f   :  { %v17708_v16 = vpop.f32.mrb[36].mxu1 }
 0x6a0   :  { %v7790_v39 = vpop.f32.mrb[37].mxu1  ;;  %v20486_v16 = vld [vmem:[#allocation4 + $0x30] sm:$0xff] }
 0x6a1   :  { %17898 = vmatmul.mubr.f32.gmra.mrb[78].mxu1 %v23258_v32  ;;  %v19272_v39 = vpack.c.bf16 %v14683_v62, %v14682_v18  ;;  %v14687_v18 = vld [vmem:[%s24725_s1 + $0x548] sm:$0xff]  ;;  %v20489_v62 = vld [vmem:[#allocation4 + $0x50] sm:$0xff] }
 0x6a2   :  { %17932 = vmatprep.mubr.f32.mxu1 %v20484_v41  ;;  %v20487_v41 = vld [vmem:[#allocation4 + $0x38] sm:$0xff] }
 0x6a5   :  { %17933 = vmatmul.mubr.f32.vlgmr.msra.gmra.mrb[80].mxu1 %v20485_v54  ;;  %v19276_v54 = vpack.c.bf16 %v14685_v38, %v14684_v50  ;;  %v20491_v50 = vld [vmem:[#allocation4 + $0x68] sm:$0xff]  ;;  %v20492_v38 = vld [vmem:[#allocation4 + $0x78] sm:$0xff] }
 0x6a6   :  { %17935 = vmatprep.mubr.f32.mxu1 %v20486_v16  ;;  %19267 = vmatpush3.bf16.msra.mxu1 %v23318_v60  ;;  %v14686_v60 = vld [vmem:[%s24725_s1 + $0x540] sm:$0xff] }
 0x6a7   :  { %19269 = vmatprep.subr.bf16.mxu1 %v19268_v58  ;;  %v20490_v16 = vld [vmem:[#allocation4 + $0x60] sm:$0xff] }
 0x6a9   :  { %17936 = vmatmul.mubr.f32.gmra.mrb[2].mxu1 %v20487_v41  ;;  %v19280_v41 = vpack.c.bf16 %v14687_v18, %v14686_v60  ;;  %v14691_v60 = vld [vmem:[%s24725_s1 + $0x568] sm:$0xff]  ;;  %v20493_v18 = vld [vmem:[#allocation4 + $0x80] sm:$0xff] }
 0x6aa   :  { %17938 = vmatprep.mubr.f32.mxu1 %v20488_v57  ;;  %19271 = vmatpush3.bf16.msra.mxu1 %v19268_v58  ;;  %v14688_v57 = vld [vmem:[%s24725_s1 + $0x550] sm:$0xff]  ;;  %v14689_v58 = vld [vmem:[%s24725_s1 + $0x558] sm:$0xff] }
 0x6ab   :  { %19273 = vmatprep.subr.bf16.mxu1 %v19272_v39 }
 0x6ad   :  { %17939 = vmatmul.mubr.f32.gmra.mrb[4].mxu1 %v20489_v62  ;;  %v19284_v62 = vpack.c.bf16 %v14689_v58, %v14688_v57  ;;  %v14693_v57 = vld [vmem:[%s24725_s1 + $0x578] sm:$0xff] }
 0x6ae   :  { %17941 = vmatprep.mubr.f32.mxu1 %v20490_v16  ;;  %19275 = vmatpush3.bf16.msra.mxu1 %v19272_v39  ;;  %v14690_v39 = vld [vmem:[%s24725_s1 + $0x560] sm:$0xff]  ;;  %v20494_v58 = vld [vmem:[#allocation4 + $0x98] sm:$0xff] }
 0x6af   :  { %19277 = vmatprep.subr.bf16.mxu1 %v19276_v54  ;;  %v19288_v16 = vpack.c.bf16 %v14691_v60, %v14690_v39  ;;  %v23605_v39 = vld [vmem:[#allocation4 + $0xf1] sm:$0xff]  ;;  %v23608_v60 = vld [vmem:[#allocation4 + $0xf9] sm:$0xff] }
 0x6b1   :  { %17942 = vmatmul.mubr.f32.gmra.mrb[6].mxu1 %v20491_v50 }
 0x6b2   :  { %17944 = vmatprep.mubr.f32.mxu1 %v20492_v38  ;;  %19279 = vmatpush3.bf16.msra.mxu1 %v19276_v54  ;;  %v14692_v54 = vld [vmem:[%s24725_s1 + $0x570] sm:$0xff] }
 0x6b3   :  { %19281 = vmatprep.subr.bf16.mxu1 %v19280_v41  ;;  %v19292_v50 = vpack.c.bf16 %v14693_v57, %v14692_v54  ;;  %v23617_v54 = vld [vmem:[#allocation4 + $0x121] sm:$0xff]  ;;  %v23620_v57 = vld [vmem:[#allocation4 + $0x129] sm:$0xff] }
 0x6b5   :  { %17945 = vmatmul.mubr.f32.gmra.mrb[8].mxu1 %v20493_v18  ;;  %v23611_v18 = vld [vmem:[#allocation4 + $0x109] sm:$0xff] }
 0x6b6   :  { %17947 = vmatprep.mubr.f32.mxu1 %v23001_v9  ;;  %19283 = vmatpush3.bf16.msra.mxu1 %v19280_v41  ;;  %v14694_v9 = vld [vmem:[%s24725_s1 + $0x680] sm:$0xff]  ;;  %v14695_v41 = vld [vmem:[%s24725_s1 + $0x688] sm:$0xff] }
 0x6b7   :  { %19285 = vmatprep.subr.bf16.mxu1 %v19284_v62  ;;  %v23431_v38 = vpack.c.bf16 %v14695_v41, %v14694_v9  ;;  %v23629_v9 = vld [vmem:[#allocation4 + $0x151] sm:$0xff]  ;;  %v23632_v41 = vld [vmem:[#allocation4 + $0x159] sm:$0xff] }
 0x6b9   :  { %17948 = vmatmul.mubr.f32.gmra.mrb[10].mxu1 %v20494_v58  ;;  %v23623_v58 = vld [vmem:[#allocation4 + $0x139] sm:$0xff] }
 0x6ba   :  { %17950 = vmatprep.mubr.f32.mxu1 %v23009_v42  ;;  %19287 = vmatpush3.bf16.msra.mxu1 %v19284_v62  ;;  %v23602_v62 = vld [vmem:[#allocation4 + $0xe1] sm:$0xff] }
 0x6bb   :  { %19289 = vmatprep.subr.bf16.mxu1 %v19288_v16 }
 0x6bd   :  { %17951 = vmatmul.mubr.f32.gmra.mrb[12].mxu1 %v23011_v43 }
 0x6be   :  { %17953 = vmatprep.mubr.f32.mxu1 %v23017_v17  ;;  %19291 = vmatpush3.bf16.msra.mxu1 %v19288_v16  ;;  %v23614_v16 = vld [vmem:[#allocation4 + $0x111] sm:$0xff] }
 0x6bf   :  { %19293 = vmatprep.subr.bf16.mxu1 %v19292_v50 }
 0x6c1   :  { %17954 = vmatmul.mubr.f32.gmra.mrb[14].mxu1 %v23019_v47 }
 0x6c2   :  { %17956 = vmatprep.mubr.f32.mxu1 %v23025_v37  ;;  %19295 = vmatpush3.bf16.msra.mxu1 %v19292_v50  ;;  %v25065_v37 = vld [vmem:[#allocation26_spill] sm:$0xff] }
 0x6c3   :  { %19297 = vmatprep.subr.bf16.mxu1 %v23431_v38  ;;  %v23626_v50 = vld [vmem:[#allocation4 + $0x141] sm:$0xff] }
 0x6c5   :  { %17957 = vmatmul.mubr.f32.gmra.mrb[16].mxu1 %v23027_v51 }
 0x6c6   :  { %17959 = vmatprep.mubr.f32.mxu1 %v23033_v49 }
 0x6c9   :  { %17960 = vmatmul.mubr.f32.gmra.mrb[18].mxu1 %v23035_v61 }
 0x6ca   :  { %17962 = vmatprep.mubr.f32.mxu1 %v23041_v7  ;;  %v14696_v7 = vld [vmem:[%s24725_s1 + $0x690] sm:$0xff] }
 0x6cd   :  { %17963 = vmatmul.mubr.f32.gmra.mrb[20].mxu1 %v23043_v11  ;;  %v14697_v11 = vld [vmem:[%s24725_s1 + $0x698] sm:$0xff] }
 0x6ce   :  { %17965 = vmatprep.mubr.f32.mxu1 %v23049_v56 }
 0x6d1   :  { %17966 = vmatmul.mubr.f32.gmra.mrb[22].mxu1 %v23051_v63  ;;  %v23498_v63 = vld [vmem:[#allocation4 + $0x1] sm:$0xff] }
 0x6d2   :  { %17968 = vmatprep.mubr.f32.mxu1 %v23057_v14  ;;  %v19300_v14 = vpack.c.bf16 %v14697_v11, %v14696_v7  ;;  %v23650_v7 = vld [vmem:[#allocation4 + $0x1a1] sm:$0xff]  ;;  %v23652_v11 = vld [vmem:[#allocation4 + $0x1b1] sm:$0xff] }
 0x6d5   :  { %17969 = vmatmul.mubr.f32.gmra.mrb[24].mxu1 %v23059_v19  ;;  %v14698_v19 = vld [vmem:[%s24725_s1 + $0x6a0] sm:$0xff] }
 0x6d6   :  { %17971 = vmatprep.mubr.f32.mxu1 %v23063_v31  ;;  %v14699_v31 = vld [vmem:[%s24725_s1 + $0x6a8] sm:$0xff] }
 0x6d9   :  { %17972 = vmatmul.mubr.f32.gmra.mrb[26].mxu1 %v23065_v48  ;;  %v23509_v48 = vld [vmem:[#allocation4 + $0x9] sm:$0xff] }
 0x6da   :  { %17974 = vmatprep.mubr.f32.mxu1 %v23069_v40  ;;  %v19304_v40 = vpack.c.bf16 %v14699_v31, %v14698_v19  ;;  %v23662_v19 = vld [vmem:[#allocation4 + $0x1d1] sm:$0xff]  ;;  %v23665_v31 = vld [vmem:[#allocation4 + $0x1e1] sm:$0xff] }
 0x6dd   :  { %17975 = vmatmul.mubr.f32.gmra.mrb[28].mxu1 %v23071_v26  ;;  %v14700_v26 = vld [vmem:[%s24725_s1 + $0x6b0] sm:$0xff] }
 0x6de   :  { %17977 = vmatprep.mubr.f32.mxu1 %v23077_v4  ;;  %v14701_v4 = vld [vmem:[%s24725_s1 + $0x6b8] sm:$0xff] }
 0x6e1   :  { %17978 = vmatmul.mubr.f32.gmra.mrb[30].mxu1 %v23079_v5  ;;  %v23518_v5 = vld [vmem:[#allocation4 + $0x19] sm:$0xff] }
 0x6e2   :  { %17980 = vmatprep.mubr.f32.mxu1 %v23258_v32 }
 0x6e4   :  { %v17759_v42 = vpop.f32.mrb[70].mxu1 }
 0x6e5   :  { %v7960_v43 = vpop.f32.mrb[71].mxu1  ;;  %17981 = vmatmul.mubr.f32.gmra.mrb[32].mxu1 %v23258_v32 }
 0x6e6   :  { %17983 = vmatprep.mubr.f32.mxu1 %v23258_v32  ;;  %v23638_v43 = vld [vmem:[#allocation4 + $0x171] sm:$0xff] }
 0x6e8   :  { %v17794_v17 = vpop.f32.mrb[72].mxu1 }
 0x6e9   :  { %v8196_v47 = vpop.f32.mrb[73].mxu1  ;;  %17984 = vmatmul.mubr.f32.gmra.mrb[82].mxu1 %v23258_v32 }
 0x6ea   :  { %17986 = vmatprep.mubr.f32.mxu1 %v23093_v55  ;;  %v19308_v55 = vpack.c.bf16 %v14701_v4, %v14700_v26  ;;  %v23641_v47 = vld [vmem:[#allocation4 + $0x181] sm:$0xff]  ;;  %v23671_v26 = vld [vmem:[#allocation4 + $0x1f9] sm:$0xff] }
 0x6eb   :  { %v23674_v4 = vld [vmem:[#allocation4 + $0x201] sm:$0xff] }
 0x6ed   :  { %17987 = vmatmul.mubr.f32.gmra.mrb[84].mxu1 %v23095_v52  ;;  %v23521_v52 = vld [vmem:[#allocation4 + $0x21] sm:$0xff] }
 0x6ee   :  { %17989 = vmatprep.mubr.f32.mxu1 %v23101_v24  ;;  %v14702_v24 = vld [vmem:[%s24725_s1 + $0x6c0] sm:$0xff] }
 0x6f1   :  { %17990 = vmatmul.mubr.f32.gmra.mrb[38].mxu1 %v23103_v25  ;;  %v14703_v25 = vld [vmem:[%s24725_s1 + $0x6c8] sm:$0xff] }
 0x6f2   :  { %17992 = vmatprep.mubr.f32.mxu1 %v23109_v36  ;;  %v23530_v36 = vld [vmem:[#allocation4 + $0x31] sm:$0xff] }
 0x6f5   :  { %17993 = vmatmul.mubr.f32.gmra.mrb[40].mxu1 %v23111_v21  ;;  %v19312_v21 = vpack.c.bf16 %v14703_v25, %v14702_v24  ;;  %v23680_v24 = vld [vmem:[#allocation4 + $0x219] sm:$0xff]  ;;  %v23683_v25 = vld [vmem:[#allocation4 + $0x229] sm:$0xff] }
 0x6f6   :  { %17995 = vmatprep.mubr.f32.mxu1 %v23117_v3  ;;  %v23533_v3 = vld [vmem:[#allocation4 + $0x39] sm:$0xff] }
 0x6f9   :  { %17996 = vmatmul.mubr.f32.gmra.mrb[42].mxu1 %v23119_v6  ;;  %v14704_v6 = vld [vmem:[%s24725_s1 + $0x6d0] sm:$0xff] }
 0x6fa   :  { %17998 = vmatprep.mubr.f32.mxu1 %v23125_v44  ;;  %v14705_v44 = vld [vmem:[%s24725_s1 + $0x6d8] sm:$0xff] }
 0x6fd   :  { %17999 = vmatmul.mubr.f32.gmra.mrb[44].mxu1 %v23127_v59  ;;  %v23542_v59 = vld [vmem:[#allocation4 + $0x49] sm:$0xff] }
 0x6fe   :  { %18001 = vmatprep.mubr.f32.mxu1 %v23133_v22  ;;  %v19316_v22 = vpack.c.bf16 %v14705_v44, %v14704_v6  ;;  %v23689_v6 = vld [vmem:[#allocation4 + $0x241] sm:$0xff]  ;;  %v23692_v44 = vld [vmem:[#allocation4 + $0x249] sm:$0xff] }
 0x701   :  { %18002 = vmatmul.mubr.f32.gmra.mrb[46].mxu1 %v23135_v30  ;;  %v23545_v30 = vld [vmem:[#allocation4 + $0x51] sm:$0xff] }
 0x702   :  { %18004 = vmatprep.mubr.f32.mxu1 %v23141_v46  ;;  %v14706_v46 = vld [vmem:[%s24725_s1 + $0x6e0] sm:$0xff] }
 0x705   :  { %18005 = vmatmul.mubr.f32.gmra.mrb[48].mxu1 %v23143_v35  ;;  %v14707_v35 = vld [vmem:[%s24725_s1 + $0x6e8] sm:$0xff] }
 0x706   :  { %18007 = vmatprep.mubr.f32.mxu1 %v23151_v0  ;;  %v23554_v0 = vld [vmem:[#allocation4 + $0x61] sm:$0xff] }
 0x709   :  { %18008 = vmatmul.mubr.f32.gmra.mrb[50].mxu1 %v25056_v10  ;;  %v23578_v10 = vld [vmem:[#allocation4 + $0x91] sm:$0xff] }
 0x70a   :  { %18010 = vmatprep.mubr.f32.mxu1 %v25057_v15 }
 0x70d   :  { %18011 = vmatmul.mubr.f32.gmra.mrb[52].mxu1 %v25058_v33  ;;  %v23583_v33 = vld [vmem:[#allocation4 + $0x99] sm:$0xff] }
 0x70e   :  { %18013 = vmatprep.mubr.f32.mxu1 %v25059_v53  ;;  %v23586_v53 = vld [vmem:[#allocation4 + $0xa9] sm:$0xff] }
 0x711   :  { %18014 = vmatmul.mubr.f32.gmra.mrb[54].mxu1 %v25060_v28  ;;  %v23590_v28 = vld [vmem:[#allocation4 + $0xb1] sm:$0xff] }
 0x712   :  { %18016 = vmatprep.mubr.f32.mxu1 %v25061_v23  ;;  %v23593_v23 = vld [vmem:[#allocation4 + $0xc1] sm:$0xff] }
 0x715   :  { %18017 = vmatmul.mubr.f32.gmra.mrb[56].mxu1 %v25062_v29  ;;  %v23596_v29 = vld [vmem:[#allocation4 + $0xc9] sm:$0xff] }
 0x716   :  { %18019 = vmatprep.mubr.f32.mxu1 %v23207_v1  ;;  %v19320_v1 = vpack.c.bf16 %v14707_v35, %v14706_v46  ;;  %v23698_v46 = vld [vmem:[#allocation4 + $0x261] sm:$0xff]  ;;  %v23701_v35 = vld [vmem:[#allocation4 + $0x271] sm:$0xff] }
 0x717   :  { %25066 = vst [vmem:[#allocation14_spill] sm:$0xff] %v23698_v46  ;;  %25067 = vst [vmem:[#allocation11_spill] sm:$0xff] %v23701_v35 }
 0x719   :  { %18020 = vmatmul.mubr.f32.gmra.mrb[58].mxu1 %v23209_v12  ;;  %v14708_v12 = vld [vmem:[%s24725_s1 + $0x6f0] sm:$0xff] }
 0x71a   :  { %18022 = vmatprep.mubr.f32.mxu1 %v23221_v20  ;;  %v23557_v20 = vld [vmem:[#allocation4 + $0x69] sm:$0xff] }
 0x71d   :  { %18023 = vmatmul.mubr.f32.gmra.mrb[60].mxu1 %v23223_v34  ;;  %v14709_v34 = vld [vmem:[%s24725_s1 + $0x6f8] sm:$0xff] }
 0x71e   :  { %18025 = vmatprep.mubr.f32.mxu1 %v23233_v2  ;;  %v19324_v2 = vpack.c.bf16 %v14709_v34, %v14708_v12  ;;  %v23707_v12 = vld [vmem:[#allocation4 + $0x289] sm:$0xff]  ;;  %v23710_v34 = vld [vmem:[#allocation4 + $0x291] sm:$0xff] }
 0x71f   :  { %25069 = vst [vmem:[#allocation9_spill] sm:$0xff] %v23707_v12  ;;  %25070 = vst [vmem:[#allocation17_spill] sm:$0xff] %v23710_v34 }
 0x721   :  { %18026 = vmatmul.mubr.f32.gmra.mrb[62].mxu1 %v23235_v13  ;;  %v23569_v13 = vld [vmem:[#allocation4 + $0x81] sm:$0xff] }
 0x722   :  { %18028 = vmatprep.mubr.f32.mxu1 %v23240_v8  ;;  %v14710_v8 = vld [vmem:[%s24725_s1 + $0x800] sm:$0xff] }
 0x725   :  { %18029 = vmatmul.mubr.f32.gmra.mrb[64].mxu1 %v23242_v27  ;;  %v14711_v27 = vld [vmem:[%s24725_s1 + $0x808] sm:$0xff] }
 0x726   :  { %18031 = vmatprep.mubr.f32.mxu1 %v25063_v45  ;;  %v23581_v15 = vpack.c.bf16 %v14711_v27, %v14710_v8  ;;  %v23599_v45 = vld [vmem:[#allocation4 + $0xd9] sm:$0xff]  ;;  %v23714_v8 = vld [vmem:[#allocation4 + $0x2a9] sm:$0xff] }
 0x727   :  { %25072 = vst [vmem:[#allocation5_spill] sm:$0xff] %v23714_v8  ;;  %v25073_v27 = vld [vmem:[#allocation16_spill] sm:$0xff] }
 0x729   :  { %18032 = vmatmul.mubr.f32.gmra.mrb[66].mxu1 %v25065_v37  ;;  %v23644_v37 = vld [vmem:[#allocation4 + $0x199] sm:$0xff] }
 0x72a   :  { %18034 = vmatprep.mubr.f32.mxu1 %v23258_v32 }
 0x72c   :  { %v17845_v51 = vpop.f32.mrb[74].mxu1 }
 0x72d   :  { %v8366_v49 = vpop.f32.mrb[75].mxu1  ;;  %18035 = vmatmul.mubr.f32.gmra.mrb[68].mxu1 %v23258_v32 }
 0x72e   :  { %18037 = vmatprep.mubr.f32.mxu1 %v23258_v32  ;;  %v23646_v49 = vld [vmem:[#allocation4 + $0x189] sm:$0xff] }
 0x730   :  { %v17848_v61 = vpop.f32.mrb[76].mxu1 }
 0x731   :  { %v8376_v56 = vpop.f32.mrb[77].mxu1  ;;  %18038 = vmatmul.mubr.f32.gmra.mrb[86].mxu1 %v23258_v32 }
 0x732   :  { %18072 = vmatprep.mubr.f32.mxu1 %v23258_v32  ;;  %v23656_v56 = vld [vmem:[#allocation4 + $0x1b9] sm:$0xff] }
 0x735   :  { %18073 = vmatmul.mubr.f32.vlgmr.msra.gmra.mrb[88].mxu1 %v23258_v32  ;;  %v23566_v32 = vld [vmem:[#allocation4 + $0x79] sm:$0xff] }
 0x736   :  { %19299 = vmatpush3.bf16.msra.mxu1 %v23431_v38  ;;  %18075 = vmatprep.mubr.f32.mxu1 %v23498_v63  ;;  %v23635_v38 = vld [vmem:[#allocation4 + $0x169] sm:$0xff] }
 0x737   :  { %19301 = vmatprep.subr.bf16.mxu1 %v19300_v14 }
 0x739   :  { %18076 = vmatmul.mubr.f32.gmra.mrb[2].mxu1 %v23509_v48 }
 0x73a   :  { %18078 = vmatprep.mubr.f32.mxu1 %v23518_v5  ;;  %19303 = vmatpush3.bf16.msra.mxu1 %v19300_v14  ;;  %v23659_v14 = vld [vmem:[#allocation4 + $0x1c9] sm:$0xff] }
 0x73b   :  { %19305 = vmatprep.subr.bf16.mxu1 %v19304_v40 }
 0x73d   :  { %18079 = vmatmul.mubr.f32.gmra.mrb[4].mxu1 %v23521_v52 }
 0x73e   :  { %18081 = vmatprep.mubr.f32.mxu1 %v23530_v36  ;;  %19307 = vmatpush3.bf16.msra.mxu1 %v19304_v40  ;;  %v23668_v40 = vld [vmem:[#allocation4 + $0x1e9] sm:$0xff] }
 0x73f   :  { %19309 = vmatprep.subr.bf16.mxu1 %v19308_v55 }
 0x741   :  { %18082 = vmatmul.mubr.f32.gmra.mrb[6].mxu1 %v23533_v3 }
 0x742   :  { %18084 = vmatprep.mubr.f32.mxu1 %v23542_v59  ;;  %19311 = vmatpush3.bf16.msra.mxu1 %v19308_v55  ;;  %v23677_v55 = vld [vmem:[#allocation4 + $0x211] sm:$0xff] }
 0x743   :  { %19313 = vmatprep.subr.bf16.mxu1 %v19312_v21 }
 0x745   :  { %18085 = vmatmul.mubr.f32.gmra.mrb[8].mxu1 %v23545_v30 }
 0x746   :  { %18087 = vmatprep.mubr.f32.mxu1 %v23554_v0  ;;  %19315 = vmatpush3.bf16.msra.mxu1 %v19312_v21  ;;  %v23686_v21 = vld [vmem:[#allocation4 + $0x231] sm:$0xff] }
 0x747   :  { %19317 = vmatprep.subr.bf16.mxu1 %v19316_v22 }
 0x749   :  { %18088 = vmatmul.mubr.f32.gmra.mrb[10].mxu1 %v23557_v20 }
 0x74a   :  { %18090 = vmatprep.mubr.f32.mxu1 %v23566_v32  ;;  %19319 = vmatpush3.bf16.msra.mxu1 %v19316_v22  ;;  %v23695_v22 = vld [vmem:[#allocation4 + $0x259] sm:$0xff] }
 0x74b   :  { %19321 = vmatprep.subr.bf16.mxu1 %v19320_v1 }
 0x74d   :  { %18091 = vmatmul.mubr.f32.gmra.mrb[12].mxu1 %v23569_v13 }
 0x74e   :  { %18093 = vmatprep.mubr.f32.mxu1 %v23578_v10  ;;  %19323 = vmatpush3.bf16.msra.mxu1 %v19320_v1  ;;  %v23704_v1 = vld [vmem:[#allocation4 + $0x279] sm:$0xff] }
 0x74f   :  { %19325 = vmatprep.subr.bf16.mxu1 %v19324_v2  ;;  %25068 = vst [vmem:[#allocation12_spill] sm:$0xff] %v23704_v1 }
 0x751   :  { %18094 = vmatmul.mubr.f32.gmra.mrb[14].mxu1 %v23583_v33 }
 0x752   :  { %18096 = vmatprep.mubr.f32.mxu1 %v23586_v53  ;;  %19327 = vmatpush3.bf16.msra.mxu1 %v19324_v2  ;;  %v25071_v2 = vld [vmem:[#allocation7_spill] sm:$0xff] }
 0x753   :  { %19329 = vmatprep.subr.bf16.mxu1 %v23581_v15 }
 0x755   :  { %18097 = vmatmul.mubr.f32.gmra.mrb[16].mxu1 %v23590_v28 }
 0x756   :  { %18099 = vmatprep.mubr.f32.mxu1 %v23593_v23 }
 0x759   :  { %18100 = vmatmul.mubr.f32.gmra.mrb[18].mxu1 %v23596_v29 }
 0x75a   :  { %18102 = vmatprep.mubr.f32.mxu1 %v23599_v45 }
 0x75d   :  { %18103 = vmatmul.mubr.f32.gmra.mrb[20].mxu1 %v23602_v62 }
 0x75e   :  { %18105 = vmatprep.mubr.f32.mxu1 %v23605_v39 }
 0x761   :  { %18106 = vmatmul.mubr.f32.gmra.mrb[22].mxu1 %v23608_v60 }
 0x762   :  { %18108 = vmatprep.mubr.f32.mxu1 %v23611_v18 }
 0x765   :  { %18109 = vmatmul.mubr.f32.gmra.mrb[24].mxu1 %v23614_v16 }
 0x766   :  { %18111 = vmatprep.mubr.f32.mxu1 %v23617_v54 }
 0x769   :  { %18112 = vmatmul.mubr.f32.gmra.mrb[26].mxu1 %v23620_v57 }
 0x76a   :  { %18114 = vmatprep.mubr.f32.mxu1 %v23623_v58 }
 0x76d   :  { %18115 = vmatmul.mubr.f32.gmra.mrb[28].mxu1 %v23626_v50 }
 0x76e   :  { %18117 = vmatprep.mubr.f32.mxu1 %v23629_v9 }
 0x771   :  { %18118 = vmatmul.mubr.f32.gmra.mrb[30].mxu1 %v23632_v41 }
 0x772   :  { %18120 = vmatprep.mubr.f32.mxu1 %v23635_v38 }
 0x774   :  { %v17899_v42 = vpop.f32.mrb[78].mxu1 }
 0x775   :  { %v8546_v17 = vpop.f32.mrb[79].mxu1  ;;  %18121 = vmatmul.mubr.f32.gmra.mrb[32].mxu1 %v23638_v43  ;;  %v25074_v42 = vld [vmem:[#allocation19_spill] sm:$0xff] }
 0x776   :  { %18123 = vmatprep.mubr.f32.mxu1 %v23641_v47  ;;  %v25075_v17 = vld [vmem:[#allocation22_spill] sm:$0xff] }
 0x778   :  { %v17934_v51 = vpop.f32.mrb[80].mxu1 }
 0x779   :  { %v8926_v61 = vpop.f32.mrb[81].mxu1  ;;  %18124 = vmatmul.mubr.f32.gmra.mrb[90].mxu1 %v23646_v49  ;;  %v25076_v51 = vld [vmem:[#allocation13_spill] sm:$0xff] }
 0x77a   :  { %18126 = vmatprep.mubr.f32.mxu1 %v23644_v37  ;;  %v25077_v61 = vld [vmem:[#allocation15_spill] sm:$0xff] }
 0x77d   :  { %18127 = vmatmul.mubr.f32.gmra.mrb[92].mxu1 %v23650_v7 }
 0x77e   :  { %18129 = vmatprep.mubr.f32.mxu1 %v23652_v11 }
 0x781   :  { %18130 = vmatmul.mubr.f32.gmra.mrb[38].mxu1 %v23656_v56 }
 0x782   :  { %18132 = vmatprep.mubr.f32.mxu1 %v23659_v14 }
 0x785   :  { %18133 = vmatmul.mubr.f32.gmra.mrb[40].mxu1 %v23662_v19 }
 0x786   :  { %18135 = vmatprep.mubr.f32.mxu1 %v23665_v31 }
 0x789   :  { %18136 = vmatmul.mubr.f32.gmra.mrb[42].mxu1 %v23668_v40 }
 0x78a   :  { %18138 = vmatprep.mubr.f32.mxu1 %v23671_v26 }
 0x78d   :  { %18139 = vmatmul.mubr.f32.gmra.mrb[44].mxu1 %v23674_v4 }
 0x78e   :  { %18141 = vmatprep.mubr.f32.mxu1 %v23677_v55 }
 0x791   :  { %18142 = vmatmul.mubr.f32.gmra.mrb[46].mxu1 %v23680_v24 }
 0x792   :  { %18144 = vmatprep.mubr.f32.mxu1 %v23683_v25 }
 0x795   :  { %18145 = vmatmul.mubr.f32.gmra.mrb[48].mxu1 %v23686_v21 }
 0x796   :  { %18147 = vmatprep.mubr.f32.mxu1 %v23689_v6 }
 0x799   :  { %18148 = vmatmul.mubr.f32.gmra.mrb[50].mxu1 %v23692_v44 }
 0x79a   :  { %18150 = vmatprep.mubr.f32.mxu1 %v23695_v22 }
 0x79d   :  { %18151 = vmatmul.mubr.f32.gmra.mrb[52].mxu1 %v23698_v46  ;;  %v25082_v46 = vld [vmem:[#allocation10_spill] sm:$0xff] }
 0x79e   :  { %18153 = vmatprep.mubr.f32.mxu1 %v23701_v35 }
 0x7a1   :  { %18154 = vmatmul.mubr.f32.gmra.mrb[54].mxu1 %v23704_v1  ;;  %v25079_v1 = vld [vmem:[#allocation20_spill] sm:$0xff] }
 0x7a2   :  { %18156 = vmatprep.mubr.f32.mxu1 %v23707_v12  ;;  %v25078_v12 = vld [vmem:[#allocation18_spill] sm:$0xff] }
 0x7a5   :  { %18157 = vmatmul.mubr.f32.gmra.mrb[56].mxu1 %v23710_v34  ;;  %v25080_v34 = vld [vmem:[#allocation8_spill] sm:$0xff] }
 0x7a6   :  { %18159 = vmatprep.mubr.f32.mxu1 %v25071_v2  ;;  %v25081_v2 = vld [vmem:[#allocation21_spill] sm:$0xff] }
 0x7a9   :  { %18160 = vmatmul.mubr.f32.gmra.mrb[58].mxu1 %v23714_v8 }
 0x7aa   :  { %18162 = vmatprep.mubr.f32.mxu1 %v25073_v27  ;;  %v25083_v27 = vld [vmem:[#allocation24_spill] sm:$0xff] }
 0x7ad   :  { %18163 = vmatmul.mubr.f32.gmra.mrb[60].mxu1 %v25074_v42 }
 0x7ae   :  { %18165 = vmatprep.mubr.f32.mxu1 %v25075_v17  ;;  %v14712_v17 = vld [vmem:[%s24725_s1 + $0x810] sm:$0xff] }
 0x7b1   :  { %18166 = vmatmul.mubr.f32.gmra.mrb[62].mxu1 %v25076_v51  ;;  %v25084_v51 = vld [vmem:[#allocation23_spill] sm:$0xff] }
 0x7b2   :  { %18168 = vmatprep.mubr.f32.mxu1 %v25077_v61  ;;  %v14717_v61 = vld [vmem:[%s24725_s1 + $0x838] sm:$0xff] }
 0x7b5   :  { %18169 = vmatmul.mubr.f32.gmra.mrb[64].mxu1 %v25078_v12  ;;  %v14713_v12 = vld [vmem:[%s24725_s1 + $0x818] sm:$0xff] }
 0x7b6   :  { %18171 = vmatprep.mubr.f32.mxu1 %v25079_v1 }
 0x7b9   :  { %18172 = vmatmul.mubr.f32.gmra.mrb[66].mxu1 %v25080_v34  ;;  %v14715_v34 = vld [vmem:[%s24725_s1 + $0x828] sm:$0xff] }
 0x7ba   :  { %18174 = vmatprep.mubr.f32.mxu1 %v25081_v2  ;;  %v14719_v2 = vld [vmem:[%s24725_s1 + $0x848] sm:$0xff] }
 0x7bc   :  { %v17985_v35 = vpop.f32.mrb[82].mxu1 }
 0x7bd   :  { %v9096_v8 = vpop.f32.mrb[83].mxu1  ;;  %18175 = vmatmul.mubr.f32.gmra.mrb[68].mxu1 %v25082_v46  ;;  %v19332_v35 = vpack.c.bf16 %v14713_v12, %v14712_v17  ;;  %v14714_v46 = vld [vmem:[%s24725_s1 + $0x820] sm:$0xff]  ;;  %v14721_v17 = vld [vmem:[%s24725_s1 + $0x858] sm:$0xff] }
 0x7be   :  { %18177 = vmatprep.mubr.f32.mxu1 %v25083_v27  ;;  %v19336_v8 = vpack.c.bf16 %v14715_v34, %v14714_v46  ;;  %v14724_v46 = vld [vmem:[%s24725_s1 + $0x870] sm:$0xff]  ;;  %v14725_v34 = vld [vmem:[%s24725_s1 + $0x878] sm:$0xff] }
 0x7c0   :  { %v17988_v42 = vpop.f32.mrb[84].mxu1 }
 0x7c1   :  { %v9106_v1 = vpop.f32.mrb[85].mxu1  ;;  %18178 = vmatmul.mubr.f32.gmra.mrb[94].mxu1 %v25084_v51  ;;  %v14720_v42 = vld [vmem:[%s24725_s1 + $0x850] sm:$0xff]  ;;  %v14723_v51 = vld [vmem:[%s24725_s1 + $0x868] sm:$0xff] }
 0x7c2   :  { %18212 = vmatprep.mubr.f32.mxu1 %v23498_v63  ;;  %v14716_v63 = vld [vmem:[%s24725_s1 + $0x830] sm:$0xff]  ;;  %v19348_v12 = vpack.c.bf16 %v14721_v17, %v14720_v42  ;;  %v14722_v1 = vld [vmem:[%s24725_s1 + $0x860] sm:$0xff]  ;;  %v25085_v17 = vld [vmem:[#allocation14_spill] sm:$0xff] }
 0x7c5   :  { %18213 = vmatmul.mubr.f32.vlgmr.msra.gmra.mrb[96].mxu1 %v23509_v48  ;;  %v19340_v48 = vpack.c.bf16 %v14717_v61, %v14716_v63  ;;  %v14726_v63 = vld [vmem:[%s24725_s1 + $0x580] sm:$0xff]  ;;  %v14727_v61 = vld [vmem:[%s24725_s1 + $0x588] sm:$0xff] }
 0x7c6   :  { %18215 = vmatprep.mubr.f32.mxu1 %v23518_v5  ;;  %19331 = vmatpush3.bf16.msra.mxu1 %v23581_v15  ;;  %v14718_v15 = vld [vmem:[%s24725_s1 + $0x840] sm:$0xff] }
 0x7c7   :  { %19333 = vmatprep.subr.bf16.mxu1 %v19332_v35  ;;  %v19344_v27 = vpack.c.bf16 %v14719_v2, %v14718_v15 }
 0x7c9   :  { %18216 = vmatmul.mubr.f32.gmra.mrb[2].mxu1 %v23521_v52 }
 0x7ca   :  { %18218 = vmatprep.mubr.f32.mxu1 %v23530_v36  ;;  %19335 = vmatpush3.bf16.msra.mxu1 %v19332_v35  ;;  %v19352_v35 = vpack.c.bf16 %v14723_v51, %v14722_v1  ;;  %v25087_v1 = vld [vmem:[#allocation12_spill] sm:$0xff]  ;;  %v25088_v51 = vld [vmem:[#allocation9_spill] sm:$0xff] }
 0x7cb   :  { %19337 = vmatprep.subr.bf16.mxu1 %v19336_v8 }
 0x7cd   :  { %18219 = vmatmul.mubr.f32.gmra.mrb[4].mxu1 %v23533_v3 }
 0x7ce   :  { %18221 = vmatprep.mubr.f32.mxu1 %v23542_v59  ;;  %19339 = vmatpush3.bf16.msra.mxu1 %v19336_v8  ;;  %v19356_v8 = vpack.c.bf16 %v14725_v34, %v14724_v46  ;;  %v23837_v46 = vld [vmem:[#allocation4 + $0x2a1] sm:$0xff] }
 0x7cf   :  { %19341 = vmatprep.subr.bf16.mxu1 %v19340_v48  ;;  %25090 = vst [vmem:[#allocation6_spill] sm:$0xff] %v23837_v46  ;;  %v25091_v34 = vld [vmem:[#allocation5_spill] sm:$0xff] }
 0x7d1   :  { %18222 = vmatmul.mubr.f32.gmra.mrb[6].mxu1 %v23545_v30 }
 0x7d2   :  { %18224 = vmatprep.mubr.f32.mxu1 %v23554_v0  ;;  %19343 = vmatpush3.bf16.msra.mxu1 %v19340_v48  ;;  %v23793_v48 = vpack.c.bf16 %v14727_v61, %v14726_v63  ;;  %v23844_v63 = vld [vmem:[#allocation4 + $0x2c1] sm:$0xff]  ;;  %v23847_v61 = vld [vmem:[#allocation4 + $0x2d1] sm:$0xff] }
 0x7d3   :  { %19345 = vmatprep.subr.bf16.mxu1 %v19344_v27  ;;  %25093 = vst [vmem:[#allocation26_spill] sm:$0xff] %v23844_v63  ;;  %25094 = vst [vmem:[#allocation7_spill] sm:$0xff] %v23847_v61 }
 0x7d5   :  { %18225 = vmatmul.mubr.f32.gmra.mrb[8].mxu1 %v23557_v20 }
 0x7d6   :  { %18227 = vmatprep.mubr.f32.mxu1 %v23566_v32  ;;  %19347 = vmatpush3.bf16.msra.mxu1 %v19344_v27 }
 0x7d7   :  { %19349 = vmatprep.subr.bf16.mxu1 %v19348_v12 }
 0x7d9   :  { %18228 = vmatmul.mubr.f32.gmra.mrb[10].mxu1 %v23569_v13 }
 0x7da   :  { %18230 = vmatprep.mubr.f32.mxu1 %v23578_v10  ;;  %19351 = vmatpush3.bf16.msra.mxu1 %v19348_v12  ;;  %v25086_v12 = vld [vmem:[#allocation11_spill] sm:$0xff] }
 0x7db   :  { %19353 = vmatprep.subr.bf16.mxu1 %v19352_v35 }
 0x7dd   :  { %18231 = vmatmul.mubr.f32.gmra.mrb[12].mxu1 %v23583_v33 }
 0x7de   :  { %18233 = vmatprep.mubr.f32.mxu1 %v23586_v53  ;;  %19355 = vmatpush3.bf16.msra.mxu1 %v19352_v35  ;;  %v25089_v35 = vld [vmem:[#allocation17_spill] sm:$0xff] }
 0x7df   :  { %19357 = vmatprep.subr.bf16.mxu1 %v19356_v8 }
 0x7e1   :  { %18234 = vmatmul.mubr.f32.gmra.mrb[14].mxu1 %v23590_v28 }
 0x7e2   :  { %18236 = vmatprep.mubr.f32.mxu1 %v23593_v23  ;;  %19359 = vmatpush3.bf16.msra.mxu1 %v19356_v8  ;;  %v23841_v8 = vld [vmem:[#allocation4 + $0x2b9] sm:$0xff] }
 0x7e3   :  { %19361 = vmatprep.subr.bf16.mxu1 %v23793_v48  ;;  %25092 = vst [vmem:[#allocation25_spill] sm:$0xff] %v23841_v8 }
 0x7e5   :  { %18237 = vmatmul.mubr.f32.gmra.mrb[16].mxu1 %v23596_v29 }
 0x7e6   :  { %18239 = vmatprep.mubr.f32.mxu1 %v23599_v45 }
 0x7e9   :  { %18240 = vmatmul.mubr.f32.gmra.mrb[18].mxu1 %v23602_v62 }
 0x7ea   :  { %18242 = vmatprep.mubr.f32.mxu1 %v23605_v39 }
 0x7ed   :  { %18243 = vmatmul.mubr.f32.gmra.mrb[20].mxu1 %v23608_v60 }
 0x7ee   :  { %18245 = vmatprep.mubr.f32.mxu1 %v23611_v18 }
 0x7f1   :  { %18246 = vmatmul.mubr.f32.gmra.mrb[22].mxu1 %v23614_v16 }
 0x7f2   :  { %18248 = vmatprep.mubr.f32.mxu1 %v23617_v54 }
 0x7f5   :  { %18249 = vmatmul.mubr.f32.gmra.mrb[24].mxu1 %v23620_v57 }
 0x7f6   :  { %18251 = vmatprep.mubr.f32.mxu1 %v23623_v58 }
 0x7f9   :  { %18252 = vmatmul.mubr.f32.gmra.mrb[26].mxu1 %v23626_v50 }
 0x7fa   :  { %18254 = vmatprep.mubr.f32.mxu1 %v23629_v9 }
 0x7fd   :  { %18255 = vmatmul.mubr.f32.gmra.mrb[28].mxu1 %v23632_v41 }
 0x7fe   :  { %18257 = vmatprep.mubr.f32.mxu1 %v23635_v38 }
 0x801   :  { %18258 = vmatmul.mubr.f32.gmra.mrb[30].mxu1 %v23638_v43 }
 0x802   :  { %18260 = vmatprep.mubr.f32.mxu1 %v23641_v47 }
 0x804   :  { %v18039_v15 = vpop.f32.mrb[86].mxu1 }
 0x805   :  { %v9276_v2 = vpop.f32.mrb[87].mxu1  ;;  %18261 = vmatmul.mubr.f32.gmra.mrb[32].mxu1 %v23646_v49  ;;  %v23850_v15 = vld [vmem:[#allocation4 + $0x2d9] sm:$0xff] }
 0x806   :  { %18263 = vmatprep.mubr.f32.mxu1 %v23644_v37  ;;  %25095 = vst [vmem:[#allocation16_spill] sm:$0xff] %v23850_v15  ;;  %v23853_v2 = vld [vmem:[#allocation4 + $0x2e9] sm:$0xff] }
 0x807   :  { %25096 = vst [vmem:[#allocation19_spill] sm:$0xff] %v23853_v2 }
 0x808   :  { %v18074_v27 = vpop.f32.mrb[88].mxu1 }
 0x809   :  { %v9800_v42 = vpop.f32.mrb[89].mxu1  ;;  %18264 = vmatmul.mubr.f32.gmra.mrb[98].mxu1 %v23650_v7  ;;  %v23856_v27 = vld [vmem:[#allocation4 + $0x2f1] sm:$0xff] }
 0x80a   :  { %18266 = vmatprep.mubr.f32.mxu1 %v23652_v11  ;;  %25097 = vst [vmem:[#allocation22_spill] sm:$0xff] %v23856_v27  ;;  %v23859_v42 = vld [vmem:[#allocation4 + $0x301] sm:$0xff] }
 0x80b   :  { %25098 = vst [vmem:[#allocation13_spill] sm:$0xff] %v23859_v42 }
 0x80d   :  { %18267 = vmatmul.mubr.f32.gmra.mrb[100].mxu1 %v23656_v56 }
 0x80e   :  { %18269 = vmatprep.mubr.f32.mxu1 %v23659_v14 }
 0x811   :  { %18270 = vmatmul.mubr.f32.gmra.mrb[38].mxu1 %v23662_v19 }
 0x812   :  { %18272 = vmatprep.mubr.f32.mxu1 %v23665_v31 }
 0x815   :  { %18273 = vmatmul.mubr.f32.gmra.mrb[40].mxu1 %v23668_v40 }
 0x816   :  { %18275 = vmatprep.mubr.f32.mxu1 %v23671_v26 }
 0x819   :  { %18276 = vmatmul.mubr.f32.gmra.mrb[42].mxu1 %v23674_v4 }
 0x81a   :  { %18278 = vmatprep.mubr.f32.mxu1 %v23677_v55 }
 0x81d   :  { %18279 = vmatmul.mubr.f32.gmra.mrb[44].mxu1 %v23680_v24 }
 0x81e   :  { %18281 = vmatprep.mubr.f32.mxu1 %v23683_v25 }
 0x821   :  { %18282 = vmatmul.mubr.f32.gmra.mrb[46].mxu1 %v23686_v21 }
 0x822   :  { %18284 = vmatprep.mubr.f32.mxu1 %v23689_v6 }
 0x825   :  { %18285 = vmatmul.mubr.f32.gmra.mrb[48].mxu1 %v23692_v44 }
 0x826   :  { %18287 = vmatprep.mubr.f32.mxu1 %v23695_v22 }
 0x829   :  { %18288 = vmatmul.mubr.f32.gmra.mrb[50].mxu1 %v25085_v17 }
 0x82a   :  { %18290 = vmatprep.mubr.f32.mxu1 %v25086_v12 }
 0x82d   :  { %18291 = vmatmul.mubr.f32.gmra.mrb[52].mxu1 %v25087_v1 }
 0x82e   :  { %18293 = vmatprep.mubr.f32.mxu1 %v25088_v51 }
 0x831   :  { %18294 = vmatmul.mubr.f32.gmra.mrb[54].mxu1 %v25089_v35 }
 0x832   :  { %18296 = vmatprep.mubr.f32.mxu1 %v23837_v46 }
 0x835   :  { %18297 = vmatmul.mubr.f32.gmra.mrb[56].mxu1 %v25091_v34  ;;  %v23876_v34 = vld [vmem:[#allocation4 + $0x339] sm:$0xff] }
 0x836   :  { %18299 = vmatprep.mubr.f32.mxu1 %v23841_v8 }
 0x839   :  { %18300 = vmatmul.mubr.f32.gmra.mrb[58].mxu1 %v23844_v63  ;;  %v23862_v63 = vld [vmem:[#allocation4 + $0x309] sm:$0xff] }
 0x83a   :  { %18302 = vmatprep.mubr.f32.mxu1 %v23847_v61  ;;  %25099 = vst [vmem:[#allocation15_spill] sm:$0xff] %v23862_v63  ;;  %v23865_v61 = vld [vmem:[#allocation4 + $0x319] sm:$0xff] }
 0x83b   :  { %25100 = vst [vmem:[#allocation18_spill] sm:$0xff] %v23865_v61 }
 0x83d   :  { %18303 = vmatmul.mubr.f32.gmra.mrb[60].mxu1 %v23850_v15  ;;  %v23868_v15 = vld [vmem:[#allocation4 + $0x321] sm:$0xff] }
 0x83e   :  { %18305 = vmatprep.mubr.f32.mxu1 %v23853_v2  ;;  %25101 = vst [vmem:[#allocation20_spill] sm:$0xff] %v23868_v15  ;;  %v23871_v2 = vld [vmem:[#allocation4 + $0x331] sm:$0xff] }
 0x83f   :  { %25102 = vst [vmem:[#allocation8_spill] sm:$0xff] %v23871_v2 }
 0x841   :  { %18306 = vmatmul.mubr.f32.gmra.mrb[62].mxu1 %v23856_v27  ;;  %v23874_v27 = vld [vmem:[#allocation4 + $0x349] sm:$0xff] }
 0x842   :  { %18308 = vmatprep.mubr.f32.mxu1 %v23859_v42 }
 0x845   :  { %18309 = vmatmul.mubr.f32.gmra.mrb[64].mxu1 %v23862_v63  ;;  %v23880_v63 = vld [vmem:[#allocation4 + $0x351] sm:$0xff] }
 0x846   :  { %18311 = vmatprep.mubr.f32.mxu1 %v23865_v61 }
 0x849   :  { %18312 = vmatmul.mubr.f32.gmra.mrb[66].mxu1 %v23868_v15  ;;  %v14728_v15 = vld [vmem:[%s24725_s1 + $0x590] sm:$0xff] }
 0x84a   :  { %18314 = vmatprep.mubr.f32.mxu1 %v23871_v2  ;;  %v14729_v2 = vld [vmem:[%s24725_s1 + $0x598] sm:$0xff] }
 0x84c   :  { %v18125_v8 = vpop.f32.mrb[90].mxu1 }
 0x84d   :  { %v9970_v42 = vpop.f32.mrb[91].mxu1  ;;  %18315 = vmatmul.mubr.f32.gmra.mrb[68].mxu1 %v23876_v34  ;;  %v19364_v8 = vpack.c.bf16 %v14729_v2, %v14728_v15  ;;  %v14733_v15 = vld [vmem:[%s24725_s1 + $0x5b8] sm:$0xff] }
 0x84e   :  { %18317 = vmatprep.mubr.f32.mxu1 %v23874_v27  ;;  %v14730_v42 = vld [vmem:[%s24725_s1 + $0x5a0] sm:$0xff]  ;;  %v14737_v2 = vld [vmem:[%s24725_s1 + $0x5d8] sm:$0xff] }
 0x850   :  { %v18128_v61 = vpop.f32.mrb[92].mxu1 }
 0x851   :  { %v9980_v46 = vpop.f32.mrb[93].mxu1  ;;  %18318 = vmatmul.mubr.f32.gmra.mrb[102].mxu1 %v23880_v63  ;;  %v14731_v61 = vld [vmem:[%s24725_s1 + $0x5a8] sm:$0xff] }
 0x852   :  { %18352 = vmatprep.mubr.f32.mxu1 %v23518_v5  ;;  %v19368_v46 = vpack.c.bf16 %v14731_v61, %v14730_v42  ;;  %v14732_v5 = vld [vmem:[%s24725_s1 + $0x5b0] sm:$0xff]  ;;  %v14741_v42 = vld [vmem:[%s24725_s1 + $0x5f8] sm:$0xff]  ;;  %v14743_v61 = vld [vmem:[%s24725_s1 + $0x708] sm:$0xff] }
 0x855   :  { %18353 = vmatmul.mubr.f32.vlgmr.msra.gmra.mrb[104].mxu1 %v23521_v52  ;;  %v19372_v52 = vpack.c.bf16 %v14733_v15, %v14732_v5  ;;  %v14755_v5 = vld [vmem:[%s24725_s1 + $0x768] sm:$0xff] }
 0x856   :  { %18355 = vmatprep.mubr.f32.mxu1 %v23530_v36  ;;  %19363 = vmatpush3.bf16.msra.mxu1 %v23793_v48  ;;  %v14734_v36 = vld [vmem:[%s24725_s1 + $0x5c0] sm:$0xff]  ;;  %v14735_v48 = vld [vmem:[%s24725_s1 + $0x5c8] sm:$0xff] }
 0x857   :  { %19365 = vmatprep.subr.bf16.mxu1 %v19364_v8  ;;  %v24072_v15 = vld [vmem:[#allocation4 + $0x62] sm:$0xff] }
 0x859   :  { %18356 = vmatmul.mubr.f32.gmra.mrb[2].mxu1 %v23533_v3  ;;  %v19376_v3 = vpack.c.bf16 %v14735_v48, %v14734_v36  ;;  %v24075_v36 = vld [vmem:[#allocation4 + $0x6a] sm:$0xff] }
 0x85a   :  { %18358 = vmatprep.mubr.f32.mxu1 %v23542_v59  ;;  %19367 = vmatpush3.bf16.msra.mxu1 %v19364_v8  ;;  %v14736_v59 = vld [vmem:[%s24725_s1 + $0x5d0] sm:$0xff]  ;;  %v14739_v8 = vld [vmem:[%s24725_s1 + $0x5e8] sm:$0xff] }
 0x85b   :  { %19369 = vmatprep.subr.bf16.mxu1 %v19368_v46  ;;  %v14756_v48 = vld [vmem:[%s24725_s1 + $0x770] sm:$0xff] }
 0x85d   :  { %18359 = vmatmul.mubr.f32.gmra.mrb[4].mxu1 %v23545_v30  ;;  %v19380_v30 = vpack.c.bf16 %v14737_v2, %v14736_v59  ;;  %v24084_v59 = vld [vmem:[#allocation4 + $0x7a] sm:$0xff] }
 0x85e   :  { %18361 = vmatprep.mubr.f32.mxu1 %v23554_v0  ;;  %19371 = vmatpush3.bf16.msra.mxu1 %v19368_v46  ;;  %v14738_v0 = vld [vmem:[%s24725_s1 + $0x5e0] sm:$0xff] }
 0x85f   :  { %19373 = vmatprep.subr.bf16.mxu1 %v19372_v52  ;;  %v14754_v46 = vld [vmem:[%s24725_s1 + $0x760] sm:$0xff] }
 0x861   :  { %18362 = vmatmul.mubr.f32.gmra.mrb[6].mxu1 %v23557_v20  ;;  %v19384_v20 = vpack.c.bf16 %v14739_v8, %v14738_v0  ;;  %v14758_v0 = vld [vmem:[%s24725_s1 + $0x880] sm:$0xff]  ;;  %v14759_v8 = vld [vmem:[%s24725_s1 + $0x888] sm:$0xff] }
 0x862   :  { %18364 = vmatprep.mubr.f32.mxu1 %v23566_v32  ;;  %19375 = vmatpush3.bf16.msra.mxu1 %v19372_v52  ;;  %v14740_v32 = vld [vmem:[%s24725_s1 + $0x5f0] sm:$0xff]  ;;  %v19416_v52 = vpack.c.bf16 %v14755_v5, %v14754_v46  ;;  %v24213_v46 = vld [vmem:[#allocation4 + $0x25a] sm:$0xff]  ;;  %v24216_v5 = vld [vmem:[#allocation4 + $0x262] sm:$0xff] }
 0x863   :  { %19377 = vmatprep.subr.bf16.mxu1 %v19376_v3 }
 0x865   :  { %18365 = vmatmul.mubr.f32.gmra.mrb[8].mxu1 %v23569_v13  ;;  %v19388_v13 = vpack.c.bf16 %v14741_v42, %v14740_v32  ;;  %v24099_v32 = vpack.c.bf16 %v14759_v8, %v14758_v0  ;;  %v24101_v42 = vld [vmem:[#allocation4 + $0x9a] sm:$0xff]  ;;  %v24231_v0 = vld [vmem:[#allocation4 + $0x2a2] sm:$0xff]  ;;  %v24234_v8 = vld [vmem:[#allocation4 + $0x2aa] sm:$0xff] }
 0x866   :  { %18367 = vmatprep.mubr.f32.mxu1 %v23578_v10  ;;  %19379 = vmatpush3.bf16.msra.mxu1 %v19376_v3  ;;  %v14742_v10 = vld [vmem:[%s24725_s1 + $0x700] sm:$0xff]  ;;  %v14757_v3 = vld [vmem:[%s24725_s1 + $0x778] sm:$0xff]  ;;  %25120 = vst [vmem:[#allocation14_spill] sm:$0xff] %v24231_v0  ;;  %25121 = vst [vmem:[#allocation11_spill] sm:$0xff] %v24234_v8 }
 0x867   :  { %19381 = vmatprep.subr.bf16.mxu1 %v19380_v30  ;;  %v19420_v2 = vpack.c.bf16 %v14757_v3, %v14756_v48  ;;  %v24222_v48 = vld [vmem:[#allocation4 + $0x27a] sm:$0xff]  ;;  %v24225_v3 = vld [vmem:[#allocation4 + $0x28a] sm:$0xff] }
 0x868   :  { %25117 = vst [vmem:[#allocation10_spill] sm:$0xff] %v24222_v48  ;;  %25118 = vst [vmem:[#allocation24_spill] sm:$0xff] %v24225_v3 }
 0x869   :  { %18368 = vmatmul.mubr.f32.gmra.mrb[10].mxu1 %v23583_v33  ;;  %v23947_v33 = vpack.c.bf16 %v14743_v61, %v14742_v10  ;;  %v24108_v10 = vld [vmem:[#allocation4 + $0xb2] sm:$0xff]  ;;  %v24111_v61 = vld [vmem:[#allocation4 + $0xc2] sm:$0xff] }
 0x86a   :  { %18370 = vmatprep.mubr.f32.mxu1 %v23586_v53  ;;  %19383 = vmatpush3.bf16.msra.mxu1 %v19380_v30  ;;  %v24087_v30 = vld [vmem:[#allocation4 + $0x82] sm:$0xff] }
 0x86b   :  { %19385 = vmatprep.subr.bf16.mxu1 %v19384_v20 }
 0x86d   :  { %18371 = vmatmul.mubr.f32.gmra.mrb[12].mxu1 %v23590_v28 }
 0x86e   :  { %18373 = vmatprep.mubr.f32.mxu1 %v23593_v23  ;;  %19387 = vmatpush3.bf16.msra.mxu1 %v19384_v20  ;;  %v24096_v20 = vld [vmem:[#allocation4 + $0x92] sm:$0xff] }
 0x86f   :  { %19389 = vmatprep.subr.bf16.mxu1 %v19388_v13 }
 0x871   :  { %18374 = vmatmul.mubr.f32.gmra.mrb[14].mxu1 %v23596_v29 }
 0x872   :  { %18376 = vmatprep.mubr.f32.mxu1 %v23599_v45  ;;  %19391 = vmatpush3.bf16.msra.mxu1 %v19388_v13  ;;  %v25103_v45 = vld [vmem:[#allocation6_spill] sm:$0xff] }
 0x873   :  { %19393 = vmatprep.subr.bf16.mxu1 %v23947_v33  ;;  %v24104_v13 = vld [vmem:[#allocation4 + $0xaa] sm:$0xff] }
 0x875   :  { %18377 = vmatmul.mubr.f32.gmra.mrb[16].mxu1 %v23602_v62  ;;  %v25104_v62 = vld [vmem:[#allocation5_spill] sm:$0xff] }
 0x876   :  { %18379 = vmatprep.mubr.f32.mxu1 %v23605_v39  ;;  %v25105_v39 = vld [vmem:[#allocation25_spill] sm:$0xff] }
 0x879   :  { %18380 = vmatmul.mubr.f32.gmra.mrb[18].mxu1 %v23608_v60  ;;  %v25106_v60 = vld [vmem:[#allocation26_spill] sm:$0xff] }
 0x87a   :  { %18382 = vmatprep.mubr.f32.mxu1 %v23611_v18  ;;  %v25107_v18 = vld [vmem:[#allocation7_spill] sm:$0xff] }
 0x87d   :  { %18383 = vmatmul.mubr.f32.gmra.mrb[20].mxu1 %v23614_v16  ;;  %v25108_v16 = vld [vmem:[#allocation16_spill] sm:$0xff] }
 0x87e   :  { %18385 = vmatprep.mubr.f32.mxu1 %v23617_v54  ;;  %v25109_v54 = vld [vmem:[#allocation19_spill] sm:$0xff] }
 0x881   :  { %18386 = vmatmul.mubr.f32.gmra.mrb[22].mxu1 %v23620_v57  ;;  %v25110_v57 = vld [vmem:[#allocation22_spill] sm:$0xff] }
 0x882   :  { %18388 = vmatprep.mubr.f32.mxu1 %v23623_v58  ;;  %v25111_v58 = vld [vmem:[#allocation13_spill] sm:$0xff] }
 0x885   :  { %18389 = vmatmul.mubr.f32.gmra.mrb[24].mxu1 %v23626_v50  ;;  %v25112_v50 = vld [vmem:[#allocation15_spill] sm:$0xff] }
 0x886   :  { %18391 = vmatprep.mubr.f32.mxu1 %v23629_v9  ;;  %v25113_v9 = vld [vmem:[#allocation18_spill] sm:$0xff] }
 0x889   :  { %18392 = vmatmul.mubr.f32.gmra.mrb[26].mxu1 %v23632_v41  ;;  %v25114_v41 = vld [vmem:[#allocation20_spill] sm:$0xff] }
 0x88a   :  { %18394 = vmatprep.mubr.f32.mxu1 %v23635_v38  ;;  %v25115_v38 = vld [vmem:[#allocation8_spill] sm:$0xff] }
 0x88d   :  { %18395 = vmatmul.mubr.f32.gmra.mrb[28].mxu1 %v23638_v43 }
 0x88e   :  { %18397 = vmatprep.mubr.f32.mxu1 %v23641_v47 }
 0x891   :  { %18398 = vmatmul.mubr.f32.gmra.mrb[30].mxu1 %v23646_v49 }
 0x892   :  { %18400 = vmatprep.mubr.f32.mxu1 %v23644_v37  ;;  %v24005_v37 = vld [vmem:[#allocation4] sm:$0xff] }
 0x893   :  { %25116 = vst [vmem:[#allocation21_spill] sm:$0xff] %v24005_v37 }
 0x894   :  { %v18179_v53 = vpop.f32.mrb[94].mxu1 }
 0x895   :  { %v10150_v28 = vpop.f32.mrb[95].mxu1  ;;  %18401 = vmatmul.mubr.f32.gmra.mrb[32].mxu1 %v23650_v7  ;;  %v14744_v7 = vld [vmem:[%s24725_s1 + $0x710] sm:$0xff]  ;;  %v24117_v53 = vld [vmem:[#allocation4 + $0xda] sm:$0xff] }
 0x896   :  { %18403 = vmatprep.mubr.f32.mxu1 %v23652_v11  ;;  %v14745_v11 = vld [vmem:[%s24725_s1 + $0x718] sm:$0xff]  ;;  %v24120_v28 = vld [vmem:[#allocation4 + $0xe2] sm:$0xff] }
 0x898   :  { %v18214_v23 = vpop.f32.mrb[96].mxu1 }
 0x899   :  { %v10530_v29 = vpop.f32.mrb[97].mxu1  ;;  %18404 = vmatmul.mubr.f32.gmra.mrb[106].mxu1 %v23656_v56  ;;  %v24123_v23 = vld [vmem:[#allocation4 + $0xf2] sm:$0xff] }
 0x89a   :  { %18406 = vmatprep.mubr.f32.mxu1 %v23659_v14  ;;  %v24016_v14 = vld [vmem:[#allocation4 + $0x2] sm:$0xff]  ;;  %v24126_v29 = vld [vmem:[#allocation4 + $0xfa] sm:$0xff] }
 0x89d   :  { %18407 = vmatmul.mubr.f32.gmra.mrb[108].mxu1 %v23662_v19  ;;  %v19396_v19 = vpack.c.bf16 %v14745_v11, %v14744_v7  ;;  %v24168_v11 = vld [vmem:[#allocation4 + $0x1a2] sm:$0xff] }
 0x89e   :  { %18409 = vmatprep.mubr.f32.mxu1 %v23665_v31  ;;  %v14746_v31 = vld [vmem:[%s24725_s1 + $0x720] sm:$0xff] }
 0x8a1   :  { %18410 = vmatmul.mubr.f32.gmra.mrb[38].mxu1 %v23668_v40  ;;  %v14747_v40 = vld [vmem:[%s24725_s1 + $0x728] sm:$0xff] }
 0x8a2   :  { %18412 = vmatprep.mubr.f32.mxu1 %v23671_v26  ;;  %v24027_v26 = vld [vmem:[#allocation4 + $0xa] sm:$0xff] }
 0x8a5   :  { %18413 = vmatmul.mubr.f32.gmra.mrb[40].mxu1 %v23674_v4  ;;  %v19400_v4 = vpack.c.bf16 %v14747_v40, %v14746_v31  ;;  %v24177_v31 = vld [vmem:[#allocation4 + $0x1ca] sm:$0xff]  ;;  %v24180_v40 = vld [vmem:[#allocation4 + $0x1d2] sm:$0xff] }
 0x8a6   :  { %18415 = vmatprep.mubr.f32.mxu1 %v23677_v55  ;;  %v14748_v55 = vld [vmem:[%s24725_s1 + $0x730] sm:$0xff] }
 0x8a9   :  { %18416 = vmatmul.mubr.f32.gmra.mrb[42].mxu1 %v23680_v24  ;;  %v14749_v24 = vld [vmem:[%s24725_s1 + $0x738] sm:$0xff] }
 0x8aa   :  { %18418 = vmatprep.mubr.f32.mxu1 %v23683_v25  ;;  %v24036_v25 = vld [vmem:[#allocation4 + $0x1a] sm:$0xff] }
 0x8ad   :  { %18419 = vmatmul.mubr.f32.gmra.mrb[44].mxu1 %v23686_v21  ;;  %v19404_v21 = vpack.c.bf16 %v14749_v24, %v14748_v55  ;;  %v24186_v55 = vld [vmem:[#allocation4 + $0x1ea] sm:$0xff]  ;;  %v24189_v24 = vld [vmem:[#allocation4 + $0x1fa] sm:$0xff] }
 0x8ae   :  { %18421 = vmatprep.mubr.f32.mxu1 %v23689_v6  ;;  %v24039_v6 = vld [vmem:[#allocation4 + $0x22] sm:$0xff] }
 0x8b1   :  { %18422 = vmatmul.mubr.f32.gmra.mrb[46].mxu1 %v23692_v44  ;;  %v14750_v44 = vld [vmem:[%s24725_s1 + $0x740] sm:$0xff] }
 0x8b2   :  { %18424 = vmatprep.mubr.f32.mxu1 %v23695_v22  ;;  %v14751_v22 = vld [vmem:[%s24725_s1 + $0x748] sm:$0xff] }
 0x8b5   :  { %18425 = vmatmul.mubr.f32.gmra.mrb[48].mxu1 %v25085_v17  ;;  %v24048_v17 = vld [vmem:[#allocation4 + $0x32] sm:$0xff] }
 0x8b6   :  { %18427 = vmatprep.mubr.f32.mxu1 %v25086_v12  ;;  %v19408_v12 = vpack.c.bf16 %v14751_v22, %v14750_v44  ;;  %v24195_v44 = vld [vmem:[#allocation4 + $0x212] sm:$0xff]  ;;  %v24198_v22 = vld [vmem:[#allocation4 + $0x21a] sm:$0xff] }
 0x8b9   :  { %18428 = vmatmul.mubr.f32.gmra.mrb[50].mxu1 %v25087_v1  ;;  %v24051_v1 = vld [vmem:[#allocation4 + $0x3a] sm:$0xff] }
 0x8ba   :  { %18430 = vmatprep.mubr.f32.mxu1 %v25088_v51  ;;  %v14752_v51 = vld [vmem:[%s24725_s1 + $0x750] sm:$0xff] }
 0x8bd   :  { %18431 = vmatmul.mubr.f32.gmra.mrb[52].mxu1 %v25089_v35  ;;  %v14753_v35 = vld [vmem:[%s24725_s1 + $0x758] sm:$0xff] }
 0x8be   :  { %18433 = vmatprep.mubr.f32.mxu1 %v25103_v45  ;;  %v24129_v45 = vld [vmem:[#allocation4 + $0x10a] sm:$0xff] }
 0x8c1   :  { %18434 = vmatmul.mubr.f32.gmra.mrb[54].mxu1 %v25104_v62  ;;  %v24132_v62 = vld [vmem:[#allocation4 + $0x112] sm:$0xff] }
 0x8c2   :  { %18436 = vmatprep.mubr.f32.mxu1 %v25105_v39  ;;  %v24135_v39 = vld [vmem:[#allocation4 + $0x122] sm:$0xff] }
 0x8c5   :  { %18437 = vmatmul.mubr.f32.gmra.mrb[56].mxu1 %v25106_v60  ;;  %v24138_v60 = vld [vmem:[#allocation4 + $0x12a] sm:$0xff] }
 0x8c6   :  { %18439 = vmatprep.mubr.f32.mxu1 %v25107_v18  ;;  %v24141_v18 = vld [vmem:[#allocation4 + $0x13a] sm:$0xff] }
 0x8c9   :  { %18440 = vmatmul.mubr.f32.gmra.mrb[58].mxu1 %v25108_v16  ;;  %v24144_v16 = vld [vmem:[#allocation4 + $0x142] sm:$0xff] }
 0x8ca   :  { %18442 = vmatprep.mubr.f32.mxu1 %v25109_v54  ;;  %v24147_v54 = vld [vmem:[#allocation4 + $0x152] sm:$0xff] }
 0x8cd   :  { %18443 = vmatmul.mubr.f32.gmra.mrb[60].mxu1 %v25110_v57  ;;  %v24150_v57 = vld [vmem:[#allocation4 + $0x15a] sm:$0xff] }
 0x8ce   :  { %18445 = vmatprep.mubr.f32.mxu1 %v25111_v58  ;;  %v24153_v58 = vld [vmem:[#allocation4 + $0x16a] sm:$0xff] }
 0x8d1   :  { %18446 = vmatmul.mubr.f32.gmra.mrb[62].mxu1 %v25112_v50 }
 0x8d2   :  { %18448 = vmatprep.mubr.f32.mxu1 %v25113_v9  ;;  %v24156_v9 = vld [vmem:[#allocation4 + $0x172] sm:$0xff] }
 0x8d5   :  { %18449 = vmatmul.mubr.f32.gmra.mrb[64].mxu1 %v25114_v41 }
 0x8d6   :  { %18451 = vmatprep.mubr.f32.mxu1 %v25115_v38  ;;  %v24159_v38 = vld [vmem:[#allocation4 + $0x182] sm:$0xff] }
 0x8d9   :  { %18452 = vmatmul.mubr.f32.gmra.mrb[66].mxu1 %v23876_v34  ;;  %v24060_v34 = vld [vmem:[#allocation4 + $0x4a] sm:$0xff] }
 0x8da   :  { %18454 = vmatprep.mubr.f32.mxu1 %v23874_v27  ;;  %v24063_v27 = vld [vmem:[#allocation4 + $0x52] sm:$0xff] }
 0x8dc   :  { %v18265_v43 = vpop.f32.mrb[98].mxu1 }
 0x8dd   :  { %v10700_v47 = vpop.f32.mrb[99].mxu1  ;;  %18455 = vmatmul.mubr.f32.gmra.mrb[68].mxu1 %v23880_v63  ;;  %v19412_v63 = vpack.c.bf16 %v14753_v35, %v14752_v51  ;;  %v24162_v43 = vld [vmem:[#allocation4 + $0x19a] sm:$0xff]  ;;  %v24204_v51 = vld [vmem:[#allocation4 + $0x232] sm:$0xff]  ;;  %v24207_v35 = vld [vmem:[#allocation4 + $0x242] sm:$0xff] }
 0x8de   :  { %18457 = vmatprep.mubr.f32.mxu1 %v24005_v37 }
 0x8e0   :  { %v18268_v49 = vpop.f32.mrb[100].mxu1 }
 0x8e1   :  { %v10710_v56 = vpop.f32.mrb[101].mxu1  ;;  %18458 = vmatmul.mubr.f32.gmra.mrb[110].mxu1 %v24005_v37  ;;  %v24164_v49 = vld [vmem:[#allocation4 + $0x18a] sm:$0xff] }
 0x8e2   :  { %18492 = vmatprep.mubr.f32.mxu1 %v24005_v37  ;;  %v24170_v56 = vld [vmem:[#allocation4 + $0x1b2] sm:$0xff] }
 0x8e5   :  { %18493 = vmatmul.mubr.f32.vlgmr.msra.gmra.mrb[112].mxu1 %v24005_v37  ;;  %v24249_v37 = vld [vmem:[#allocation4 + $0x2ea] sm:$0xff] }
 0x8e6   :  { %19395 = vmatpush3.bf16.msra.mxu1 %v23947_v33  ;;  %18495 = vmatprep.mubr.f32.mxu1 %v24016_v14  ;;  %v24114_v33 = vld [vmem:[#allocation4 + $0xca] sm:$0xff]  ;;  %25126 = vst [vmem:[#allocation5_spill] sm:$0xff] %v24249_v37 }
 0x8e7   :  { %19397 = vmatprep.subr.bf16.mxu1 %v19396_v19 }
 0x8e9   :  { %18496 = vmatmul.mubr.f32.gmra.mrb[2].mxu1 %v24027_v26 }
 0x8ea   :  { %18498 = vmatprep.mubr.f32.mxu1 %v24036_v25  ;;  %19399 = vmatpush3.bf16.msra.mxu1 %v19396_v19  ;;  %v24174_v19 = vld [vmem:[#allocation4 + $0x1ba] sm:$0xff] }
 0x8eb   :  { %19401 = vmatprep.subr.bf16.mxu1 %v19400_v4 }
 0x8ed   :  { %18499 = vmatmul.mubr.f32.gmra.mrb[4].mxu1 %v24039_v6 }
 0x8ee   :  { %18501 = vmatprep.mubr.f32.mxu1 %v24048_v17  ;;  %19403 = vmatpush3.bf16.msra.mxu1 %v19400_v4  ;;  %v24183_v4 = vld [vmem:[#allocation4 + $0x1e2] sm:$0xff] }
 0x8ef   :  { %19405 = vmatprep.subr.bf16.mxu1 %v19404_v21 }
 0x8f1   :  { %18502 = vmatmul.mubr.f32.gmra.mrb[6].mxu1 %v24051_v1 }
 0x8f2   :  { %18504 = vmatprep.mubr.f32.mxu1 %v24060_v34  ;;  %19407 = vmatpush3.bf16.msra.mxu1 %v19404_v21  ;;  %v24192_v21 = vld [vmem:[#allocation4 + $0x202] sm:$0xff] }
 0x8f3   :  { %19409 = vmatprep.subr.bf16.mxu1 %v19408_v12 }
 0x8f5   :  { %18505 = vmatmul.mubr.f32.gmra.mrb[8].mxu1 %v24063_v27 }
 0x8f6   :  { %18507 = vmatprep.mubr.f32.mxu1 %v24072_v15  ;;  %19411 = vmatpush3.bf16.msra.mxu1 %v19408_v12  ;;  %v24201_v12 = vld [vmem:[#allocation4 + $0x22a] sm:$0xff] }
 0x8f7   :  { %19413 = vmatprep.subr.bf16.mxu1 %v19412_v63 }
 0x8f9   :  { %18508 = vmatmul.mubr.f32.gmra.mrb[10].mxu1 %v24075_v36 }
 0x8fa   :  { %18510 = vmatprep.mubr.f32.mxu1 %v24084_v59  ;;  %19415 = vmatpush3.bf16.msra.mxu1 %v19412_v63  ;;  %v24210_v63 = vld [vmem:[#allocation4 + $0x24a] sm:$0xff] }
 0x8fb   :  { %19417 = vmatprep.subr.bf16.mxu1 %v19416_v52 }
 0x8fd   :  { %18511 = vmatmul.mubr.f32.gmra.mrb[12].mxu1 %v24087_v30 }
 0x8fe   :  { %18513 = vmatprep.mubr.f32.mxu1 %v24096_v20  ;;  %19419 = vmatpush3.bf16.msra.mxu1 %v19416_v52  ;;  %v24219_v52 = vld [vmem:[#allocation4 + $0x272] sm:$0xff] }
 0x8ff   :  { %19421 = vmatprep.subr.bf16.mxu1 %v19420_v2 }
 0x901   :  { %18514 = vmatmul.mubr.f32.gmra.mrb[14].mxu1 %v24101_v42 }
 0x902   :  { %18516 = vmatprep.mubr.f32.mxu1 %v24104_v13  ;;  %19423 = vmatpush3.bf16.msra.mxu1 %v19420_v2  ;;  %v24228_v2 = vld [vmem:[#allocation4 + $0x292] sm:$0xff] }
 0x903   :  { %19425 = vmatprep.subr.bf16.mxu1 %v24099_v32  ;;  %25119 = vst [vmem:[#allocation23_spill] sm:$0xff] %v24228_v2 }
 0x905   :  { %18517 = vmatmul.mubr.f32.gmra.mrb[16].mxu1 %v24108_v10 }
 0x906   :  { %18519 = vmatprep.mubr.f32.mxu1 %v24111_v61 }
 0x909   :  { %18520 = vmatmul.mubr.f32.gmra.mrb[18].mxu1 %v24114_v33 }
 0x90a   :  { %18522 = vmatprep.mubr.f32.mxu1 %v24117_v53 }
 0x90d   :  { %18523 = vmatmul.mubr.f32.gmra.mrb[20].mxu1 %v24120_v28 }
 0x90e   :  { %18525 = vmatprep.mubr.f32.mxu1 %v24123_v23 }
 0x911   :  { %18526 = vmatmul.mubr.f32.gmra.mrb[22].mxu1 %v24126_v29 }
 0x912   :  { %18528 = vmatprep.mubr.f32.mxu1 %v24129_v45 }
 0x915   :  { %18529 = vmatmul.mubr.f32.gmra.mrb[24].mxu1 %v24132_v62 }
 0x916   :  { %18531 = vmatprep.mubr.f32.mxu1 %v24135_v39 }
 0x919   :  { %18532 = vmatmul.mubr.f32.gmra.mrb[26].mxu1 %v24138_v60 }
 0x91a   :  { %18534 = vmatprep.mubr.f32.mxu1 %v24141_v18 }
 0x91d   :  { %18535 = vmatmul.mubr.f32.gmra.mrb[28].mxu1 %v24144_v16 }
 0x91e   :  { %18537 = vmatprep.mubr.f32.mxu1 %v24147_v54 }
 0x921   :  { %18538 = vmatmul.mubr.f32.gmra.mrb[30].mxu1 %v24150_v57 }
 0x922   :  { %18540 = vmatprep.mubr.f32.mxu1 %v24153_v58 }
 0x924   :  { %v18319_v50 = vpop.f32.mrb[102].mxu1 }
 0x925   :  { %v10880_v41 = vpop.f32.mrb[103].mxu1  ;;  %18541 = vmatmul.mubr.f32.gmra.mrb[32].mxu1 %v24156_v9  ;;  %v24237_v50 = vld [vmem:[#allocation4 + $0x2ba] sm:$0xff] }
 0x926   :  { %18543 = vmatprep.mubr.f32.mxu1 %v24159_v38  ;;  %25122 = vst [vmem:[#allocation12_spill] sm:$0xff] %v24237_v50  ;;  %v24240_v41 = vld [vmem:[#allocation4 + $0x2c2] sm:$0xff] }
 0x927   :  { %25123 = vst [vmem:[#allocation9_spill] sm:$0xff] %v24240_v41 }
 0x928   :  { %v18354_v47 = vpop.f32.mrb[104].mxu1 }
 0x929   :  { %v11260_v7 = vpop.f32.mrb[105].mxu1  ;;  %18544 = vmatmul.mubr.f32.gmra.mrb[114].mxu1 %v24164_v49  ;;  %v24243_v47 = vld [vmem:[#allocation4 + $0x2d2] sm:$0xff] }
 0x92a   :  { %18546 = vmatprep.mubr.f32.mxu1 %v24162_v43  ;;  %25124 = vst [vmem:[#allocation17_spill] sm:$0xff] %v24243_v47  ;;  %v24246_v7 = vld [vmem:[#allocation4 + $0x2da] sm:$0xff] }
 0x92b   :  { %25125 = vst [vmem:[#allocation6_spill] sm:$0xff] %v24246_v7 }
 0x92d   :  { %18547 = vmatmul.mubr.f32.gmra.mrb[116].mxu1 %v24168_v11 }
 0x92e   :  { %18549 = vmatprep.mubr.f32.mxu1 %v24170_v56 }
 0x931   :  { %18550 = vmatmul.mubr.f32.gmra.mrb[38].mxu1 %v24174_v19 }
 0x932   :  { %18552 = vmatprep.mubr.f32.mxu1 %v24177_v31 }
 0x935   :  { %18553 = vmatmul.mubr.f32.gmra.mrb[40].mxu1 %v24180_v40 }
 0x936   :  { %18555 = vmatprep.mubr.f32.mxu1 %v24183_v4 }
 0x939   :  { %18556 = vmatmul.mubr.f32.gmra.mrb[42].mxu1 %v24186_v55 }
 0x93a   :  { %18558 = vmatprep.mubr.f32.mxu1 %v24189_v24 }
 0x93d   :  { %18559 = vmatmul.mubr.f32.gmra.mrb[44].mxu1 %v24192_v21 }
 0x93e   :  { %18561 = vmatprep.mubr.f32.mxu1 %v24195_v44 }
 0x941   :  { %18562 = vmatmul.mubr.f32.gmra.mrb[46].mxu1 %v24198_v22 }
 0x942   :  { %18564 = vmatprep.mubr.f32.mxu1 %v24201_v12 }
 0x945   :  { %18565 = vmatmul.mubr.f32.gmra.mrb[48].mxu1 %v24204_v51 }
 0x946   :  { %18567 = vmatprep.mubr.f32.mxu1 %v24207_v35 }
 0x949   :  { %18568 = vmatmul.mubr.f32.gmra.mrb[50].mxu1 %v24210_v63 }
 0x94a   :  { %18570 = vmatprep.mubr.f32.mxu1 %v24213_v46 }
 0x94d   :  { %18571 = vmatmul.mubr.f32.gmra.mrb[52].mxu1 %v24216_v5 }
 0x94e   :  { %18573 = vmatprep.mubr.f32.mxu1 %v24219_v52 }
 0x951   :  { %18574 = vmatmul.mubr.f32.gmra.mrb[54].mxu1 %v24222_v48 }
 0x952   :  { %18576 = vmatprep.mubr.f32.mxu1 %v24225_v3 }
 0x955   :  { %18577 = vmatmul.mubr.f32.gmra.mrb[56].mxu1 %v24228_v2  ;;  %v24267_v2 = vld [vmem:[#allocation4 + $0x332] sm:$0xff] }
 0x956   :  { %18579 = vmatprep.mubr.f32.mxu1 %v24231_v0  ;;  %v24264_v0 = vld [vmem:[#allocation4 + $0x322] sm:$0xff]  ;;  %25131 = vst [vmem:[#allocation19_spill] sm:$0xff] %v24267_v2 }
 0x959   :  { %18580 = vmatmul.mubr.f32.gmra.mrb[58].mxu1 %v24234_v8  ;;  %v24252_v8 = vld [vmem:[#allocation4 + $0x2f2] sm:$0xff] }
 0x95a   :  { %18582 = vmatprep.mubr.f32.mxu1 %v24237_v50  ;;  %25127 = vst [vmem:[#allocation25_spill] sm:$0xff] %v24252_v8  ;;  %v24255_v50 = vld [vmem:[#allocation4 + $0x302] sm:$0xff] }
 0x95b   :  { %25128 = vst [vmem:[#allocation26_spill] sm:$0xff] %v24255_v50 }
 0x95d   :  { %18583 = vmatmul.mubr.f32.gmra.mrb[60].mxu1 %v24240_v41  ;;  %v24258_v41 = vld [vmem:[#allocation4 + $0x30a] sm:$0xff] }
 0x95e   :  { %18585 = vmatprep.mubr.f32.mxu1 %v24243_v47  ;;  %25129 = vst [vmem:[#allocation7_spill] sm:$0xff] %v24258_v41  ;;  %v24261_v47 = vld [vmem:[#allocation4 + $0x31a] sm:$0xff] }
 0x95f   :  { %25130 = vst [vmem:[#allocation16_spill] sm:$0xff] %v24261_v47 }
 0x961   :  { %18586 = vmatmul.mubr.f32.gmra.mrb[62].mxu1 %v24246_v7 }
 0x962   :  { %18588 = vmatprep.mubr.f32.mxu1 %v24249_v37 }
 0x965   :  { %18589 = vmatmul.mubr.f32.gmra.mrb[64].mxu1 %v24252_v8 }
 0x966   :  { %18591 = vmatprep.mubr.f32.mxu1 %v24255_v50  ;;  %v24270_v50 = vld [vmem:[#allocation4 + $0x33a] sm:$0xff] }
 0x969   :  { %18592 = vmatmul.mubr.f32.gmra.mrb[66].mxu1 %v24258_v41  ;;  %v14760_v41 = vld [vmem:[%s24725_s1 + $0x890] sm:$0xff] }
 0x96a   :  { %18594 = vmatprep.mubr.f32.mxu1 %v24261_v47 }
 0x96c   :  { %v18405_v7 = vpop.f32.mrb[106].mxu1 }
 0x96d   :  { %v11430_v37 = vpop.f32.mrb[107].mxu1  ;;  %18595 = vmatmul.mubr.f32.gmra.mrb[68].mxu1 %v24264_v0  ;;  %v14761_v7 = vld [vmem:[%s24725_s1 + $0x898] sm:$0xff] }
 0x96e   :  { %18597 = vmatprep.mubr.f32.mxu1 %v24267_v2  ;;  %v19428_v37 = vpack.c.bf16 %v14761_v7, %v14760_v41  ;;  %v14763_v2 = vld [vmem:[%s24725_s1 + $0x8a8] sm:$0xff]  ;;  %v14765_v41 = vld [vmem:[%s24725_s1 + $0x8b8] sm:$0xff] }
 0x970   :  { %v18408_v8 = vpop.f32.mrb[108].mxu1 }
 0x971   :  { %v11440_v47 = vpop.f32.mrb[109].mxu1  ;;  %18598 = vmatmul.mubr.f32.gmra.mrb[118].mxu1 %v24270_v50  ;;  %v14762_v8 = vld [vmem:[%s24725_s1 + $0x8a0] sm:$0xff] }
 0x972   :  { %18632 = vmatprep.mubr.f32.mxu1 %v24016_v14  ;;  %v19432_v47 = vpack.c.bf16 %v14763_v2, %v14762_v8  ;;  %v14764_v14 = vld [vmem:[%s24725_s1 + $0x8b0] sm:$0xff]  ;;  %v14767_v2 = vld [vmem:[%s24725_s1 + $0x8c8] sm:$0xff]  ;;  %v14769_v8 = vld [vmem:[%s24725_s1 + $0x8d8] sm:$0xff] }
 0x975   :  { %18633 = vmatmul.mubr.f32.vlgmr.msra.gmra.mrb[120].mxu1 %v24027_v26  ;;  %v19436_v26 = vpack.c.bf16 %v14765_v41, %v14764_v14  ;;  %v14771_v41 = vld [vmem:[%s24725_s1 + $0x8e8] sm:$0xff] }
 0x976   :  { %18635 = vmatprep.mubr.f32.mxu1 %v24036_v25  ;;  %19427 = vmatpush3.bf16.msra.mxu1 %v24099_v32  ;;  %v14766_v32 = vld [vmem:[%s24725_s1 + $0x8c0] sm:$0xff] }
 0x977   :  { %19429 = vmatprep.subr.bf16.mxu1 %v19428_v37  ;;  %v19440_v7 = vpack.c.bf16 %v14767_v2, %v14766_v32  ;;  %v14773_v2 = vld [vmem:[%s24725_s1 + $0x8f8] sm:$0xff] }
 0x979   :  { %18636 = vmatmul.mubr.f32.gmra.mrb[2].mxu1 %v24039_v6 }
 0x97a   :  { %18638 = vmatprep.mubr.f32.mxu1 %v24048_v17  ;;  %19431 = vmatpush3.bf16.msra.mxu1 %v19428_v37  ;;  %v14768_v37 = vld [vmem:[%s24725_s1 + $0x8d0] sm:$0xff] }
 0x97b   :  { %19433 = vmatprep.subr.bf16.mxu1 %v19432_v47  ;;  %v19444_v14 = vpack.c.bf16 %v14769_v8, %v14768_v37 }
 0x97d   :  { %18639 = vmatmul.mubr.f32.gmra.mrb[4].mxu1 %v24051_v1 }
 0x97e   :  { %18641 = vmatprep.mubr.f32.mxu1 %v24060_v34  ;;  %19435 = vmatpush3.bf16.msra.mxu1 %v19432_v47  ;;  %v14770_v47 = vld [vmem:[%s24725_s1 + $0x8e0] sm:$0xff] }
 0x97f   :  { %19437 = vmatprep.subr.bf16.mxu1 %v19436_v26  ;;  %v19448_v32 = vpack.c.bf16 %v14771_v41, %v14770_v47  ;;  %v25132_v41 = vld [vmem:[#allocation23_spill] sm:$0xff] }
 0x981   :  { %18642 = vmatmul.mubr.f32.gmra.mrb[6].mxu1 %v24063_v27 }
 0x982   :  { %18644 = vmatprep.mubr.f32.mxu1 %v24072_v15  ;;  %19439 = vmatpush3.bf16.msra.mxu1 %v19436_v26  ;;  %v14772_v26 = vld [vmem:[%s24725_s1 + $0x8f0] sm:$0xff] }
 0x983   :  { %19441 = vmatprep.subr.bf16.mxu1 %v19440_v7  ;;  %v19452_v37 = vpack.c.bf16 %v14773_v2, %v14772_v26  ;;  %v25134_v26 = vld [vmem:[#allocation11_spill] sm:$0xff]  ;;  %v25135_v2 = vld [vmem:[#allocation12_spill] sm:$0xff] }
 0x985   :  { %18645 = vmatmul.mubr.f32.gmra.mrb[8].mxu1 %v24075_v36 }
 0x986   :  { %18647 = vmatprep.mubr.f32.mxu1 %v24084_v59  ;;  %19443 = vmatpush3.bf16.msra.mxu1 %v19440_v7 }
 0x987   :  { %19445 = vmatprep.subr.bf16.mxu1 %v19444_v14 }
 0x989   :  { %18648 = vmatmul.mubr.f32.gmra.mrb[10].mxu1 %v24087_v30 }
 0x98a   :  { %18650 = vmatprep.mubr.f32.mxu1 %v24096_v20  ;;  %19447 = vmatpush3.bf16.msra.mxu1 %v19444_v14 }
 0x98b   :  { %19449 = vmatprep.subr.bf16.mxu1 %v19448_v32 }
 0x98d   :  { %18651 = vmatmul.mubr.f32.gmra.mrb[12].mxu1 %v24101_v42 }
 0x98e   :  { %18653 = vmatprep.mubr.f32.mxu1 %v24104_v13  ;;  %19451 = vmatpush3.bf16.msra.mxu1 %v19448_v32  ;;  %v25133_v32 = vld [vmem:[#allocation14_spill] sm:$0xff] }
 0x98f   :  { %19453 = vmatprep.subr.bf16.mxu1 %v19452_v37 }
 0x991   :  { %18654 = vmatmul.mubr.f32.gmra.mrb[14].mxu1 %v24108_v10 }
 0x992   :  { %18656 = vmatprep.mubr.f32.mxu1 %v24111_v61  ;;  %19455 = vmatpush3.bf16.msra.mxu1 %v19452_v37  ;;  %v25136_v37 = vld [vmem:[#allocation9_spill] sm:$0xff] }
 0x995   :  { %18657 = vmatmul.mubr.f32.gmra.mrb[16].mxu1 %v24114_v33 }
 0x996   :  { %18659 = vmatprep.mubr.f32.mxu1 %v24117_v53 }
 0x999   :  { %18660 = vmatmul.mubr.f32.gmra.mrb[18].mxu1 %v24120_v28 }
 0x99a   :  { %18662 = vmatprep.mubr.f32.mxu1 %v24123_v23 }
 0x99d   :  { %18663 = vmatmul.mubr.f32.gmra.mrb[20].mxu1 %v24126_v29 }
 0x99e   :  { %18665 = vmatprep.mubr.f32.mxu1 %v24129_v45 }
 0x9a1   :  { %18666 = vmatmul.mubr.f32.gmra.mrb[22].mxu1 %v24132_v62 }
 0x9a2   :  { %18668 = vmatprep.mubr.f32.mxu1 %v24135_v39 }
 0x9a5   :  { %18669 = vmatmul.mubr.f32.gmra.mrb[24].mxu1 %v24138_v60 }
 0x9a6   :  { %18671 = vmatprep.mubr.f32.mxu1 %v24141_v18 }
 0x9a9   :  { %18672 = vmatmul.mubr.f32.gmra.mrb[26].mxu1 %v24144_v16 }
 0x9aa   :  { %18674 = vmatprep.mubr.f32.mxu1 %v24147_v54 }
 0x9ad   :  { %18675 = vmatmul.mubr.f32.gmra.mrb[28].mxu1 %v24150_v57 }
 0x9ae   :  { %18677 = vmatprep.mubr.f32.mxu1 %v24153_v58 }
 0x9b1   :  { %18678 = vmatmul.mubr.f32.gmra.mrb[30].mxu1 %v24156_v9 }
 0x9b2   :  { %18680 = vmatprep.mubr.f32.mxu1 %v24159_v38 }
 0x9b4   :  { %v18459_v7 = vpop.f32.mrb[110].mxu1 }
 0x9b5   :  { %v11610_v8 = vpop.f32.mrb[111].mxu1  ;;  %18681 = vmatmul.mubr.f32.gmra.mrb[32].mxu1 %v24164_v49  ;;  %v25137_v7 = vld [vmem:[#allocation17_spill] sm:$0xff] }
 0x9b6   :  { %18683 = vmatprep.mubr.f32.mxu1 %v24162_v43  ;;  %v25138_v8 = vld [vmem:[#allocation6_spill] sm:$0xff] }
 0x9b8   :  { %v18494_v14 = vpop.f32.mrb[112].mxu1 }
 0x9b9   :  { %v12134_v47 = vpop.f32.mrb[113].mxu1  ;;  %18684 = vmatmul.mubr.f32.gmra.mrb[122].mxu1 %v24168_v11  ;;  %v25139_v14 = vld [vmem:[#allocation5_spill] sm:$0xff] }
 0x9ba   :  { %18686 = vmatprep.mubr.f32.mxu1 %v24170_v56  ;;  %v25140_v47 = vld [vmem:[#allocation25_spill] sm:$0xff] }
 0x9bd   :  { %18687 = vmatmul.mubr.f32.gmra.mrb[124].mxu1 %v24174_v19 }
 0x9be   :  { %18689 = vmatprep.mubr.f32.mxu1 %v24177_v31 }
 0x9c1   :  { %18690 = vmatmul.mubr.f32.gmra.mrb[38].mxu1 %v24180_v40 }
 0x9c2   :  { %18692 = vmatprep.mubr.f32.mxu1 %v24183_v4 }
 0x9c5   :  { %18693 = vmatmul.mubr.f32.gmra.mrb[40].mxu1 %v24186_v55 }
 0x9c6   :  { %18695 = vmatprep.mubr.f32.mxu1 %v24189_v24 }
 0x9c9   :  { %18696 = vmatmul.mubr.f32.gmra.mrb[42].mxu1 %v24192_v21 }
 0x9ca   :  { %18698 = vmatprep.mubr.f32.mxu1 %v24195_v44 }
 0x9cd   :  { %18699 = vmatmul.mubr.f32.gmra.mrb[44].mxu1 %v24198_v22 }
 0x9ce   :  { %18701 = vmatprep.mubr.f32.mxu1 %v24201_v12 }
 0x9d1   :  { %18702 = vmatmul.mubr.f32.gmra.mrb[46].mxu1 %v24204_v51 }
 0x9d2   :  { %18704 = vmatprep.mubr.f32.mxu1 %v24207_v35 }
 0x9d5   :  { %18705 = vmatmul.mubr.f32.gmra.mrb[48].mxu1 %v24210_v63 }
 0x9d6   :  { %18707 = vmatprep.mubr.f32.mxu1 %v24213_v46 }
 0x9d9   :  { %18708 = vmatmul.mubr.f32.gmra.mrb[50].mxu1 %v24216_v5 }
 0x9da   :  { %18710 = vmatprep.mubr.f32.mxu1 %v24219_v52 }
 0x9dd   :  { %18711 = vmatmul.mubr.f32.gmra.mrb[52].mxu1 %v24222_v48  ;;  %v25141_v48 = vld [vmem:[#allocation26_spill] sm:$0xff] }
 0x9de   :  { %18713 = vmatprep.mubr.f32.mxu1 %v24225_v3  ;;  %v25142_v3 = vld [vmem:[#allocation7_spill] sm:$0xff] }
 0x9e1   :  { %18714 = vmatmul.mubr.f32.gmra.mrb[54].mxu1 %v25132_v41  ;;  %v25143_v41 = vld [vmem:[#allocation16_spill] sm:$0xff] }
 0x9e2   :  { %18716 = vmatprep.mubr.f32.mxu1 %v25133_v32 }
 0x9e5   :  { %18717 = vmatmul.mubr.f32.gmra.mrb[56].mxu1 %v25134_v26  ;;  %v25144_v26 = vld [vmem:[#allocation19_spill] sm:$0xff] }
 0x9e6   :  { %18719 = vmatprep.mubr.f32.mxu1 %v25135_v2  ;;  %v24385_v2 = vld [vmem:[#allocation4 + $0x34a] sm:$0xff] }
 0x9e9   :  { %18720 = vmatmul.mubr.f32.gmra.mrb[58].mxu1 %v25136_v37 }
 0x9ea   :  { %18722 = vmatprep.mubr.f32.mxu1 %v25137_v7 }
 0x9ed   :  { %18723 = vmatmul.mubr.f32.gmra.mrb[60].mxu1 %v25138_v8 }
 0x9ee   :  { %18725 = vmatprep.mubr.f32.mxu1 %v25139_v14  ;;  %v24389_v14 = vld [vmem:[#allocation4 + $0x352] sm:$0xff] }
 0x9f1   :  { %18726 = vmatmul.mubr.f32.gmra.mrb[62].mxu1 %v25140_v47 }
 0x9f2   :  { %18728 = vmatprep.mubr.f32.mxu1 %v25141_v48 }
 0x9f5   :  { %18729 = vmatmul.mubr.f32.gmra.mrb[64].mxu1 %v25142_v3 }
 0x9f6   :  { %18731 = vmatprep.mubr.f32.mxu1 %v25143_v41 }
 0x9f9   :  { %18732 = vmatmul.mubr.f32.gmra.mrb[66].mxu1 %v24264_v0 }
 0x9fa   :  { %18734 = vmatprep.mubr.f32.mxu1 %v25144_v26 }
 0x9fc   :  { %v18545_v37 = vpop.f32.mrb[114].mxu1 }
 0x9fd   :  { %v12304_v7 = vpop.f32.mrb[115].mxu1  ;;  %18735 = vmatmul.mubr.f32.gmra.mrb[68].mxu1 %v24270_v50 }
 0x9fe   :  { %18737 = vmatprep.mubr.f32.mxu1 %v24385_v2 }
 0xa00   :  { %v18548_v47 = vpop.f32.mrb[116].mxu1 }
 0xa01   :  { %v12314_v48 = vpop.f32.mrb[117].mxu1  ;;  %18738 = vmatmul.mubr.f32.gmra.mrb[126].mxu1 %v24389_v14 }
 0xa02   :  { %18772 = vmatprep.mubr.f32.mxu1 %v24036_v25 }
 0xa05   :  { %18773 = vmatmul.mubr.f32.vlgmr.msra.gmra.mrb[128].mxu1 %v24039_v6 }
 0xa06   :  { %18775 = vmatprep.mubr.f32.mxu1 %v24048_v17 }
 0xa09   :  { %18776 = vmatmul.mubr.f32.gmra.mrb[2].mxu1 %v24051_v1 }
 0xa0a   :  { %18778 = vmatprep.mubr.f32.mxu1 %v24060_v34  ;;  %v25145_v34 = vld [vmem:[#allocation10_spill] sm:$0xff] }
 0xa0d   :  { %18779 = vmatmul.mubr.f32.gmra.mrb[4].mxu1 %v24063_v27  ;;  %v25146_v27 = vld [vmem:[#allocation24_spill] sm:$0xff] }
 0xa0e   :  { %18781 = vmatprep.mubr.f32.mxu1 %v24072_v15  ;;  %v25147_v15 = vld [vmem:[#allocation23_spill] sm:$0xff] }
 0xa11   :  { %18782 = vmatmul.mubr.f32.gmra.mrb[6].mxu1 %v24075_v36  ;;  %v25148_v36 = vld [vmem:[#allocation11_spill] sm:$0xff] }
 0xa12   :  { %18784 = vmatprep.mubr.f32.mxu1 %v24084_v59  ;;  %v25149_v59 = vld [vmem:[#allocation12_spill] sm:$0xff] }
 0xa15   :  { %18785 = vmatmul.mubr.f32.gmra.mrb[8].mxu1 %v24087_v30  ;;  %v25150_v30 = vld [vmem:[#allocation9_spill] sm:$0xff] }
 0xa16   :  { %18787 = vmatprep.mubr.f32.mxu1 %v24096_v20  ;;  %v25151_v20 = vld [vmem:[#allocation17_spill] sm:$0xff] }
 0xa19   :  { %18788 = vmatmul.mubr.f32.gmra.mrb[10].mxu1 %v24101_v42  ;;  %v25152_v42 = vld [vmem:[#allocation5_spill] sm:$0xff] }
 0xa1a   :  { %18790 = vmatprep.mubr.f32.mxu1 %v24104_v13  ;;  %v25153_v13 = vld [vmem:[#allocation25_spill] sm:$0xff] }
 0xa1d   :  { %18791 = vmatmul.mubr.f32.gmra.mrb[12].mxu1 %v24108_v10  ;;  %v25154_v10 = vld [vmem:[#allocation26_spill] sm:$0xff] }
 0xa1e   :  { %18793 = vmatprep.mubr.f32.mxu1 %v24111_v61 }
 0xa21   :  { %18794 = vmatmul.mubr.f32.gmra.mrb[14].mxu1 %v24114_v33 }
 0xa22   :  { %18796 = vmatprep.mubr.f32.mxu1 %v24117_v53  ;;  %v25155_v53 = vld [vmem:[#allocation21_spill] sm:$0xff] }
 0xa25   :  { %18797 = vmatmul.mubr.f32.gmra.mrb[16].mxu1 %v24120_v28 }
 0xa26   :  { %18799 = vmatprep.mubr.f32.mxu1 %v24123_v23 }
 0xa29   :  { %18800 = vmatmul.mubr.f32.gmra.mrb[18].mxu1 %v24126_v29 }
 0xa2a   :  { %18802 = vmatprep.mubr.f32.mxu1 %v24129_v45 }
 0xa2d   :  { %18803 = vmatmul.mubr.f32.gmra.mrb[20].mxu1 %v24132_v62 }
 0xa2e   :  { %18805 = vmatprep.mubr.f32.mxu1 %v24135_v39 }
 0xa31   :  { %18806 = vmatmul.mubr.f32.gmra.mrb[22].mxu1 %v24138_v60  ;;  %v24467_v60 = vld [vmem:[%s24727_s2 + $0x1] ss:$0 sm:$0xff] }
 0xa32   :  { %18808 = vmatprep.mubr.f32.mxu1 %v24141_v18 }
 0xa35   :  { %18809 = vmatmul.mubr.f32.gmra.mrb[24].mxu1 %v24144_v16 }
 0xa36   :  { %18811 = vmatprep.mubr.f32.mxu1 %v24147_v54 }
 0xa39   :  { %18812 = vmatmul.mubr.f32.gmra.mrb[26].mxu1 %v24150_v57 }
 0xa3a   :  { %18814 = vmatprep.mubr.f32.mxu1 %v24153_v58 }
 0xa3d   :  { %18815 = vmatmul.mubr.f32.gmra.mrb[28].mxu1 %v24156_v9 }
 0xa3e   :  { %18817 = vmatprep.mubr.f32.mxu1 %v24159_v38 }
 0xa41   :  { %18818 = vmatmul.mubr.f32.gmra.mrb[30].mxu1 %v24164_v49 }
 0xa42   :  { %18820 = vmatprep.mubr.f32.mxu1 %v24162_v43 }
 0xa44   :  { %v18599_v25 = vpop.f32.mrb[118].mxu1 }
 0xa45   :  { %v12484_v6 = vpop.f32.mrb[119].mxu1  ;;  %18821 = vmatmul.mubr.f32.gmra.mrb[32].mxu1 %v24168_v11 }
 0xa46   :  { %18823 = vmatprep.mubr.f32.mxu1 %v24170_v56 }
 0xa48   :  { %v18634_v17 = vpop.f32.mrb[120].mxu1 }
 0xa49   :  { %v12864_v1 = vpop.f32.mrb[121].mxu1  ;;  %18824 = vmatmul.mubr.f32.gmra.mrb[130].mxu1 %v24174_v19 }
 0xa4a   :  { %18826 = vmatprep.mubr.f32.mxu1 %v24177_v31 }
 0xa4d   :  { %18827 = vmatmul.mubr.f32.gmra.mrb[132].mxu1 %v24180_v40 }
 0xa4e   :  { %18829 = vmatprep.mubr.f32.mxu1 %v24183_v4 }
 0xa51   :  { %18830 = vmatmul.mubr.f32.gmra.mrb[38].mxu1 %v24186_v55 }
 0xa52   :  { %18832 = vmatprep.mubr.f32.mxu1 %v24189_v24 }
 0xa55   :  { %18833 = vmatmul.mubr.f32.gmra.mrb[40].mxu1 %v24192_v21 }
 0xa56   :  { %18835 = vmatprep.mubr.f32.mxu1 %v24195_v44 }
 0xa59   :  { %18836 = vmatmul.mubr.f32.gmra.mrb[42].mxu1 %v24198_v22 }
 0xa5a   :  { %18838 = vmatprep.mubr.f32.mxu1 %v24201_v12 }
 0xa5d   :  { %18839 = vmatmul.mubr.f32.gmra.mrb[44].mxu1 %v24204_v51 }
 0xa5e   :  { %18841 = vmatprep.mubr.f32.mxu1 %v24207_v35 }
 0xa61   :  { %18842 = vmatmul.mubr.f32.gmra.mrb[46].mxu1 %v24210_v63 }
 0xa62   :  { %18844 = vmatprep.mubr.f32.mxu1 %v24213_v46 }
 0xa65   :  { %18845 = vmatmul.mubr.f32.gmra.mrb[48].mxu1 %v24216_v5 }
 0xa66   :  { %18847 = vmatprep.mubr.f32.mxu1 %v24219_v52 }
 0xa69   :  { %18848 = vmatmul.mubr.f32.gmra.mrb[50].mxu1 %v25145_v34 }
 0xa6a   :  { %18850 = vmatprep.mubr.f32.mxu1 %v25146_v27 }
 0xa6d   :  { %18851 = vmatmul.mubr.f32.gmra.mrb[52].mxu1 %v25147_v15 }
 0xa6e   :  { %18853 = vmatprep.mubr.f32.mxu1 %v25133_v32 }
 0xa71   :  { %18854 = vmatmul.mubr.f32.gmra.mrb[54].mxu1 %v25148_v36 }
 0xa72   :  { %18856 = vmatprep.mubr.f32.mxu1 %v25149_v59 }
 0xa75   :  { %18857 = vmatmul.mubr.f32.gmra.mrb[56].mxu1 %v25150_v30 }
 0xa76   :  { %18859 = vmatprep.mubr.f32.mxu1 %v25151_v20 }
 0xa79   :  { %18860 = vmatmul.mubr.f32.gmra.mrb[58].mxu1 %v25138_v8 }
 0xa7a   :  { %18862 = vmatprep.mubr.f32.mxu1 %v25152_v42 }
 0xa7d   :  { %18863 = vmatmul.mubr.f32.gmra.mrb[60].mxu1 %v25153_v13 }
 0xa7e   :  { %18865 = vmatprep.mubr.f32.mxu1 %v25154_v10 }
 0xa81   :  { %18866 = vmatmul.mubr.f32.gmra.mrb[62].mxu1 %v25142_v3 }
 0xa82   :  { %18868 = vmatprep.mubr.f32.mxu1 %v25143_v41 }
 0xa85   :  { %18869 = vmatmul.mubr.f32.gmra.mrb[64].mxu1 %v24264_v0 }
 0xa86   :  { %18871 = vmatprep.mubr.f32.mxu1 %v25144_v26 }
 0xa89   :  { %18872 = vmatmul.mubr.f32.gmra.mrb[66].mxu1 %v24270_v50 }
 0xa8a   :  { %18874 = vmatprep.mubr.f32.mxu1 %v24385_v2 }
 0xa8c   :  { %v18685_v61 = vpop.f32.mrb[122].mxu1 }
 0xa8d   :  { %v13034_v33 = vpop.f32.mrb[123].mxu1  ;;  %18875 = vmatmul.mubr.f32.gmra.mrb[68].mxu1 %v24389_v14 }
 0xa8e   :  { %18877 = vmatprep.mubr.f32.mxu1 %v25155_v53 }
 0xa90   :  { %v18688_v28 = vpop.f32.mrb[124].mxu1 }
 0xa91   :  { %v13044_v23 = vpop.f32.mrb[125].mxu1  ;;  %18878 = vmatmul.mubr.f32.gmra.mrb[134].mxu1 %v25155_v53 }
 0xad4   :  { %v18739_v29 = vpop.f32.mrb[126].mxu1 }
 0xad5   :  { %v13214_v45 = vpop.f32.mrb[127].mxu1 }
 0xad8   :  { %v18774_v62 = vpop.f32.mrb[128].mxu1 }
 0xad9   :  { %v13594_v39 = vpop.f32.mrb[129].mxu1 }
 0xadc   :  { %v18777_v18 = vpop.f32.mrb[2].mxu1 }
 0xadd   :  { %v14242_v16 = vadd.f32 %v18777_v18, %v24467_v60  ;;  %v13604_v54 = vpop.f32.mrb[3].mxu1 }
 0xade   :  { %v14241_v57 = vadd.f32 %v24467_v60, %v13604_v54 }
 0xadf   :  { %v14306_v58 = vmul.f32 0.2, %v14242_v16 }
 0xae0   :  { %v14305_v9 = vmul.f32 0.2, %v14241_v57  ;;  %v18780_v38 = vpop.f32.mrb[4].mxu1 }
 0xae1   :  { %v14370_v43 = vmax.f32 %v14242_v16, %v14306_v58  ;;  %v14244_v49 = vadd.f32 %v18780_v38, %v24467_v60  ;;  %v13614_v11 = vpop.f32.mrb[5].mxu1 }
 0xae2   :  { %v14369_v56 = vmax.f32 %v14241_v57, %v14305_v9  ;;  %v14243_v19 = vadd.f32 %v24467_v60, %v13614_v11 }
 0xae3   :  { %14434 = vst [vmem:[%s24728_s3 + $0x8] sm:$0xff] %v14370_v43  ;;  %v14308_v31 = vmul.f32 0.2, %v14244_v49 }
 0xae4   :  { %14433 = vst [vmem:[%s24728_s3] sm:$0xff] %v14369_v56  ;;  %v14307_v40 = vmul.f32 0.2, %v14243_v19  ;;  %v18783_v4 = vpop.f32.mrb[6].mxu1 }
 0xae5   :  { %v14372_v55 = vmax.f32 %v14244_v49, %v14308_v31  ;;  %v14246_v24 = vadd.f32 %v18783_v4, %v24467_v60  ;;  %v13624_v21 = vpop.f32.mrb[7].mxu1 }
 0xae6   :  { %v14371_v44 = vmax.f32 %v14243_v19, %v14307_v40  ;;  %v14245_v22 = vadd.f32 %v24467_v60, %v13624_v21 }
 0xae7   :  { %14436 = vst [vmem:[%s24728_s3 + $0x18] sm:$0xff] %v14372_v55  ;;  %v14310_v12 = vmul.f32 0.2, %v14246_v24 }
 0xae8   :  { %14435 = vst [vmem:[%s24728_s3 + $0x10] sm:$0xff] %v14371_v44  ;;  %v14309_v51 = vmul.f32 0.2, %v14245_v22  ;;  %v18786_v35 = vpop.f32.mrb[8].mxu1 }
 0xae9   :  { %v14374_v63 = vmax.f32 %v14246_v24, %v14310_v12  ;;  %v14248_v46 = vadd.f32 %v18786_v35, %v24467_v60  ;;  %v13634_v5 = vpop.f32.mrb[9].mxu1 }
 0xaea   :  { %v14373_v52 = vmax.f32 %v14245_v22, %v14309_v51  ;;  %v14247_v48 = vadd.f32 %v24467_v60, %v13634_v5 }
 0xaeb   :  { %14438 = vst [vmem:[%s24728_s3 + $0x28] sm:$0xff] %v14374_v63  ;;  %v14312_v3 = vmul.f32 0.2, %v14248_v46 }
 0xaec   :  { %14437 = vst [vmem:[%s24728_s3 + $0x20] sm:$0xff] %v14373_v52  ;;  %v14311_v0 = vmul.f32 0.2, %v14247_v48  ;;  %v18789_v50 = vpop.f32.mrb[10].mxu1 }
 0xaed   :  { %v14376_v41 = vmax.f32 %v14248_v46, %v14312_v3  ;;  %v14250_v32 = vadd.f32 %v18789_v50, %v24467_v60  ;;  %v13644_v26 = vpop.f32.mrb[11].mxu1 }
 0xaee   :  { %v14375_v2 = vmax.f32 %v14247_v48, %v14311_v0  ;;  %v14249_v37 = vadd.f32 %v24467_v60, %v13644_v26 }
 0xaef   :  { %14440 = vst [vmem:[%s24728_s3 + $0x38] sm:$0xff] %v14376_v41  ;;  %v14314_v7 = vmul.f32 0.2, %v14250_v32 }
 0xaf0   :  { %14439 = vst [vmem:[%s24728_s3 + $0x30] sm:$0xff] %v14375_v2  ;;  %v14313_v8 = vmul.f32 0.2, %v14249_v37  ;;  %v18792_v14 = vpop.f32.mrb[12].mxu1 }
 0xaf1   :  { %v14378_v47 = vmax.f32 %v14250_v32, %v14314_v7  ;;  %v14252_v25 = vadd.f32 %v18792_v14, %v24467_v60  ;;  %v13654_v6 = vpop.f32.mrb[13].mxu1 }
 0xaf2   :  { %v14377_v17 = vmax.f32 %v14249_v37, %v14313_v8  ;;  %v14251_v1 = vadd.f32 %v24467_v60, %v13654_v6 }
 0xaf3   :  { %14442 = vst [vmem:[%s24728_s3 + $0x48] sm:$0xff] %v14378_v47  ;;  %v14316_v34 = vmul.f32 0.2, %v14252_v25 }
 0xaf4   :  { %14441 = vst [vmem:[%s24728_s3 + $0x40] sm:$0xff] %v14377_v17  ;;  %v14315_v27 = vmul.f32 0.2, %v14251_v1  ;;  %v18795_v15 = vpop.f32.mrb[14].mxu1 }
 0xaf5   :  { %v14380_v36 = vmax.f32 %v14252_v25, %v14316_v34  ;;  %v14254_v59 = vadd.f32 %v18795_v15, %v24467_v60  ;;  %v13664_v30 = vpop.f32.mrb[15].mxu1 }
 0xaf6   :  { %v14379_v20 = vmax.f32 %v14251_v1, %v14315_v27  ;;  %v14253_v42 = vadd.f32 %v24467_v60, %v13664_v30 }
 0xaf7   :  { %14444 = vst [vmem:[%s24728_s3 + $0x58] sm:$0xff] %v14380_v36  ;;  %v14318_v13 = vmul.f32 0.2, %v14254_v59 }
 0xaf8   :  { %14443 = vst [vmem:[%s24728_s3 + $0x50] sm:$0xff] %v14379_v20  ;;  %v14317_v10 = vmul.f32 0.2, %v14253_v42  ;;  %v18798_v61 = vpop.f32.mrb[16].mxu1 }
 0xaf9   :  { %v14382_v33 = vmax.f32 %v14254_v59, %v14318_v13  ;;  %v14256_v53 = vadd.f32 %v18798_v61, %v24467_v60  ;;  %v13674_v28 = vpop.f32.mrb[17].mxu1 }
 0xafa   :  { %v14381_v23 = vmax.f32 %v14253_v42, %v14317_v10  ;;  %v14255_v29 = vadd.f32 %v24467_v60, %v13674_v28 }
 0xafb   :  { %14446 = vst [vmem:[%s24728_s3 + $0x68] sm:$0xff] %v14382_v33  ;;  %v14320_v45 = vmul.f32 0.2, %v14256_v53 }
 0xafc   :  { %14445 = vst [vmem:[%s24728_s3 + $0x60] sm:$0xff] %v14381_v23  ;;  %v14319_v62 = vmul.f32 0.2, %v14255_v29  ;;  %v18801_v39 = vpop.f32.mrb[18].mxu1 }
 0xafd   :  { %v14384_v18 = vmax.f32 %v14256_v53, %v14320_v45  ;;  %v14258_v16 = vadd.f32 %v18801_v39, %v24467_v60  ;;  %v13684_v54 = vpop.f32.mrb[19].mxu1 }
 0xafe   :  { %v14383_v57 = vmax.f32 %v14255_v29, %v14319_v62  ;;  %v14257_v58 = vadd.f32 %v24467_v60, %v13684_v54 }
 0xaff   :  { %14448 = vst [vmem:[%s24728_s3 + $0x78] sm:$0xff] %v14384_v18  ;;  %v14322_v9 = vmul.f32 0.2, %v14258_v16 }
 0xb00   :  { %14447 = vst [vmem:[%s24728_s3 + $0x70] sm:$0xff] %v14383_v57  ;;  %v14321_v38 = vmul.f32 0.2, %v14257_v58  ;;  %v18804_v43 = vpop.f32.mrb[20].mxu1 }
 0xb01   :  { %v14386_v49 = vmax.f32 %v14258_v16, %v14322_v9  ;;  %v14260_v11 = vadd.f32 %v18804_v43, %v24467_v60  ;;  %v13694_v56 = vpop.f32.mrb[21].mxu1 }
 0xb02   :  { %v14385_v19 = vmax.f32 %v14257_v58, %v14321_v38  ;;  %v14259_v31 = vadd.f32 %v24467_v60, %v13694_v56 }
 0xb03   :  { %14450 = vst [vmem:[%s24728_s3 + $0x88] sm:$0xff] %v14386_v49  ;;  %v14324_v40 = vmul.f32 0.2, %v14260_v11 }
 0xb04   :  { %14449 = vst [vmem:[%s24728_s3 + $0x80] sm:$0xff] %v14385_v19  ;;  %v14323_v4 = vmul.f32 0.2, %v14259_v31  ;;  %v18807_v55 = vpop.f32.mrb[22].mxu1 }
 0xb05   :  { %v14388_v24 = vmax.f32 %v14260_v11, %v14324_v40  ;;  %v14262_v21 = vadd.f32 %v18807_v55, %v24467_v60  ;;  %v13704_v44 = vpop.f32.mrb[23].mxu1 }
 0xb06   :  { %v14387_v22 = vmax.f32 %v14259_v31, %v14323_v4  ;;  %v14261_v12 = vadd.f32 %v24467_v60, %v13704_v44 }
 0xb07   :  { %14452 = vst [vmem:[%s24728_s3 + $0x98] sm:$0xff] %v14388_v24  ;;  %v14326_v51 = vmul.f32 0.2, %v14262_v21 }
 0xb08   :  { %14451 = vst [vmem:[%s24728_s3 + $0x90] sm:$0xff] %v14387_v22  ;;  %v14325_v35 = vmul.f32 0.2, %v14261_v12  ;;  %v18810_v63 = vpop.f32.mrb[24].mxu1 }
 0xb09   :  { %v14390_v46 = vmax.f32 %v14262_v21, %v14326_v51  ;;  %v14264_v5 = vadd.f32 %v18810_v63, %v24467_v60  ;;  %v13714_v52 = vpop.f32.mrb[25].mxu1 }
 0xb0a   :  { %v14389_v48 = vmax.f32 %v14261_v12, %v14325_v35  ;;  %v14263_v3 = vadd.f32 %v24467_v60, %v13714_v52 }
 0xb0b   :  { %14454 = vst [vmem:[%s24728_s3 + $0xa8] sm:$0xff] %v14390_v46  ;;  %v14328_v0 = vmul.f32 0.2, %v14264_v5 }
 0xb0c   :  { %14453 = vst [vmem:[%s24728_s3 + $0xa0] sm:$0xff] %v14389_v48  ;;  %v14327_v50 = vmul.f32 0.2, %v14263_v3  ;;  %v18813_v41 = vpop.f32.mrb[26].mxu1 }
 0xb0d   :  { %v14392_v32 = vmax.f32 %v14264_v5, %v14328_v0  ;;  %v14266_v26 = vadd.f32 %v18813_v41, %v24467_v60  ;;  %v13724_v2 = vpop.f32.mrb[27].mxu1 }
 0xb0e   :  { %v14391_v37 = vmax.f32 %v14263_v3, %v14327_v50  ;;  %v14265_v7 = vadd.f32 %v24467_v60, %v13724_v2 }
 0xb0f   :  { %14456 = vst [vmem:[%s24728_s3 + $0xb8] sm:$0xff] %v14392_v32  ;;  %v14330_v8 = vmul.f32 0.2, %v14266_v26 }
 0xb10   :  { %14455 = vst [vmem:[%s24728_s3 + $0xb0] sm:$0xff] %v14391_v37  ;;  %v14329_v14 = vmul.f32 0.2, %v14265_v7  ;;  %v18816_v47 = vpop.f32.mrb[28].mxu1 }
 0xb11   :  { %v14394_v25 = vmax.f32 %v14266_v26, %v14330_v8  ;;  %v14268_v6 = vadd.f32 %v18816_v47, %v24467_v60  ;;  %v13734_v17 = vpop.f32.mrb[29].mxu1 }
 0xb12   :  { %v14393_v1 = vmax.f32 %v14265_v7, %v14329_v14  ;;  %v14267_v34 = vadd.f32 %v24467_v60, %v13734_v17 }
 0xb13   :  { %14458 = vst [vmem:[%s24728_s3 + $0xc8] sm:$0xff] %v14394_v25  ;;  %v14332_v27 = vmul.f32 0.2, %v14268_v6 }
 0xb14   :  { %14457 = vst [vmem:[%s24728_s3 + $0xc0] sm:$0xff] %v14393_v1  ;;  %v14331_v15 = vmul.f32 0.2, %v14267_v34  ;;  %v18819_v36 = vpop.f32.mrb[30].mxu1 }
 0xb15   :  { %v14396_v59 = vmax.f32 %v14268_v6, %v14332_v27  ;;  %v14270_v30 = vadd.f32 %v18819_v36, %v24467_v60  ;;  %v13744_v20 = vpop.f32.mrb[31].mxu1 }
 0xb16   :  { %v14395_v42 = vmax.f32 %v14267_v34, %v14331_v15  ;;  %v14269_v13 = vadd.f32 %v24467_v60, %v13744_v20 }
 0xb17   :  { %14460 = vst [vmem:[%s24728_s3 + $0xd8] sm:$0xff] %v14396_v59  ;;  %v14334_v10 = vmul.f32 0.2, %v14270_v30 }
 0xb18   :  { %14459 = vst [vmem:[%s24728_s3 + $0xd0] sm:$0xff] %v14395_v42  ;;  %v14333_v61 = vmul.f32 0.2, %v14269_v13  ;;  %v18822_v33 = vpop.f32.mrb[32].mxu1 }
 0xb19   :  { %v14398_v53 = vmax.f32 %v14270_v30, %v14334_v10  ;;  %v14272_v28 = vadd.f32 %v18822_v33, %v24467_v60  ;;  %v13754_v23 = vpop.f32.mrb[33].mxu1 }
 0xb1a   :  { %v14397_v29 = vmax.f32 %v14269_v13, %v14333_v61  ;;  %v14271_v45 = vadd.f32 %v24467_v60, %v13754_v23 }
 0xb1b   :  { %14462 = vst [vmem:[%s24728_s3 + $0xe8] sm:$0xff] %v14398_v53  ;;  %v14336_v62 = vmul.f32 0.2, %v14272_v28 }
 0xb1c   :  { %14461 = vst [vmem:[%s24728_s3 + $0xe0] sm:$0xff] %v14397_v29  ;;  %v14335_v39 = vmul.f32 0.2, %v14271_v45  ;;  %v18825_v18 = vpop.f32.mrb[130].mxu1 }
 0xb1d   :  { %v14400_v16 = vmax.f32 %v14272_v28, %v14336_v62  ;;  %v13764_v54 = vpop.f32.mrb[131].mxu1 }
 0xb1e   :  { %v14399_v57 = vmax.f32 %v14271_v45, %v14335_v39 }
 0xb1f   :  { %14464 = vst [vmem:[%s24728_s3 + $0xf8] sm:$0xff] %v14400_v16 }
 0xb20   :  { %14463 = vst [vmem:[%s24728_s3 + $0xf0] sm:$0xff] %v14399_v57  ;;  %v18828_v58 = vpop.f32.mrb[132].mxu1 }
 0xb21   :  { %v13774_v9 = vpop.f32.mrb[133].mxu1 }
 0xb24   :  { %v18831_v38 = vpop.f32.mrb[38].mxu1 }
 0xb25   :  { %v14274_v43 = vadd.f32 %v18831_v38, %v24467_v60  ;;  %v13784_v49 = vpop.f32.mrb[39].mxu1 }
 0xb26   :  { %v14273_v11 = vadd.f32 %v24467_v60, %v13784_v49 }
 0xb27   :  { %v14338_v56 = vmul.f32 0.2, %v14274_v43 }
 0xb28   :  { %v14337_v19 = vmul.f32 0.2, %v14273_v11  ;;  %v18834_v31 = vpop.f32.mrb[40].mxu1 }
 0xb29   :  { %v14402_v40 = vmax.f32 %v14274_v43, %v14338_v56  ;;  %v14276_v4 = vadd.f32 %v18834_v31, %v24467_v60  ;;  %v13794_v55 = vpop.f32.mrb[41].mxu1 }
 0xb2a   :  { %v14401_v24 = vmax.f32 %v14273_v11, %v14337_v19  ;;  %v14275_v21 = vadd.f32 %v24467_v60, %v13794_v55 }
 0xb2b   :  { %14466 = vst [vmem:[%s24728_s3 + $0x108] sm:$0xff] %v14402_v40  ;;  %v14340_v44 = vmul.f32 0.2, %v14276_v4 }
 0xb2c   :  { %14465 = vst [vmem:[%s24728_s3 + $0x100] sm:$0xff] %v14401_v24  ;;  %v14339_v22 = vmul.f32 0.2, %v14275_v21  ;;  %v18837_v12 = vpop.f32.mrb[42].mxu1 }
 0xb2d   :  { %v14404_v51 = vmax.f32 %v14276_v4, %v14340_v44  ;;  %v14278_v35 = vadd.f32 %v18837_v12, %v24467_v60  ;;  %v13804_v63 = vpop.f32.mrb[43].mxu1 }
 0xb2e   :  { %v14403_v46 = vmax.f32 %v14275_v21, %v14339_v22  ;;  %v14277_v5 = vadd.f32 %v24467_v60, %v13804_v63 }
 0xb2f   :  { %14468 = vst [vmem:[%s24728_s3 + $0x118] sm:$0xff] %v14404_v51  ;;  %v14342_v52 = vmul.f32 0.2, %v14278_v35 }
 0xb30   :  { %14467 = vst [vmem:[%s24728_s3 + $0x110] sm:$0xff] %v14403_v46  ;;  %v14341_v48 = vmul.f32 0.2, %v14277_v5  ;;  %v18840_v3 = vpop.f32.mrb[44].mxu1 }
 0xb31   :  { %v14406_v0 = vmax.f32 %v14278_v35, %v14342_v52  ;;  %v14280_v50 = vadd.f32 %v18840_v3, %v24467_v60  ;;  %v13814_v41 = vpop.f32.mrb[45].mxu1 }
 0xb32   :  { %v14405_v32 = vmax.f32 %v14277_v5, %v14341_v48  ;;  %v14279_v26 = vadd.f32 %v24467_v60, %v13814_v41 }
 0xb33   :  { %14470 = vst [vmem:[%s24728_s3 + $0x128] sm:$0xff] %v14406_v0  ;;  %v14344_v2 = vmul.f32 0.2, %v14280_v50 }
 0xb34   :  { %14469 = vst [vmem:[%s24728_s3 + $0x120] sm:$0xff] %v14405_v32  ;;  %v14343_v37 = vmul.f32 0.2, %v14279_v26  ;;  %v18843_v7 = vpop.f32.mrb[46].mxu1 }
 0xb35   :  { %v14408_v8 = vmax.f32 %v14280_v50, %v14344_v2  ;;  %v14282_v14 = vadd.f32 %v18843_v7, %v24467_v60  ;;  %v13824_v47 = vpop.f32.mrb[47].mxu1 }
 0xb36   :  { %v14407_v25 = vmax.f32 %v14279_v26, %v14343_v37  ;;  %v14281_v6 = vadd.f32 %v24467_v60, %v13824_v47 }
 0xb37   :  { %14472 = vst [vmem:[%s24728_s3 + $0x138] sm:$0xff] %v14408_v8  ;;  %v14346_v17 = vmul.f32 0.2, %v14282_v14 }
 0xb38   :  { %14471 = vst [vmem:[%s24728_s3 + $0x130] sm:$0xff] %v14407_v25  ;;  %v14345_v1 = vmul.f32 0.2, %v14281_v6  ;;  %v18846_v34 = vpop.f32.mrb[48].mxu1 }
 0xb39   :  { %v14410_v27 = vmax.f32 %v14282_v14, %v14346_v17  ;;  %v14284_v15 = vadd.f32 %v18846_v34, %v24467_v60  ;;  %v13834_v36 = vpop.f32.mrb[49].mxu1 }
 0xb3a   :  { %v14409_v59 = vmax.f32 %v14281_v6, %v14345_v1  ;;  %v14283_v30 = vadd.f32 %v24467_v60, %v13834_v36 }
 0xb3b   :  { %14474 = vst [vmem:[%s24728_s3 + $0x148] sm:$0xff] %v14410_v27  ;;  %v14348_v20 = vmul.f32 0.2, %v14284_v15 }
 0xb3c   :  { %14473 = vst [vmem:[%s24728_s3 + $0x140] sm:$0xff] %v14409_v59  ;;  %v14347_v42 = vmul.f32 0.2, %v14283_v30  ;;  %v18849_v13 = vpop.f32.mrb[50].mxu1 }
 0xb3d   :  { %v14412_v10 = vmax.f32 %v14284_v15, %v14348_v20  ;;  %v14286_v61 = vadd.f32 %v18849_v13, %v24467_v60  ;;  %v13844_v33 = vpop.f32.mrb[51].mxu1 }
 0xb3e   :  { %v14411_v53 = vmax.f32 %v14283_v30, %v14347_v42  ;;  %v14285_v28 = vadd.f32 %v24467_v60, %v13844_v33 }
 0xb3f   :  { %14476 = vst [vmem:[%s24728_s3 + $0x158] sm:$0xff] %v14412_v10  ;;  %v14350_v23 = vmul.f32 0.2, %v14286_v61 }
 0xb40   :  { %14475 = vst [vmem:[%s24728_s3 + $0x150] sm:$0xff] %v14411_v53  ;;  %v14349_v29 = vmul.f32 0.2, %v14285_v28  ;;  %v18852_v45 = vpop.f32.mrb[52].mxu1 }
 0xb41   :  { %v14414_v62 = vmax.f32 %v14286_v61, %v14350_v23  ;;  %v14288_v39 = vadd.f32 %v18852_v45, %v24467_v60  ;;  %v13854_v18 = vpop.f32.mrb[53].mxu1 }
 0xb42   :  { %v14413_v16 = vmax.f32 %v14285_v28, %v14349_v29  ;;  %v14287_v54 = vadd.f32 %v24467_v60, %v13854_v18 }
 0xb43   :  { %14478 = vst [vmem:[%s24728_s3 + $0x168] sm:$0xff] %v14414_v62  ;;  %v14352_v57 = vmul.f32 0.2, %v14288_v39 }
 0xb44   :  { %14477 = vst [vmem:[%s24728_s3 + $0x160] sm:$0xff] %v14413_v16  ;;  %v14351_v58 = vmul.f32 0.2, %v14287_v54  ;;  %v18855_v9 = vpop.f32.mrb[54].mxu1 }
 0xb45   :  { %v14416_v38 = vmax.f32 %v14288_v39, %v14352_v57  ;;  %v14290_v43 = vadd.f32 %v18855_v9, %v24467_v60  ;;  %v13864_v49 = vpop.f32.mrb[55].mxu1 }
 0xb46   :  { %v14415_v11 = vmax.f32 %v14287_v54, %v14351_v58  ;;  %v14289_v56 = vadd.f32 %v24467_v60, %v13864_v49 }
 0xb47   :  { %14480 = vst [vmem:[%s24728_s3 + $0x178] sm:$0xff] %v14416_v38  ;;  %v14354_v19 = vmul.f32 0.2, %v14290_v43 }
 0xb48   :  { %14479 = vst [vmem:[%s24728_s3 + $0x170] sm:$0xff] %v14415_v11  ;;  %v14353_v31 = vmul.f32 0.2, %v14289_v56  ;;  %v18858_v40 = vpop.f32.mrb[56].mxu1 }
 0xb49   :  { %v14418_v4 = vmax.f32 %v14290_v43, %v14354_v19  ;;  %v14292_v55 = vadd.f32 %v18858_v40, %v24467_v60  ;;  %v13874_v24 = vpop.f32.mrb[57].mxu1 }
 0xb4a   :  { %v14417_v21 = vmax.f32 %v14289_v56, %v14353_v31  ;;  %v14291_v44 = vadd.f32 %v24467_v60, %v13874_v24 }
 0xb4b   :  { %14482 = vst [vmem:[%s24728_s3 + $0x188] sm:$0xff] %v14418_v4  ;;  %v14356_v22 = vmul.f32 0.2, %v14292_v55 }
 0xb4c   :  { %14481 = vst [vmem:[%s24728_s3 + $0x180] sm:$0xff] %v14417_v21  ;;  %v14355_v12 = vmul.f32 0.2, %v14291_v44  ;;  %v18861_v51 = vpop.f32.mrb[58].mxu1 }
 0xb4d   :  { %v14420_v35 = vmax.f32 %v14292_v55, %v14356_v22  ;;  %v14294_v63 = vadd.f32 %v18861_v51, %v24467_v60  ;;  %v13884_v46 = vpop.f32.mrb[59].mxu1 }
 0xb4e   :  { %v14419_v5 = vmax.f32 %v14291_v44, %v14355_v12  ;;  %v14293_v52 = vadd.f32 %v24467_v60, %v13884_v46 }
 0xb4f   :  { %14484 = vst [vmem:[%s24728_s3 + $0x198] sm:$0xff] %v14420_v35  ;;  %v14358_v48 = vmul.f32 0.2, %v14294_v63 }
 0xb50   :  { %14483 = vst [vmem:[%s24728_s3 + $0x190] sm:$0xff] %v14419_v5  ;;  %v14357_v3 = vmul.f32 0.2, %v14293_v52  ;;  %v18864_v0 = vpop.f32.mrb[60].mxu1 }
 0xb51   :  { %v14422_v50 = vmax.f32 %v14294_v63, %v14358_v48  ;;  %v14296_v41 = vadd.f32 %v18864_v0, %v24467_v60  ;;  %v13894_v32 = vpop.f32.mrb[61].mxu1 }
 0xb52   :  { %v14421_v26 = vmax.f32 %v14293_v52, %v14357_v3  ;;  %v14295_v2 = vadd.f32 %v24467_v60, %v13894_v32 }
 0xb53   :  { %14486 = vst [vmem:[%s24728_s3 + $0x1a8] sm:$0xff] %v14422_v50  ;;  %v14360_v37 = vmul.f32 0.2, %v14296_v41 }
 0xb54   :  { %14485 = vst [vmem:[%s24728_s3 + $0x1a0] sm:$0xff] %v14421_v26  ;;  %v14359_v7 = vmul.f32 0.2, %v14295_v2  ;;  %v18867_v8 = vpop.f32.mrb[62].mxu1 }
 0xb55   :  { %v14424_v14 = vmax.f32 %v14296_v41, %v14360_v37  ;;  %v14298_v47 = vadd.f32 %v18867_v8, %v24467_v60  ;;  %v13904_v25 = vpop.f32.mrb[63].mxu1 }
 0xb56   :  { %v14423_v6 = vmax.f32 %v14295_v2, %v14359_v7  ;;  %v14297_v17 = vadd.f32 %v24467_v60, %v13904_v25 }
 0xb57   :  { %14488 = vst [vmem:[%s24728_s3 + $0x1b8] sm:$0xff] %v14424_v14  ;;  %v14362_v1 = vmul.f32 0.2, %v14298_v47 }
 0xb58   :  { %14487 = vst [vmem:[%s24728_s3 + $0x1b0] sm:$0xff] %v14423_v6  ;;  %v14361_v34 = vmul.f32 0.2, %v14297_v17  ;;  %v18870_v27 = vpop.f32.mrb[64].mxu1 }
 0xb59   :  { %v14426_v15 = vmax.f32 %v14298_v47, %v14362_v1  ;;  %v14300_v36 = vadd.f32 %v18870_v27, %v24467_v60  ;;  %v13914_v59 = vpop.f32.mrb[65].mxu1 }
 0xb5a   :  { %v14425_v30 = vmax.f32 %v14297_v17, %v14361_v34  ;;  %v14299_v20 = vadd.f32 %v24467_v60, %v13914_v59 }
 0xb5b   :  { %14490 = vst [vmem:[%s24728_s3 + $0x1c8] sm:$0xff] %v14426_v15  ;;  %v14364_v42 = vmul.f32 0.2, %v14300_v36 }
 0xb5c   :  { %14489 = vst [vmem:[%s24728_s3 + $0x1c0] sm:$0xff] %v14425_v30  ;;  %v14363_v13 = vmul.f32 0.2, %v14299_v20  ;;  %v18873_v10 = vpop.f32.mrb[66].mxu1 }
 0xb5d   :  { %v14428_v61 = vmax.f32 %v14300_v36, %v14364_v42  ;;  %v14302_v33 = vadd.f32 %v18873_v10, %v24467_v60  ;;  %v13924_v53 = vpop.f32.mrb[67].mxu1 }
 0xb5e   :  { %v14427_v28 = vmax.f32 %v14299_v20, %v14363_v13  ;;  %v14301_v23 = vadd.f32 %v24467_v60, %v13924_v53 }
 0xb5f   :  { %14492 = vst [vmem:[%s24728_s3 + $0x1d8] sm:$0xff] %v14428_v61  ;;  %v14366_v29 = vmul.f32 0.2, %v14302_v33 }
 0xb60   :  { %14491 = vst [vmem:[%s24728_s3 + $0x1d0] sm:$0xff] %v14427_v28  ;;  %v14365_v45 = vmul.f32 0.2, %v14301_v23  ;;  %v18876_v62 = vpop.f32.mrb[68].mxu1 }
 0xb61   :  { %v14430_v39 = vmax.f32 %v14302_v33, %v14366_v29  ;;  %v14304_v18 = vadd.f32 %v18876_v62, %v24467_v60  ;;  %v13934_v16 = vpop.f32.mrb[69].mxu1 }
 0xb62   :  { %v14429_v54 = vmax.f32 %v14301_v23, %v14365_v45  ;;  %v14303_v57 = vadd.f32 %v24467_v60, %v13934_v16 }
 0xb63   :  { %14494 = vst [vmem:[%s24728_s3 + $0x1e8] sm:$0xff] %v14430_v39  ;;  %v14368_v58 = vmul.f32 0.2, %v14304_v18 }
 0xb64   :  { %14493 = vst [vmem:[%s24728_s3 + $0x1e0] sm:$0xff] %v14429_v54  ;;  %v14367_v9 = vmul.f32 0.2, %v14303_v57  ;;  %v18879_v38 = vpop.f32.mrb[134].mxu1 }
 0xb65   :  { %v14432_v43 = vmax.f32 %v14304_v18, %v14368_v58  ;;  %v13944_v49 = vpop.f32.mrb[135].mxu1 }
 0xb66   :  { %v14431_v11 = vmax.f32 %v14303_v57, %v14367_v9 }
 0xb67   :  { %14496 = vst [vmem:[%s24728_s3 + $0x1f8] sm:$0xff] %v14432_v43 }
 0xb68   :  { %14495 = vst [vmem:[%s24728_s3 + $0x1f0] sm:$0xff] %v14431_v11 }

</bundles_post_ra>
